<compile_context>
chip_gen: v7x
topology: tpu7x:2x2x1
jax: 0.10.0
libtpu: 0.0.40
codegen_flags: <defaults>
</compile_context>

<pallas_src>
import functools

import jax
import jax.numpy as jnp
from jax.experimental import pallas as pl
from jax.experimental.pallas import tpu as pltpu


def _choose_tile(n, pref):
    """Largest candidate tile (multiple of 8) that divides n, else full n."""
    for t in (pref, 1024, 512, 256, 128, 64, 32, 16, 8):
        if t <= n and n % t == 0:
            return t
    return n


@functools.lru_cache(maxsize=None)
def _attn_vmem_limit():
    """min(64 MiB, half of per-core VMEM) - safe on v5e/v6e (128 MiB) and v7x (64 MiB)."""
    try:
        cap = int(pltpu.get_tpu_info().vmem_capacity_bytes)
    except Exception:
        cap = 128 * 1024 * 1024
    return int(min(64 * 1024 * 1024, max(cap // 2, 16 * 1024 * 1024)))


# ---------------------------------------------------------------------------
# Fused multi-layer 1x1-conv kernel (channel-last matmuls, bf16 MXU, f32 acc)
# ---------------------------------------------------------------------------

def _fused_mlp_kernel(*refs, n_in, relus):
    n_layers = len(relus)
    i = n_in
    acc = None
    for xi in range(n_in):
        x = refs[xi][...]
        w = refs[i][...]
        i += 1
        part = jnp.dot(x.astype(jnp.bfloat16), w,
                       preferred_element_type=jnp.float32)
        acc = part if acc is None else acc + part
    y = acc + refs[i][...]
    i += 1
    if relus[0]:
        y = jnp.maximum(y, 0.0)
    for l in range(1, n_layers):
        w = refs[i][...]
        b = refs[i + 1][...]
        i += 2
        y = jnp.dot(y.astype(jnp.bfloat16), w,
                    preferred_element_type=jnp.float32) + b
        if relus[l]:
            y = jnp.maximum(y, 0.0)
    refs[i][...] = y


def fused_mlp(xs, w0_list, b0, tail, relus, tile_n=512):
    """Fused stack of 1x1 convs, tiled over (B, N).

    xs      : list of (B, N, Ci) or (B, 1, Ci) (broadcast over N) f32 arrays;
              the first layer's contraction is split across them (== concat).
    w0_list : list of (Ci, C1) bf16 weight slices, one per input in xs.
    b0      : (C1,) shared f32 bias OR (B, 1, C1) per-batch f32 bias (e.g. a
              precomputed global-feature contribution folded into the bias).
    tail    : list of (w_bf16, b_f32) for layers 1..L-1.
    relus   : tuple of bools (ReLU after each layer), len == 1 + len(tail).
    """
    B = xs[0].shape[0]
    N = max(x.shape[1] for x in xs)
    c_out = tail[-1][0].shape[1] if tail else w0_list[0].shape[1]
    tn = _choose_tile(N, tile_n)

    in_specs = []
    args = []
    for x in xs:
        ci = x.shape[2]
        if x.shape[1] == 1:       # broadcast over the point axis (global feat)
            in_specs.append(pl.BlockSpec((None, 1, ci), lambda b, j: (b, 0, 0)))
        else:
            in_specs.append(pl.BlockSpec((None, tn, ci), lambda b, j: (b, j, 0)))
        args.append(x)
    for w in w0_list:
        in_specs.append(pl.BlockSpec(w.shape, lambda b, j: (0, 0)))
        args.append(w)
    if b0.ndim == 3:                                   # per-batch bias (B,1,C1)
        in_specs.append(pl.BlockSpec((None, 1, b0.shape[2]),
                                     lambda b, j: (b, 0, 0)))
        args.append(b0)
    else:
        in_specs.append(pl.BlockSpec((1, b0.shape[0]), lambda b, j: (0, 0)))
        args.append(b0.reshape(1, -1))
    for w, b in tail:
        in_specs.append(pl.BlockSpec(w.shape, lambda b, j: (0, 0)))
        args.append(w)
        in_specs.append(pl.BlockSpec((1, b.shape[0]), lambda b, j: (0, 0)))
        args.append(b.reshape(1, -1))

    kernel = functools.partial(_fused_mlp_kernel, n_in=len(xs),
                               relus=tuple(relus))
    return pl.pallas_call(
        kernel,
        out_shape=jax.ShapeDtypeStruct((B, N, c_out), jnp.float32),
        grid=(B, N // tn),
        in_specs=in_specs,
        out_specs=pl.BlockSpec((None, tn, c_out), lambda b, j: (b, j, 0)),
        compiler_params=pltpu.CompilerParams(
            dimension_semantics=("parallel", "parallel")),
    )(*args)


# ---------------------------------------------------------------------------
# mlp_1 with the global max fused in as a second (B, 1, C) accumulator output
# ---------------------------------------------------------------------------

def _mlp1_kernel(x_ref, w1_ref, b1_ref, w2_ref, b2_ref, f_ref, g_ref):
    h = jnp.maximum(
        jnp.dot(x_ref[...].astype(jnp.bfloat16), w1_ref[...],
                preferred_element_type=jnp.float32) + b1_ref[...], 0.0)
    y = (jnp.dot(h.astype(jnp.bfloat16), w2_ref[...],
                 preferred_element_type=jnp.float32) + b2_ref[...])
    f_ref[...] = y

    @pl.when(pl.program_id(1) == 0)
    def _():
        g_ref[...] = jnp.full_like(g_ref, -jnp.inf)
    g_ref[...] = jnp.maximum(g_ref[...], jnp.max(y, axis=0, keepdims=True))


def mlp1_with_max(points, p, tile_n=512):
    B, N, _ = points.shape
    C = p['m1_w2'].shape[1]
    tn = _choose_tile(N, tile_n)
    return pl.pallas_call(
        _mlp1_kernel,
        out_shape=(jax.ShapeDtypeStruct((B, N, C), jnp.float32),
                   jax.ShapeDtypeStruct((B, 1, C), jnp.float32)),
        grid=(B, N // tn),
        in_specs=[pl.BlockSpec((None, tn, 3), lambda b, j: (b, j, 0)),
                  pl.BlockSpec(p['m1_w1'].shape, lambda b, j: (0, 0)),
                  pl.BlockSpec((1, p['m1_b1'].shape[0]), lambda b, j: (0, 0)),
                  pl.BlockSpec(p['m1_w2'].shape, lambda b, j: (0, 0)),
                  pl.BlockSpec((1, p['m1_b2'].shape[0]), lambda b, j: (0, 0))],
        out_specs=(pl.BlockSpec((None, tn, C), lambda b, j: (b, j, 0)),
                   pl.BlockSpec((None, 1, C), lambda b, j: (b, 0, 0))),
        compiler_params=pltpu.CompilerParams(
            dimension_semantics=("parallel", "arbitrary")),
    )(points, p['m1_w1'], p['m1_b1'].reshape(1, -1),
      p['m1_w2'], p['m1_b2'].reshape(1, -1))


# ---------------------------------------------------------------------------
# Fused KNN: distances + iterative k-smallest selection, no (B,N,N) in HBM
# ---------------------------------------------------------------------------

def _knn_kernel(pa_ref, pb_ref, bsq_ref, idx_ref, *, k):
    pa = pa_ref[...]                                      # (tn, 3) query rows
    pb = pb_ref[...]                                      # (N, 3)  all keys
    cross = jax.lax.dot_general(pa, pb, (((1,), (1,)), ((), ())),
                                preferred_element_type=jnp.float32)  # (tn, N)
    # ranking metric: |key|^2 - 2 q.k  (row-constant |q|^2 dropped -> same order)
    d = bsq_ref[...] - 2.0 * cross                        # (1,N)+(tn,N) -> (tn,N)
    TN, N = d.shape
    iota = jax.lax.broadcasted_iota(jnp.int32, (TN, N), 1).astype(jnp.float32)
    big = jnp.float32(jnp.inf)
    cols = []
    for _ in range(k):
        mval = jnp.min(d, axis=-1, keepdims=True)                     # (tn, 1)
        sel = jnp.min(jnp.where(d <= mval, iota, float(N)),
                      axis=-1, keepdims=True)             # lowest index of min
        cols.append(sel)
        d = jnp.where(iota == sel, big, d)                # mask out selected
    idx_ref[...] = jnp.concatenate(cols, axis=-1).astype(jnp.int32)


def knn_indices(k, pos, tile_n=128):
    """pos: (B, N, 3) -> (B, N, k) int32 neighbor indices (ascending distance)."""
    B, N, _ = pos.shape
    tn = _choose_tile(N, tile_n)
    key_sq = jnp.sum(pos * pos, axis=-1)[:, None, :]      # (B, 1, N), hoisted
    kernel = functools.partial(_knn_kernel, k=k)
    return pl.pallas_call(
        kernel,
        out_shape=jax.ShapeDtypeStruct((B, N, k), jnp.int32),
        grid=(B, N // tn),
        in_specs=[pl.BlockSpec((None, tn, 3), lambda b, j: (b, j, 0)),
                  pl.BlockSpec((None, N, 3), lambda b, j: (b, 0, 0)),
                  pl.BlockSpec((None, 1, N), lambda b, j: (b, 0, 0))],
        out_specs=pl.BlockSpec((None, tn, k), lambda b, j: (b, j, 0)),
        compiler_params=pltpu.CompilerParams(
            dimension_semantics=("parallel", "parallel")),
    )(pos, pos, key_sq)


# ---------------------------------------------------------------------------
# linear_start + fused K/Q/V projection, three bf16 outputs
# ---------------------------------------------------------------------------

def _kqv_kernel(x_ref, lsw_ref, lsb_ref, kqvw_ref, kqvb_ref,
                k_ref, q_ref, v_ref):
    D = k_ref.shape[-1]
    h = (jnp.dot(x_ref[...].astype(jnp.bfloat16), lsw_ref[...],
                 preferred_element_type=jnp.float32) + lsb_ref[...])
    kqv = (jnp.dot(h.astype(jnp.bfloat16), kqvw_ref[...],
                   preferred_element_type=jnp.float32) + kqvb_ref[...])
    k_ref[...] = kqv[:, :D].astype(jnp.bfloat16)
    q_ref[...] = kqv[:, D:2 * D].astype(jnp.bfloat16)
    v_ref[...] = kqv[:, 2 * D:].astype(jnp.bfloat16)


def kqv_project(x, tp, tile_n=512):
    B, N, C = x.shape
    D = tp['ls_w'].shape[1]
    tn = _choose_tile(N, tile_n)
    return pl.pallas_call(
        _kqv_kernel,
        out_shape=tuple(jax.ShapeDtypeStruct((B, N, D), jnp.bfloat16)
                        for _ in range(3)),
        grid=(B, N // tn),
        in_specs=[pl.BlockSpec((None, tn, C), lambda b, j: (b, j, 0)),
                  pl.BlockSpec(tp['ls_w'].shape, lambda b, j: (0, 0)),
                  pl.BlockSpec((1, D), lambda b, j: (0, 0)),
                  pl.BlockSpec(tp['kqv_w'].shape, lambda b, j: (0, 0)),
                  pl.BlockSpec((1, 3 * D), lambda b, j: (0, 0))],
        out_specs=tuple(pl.BlockSpec((None, tn, D), lambda b, j: (b, j, 0))
                        for _ in range(3)),
        compiler_params=pltpu.CompilerParams(
            dimension_semantics=("parallel", "parallel")),
    )(x, tp['ls_w'], tp['ls_b'].reshape(1, -1),
      tp['kqv_w'], tp['kqv_b'].reshape(1, -1))


# ---------------------------------------------------------------------------
# Attention core: pos-MLP (layer 1 on the VPU) + attn-MLP + softmax +
# aggregation + linear_end + residual, all fused, tiled over N.
# ---------------------------------------------------------------------------

def _attn_kernel(q_ref, kg_ref, v_ref, px_ref, py_ref, pz_ref, xid_ref,
                 pw1_ref, pb1_ref, pw2_ref, pb2_ref,
                 aw1_ref, ab1_ref, aw2_ref, ab2_ref,
                 lw_ref, lb_ref, o_ref):
    TN, K, D = kg_ref.shape
    H = pw1_ref.shape[1]

    q = q_ref[...].astype(jnp.float32)                    # (TN, D)
    kg = kg_ref[...].astype(jnp.float32)                  # (TN, K, D)
    qk_rel = q[:, None, :] - kg                           # (TN, K, D)

    # pos_mlp layer 1 (conv2d 3->H, BN folded) as three VPU multiply-adds.
    w1 = pw1_ref[...]                                     # (3, H) f32
    b1 = pb1_ref[...].reshape(1, 1, H)
    h = (px_ref[...][:, :, None] * w1[0].reshape(1, 1, H)
         + py_ref[...][:, :, None] * w1[1].reshape(1, 1, H)
         + pz_ref[...][:, :, None] * w1[2].reshape(1, 1, H)
         + b1)                                            # (TN, K, H)
    h = jnp.maximum(h, 0.0)
    pos_emb = (jnp.dot(h.reshape(TN * K, H).astype(jnp.bfloat16), pw2_ref[...],
                       preferred_element_type=jnp.float32)
               + pb2_ref[...]).reshape(TN, K, D)

    # attn_mlp: conv2d(D->4D) [BN folded] -> ReLU -> conv2d(4D->D)
    a_in = (qk_rel + pos_emb).reshape(TN * K, D)
    ah = jnp.maximum(
        jnp.dot(a_in.astype(jnp.bfloat16), aw1_ref[...],
                preferred_element_type=jnp.float32) + ab1_ref[...], 0.0)
    attn = (jnp.dot(ah.astype(jnp.bfloat16), aw2_ref[...],
                    preferred_element_type=jnp.float32)
            + ab2_ref[...]).reshape(TN, K, D)

    # softmax over the neighbor axis K (== torch softmax(..., -1))
    m = jnp.max(attn, axis=1, keepdims=True)
    e = jnp.exp(attn - m)
    attn = e * pl.reciprocal(jnp.sum(e, axis=1, keepdims=True), approx=True)

    # agg = einsum('bcij,bcij->bci', attention, value + pos_emb)
    vt = v_ref[...].astype(jnp.float32)[:, None, :] + pos_emb
    agg = jnp.sum(attn * vt, axis=1)                      # (TN, D)

    # linear_end + residual, fused (never hits HBM in between)
    o_ref[...] = (jnp.dot(agg.astype(jnp.bfloat16), lw_ref[...],
                          preferred_element_type=jnp.float32)
                  + lb_ref[...] + xid_ref[...])


def attention_core(query, key_g, value, px, py, pz, x_identity, tp,
                   tile_n=256):
    B, N, K, D = key_g.shape
    C = x_identity.shape[-1]
    H = tp['pm1_w'].shape[1]
    D4 = tp['am1_w'].shape[1]
    tn = _choose_tile(N, tile_n)

    def wspec(shape):
        return pl.BlockSpec(shape, lambda b, j: (0, 0))

    return pl.pallas_call(
        _attn_kernel,
        out_shape=jax.ShapeDtypeStruct((B, N, C), jnp.float32),
        grid=(B, N // tn),
        in_specs=[
            pl.BlockSpec((None, tn, D), lambda b, j: (b, j, 0)),        # query bf16
            pl.BlockSpec((None, tn, K, D), lambda b, j: (b, j, 0, 0)),  # key_g bf16
            pl.BlockSpec((None, tn, D), lambda b, j: (b, j, 0)),        # value bf16
            pl.BlockSpec((None, tn, K), lambda b, j: (b, j, 0)),        # pos_rel x
            pl.BlockSpec((None, tn, K), lambda b, j: (b, j, 0)),        # pos_rel y
            pl.BlockSpec((None, tn, K), lambda b, j: (b, j, 0)),        # pos_rel z
            pl.BlockSpec((None, tn, C), lambda b, j: (b, j, 0)),        # identity
            wspec((3, H)), wspec((1, H)),
            wspec((H, D)), wspec((1, D)),
            wspec((D, D4)), wspec((1, D4)),
            wspec((D4, D)), wspec((1, D)),
            wspec((D, C)), wspec((1, C)),
        ],
        out_specs=pl.BlockSpec((None, tn, C), lambda b, j: (b, j, 0)),
        compiler_params=pltpu.CompilerParams(
            dimension_semantics=("parallel", "parallel"),
            vmem_limit_bytes=_attn_vmem_limit()),
    )(query, key_g, value, px, py, pz, x_identity,
      tp['pm1_w'], tp['pm1_b'].reshape(1, -1),
      tp['pm2_w'], tp['pm2_b'].reshape(1, -1),
      tp['am1_w'], tp['am1_b'].reshape(1, -1),
      tp['am2_w'], tp['am2_b'].reshape(1, -1),
      tp['le_w'], tp['le_b'].reshape(1, -1))


# ---------------------------------------------------------------------------
# Plain-JAX glue: neighbor gather
# ---------------------------------------------------------------------------

def grouping_operation(feat, idx):
    """feat: (B, N, C), idx: (B, N, K) -> (B, N, K, C)  (XLA gather)."""
    return jnp.take_along_axis(feat[:, :, None, :], idx[:, :, :, None], axis=1)


# ---------------------------------------------------------------------------
# Parameter initialization (deterministic, PyTorch-style fan_in uniform)
# ---------------------------------------------------------------------------

def init_conv(key, cin, cout):
    k1, k2 = jax.random.split(key)
    bound = 1.0 / jnp.sqrt(jnp.float32(cin))
    w = jax.random.uniform(k1, (cin, cout), jnp.float32, -bound, bound)
    b = jax.random.uniform(k2, (cout,), jnp.float32, -bound, bound)
    return w, b


def init_bn(key, c):
    k1, k2 = jax.random.split(key)
    gamma = 1.0 + 0.1 * jax.random.normal(k1, (c,), jnp.float32)
    beta = 0.1 * jax.random.normal(k2, (c,), jnp.float32)
    return gamma, beta


def fold_bn(w, b, gamma, beta, eps=1e-5):
    # eval-mode BN with running_mean=0, running_var=1 folded into the conv
    scale = gamma / jnp.sqrt(1.0 + eps)
    return w * scale[None, :], b * scale + beta


def _bf(x):
    return x.astype(jnp.bfloat16)


def transformer_params(key, in_channel, dim, pos_hidden=64, attn_mult=4):
    ks = jax.random.split(key, 11)
    p = {}
    ls_w, ls_b = init_conv(ks[0], in_channel, dim)
    k_w, k_b = init_conv(ks[1], dim, dim)
    q_w, q_b = init_conv(ks[2], dim, dim)
    v_w, v_b = init_conv(ks[3], dim, dim)
    p['ls_w'], p['ls_b'] = _bf(ls_w), ls_b
    p['kqv_w'] = _bf(jnp.concatenate([k_w, q_w, v_w], axis=1))   # fused K|Q|V
    p['kqv_b'] = jnp.concatenate([k_b, q_b, v_b])
    w, b = init_conv(ks[4], 3, pos_hidden)
    g, be = init_bn(ks[5], pos_hidden)
    p['pm1_w'], p['pm1_b'] = fold_bn(w, b, g, be)   # f32, used on the VPU
    pm2_w, pm2_b = init_conv(ks[6], pos_hidden, dim)
    p['pm2_w'], p['pm2_b'] = _bf(pm2_w), pm2_b
    w, b = init_conv(ks[7], dim, dim * attn_mult)
    g, be = init_bn(ks[8], dim * attn_mult)
    am1_w, am1_b = fold_bn(w, b, g, be)
    p['am1_w'], p['am1_b'] = _bf(am1_w), am1_b
    am2_w, am2_b = init_conv(ks[9], dim * attn_mult, dim)
    p['am2_w'], p['am2_b'] = _bf(am2_w), am2_b
    le_w, le_b = init_conv(ks[10], dim, in_channel)
    p['le_w'], p['le_b'] = _bf(le_w), le_b
    return p


def model_params(key, dim_feat=128, hidden_dim=64):
    assert dim_feat == 128, "comp_1/2/3 heads are hard-wired to 128 channels"
    ks = jax.random.split(key, 14)
    p = {}
    w, b = init_conv(ks[0], 3, 64)
    p['m1_w1'], p['m1_b1'] = _bf(w), b
    w, b = init_conv(ks[1], 64, dim_feat)
    p['m1_w2'], p['m1_b2'] = _bf(w), b
    w, b = init_conv(ks[2], dim_feat * 2, dim_feat * 2)
    p['m2_w1f'] = _bf(w[:dim_feat])           # feature_1 part of the concat
    p['m2_w1g'] = _bf(w[dim_feat:])           # global-max part of the concat
    p['m2_b1'] = b
    w, b = init_conv(ks[3], dim_feat * 2, dim_feat)
    p['m2_w2'], p['m2_b2'] = _bf(w), b
    # shared point_transformer (same weights used 3 times, as in PyTorch)
    p['tf'] = transformer_params(ks[4], dim_feat, hidden_dim)
    # comp_1: Conv1d(256,128) BN ReLU
    w, b = init_conv(ks[5], 256, 128)
    g, be = init_bn(ks[6], 128)
    w, b = fold_bn(w, b, g, be)
    p['c1_w1'] = [_bf(w[0:128]), _bf(w[128:256])]
    p['c1_b1'] = b
    # comp_2: Conv1d(384,256) BN ReLU Conv1d(256,128)
    w, b = init_conv(ks[7], 384, 256)
    g, be = init_bn(ks[8], 256)
    w, b = fold_bn(w, b, g, be)
    p['c2_w1'] = [_bf(w[0:128]), _bf(w[128:256]), _bf(w[256:384])]
    p['c2_b1'] = b
    w, b = init_conv(ks[9], 256, 128)
    p['c2_w2'], p['c2_b2'] = _bf(w), b
    # comp_3: Conv1d(512,384) BN ReLU Conv1d(384,256) ReLU Conv1d(256,128)
    w, b = init_conv(ks[10], 512, 384)
    g, be = init_bn(ks[11], 384)
    w, b = fold_bn(w, b, g, be)
    p['c3_w1'] = [_bf(w[i * 128:(i + 1) * 128]) for i in range(4)]
    p['c3_b1'] = b
    w, b = init_conv(ks[12], 384, 256)
    p['c3_w2'], p['c3_b2'] = _bf(w), b
    w, b = init_conv(ks[13], 256, 128)
    p['c3_w3'], p['c3_b3'] = _bf(w), b
    return p


# ---------------------------------------------------------------------------
# Forward passes
# ---------------------------------------------------------------------------

def transformer_forward(tp, x, idx_knn, px, py, pz):
    # fused linear_start + K/Q/V projections (one kernel, bf16 outputs)
    key, query, value = kqv_project(x, tp)
    key_g = grouping_operation(key, idx_knn)     # (B, N, K, D) bf16 (XLA gather)
    # attention + linear_end + residual in one tiled kernel
    return attention_core(query, key_g, value, px, py, pz, x, tp)


def model_forward(p, points, n_knn=16):
    # points: (B, N, 3)   (PyTorch layout (B, 3, N) transposed)
    feature_1, gmax = mlp1_with_max(points, p)                    # fused max
    # feature_2 = cat([feature_1, broadcast(gmax)]):  gmax contribution is
    # precomputed once per batch and folded into the first-layer bias.
    gproj = (jnp.einsum('boc,cd->bod', gmax,
                        p['m2_w1g'].astype(jnp.float32))
             + p['m2_b1'][None, None, :])                         # (B, 1, 256)
    feature_3 = fused_mlp([feature_1], [p['m2_w1f']], gproj,
                          [(p['m2_w2'], p['m2_b2'])], (True, False))

    # KNN / relative positions computed ONCE, reused by all 3 transformer layers
    idx_knn = knn_indices(n_knn, points)                          # (B, N, K)
    pos_g = grouping_operation(points, idx_knn)                   # (B, N, K, 3)
    pos_rel = points[:, :, None, :] - pos_g
    px, py, pz = pos_rel[..., 0], pos_rel[..., 1], pos_rel[..., 2]

    tf = p['tf']
    pf1 = transformer_forward(tf, feature_3, idx_knn, px, py, pz)
    pf1 = fused_mlp([pf1, feature_3], p['c1_w1'], p['c1_b1'], [], (True,))
    pf2 = transformer_forward(tf, pf1, idx_knn, px, py, pz)
    pf2 = fused_mlp([pf2, pf1, feature_3], p['c2_w1'], p['c2_b1'],
                    [(p['c2_w2'], p['c2_b2'])], (True, False))
    pf3 = transformer_forward(tf, pf2, idx_knn, px, py, pz)
    pf3 = fused_mlp([pf3, pf2, pf1, feature_3], p['c3_w1'], p['c3_b1'],
                    [(p['c3_w2'], p['c3_b2']), (p['c3_w3'], p['c3_b3'])],
                    (True, True, False))
    return pf3


# ---------------------------------------------------------------------------

if __name__ == "__main__":
    key = jax.random.PRNGKey(0)
    kp, kx = jax.random.split(key)

    B, N = 2, 16                                 # small point cloud
    dim_feat, hidden_dim, n_knn = 128, 64, 16    # comp_* heads require 128

    params = model_params(kp, dim_feat=dim_feat, hidden_dim=hidden_dim)
    points = jax.random.normal(kx, (B, N, 3), jnp.float32)   # channel-last

    forward = jax.jit(functools.partial(model_forward, n_knn=n_knn))
    out = jax.block_until_ready(forward(params, points))
    assert out.shape == (B, N, dim_feat) and out.dtype == jnp.float32
    print("KERNEL_OK")
</pallas_src>

<mosaic_0001>
module attributes {stable_mosaic.version = 11 : i64} {
  func.func @_mlp1_kernel(%arg0: i32, %arg1: i32, %arg2: memref<1x16x3xf32, #tpu.memory_space<vmem>>, %arg3: memref<3x64xbf16, #tpu.memory_space<vmem>>, %arg4: memref<1x64xf32, #tpu.memory_space<vmem>>, %arg5: memref<64x128xbf16, #tpu.memory_space<vmem>>, %arg6: memref<1x128xf32, #tpu.memory_space<vmem>>, %arg7: memref<1x16x128xf32, #tpu.memory_space<vmem>>, %arg8: memref<1x1x128xf32, #tpu.memory_space<vmem>>) attributes {dimension_semantics = [#tpu.dimension_semantics<parallel>, #tpu.dimension_semantics<arbitrary>], iteration_bounds = array<i64: 2, 1>, scalar_prefetch = 0 : i64, scratch_operands = 0 : i64, tpu.core_type = #tpu.core_type<tc>, window_params = [{transform_indices = @transform_0, window_bounds = array<i64: 1, 16, 3>}, {pipeline_mode = #tpu.pipeline_mode<synchronous>, transform_indices = @transform_1, window_bounds = array<i64: 3, 64>}, {pipeline_mode = #tpu.pipeline_mode<synchronous>, transform_indices = @transform_2, window_bounds = array<i64: 1, 64>}, {pipeline_mode = #tpu.pipeline_mode<synchronous>, transform_indices = @transform_3, window_bounds = array<i64: 64, 128>}, {pipeline_mode = #tpu.pipeline_mode<synchronous>, transform_indices = @transform_4, window_bounds = array<i64: 1, 128>}, {transform_indices = @transform_5, window_bounds = array<i64: 1, 16, 128>}, {transform_indices = @transform_6, window_bounds = array<i64: 1, 1, 128>}]} {
    %c0 = arith.constant 0 : index
    %c0_0 = arith.constant 0 : index
    %c0_1 = arith.constant 0 : index
    %0 = vector.load %arg2[%c0, %c0_0, %c0_1] : memref<1x16x3xf32, #tpu.memory_space<vmem>>, vector<1x16x3xf32>
    %1 = vector.shape_cast %0 : vector<1x16x3xf32> to vector<16x3xf32>
    %2 = arith.truncf %1 : vector<16x3xf32> to vector<16x3xbf16>
    %c0_2 = arith.constant 0 : index
    %c0_3 = arith.constant 0 : index
    %3 = vector.load %arg3[%c0_2, %c0_3] : memref<3x64xbf16, #tpu.memory_space<vmem>>, vector<3x64xbf16>
    %cst = arith.constant dense<0.000000e+00> : vector<16x64xf32>
    %4 = tpu.matmul %2, %3, %cst {dimension_numbers = #tpu.dot_dimension_numbers<[1], [0], [0], [1], [0, 0, 1, 1], [], []>} : vector<16x3xbf16>, vector<3x64xbf16>, vector<16x64xf32> -> vector<16x64xf32>
    %c0_4 = arith.constant 0 : index
    %c0_5 = arith.constant 0 : index
    %5 = vector.load %arg4[%c0_4, %c0_5] : memref<1x64xf32, #tpu.memory_space<vmem>>, vector<1x64xf32>
    %6 = vector.broadcast %5 : vector<1x64xf32> to vector<16x64xf32>
    %7 = arith.addf %4, %6 : vector<16x64xf32>
    %cst_6 = arith.constant 0.000000e+00 : f32
    %8 = vector.broadcast %cst_6 : f32 to vector<16x64xf32>
    %9 = arith.maximumf %7, %8 : vector<16x64xf32>
    %10 = arith.truncf %9 : vector<16x64xf32> to vector<16x64xbf16>
    %c0_7 = arith.constant 0 : index
    %c0_8 = arith.constant 0 : index
    %11 = vector.load %arg5[%c0_7, %c0_8] : memref<64x128xbf16, #tpu.memory_space<vmem>>, vector<64x128xbf16>
    %cst_9 = arith.constant dense<0.000000e+00> : vector<16x128xf32>
    %12 = tpu.matmul %10, %11, %cst_9 {dimension_numbers = #tpu.dot_dimension_numbers<[1], [0], [0], [1], [0, 0, 1, 1], [], []>} : vector<16x64xbf16>, vector<64x128xbf16>, vector<16x128xf32> -> vector<16x128xf32>
    %c0_10 = arith.constant 0 : index
    %c0_11 = arith.constant 0 : index
    %13 = vector.load %arg6[%c0_10, %c0_11] : memref<1x128xf32, #tpu.memory_space<vmem>>, vector<1x128xf32>
    %14 = vector.broadcast %13 : vector<1x128xf32> to vector<16x128xf32>
    %15 = arith.addf %12, %14 : vector<16x128xf32>
    %c0_12 = arith.constant 0 : index
    %c0_13 = arith.constant 0 : index
    %c0_14 = arith.constant 0 : index
    %16 = vector.load %arg7[%c0_12, %c0_13, %c0_14] : memref<1x16x128xf32, #tpu.memory_space<vmem>>, vector<1x16x128xf32>
    %17 = vector.shape_cast %16 : vector<1x16x128xf32> to vector<16x128xf32>
    %18 = vector.shape_cast %15 : vector<16x128xf32> to vector<1x16x128xf32>
    tpu.vector_store %arg7[%c0_12, %c0_13, %c0_14], %18 {strides = array<i32>} : memref<1x16x128xf32, #tpu.memory_space<vmem>>, vector<1x16x128xf32>,
    %c0_i32 = arith.constant 0 : i32
    %19 = arith.cmpi eq, %arg1, %c0_i32 : i32
    %20 = arith.extui %19 : i1 to i32
    %c0_i32_15 = arith.constant 0 : i32
    %21 = arith.cmpi ne, %20, %c0_i32_15 : i32
    scf.if %21 {
      %cst_23 = arith.constant 0xFF800000 : f32
      %30 = vector.broadcast %cst_23 : f32 to vector<1x128xf32>
      %c0_24 = arith.constant 0 : index
      %c0_25 = arith.constant 0 : index
      %c0_26 = arith.constant 0 : index
      %31 = vector.load %arg8[%c0_24, %c0_25, %c0_26] : memref<1x1x128xf32, #tpu.memory_space<vmem>>, vector<1x1x128xf32>
      %32 = vector.shape_cast %31 : vector<1x1x128xf32> to vector<1x128xf32>
      %33 = vector.shape_cast %30 : vector<1x128xf32> to vector<1x1x128xf32>
      tpu.vector_store %arg8[%c0_24, %c0_25, %c0_26], %33 {strides = array<i32>} : memref<1x1x128xf32, #tpu.memory_space<vmem>>, vector<1x1x128xf32>,
    } else {
    }
    %c0_16 = arith.constant 0 : index
    %c0_17 = arith.constant 0 : index
    %c0_18 = arith.constant 0 : index
    %22 = vector.load %arg8[%c0_16, %c0_17, %c0_18] : memref<1x1x128xf32, #tpu.memory_space<vmem>>, vector<1x1x128xf32>
    %23 = vector.shape_cast %22 : vector<1x1x128xf32> to vector<1x128xf32>
    %cst_19 = arith.constant dense<0xFF800000> : vector<128xf32>
    %24 = vector.multi_reduction <maximumf>, %15, %cst_19 [0] : vector<16x128xf32> to vector<128xf32>
    %25 = vector.shape_cast %24 : vector<128xf32> to vector<1x128xf32>
    %26 = arith.maximumf %23, %25 : vector<1x128xf32>
    %c0_20 = arith.constant 0 : index
    %c0_21 = arith.constant 0 : index
    %c0_22 = arith.constant 0 : index
    %27 = vector.load %arg8[%c0_20, %c0_21, %c0_22] : memref<1x1x128xf32, #tpu.memory_space<vmem>>, vector<1x1x128xf32>
    %28 = vector.shape_cast %27 : vector<1x1x128xf32> to vector<1x128xf32>
    %29 = vector.shape_cast %26 : vector<1x128xf32> to vector<1x1x128xf32>
    tpu.vector_store %arg8[%c0_20, %c0_21, %c0_22], %29 {strides = array<i32>} : memref<1x1x128xf32, #tpu.memory_space<vmem>>, vector<1x1x128xf32>,
    return
  }
  func.func @transform_0(%arg0: i32, %arg1: i32) -> (i32, i32, i32) {
    %c0_i32 = arith.constant 0 : i32
    %c0_i32_0 = arith.constant 0 : i32
    return %arg0, %arg1, %c0_i32 : i32, i32, i32
  }
  func.func @transform_1(%arg0: i32, %arg1: i32) -> (i32, i32) {
    %c0_i32 = arith.constant 0 : i32
    %c0_i32_0 = arith.constant 0 : i32
    %c0_i32_1 = arith.constant 0 : i32
    return %c0_i32, %c0_i32_0 : i32, i32
  }
  func.func @transform_2(%arg0: i32, %arg1: i32) -> (i32, i32) {
    %c0_i32 = arith.constant 0 : i32
    %c0_i32_0 = arith.constant 0 : i32
    %c0_i32_1 = arith.constant 0 : i32
    return %c0_i32, %c0_i32_0 : i32, i32
  }
  func.func @transform_3(%arg0: i32, %arg1: i32) -> (i32, i32) {
    %c0_i32 = arith.constant 0 : i32
    %c0_i32_0 = arith.constant 0 : i32
    %c0_i32_1 = arith.constant 0 : i32
    return %c0_i32, %c0_i32_0 : i32, i32
  }
  func.func @transform_4(%arg0: i32, %arg1: i32) -> (i32, i32) {
    %c0_i32 = arith.constant 0 : i32
    %c0_i32_0 = arith.constant 0 : i32
    %c0_i32_1 = arith.constant 0 : i32
    return %c0_i32, %c0_i32_0 : i32, i32
  }
  func.func @transform_5(%arg0: i32, %arg1: i32) -> (i32, i32, i32) {
    %c0_i32 = arith.constant 0 : i32
    %c0_i32_0 = arith.constant 0 : i32
    return %arg0, %arg1, %c0_i32 : i32, i32, i32
  }
  func.func @transform_6(%arg0: i32, %arg1: i32) -> (i32, i32, i32) {
    %c0_i32 = arith.constant 0 : i32
    %c0_i32_0 = arith.constant 0 : i32
    %c0_i32_1 = arith.constant 0 : i32
    return %arg0, %c0_i32, %c0_i32_0 : i32, i32, i32
  }
}

module attributes {stable_mosaic.version = 11 : i64} {
  func.func @_fused_mlp_kernel(%arg0: i32, %arg1: i32, %arg2: memref<1x16x128xf32, #tpu.memory_space<vmem>>, %arg3: memref<128x256xbf16, #tpu.memory_space<vmem>>, %arg4: memref<1x1x256xf32, #tpu.memory_space<vmem>>, %arg5: memref<256x128xbf16, #tpu.memory_space<vmem>>, %arg6: memref<1x128xf32, #tpu.memory_space<vmem>>, %arg7: memref<1x16x128xf32, #tpu.memory_space<vmem>>) attributes {dimension_semantics = [#tpu.dimension_semantics<parallel>, #tpu.dimension_semantics<parallel>], iteration_bounds = array<i64: 2, 1>, scalar_prefetch = 0 : i64, scratch_operands = 0 : i64, tpu.core_type = #tpu.core_type<tc>, window_params = [{transform_indices = @transform_0, window_bounds = array<i64: 1, 16, 128>}, {pipeline_mode = #tpu.pipeline_mode<synchronous>, transform_indices = @transform_1, window_bounds = array<i64: 128, 256>}, {transform_indices = @transform_2, window_bounds = array<i64: 1, 1, 256>}, {pipeline_mode = #tpu.pipeline_mode<synchronous>, transform_indices = @transform_3, window_bounds = array<i64: 256, 128>}, {pipeline_mode = #tpu.pipeline_mode<synchronous>, transform_indices = @transform_4, window_bounds = array<i64: 1, 128>}, {transform_indices = @transform_5, window_bounds = array<i64: 1, 16, 128>}]} {
    %c0 = arith.constant 0 : index
    %c0_0 = arith.constant 0 : index
    %c0_1 = arith.constant 0 : index
    %0 = vector.load %arg2[%c0, %c0_0, %c0_1] : memref<1x16x128xf32, #tpu.memory_space<vmem>>, vector<1x16x128xf32>
    %1 = vector.shape_cast %0 : vector<1x16x128xf32> to vector<16x128xf32>
    %c0_2 = arith.constant 0 : index
    %c0_3 = arith.constant 0 : index
    %2 = vector.load %arg3[%c0_2, %c0_3] : memref<128x256xbf16, #tpu.memory_space<vmem>>, vector<128x256xbf16>
    %3 = arith.truncf %1 : vector<16x128xf32> to vector<16x128xbf16>
    %cst = arith.constant dense<0.000000e+00> : vector<16x256xf32>
    %4 = tpu.matmul %3, %2, %cst {dimension_numbers = #tpu.dot_dimension_numbers<[1], [0], [0], [1], [0, 0, 1, 1], [], []>} : vector<16x128xbf16>, vector<128x256xbf16>, vector<16x256xf32> -> vector<16x256xf32>
    %c0_4 = arith.constant 0 : index
    %c0_5 = arith.constant 0 : index
    %c0_6 = arith.constant 0 : index
    %5 = vector.load %arg4[%c0_4, %c0_5, %c0_6] : memref<1x1x256xf32, #tpu.memory_space<vmem>>, vector<1x1x256xf32>
    %6 = vector.shape_cast %5 : vector<1x1x256xf32> to vector<1x256xf32>
    %7 = vector.broadcast %6 : vector<1x256xf32> to vector<16x256xf32>
    %8 = arith.addf %4, %7 : vector<16x256xf32>
    %cst_7 = arith.constant 0.000000e+00 : f32
    %9 = vector.broadcast %cst_7 : f32 to vector<16x256xf32>
    %10 = arith.maximumf %8, %9 : vector<16x256xf32>
    %c0_8 = arith.constant 0 : index
    %c0_9 = arith.constant 0 : index
    %11 = vector.load %arg5[%c0_8, %c0_9] : memref<256x128xbf16, #tpu.memory_space<vmem>>, vector<256x128xbf16>
    %c0_10 = arith.constant 0 : index
    %c0_11 = arith.constant 0 : index
    %12 = vector.load %arg6[%c0_10, %c0_11] : memref<1x128xf32, #tpu.memory_space<vmem>>, vector<1x128xf32>
    %13 = arith.truncf %10 : vector<16x256xf32> to vector<16x256xbf16>
    %cst_12 = arith.constant dense<0.000000e+00> : vector<16x128xf32>
    %14 = tpu.matmul %13, %11, %cst_12 {dimension_numbers = #tpu.dot_dimension_numbers<[1], [0], [0], [1], [0, 0, 1, 1], [], []>} : vector<16x256xbf16>, vector<256x128xbf16>, vector<16x128xf32> -> vector<16x128xf32>
    %15 = vector.broadcast %12 : vector<1x128xf32> to vector<16x128xf32>
    %16 = arith.addf %14, %15 : vector<16x128xf32>
    %c0_13 = arith.constant 0 : index
    %c0_14 = arith.constant 0 : index
    %c0_15 = arith.constant 0 : index
    %17 = vector.load %arg7[%c0_13, %c0_14, %c0_15] : memref<1x16x128xf32, #tpu.memory_space<vmem>>, vector<1x16x128xf32>
    %18 = vector.shape_cast %17 : vector<1x16x128xf32> to vector<16x128xf32>
    %19 = vector.shape_cast %16 : vector<16x128xf32> to vector<1x16x128xf32>
    tpu.vector_store %arg7[%c0_13, %c0_14, %c0_15], %19 {strides = array<i32>} : memref<1x16x128xf32, #tpu.memory_space<vmem>>, vector<1x16x128xf32>,
    return
  }
  func.func @transform_0(%arg0: i32, %arg1: i32) -> (i32, i32, i32) {
    %c0_i32 = arith.constant 0 : i32
    %c0_i32_0 = arith.constant 0 : i32
    return %arg0, %arg1, %c0_i32 : i32, i32, i32
  }
  func.func @transform_1(%arg0: i32, %arg1: i32) -> (i32, i32) {
    %c0_i32 = arith.constant 0 : i32
    %c0_i32_0 = arith.constant 0 : i32
    %c0_i32_1 = arith.constant 0 : i32
    return %c0_i32, %c0_i32_0 : i32, i32
  }
  func.func @transform_2(%arg0: i32, %arg1: i32) -> (i32, i32, i32) {
    %c0_i32 = arith.constant 0 : i32
    %c0_i32_0 = arith.constant 0 : i32
    %c0_i32_1 = arith.constant 0 : i32
    return %arg0, %c0_i32, %c0_i32_0 : i32, i32, i32
  }
  func.func @transform_3(%arg0: i32, %arg1: i32) -> (i32, i32) {
    %c0_i32 = arith.constant 0 : i32
    %c0_i32_0 = arith.constant 0 : i32
    %c0_i32_1 = arith.constant 0 : i32
    return %c0_i32, %c0_i32_0 : i32, i32
  }
  func.func @transform_4(%arg0: i32, %arg1: i32) -> (i32, i32) {
    %c0_i32 = arith.constant 0 : i32
    %c0_i32_0 = arith.constant 0 : i32
    %c0_i32_1 = arith.constant 0 : i32
    return %c0_i32, %c0_i32_0 : i32, i32
  }
  func.func @transform_5(%arg0: i32, %arg1: i32) -> (i32, i32, i32) {
    %c0_i32 = arith.constant 0 : i32
    %c0_i32_0 = arith.constant 0 : i32
    return %arg0, %arg1, %c0_i32 : i32, i32, i32
  }
}

module attributes {stable_mosaic.version = 11 : i64} {
  func.func @_kqv_kernel(%arg0: i32, %arg1: i32, %arg2: memref<1x16x128xf32, #tpu.memory_space<vmem>>, %arg3: memref<128x64xbf16, #tpu.memory_space<vmem>>, %arg4: memref<1x64xf32, #tpu.memory_space<vmem>>, %arg5: memref<64x192xbf16, #tpu.memory_space<vmem>>, %arg6: memref<1x192xf32, #tpu.memory_space<vmem>>, %arg7: memref<1x16x64xbf16, #tpu.memory_space<vmem>>, %arg8: memref<1x16x64xbf16, #tpu.memory_space<vmem>>, %arg9: memref<1x16x64xbf16, #tpu.memory_space<vmem>>) attributes {dimension_semantics = [#tpu.dimension_semantics<parallel>, #tpu.dimension_semantics<parallel>], iteration_bounds = array<i64: 2, 1>, scalar_prefetch = 0 : i64, scratch_operands = 0 : i64, tpu.core_type = #tpu.core_type<tc>, window_params = [{transform_indices = @transform_0, window_bounds = array<i64: 1, 16, 128>}, {pipeline_mode = #tpu.pipeline_mode<synchronous>, transform_indices = @transform_1, window_bounds = array<i64: 128, 64>}, {pipeline_mode = #tpu.pipeline_mode<synchronous>, transform_indices = @transform_2, window_bounds = array<i64: 1, 64>}, {pipeline_mode = #tpu.pipeline_mode<synchronous>, transform_indices = @transform_3, window_bounds = array<i64: 64, 192>}, {pipeline_mode = #tpu.pipeline_mode<synchronous>, transform_indices = @transform_4, window_bounds = array<i64: 1, 192>}, {transform_indices = @transform_5, window_bounds = array<i64: 1, 16, 64>}, {transform_indices = @transform_6, window_bounds = array<i64: 1, 16, 64>}, {transform_indices = @transform_7, window_bounds = array<i64: 1, 16, 64>}]} {
    %c0 = arith.constant 0 : index
    %c0_0 = arith.constant 0 : index
    %c0_1 = arith.constant 0 : index
    %0 = vector.load %arg2[%c0, %c0_0, %c0_1] : memref<1x16x128xf32, #tpu.memory_space<vmem>>, vector<1x16x128xf32>
    %1 = vector.shape_cast %0 : vector<1x16x128xf32> to vector<16x128xf32>
    %2 = arith.truncf %1 : vector<16x128xf32> to vector<16x128xbf16>
    %c0_2 = arith.constant 0 : index
    %c0_3 = arith.constant 0 : index
    %3 = vector.load %arg3[%c0_2, %c0_3] : memref<128x64xbf16, #tpu.memory_space<vmem>>, vector<128x64xbf16>
    %cst = arith.constant dense<0.000000e+00> : vector<16x64xf32>
    %4 = tpu.matmul %2, %3, %cst {dimension_numbers = #tpu.dot_dimension_numbers<[1], [0], [0], [1], [0, 0, 1, 1], [], []>} : vector<16x128xbf16>, vector<128x64xbf16>, vector<16x64xf32> -> vector<16x64xf32>
    %c0_4 = arith.constant 0 : index
    %c0_5 = arith.constant 0 : index
    %5 = vector.load %arg4[%c0_4, %c0_5] : memref<1x64xf32, #tpu.memory_space<vmem>>, vector<1x64xf32>
    %6 = vector.broadcast %5 : vector<1x64xf32> to vector<16x64xf32>
    %7 = arith.addf %4, %6 : vector<16x64xf32>
    %8 = arith.truncf %7 : vector<16x64xf32> to vector<16x64xbf16>
    %c0_6 = arith.constant 0 : index
    %c0_7 = arith.constant 0 : index
    %9 = vector.load %arg5[%c0_6, %c0_7] : memref<64x192xbf16, #tpu.memory_space<vmem>>, vector<64x192xbf16>
    %cst_8 = arith.constant dense<0.000000e+00> : vector<16x192xf32>
    %10 = tpu.matmul %8, %9, %cst_8 {dimension_numbers = #tpu.dot_dimension_numbers<[1], [0], [0], [1], [0, 0, 1, 1], [], []>} : vector<16x64xbf16>, vector<64x192xbf16>, vector<16x192xf32> -> vector<16x192xf32>
    %c0_9 = arith.constant 0 : index
    %c0_10 = arith.constant 0 : index
    %11 = vector.load %arg6[%c0_9, %c0_10] : memref<1x192xf32, #tpu.memory_space<vmem>>, vector<1x192xf32>
    %12 = vector.broadcast %11 : vector<1x192xf32> to vector<16x192xf32>
    %13 = arith.addf %10, %12 : vector<16x192xf32>
    %14 = vector.extract_strided_slice %13 {offsets = [0, 0], sizes = [16, 64], strides = [1, 1]} : vector<16x192xf32> to vector<16x64xf32>
    %15 = arith.truncf %14 : vector<16x64xf32> to vector<16x64xbf16>
    %c0_11 = arith.constant 0 : index
    %c0_12 = arith.constant 0 : index
    %c0_13 = arith.constant 0 : index
    %16 = vector.load %arg7[%c0_11, %c0_12, %c0_13] : memref<1x16x64xbf16, #tpu.memory_space<vmem>>, vector<1x16x64xbf16>
    %17 = vector.shape_cast %16 : vector<1x16x64xbf16> to vector<16x64xbf16>
    %18 = vector.shape_cast %15 : vector<16x64xbf16> to vector<1x16x64xbf16>
    tpu.vector_store %arg7[%c0_11, %c0_12, %c0_13], %18 {strides = array<i32>} : memref<1x16x64xbf16, #tpu.memory_space<vmem>>, vector<1x16x64xbf16>,
    %19 = vector.extract_strided_slice %13 {offsets = [0, 64], sizes = [16, 64], strides = [1, 1]} : vector<16x192xf32> to vector<16x64xf32>
    %20 = arith.truncf %19 : vector<16x64xf32> to vector<16x64xbf16>
    %c0_14 = arith.constant 0 : index
    %c0_15 = arith.constant 0 : index
    %c0_16 = arith.constant 0 : index
    %21 = vector.load %arg8[%c0_14, %c0_15, %c0_16] : memref<1x16x64xbf16, #tpu.memory_space<vmem>>, vector<1x16x64xbf16>
    %22 = vector.shape_cast %21 : vector<1x16x64xbf16> to vector<16x64xbf16>
    %23 = vector.shape_cast %20 : vector<16x64xbf16> to vector<1x16x64xbf16>
    tpu.vector_store %arg8[%c0_14, %c0_15, %c0_16], %23 {strides = array<i32>} : memref<1x16x64xbf16, #tpu.memory_space<vmem>>, vector<1x16x64xbf16>,
    %24 = vector.extract_strided_slice %13 {offsets = [0, 128], sizes = [16, 64], strides = [1, 1]} : vector<16x192xf32> to vector<16x64xf32>
    %25 = arith.truncf %24 : vector<16x64xf32> to vector<16x64xbf16>
    %c0_17 = arith.constant 0 : index
    %c0_18 = arith.constant 0 : index
    %c0_19 = arith.constant 0 : index
    %26 = vector.load %arg9[%c0_17, %c0_18, %c0_19] : memref<1x16x64xbf16, #tpu.memory_space<vmem>>, vector<1x16x64xbf16>
    %27 = vector.shape_cast %26 : vector<1x16x64xbf16> to vector<16x64xbf16>
    %28 = vector.shape_cast %25 : vector<16x64xbf16> to vector<1x16x64xbf16>
    tpu.vector_store %arg9[%c0_17, %c0_18, %c0_19], %28 {strides = array<i32>} : memref<1x16x64xbf16, #tpu.memory_space<vmem>>, vector<1x16x64xbf16>,
    return
  }
  func.func @transform_0(%arg0: i32, %arg1: i32) -> (i32, i32, i32) {
    %c0_i32 = arith.constant 0 : i32
    %c0_i32_0 = arith.constant 0 : i32
    return %arg0, %arg1, %c0_i32 : i32, i32, i32
  }
  func.func @transform_1(%arg0: i32, %arg1: i32) -> (i32, i32) {
    %c0_i32 = arith.constant 0 : i32
    %c0_i32_0 = arith.constant 0 : i32
    %c0_i32_1 = arith.constant 0 : i32
    return %c0_i32, %c0_i32_0 : i32, i32
  }
  func.func @transform_2(%arg0: i32, %arg1: i32) -> (i32, i32) {
    %c0_i32 = arith.constant 0 : i32
    %c0_i32_0 = arith.constant 0 : i32
    %c0_i32_1 = arith.constant 0 : i32
    return %c0_i32, %c0_i32_0 : i32, i32
  }
  func.func @transform_3(%arg0: i32, %arg1: i32) -> (i32, i32) {
    %c0_i32 = arith.constant 0 : i32
    %c0_i32_0 = arith.constant 0 : i32
    %c0_i32_1 = arith.constant 0 : i32
    return %c0_i32, %c0_i32_0 : i32, i32
  }
  func.func @transform_4(%arg0: i32, %arg1: i32) -> (i32, i32) {
    %c0_i32 = arith.constant 0 : i32
    %c0_i32_0 = arith.constant 0 : i32
    %c0_i32_1 = arith.constant 0 : i32
    return %c0_i32, %c0_i32_0 : i32, i32
  }
  func.func @transform_5(%arg0: i32, %arg1: i32) -> (i32, i32, i32) {
    %c0_i32 = arith.constant 0 : i32
    %c0_i32_0 = arith.constant 0 : i32
    return %arg0, %arg1, %c0_i32 : i32, i32, i32
  }
  func.func @transform_6(%arg0: i32, %arg1: i32) -> (i32, i32, i32) {
    %c0_i32 = arith.constant 0 : i32
    %c0_i32_0 = arith.constant 0 : i32
    return %arg0, %arg1, %c0_i32 : i32, i32, i32
  }
  func.func @transform_7(%arg0: i32, %arg1: i32) -> (i32, i32, i32) {
    %c0_i32 = arith.constant 0 : i32
    %c0_i32_0 = arith.constant 0 : i32
    return %arg0, %arg1, %c0_i32 : i32, i32, i32
  }
}

module attributes {stable_mosaic.version = 11 : i64} {
  func.func @_knn_kernel(%arg0: i32, %arg1: i32, %arg2: memref<1x16x3xf32, #tpu.memory_space<vmem>>, %arg3: memref<1x16x3xf32, #tpu.memory_space<vmem>>, %arg4: memref<1x1x16xf32, #tpu.memory_space<vmem>>, %arg5: memref<1x16x16xi32, #tpu.memory_space<vmem>>) attributes {dimension_semantics = [#tpu.dimension_semantics<parallel>, #tpu.dimension_semantics<parallel>], iteration_bounds = array<i64: 2, 1>, scalar_prefetch = 0 : i64, scratch_operands = 0 : i64, tpu.core_type = #tpu.core_type<tc>, window_params = [{transform_indices = @transform_0, window_bounds = array<i64: 1, 16, 3>}, {transform_indices = @transform_1, window_bounds = array<i64: 1, 16, 3>}, {transform_indices = @transform_2, window_bounds = array<i64: 1, 1, 16>}, {transform_indices = @transform_3, window_bounds = array<i64: 1, 16, 16>}]} {
    %c0 = arith.constant 0 : index
    %c0_0 = arith.constant 0 : index
    %c0_1 = arith.constant 0 : index
    %0 = vector.load %arg2[%c0, %c0_0, %c0_1] : memref<1x16x3xf32, #tpu.memory_space<vmem>>, vector<1x16x3xf32>
    %1 = vector.shape_cast %0 : vector<1x16x3xf32> to vector<16x3xf32>
    %c0_2 = arith.constant 0 : index
    %c0_3 = arith.constant 0 : index
    %c0_4 = arith.constant 0 : index
    %2 = vector.load %arg3[%c0_2, %c0_3, %c0_4] : memref<1x16x3xf32, #tpu.memory_space<vmem>>, vector<1x16x3xf32>
    %3 = vector.shape_cast %2 : vector<1x16x3xf32> to vector<16x3xf32>
    %cst = arith.constant dense<0.000000e+00> : vector<16x16xf32>
    %4 = tpu.matmul %1, %3, %cst {dimension_numbers = #tpu.dot_dimension_numbers<[1], [1], [0], [0], [0, 0, 1, 0], [], []>} : vector<16x3xf32>, vector<16x3xf32>, vector<16x16xf32> -> vector<16x16xf32>
    %c0_5 = arith.constant 0 : index
    %c0_6 = arith.constant 0 : index
    %c0_7 = arith.constant 0 : index
    %5 = vector.load %arg4[%c0_5, %c0_6, %c0_7] : memref<1x1x16xf32, #tpu.memory_space<vmem>>, vector<1x1x16xf32>
    %6 = vector.shape_cast %5 : vector<1x1x16xf32> to vector<1x16xf32>
    %cst_8 = arith.constant 2.000000e+00 : f32
    %7 = vector.broadcast %cst_8 : f32 to vector<16x16xf32>
    %8 = arith.mulf %7, %4 : vector<16x16xf32>
    %9 = vector.broadcast %6 : vector<1x16xf32> to vector<16x16xf32>
    %10 = arith.subf %9, %8 : vector<16x16xf32>
    %11 = tpu.iota {dimensions = array<i32: 1>} : vector<16x16xi32>
    %12 = arith.sitofp %11 : vector<16x16xi32> to vector<16x16xf32>
    %cst_9 = arith.constant dense<0x7F800000> : vector<16xf32>
    %13 = vector.multi_reduction <minimumf>, %10, %cst_9 [1] : vector<16x16xf32> to vector<16xf32>
    %14 = vector.shape_cast %13 : vector<16xf32> to vector<16x1xf32>
    %15 = vector.broadcast %14 : vector<16x1xf32> to vector<16x16xf32>
    %16 = arith.cmpf ole, %10, %15 : vector<16x16xf32>
    %cst_10 = arith.constant 1.600000e+01 : f32
    %17 = vector.broadcast %cst_10 : f32 to vector<16x16xf32>
    %18 = arith.select %16, %12, %17 : vector<16x16xi1>, vector<16x16xf32>
    %cst_11 = arith.constant dense<0x7F800000> : vector<16xf32>
    %19 = vector.multi_reduction <minimumf>, %18, %cst_11 [1] : vector<16x16xf32> to vector<16xf32>
    %20 = vector.shape_cast %19 : vector<16xf32> to vector<16x1xf32>
    %21 = vector.broadcast %20 : vector<16x1xf32> to vector<16x16xf32>
    %22 = arith.cmpf oeq, %12, %21 : vector<16x16xf32>
    %cst_12 = arith.constant 0x7F800000 : f32
    %23 = vector.broadcast %cst_12 : f32 to vector<16x16xf32>
    %24 = arith.select %22, %23, %10 : vector<16x16xi1>, vector<16x16xf32>
    %cst_13 = arith.constant dense<0x7F800000> : vector<16xf32>
    %25 = vector.multi_reduction <minimumf>, %24, %cst_13 [1] : vector<16x16xf32> to vector<16xf32>
    %26 = vector.shape_cast %25 : vector<16xf32> to vector<16x1xf32>
    %27 = vector.broadcast %26 : vector<16x1xf32> to vector<16x16xf32>
    %28 = arith.cmpf ole, %24, %27 : vector<16x16xf32>
    %cst_14 = arith.constant 1.600000e+01 : f32
    %29 = vector.broadcast %cst_14 : f32 to vector<16x16xf32>
    %30 = arith.select %28, %12, %29 : vector<16x16xi1>, vector<16x16xf32>
    %cst_15 = arith.constant dense<0x7F800000> : vector<16xf32>
    %31 = vector.multi_reduction <minimumf>, %30, %cst_15 [1] : vector<16x16xf32> to vector<16xf32>
    %32 = vector.shape_cast %31 : vector<16xf32> to vector<16x1xf32>
    %33 = vector.broadcast %32 : vector<16x1xf32> to vector<16x16xf32>
    %34 = arith.cmpf oeq, %12, %33 : vector<16x16xf32>
    %cst_16 = arith.constant 0x7F800000 : f32
    %35 = vector.broadcast %cst_16 : f32 to vector<16x16xf32>
    %36 = arith.select %34, %35, %24 : vector<16x16xi1>, vector<16x16xf32>
    %cst_17 = arith.constant dense<0x7F800000> : vector<16xf32>
    %37 = vector.multi_reduction <minimumf>, %36, %cst_17 [1] : vector<16x16xf32> to vector<16xf32>
    %38 = vector.shape_cast %37 : vector<16xf32> to vector<16x1xf32>
    %39 = vector.broadcast %38 : vector<16x1xf32> to vector<16x16xf32>
    %40 = arith.cmpf ole, %36, %39 : vector<16x16xf32>
    %cst_18 = arith.constant 1.600000e+01 : f32
    %41 = vector.broadcast %cst_18 : f32 to vector<16x16xf32>
    %42 = arith.select %40, %12, %41 : vector<16x16xi1>, vector<16x16xf32>
    %cst_19 = arith.constant dense<0x7F800000> : vector<16xf32>
    %43 = vector.multi_reduction <minimumf>, %42, %cst_19 [1] : vector<16x16xf32> to vector<16xf32>
    %44 = vector.shape_cast %43 : vector<16xf32> to vector<16x1xf32>
    %45 = vector.broadcast %44 : vector<16x1xf32> to vector<16x16xf32>
    %46 = arith.cmpf oeq, %12, %45 : vector<16x16xf32>
    %cst_20 = arith.constant 0x7F800000 : f32
    %47 = vector.broadcast %cst_20 : f32 to vector<16x16xf32>
    %48 = arith.select %46, %47, %36 : vector<16x16xi1>, vector<16x16xf32>
    %cst_21 = arith.constant dense<0x7F800000> : vector<16xf32>
    %49 = vector.multi_reduction <minimumf>, %48, %cst_21 [1] : vector<16x16xf32> to vector<16xf32>
    %50 = vector.shape_cast %49 : vector<16xf32> to vector<16x1xf32>
    %51 = vector.broadcast %50 : vector<16x1xf32> to vector<16x16xf32>
    %52 = arith.cmpf ole, %48, %51 : vector<16x16xf32>
    %cst_22 = arith.constant 1.600000e+01 : f32
    %53 = vector.broadcast %cst_22 : f32 to vector<16x16xf32>
    %54 = arith.select %52, %12, %53 : vector<16x16xi1>, vector<16x16xf32>
    %cst_23 = arith.constant dense<0x7F800000> : vector<16xf32>
    %55 = vector.multi_reduction <minimumf>, %54, %cst_23 [1] : vector<16x16xf32> to vector<16xf32>
    %56 = vector.shape_cast %55 : vector<16xf32> to vector<16x1xf32>
    %57 = vector.broadcast %56 : vector<16x1xf32> to vector<16x16xf32>
    %58 = arith.cmpf oeq, %12, %57 : vector<16x16xf32>
    %cst_24 = arith.constant 0x7F800000 : f32
    %59 = vector.broadcast %cst_24 : f32 to vector<16x16xf32>
    %60 = arith.select %58, %59, %48 : vector<16x16xi1>, vector<16x16xf32>
    %cst_25 = arith.constant dense<0x7F800000> : vector<16xf32>
    %61 = vector.multi_reduction <minimumf>, %60, %cst_25 [1] : vector<16x16xf32> to vector<16xf32>
    %62 = vector.shape_cast %61 : vector<16xf32> to vector<16x1xf32>
    %63 = vector.broadcast %62 : vector<16x1xf32> to vector<16x16xf32>
    %64 = arith.cmpf ole, %60, %63 : vector<16x16xf32>
    %cst_26 = arith.constant 1.600000e+01 : f32
    %65 = vector.broadcast %cst_26 : f32 to vector<16x16xf32>
    %66 = arith.select %64, %12, %65 : vector<16x16xi1>, vector<16x16xf32>
    %cst_27 = arith.constant dense<0x7F800000> : vector<16xf32>
    %67 = vector.multi_reduction <minimumf>, %66, %cst_27 [1] : vector<16x16xf32> to vector<16xf32>
    %68 = vector.shape_cast %67 : vector<16xf32> to vector<16x1xf32>
    %69 = vector.broadcast %68 : vector<16x1xf32> to vector<16x16xf32>
    %70 = arith.cmpf oeq, %12, %69 : vector<16x16xf32>
    %cst_28 = arith.constant 0x7F800000 : f32
    %71 = vector.broadcast %cst_28 : f32 to vector<16x16xf32>
    %72 = arith.select %70, %71, %60 : vector<16x16xi1>, vector<16x16xf32>
    %cst_29 = arith.constant dense<0x7F800000> : vector<16xf32>
    %73 = vector.multi_reduction <minimumf>, %72, %cst_29 [1] : vector<16x16xf32> to vector<16xf32>
    %74 = vector.shape_cast %73 : vector<16xf32> to vector<16x1xf32>
    %75 = vector.broadcast %74 : vector<16x1xf32> to vector<16x16xf32>
    %76 = arith.cmpf ole, %72, %75 : vector<16x16xf32>
    %cst_30 = arith.constant 1.600000e+01 : f32
    %77 = vector.broadcast %cst_30 : f32 to vector<16x16xf32>
    %78 = arith.select %76, %12, %77 : vector<16x16xi1>, vector<16x16xf32>
    %cst_31 = arith.constant dense<0x7F800000> : vector<16xf32>
    %79 = vector.multi_reduction <minimumf>, %78, %cst_31 [1] : vector<16x16xf32> to vector<16xf32>
    %80 = vector.shape_cast %79 : vector<16xf32> to vector<16x1xf32>
    %81 = vector.broadcast %80 : vector<16x1xf32> to vector<16x16xf32>
    %82 = arith.cmpf oeq, %12, %81 : vector<16x16xf32>
    %cst_32 = arith.constant 0x7F800000 : f32
    %83 = vector.broadcast %cst_32 : f32 to vector<16x16xf32>
    %84 = arith.select %82, %83, %72 : vector<16x16xi1>, vector<16x16xf32>
    %cst_33 = arith.constant dense<0x7F800000> : vector<16xf32>
    %85 = vector.multi_reduction <minimumf>, %84, %cst_33 [1] : vector<16x16xf32> to vector<16xf32>
    %86 = vector.shape_cast %85 : vector<16xf32> to vector<16x1xf32>
    %87 = vector.broadcast %86 : vector<16x1xf32> to vector<16x16xf32>
    %88 = arith.cmpf ole, %84, %87 : vector<16x16xf32>
    %cst_34 = arith.constant 1.600000e+01 : f32
    %89 = vector.broadcast %cst_34 : f32 to vector<16x16xf32>
    %90 = arith.select %88, %12, %89 : vector<16x16xi1>, vector<16x16xf32>
    %cst_35 = arith.constant dense<0x7F800000> : vector<16xf32>
    %91 = vector.multi_reduction <minimumf>, %90, %cst_35 [1] : vector<16x16xf32> to vector<16xf32>
    %92 = vector.shape_cast %91 : vector<16xf32> to vector<16x1xf32>
    %93 = vector.broadcast %92 : vector<16x1xf32> to vector<16x16xf32>
    %94 = arith.cmpf oeq, %12, %93 : vector<16x16xf32>
    %cst_36 = arith.constant 0x7F800000 : f32
    %95 = vector.broadcast %cst_36 : f32 to vector<16x16xf32>
    %96 = arith.select %94, %95, %84 : vector<16x16xi1>, vector<16x16xf32>
    %cst_37 = arith.constant dense<0x7F800000> : vector<16xf32>
    %97 = vector.multi_reduction <minimumf>, %96, %cst_37 [1] : vector<16x16xf32> to vector<16xf32>
    %98 = vector.shape_cast %97 : vector<16xf32> to vector<16x1xf32>
    %99 = vector.broadcast %98 : vector<16x1xf32> to vector<16x16xf32>
    %100 = arith.cmpf ole, %96, %99 : vector<16x16xf32>
    %cst_38 = arith.constant 1.600000e+01 : f32
    %101 = vector.broadcast %cst_38 : f32 to vector<16x16xf32>
    %102 = arith.select %100, %12, %101 : vector<16x16xi1>, vector<16x16xf32>
    %cst_39 = arith.constant dense<0x7F800000> : vector<16xf32>
    %103 = vector.multi_reduction <minimumf>, %102, %cst_39 [1] : vector<16x16xf32> to vector<16xf32>
    %104 = vector.shape_cast %103 : vector<16xf32> to vector<16x1xf32>
    %105 = vector.broadcast %104 : vector<16x1xf32> to vector<16x16xf32>
    %106 = arith.cmpf oeq, %12, %105 : vector<16x16xf32>
    %cst_40 = arith.constant 0x7F800000 : f32
    %107 = vector.broadcast %cst_40 : f32 to vector<16x16xf32>
    %108 = arith.select %106, %107, %96 : vector<16x16xi1>, vector<16x16xf32>
    %cst_41 = arith.constant dense<0x7F800000> : vector<16xf32>
    %109 = vector.multi_reduction <minimumf>, %108, %cst_41 [1] : vector<16x16xf32> to vector<16xf32>
    %110 = vector.shape_cast %109 : vector<16xf32> to vector<16x1xf32>
    %111 = vector.broadcast %110 : vector<16x1xf32> to vector<16x16xf32>
    %112 = arith.cmpf ole, %108, %111 : vector<16x16xf32>
    %cst_42 = arith.constant 1.600000e+01 : f32
    %113 = vector.broadcast %cst_42 : f32 to vector<16x16xf32>
    %114 = arith.select %112, %12, %113 : vector<16x16xi1>, vector<16x16xf32>
    %cst_43 = arith.constant dense<0x7F800000> : vector<16xf32>
    %115 = vector.multi_reduction <minimumf>, %114, %cst_43 [1] : vector<16x16xf32> to vector<16xf32>
    %116 = vector.shape_cast %115 : vector<16xf32> to vector<16x1xf32>
    %117 = vector.broadcast %116 : vector<16x1xf32> to vector<16x16xf32>
    %118 = arith.cmpf oeq, %12, %117 : vector<16x16xf32>
    %cst_44 = arith.constant 0x7F800000 : f32
    %119 = vector.broadcast %cst_44 : f32 to vector<16x16xf32>
    %120 = arith.select %118, %119, %108 : vector<16x16xi1>, vector<16x16xf32>
    %cst_45 = arith.constant dense<0x7F800000> : vector<16xf32>
    %121 = vector.multi_reduction <minimumf>, %120, %cst_45 [1] : vector<16x16xf32> to vector<16xf32>
    %122 = vector.shape_cast %121 : vector<16xf32> to vector<16x1xf32>
    %123 = vector.broadcast %122 : vector<16x1xf32> to vector<16x16xf32>
    %124 = arith.cmpf ole, %120, %123 : vector<16x16xf32>
    %cst_46 = arith.constant 1.600000e+01 : f32
    %125 = vector.broadcast %cst_46 : f32 to vector<16x16xf32>
    %126 = arith.select %124, %12, %125 : vector<16x16xi1>, vector<16x16xf32>
    %cst_47 = arith.constant dense<0x7F800000> : vector<16xf32>
    %127 = vector.multi_reduction <minimumf>, %126, %cst_47 [1] : vector<16x16xf32> to vector<16xf32>
    %128 = vector.shape_cast %127 : vector<16xf32> to vector<16x1xf32>
    %129 = vector.broadcast %128 : vector<16x1xf32> to vector<16x16xf32>
    %130 = arith.cmpf oeq, %12, %129 : vector<16x16xf32>
    %cst_48 = arith.constant 0x7F800000 : f32
    %131 = vector.broadcast %cst_48 : f32 to vector<16x16xf32>
    %132 = arith.select %130, %131, %120 : vector<16x16xi1>, vector<16x16xf32>
    %cst_49 = arith.constant dense<0x7F800000> : vector<16xf32>
    %133 = vector.multi_reduction <minimumf>, %132, %cst_49 [1] : vector<16x16xf32> to vector<16xf32>
    %134 = vector.shape_cast %133 : vector<16xf32> to vector<16x1xf32>
    %135 = vector.broadcast %134 : vector<16x1xf32> to vector<16x16xf32>
    %136 = arith.cmpf ole, %132, %135 : vector<16x16xf32>
    %cst_50 = arith.constant 1.600000e+01 : f32
    %137 = vector.broadcast %cst_50 : f32 to vector<16x16xf32>
    %138 = arith.select %136, %12, %137 : vector<16x16xi1>, vector<16x16xf32>
    %cst_51 = arith.constant dense<0x7F800000> : vector<16xf32>
    %139 = vector.multi_reduction <minimumf>, %138, %cst_51 [1] : vector<16x16xf32> to vector<16xf32>
    %140 = vector.shape_cast %139 : vector<16xf32> to vector<16x1xf32>
    %141 = vector.broadcast %140 : vector<16x1xf32> to vector<16x16xf32>
    %142 = arith.cmpf oeq, %12, %141 : vector<16x16xf32>
    %cst_52 = arith.constant 0x7F800000 : f32
    %143 = vector.broadcast %cst_52 : f32 to vector<16x16xf32>
    %144 = arith.select %142, %143, %132 : vector<16x16xi1>, vector<16x16xf32>
    %cst_53 = arith.constant dense<0x7F800000> : vector<16xf32>
    %145 = vector.multi_reduction <minimumf>, %144, %cst_53 [1] : vector<16x16xf32> to vector<16xf32>
    %146 = vector.shape_cast %145 : vector<16xf32> to vector<16x1xf32>
    %147 = vector.broadcast %146 : vector<16x1xf32> to vector<16x16xf32>
    %148 = arith.cmpf ole, %144, %147 : vector<16x16xf32>
    %cst_54 = arith.constant 1.600000e+01 : f32
    %149 = vector.broadcast %cst_54 : f32 to vector<16x16xf32>
    %150 = arith.select %148, %12, %149 : vector<16x16xi1>, vector<16x16xf32>
    %cst_55 = arith.constant dense<0x7F800000> : vector<16xf32>
    %151 = vector.multi_reduction <minimumf>, %150, %cst_55 [1] : vector<16x16xf32> to vector<16xf32>
    %152 = vector.shape_cast %151 : vector<16xf32> to vector<16x1xf32>
    %153 = vector.broadcast %152 : vector<16x1xf32> to vector<16x16xf32>
    %154 = arith.cmpf oeq, %12, %153 : vector<16x16xf32>
    %cst_56 = arith.constant 0x7F800000 : f32
    %155 = vector.broadcast %cst_56 : f32 to vector<16x16xf32>
    %156 = arith.select %154, %155, %144 : vector<16x16xi1>, vector<16x16xf32>
    %cst_57 = arith.constant dense<0x7F800000> : vector<16xf32>
    %157 = vector.multi_reduction <minimumf>, %156, %cst_57 [1] : vector<16x16xf32> to vector<16xf32>
    %158 = vector.shape_cast %157 : vector<16xf32> to vector<16x1xf32>
    %159 = vector.broadcast %158 : vector<16x1xf32> to vector<16x16xf32>
    %160 = arith.cmpf ole, %156, %159 : vector<16x16xf32>
    %cst_58 = arith.constant 1.600000e+01 : f32
    %161 = vector.broadcast %cst_58 : f32 to vector<16x16xf32>
    %162 = arith.select %160, %12, %161 : vector<16x16xi1>, vector<16x16xf32>
    %cst_59 = arith.constant dense<0x7F800000> : vector<16xf32>
    %163 = vector.multi_reduction <minimumf>, %162, %cst_59 [1] : vector<16x16xf32> to vector<16xf32>
    %164 = vector.shape_cast %163 : vector<16xf32> to vector<16x1xf32>
    %165 = vector.broadcast %164 : vector<16x1xf32> to vector<16x16xf32>
    %166 = arith.cmpf oeq, %12, %165 : vector<16x16xf32>
    %cst_60 = arith.constant 0x7F800000 : f32
    %167 = vector.broadcast %cst_60 : f32 to vector<16x16xf32>
    %168 = arith.select %166, %167, %156 : vector<16x16xi1>, vector<16x16xf32>
    %cst_61 = arith.constant dense<0x7F800000> : vector<16xf32>
    %169 = vector.multi_reduction <minimumf>, %168, %cst_61 [1] : vector<16x16xf32> to vector<16xf32>
    %170 = vector.shape_cast %169 : vector<16xf32> to vector<16x1xf32>
    %171 = vector.broadcast %170 : vector<16x1xf32> to vector<16x16xf32>
    %172 = arith.cmpf ole, %168, %171 : vector<16x16xf32>
    %cst_62 = arith.constant 1.600000e+01 : f32
    %173 = vector.broadcast %cst_62 : f32 to vector<16x16xf32>
    %174 = arith.select %172, %12, %173 : vector<16x16xi1>, vector<16x16xf32>
    %cst_63 = arith.constant dense<0x7F800000> : vector<16xf32>
    %175 = vector.multi_reduction <minimumf>, %174, %cst_63 [1] : vector<16x16xf32> to vector<16xf32>
    %176 = vector.shape_cast %175 : vector<16xf32> to vector<16x1xf32>
    %177 = vector.broadcast %176 : vector<16x1xf32> to vector<16x16xf32>
    %178 = arith.cmpf oeq, %12, %177 : vector<16x16xf32>
    %cst_64 = arith.constant 0x7F800000 : f32
    %179 = vector.broadcast %cst_64 : f32 to vector<16x16xf32>
    %180 = arith.select %178, %179, %168 : vector<16x16xi1>, vector<16x16xf32>
    %cst_65 = arith.constant dense<0x7F800000> : vector<16xf32>
    %181 = vector.multi_reduction <minimumf>, %180, %cst_65 [1] : vector<16x16xf32> to vector<16xf32>
    %182 = vector.shape_cast %181 : vector<16xf32> to vector<16x1xf32>
    %183 = vector.broadcast %182 : vector<16x1xf32> to vector<16x16xf32>
    %184 = arith.cmpf ole, %180, %183 : vector<16x16xf32>
    %cst_66 = arith.constant 1.600000e+01 : f32
    %185 = vector.broadcast %cst_66 : f32 to vector<16x16xf32>
    %186 = arith.select %184, %12, %185 : vector<16x16xi1>, vector<16x16xf32>
    %cst_67 = arith.constant dense<0x7F800000> : vector<16xf32>
    %187 = vector.multi_reduction <minimumf>, %186, %cst_67 [1] : vector<16x16xf32> to vector<16xf32>
    %188 = vector.shape_cast %187 : vector<16xf32> to vector<16x1xf32>
    %189 = vector.broadcast %188 : vector<16x1xf32> to vector<16x16xf32>
    %190 = arith.cmpf oeq, %12, %189 : vector<16x16xf32>
    %cst_68 = arith.constant 0x7F800000 : f32
    %191 = vector.broadcast %cst_68 : f32 to vector<16x16xf32>
    %192 = arith.select %190, %191, %180 : vector<16x16xi1>, vector<16x16xf32>
    %cst_69 = arith.constant dense<0x7F800000> : vector<16xf32>
    %193 = vector.multi_reduction <minimumf>, %192, %cst_69 [1] : vector<16x16xf32> to vector<16xf32>
    %194 = vector.shape_cast %193 : vector<16xf32> to vector<16x1xf32>
    %195 = vector.broadcast %194 : vector<16x1xf32> to vector<16x16xf32>
    %196 = arith.cmpf ole, %192, %195 : vector<16x16xf32>
    %cst_70 = arith.constant 1.600000e+01 : f32
    %197 = vector.broadcast %cst_70 : f32 to vector<16x16xf32>
    %198 = arith.select %196, %12, %197 : vector<16x16xi1>, vector<16x16xf32>
    %cst_71 = arith.constant dense<0x7F800000> : vector<16xf32>
    %199 = vector.multi_reduction <minimumf>, %198, %cst_71 [1] : vector<16x16xf32> to vector<16xf32>
    %200 = vector.shape_cast %199 : vector<16xf32> to vector<16x1xf32>
    %201 = tpu.concatenate %20, %32, %44, %56, %68, %80, %92, %104, %116, %128, %140, %152, %164, %176, %188, %200 in 1 : vector<16x1xf32>, vector<16x1xf32>, vector<16x1xf32>, vector<16x1xf32>, vector<16x1xf32>, vector<16x1xf32>, vector<16x1xf32>, vector<16x1xf32>, vector<16x1xf32>, vector<16x1xf32>, vector<16x1xf32>, vector<16x1xf32>, vector<16x1xf32>, vector<16x1xf32>, vector<16x1xf32>, vector<16x1xf32> -> vector<16x16xf32>
    %202 = arith.fptosi %201 : vector<16x16xf32> to vector<16x16xi32>
    %c0_72 = arith.constant 0 : index
    %c0_73 = arith.constant 0 : index
    %c0_74 = arith.constant 0 : index
    %203 = vector.load %arg5[%c0_72, %c0_73, %c0_74] : memref<1x16x16xi32, #tpu.memory_space<vmem>>, vector<1x16x16xi32>
    %204 = vector.shape_cast %203 : vector<1x16x16xi32> to vector<16x16xi32>
    %205 = vector.shape_cast %202 : vector<16x16xi32> to vector<1x16x16xi32>
    tpu.vector_store %arg5[%c0_72, %c0_73, %c0_74], %205 {strides = array<i32>} : memref<1x16x16xi32, #tpu.memory_space<vmem>>, vector<1x16x16xi32>,
    return
  }
  func.func @transform_0(%arg0: i32, %arg1: i32) -> (i32, i32, i32) {
    %c0_i32 = arith.constant 0 : i32
    %c0_i32_0 = arith.constant 0 : i32
    return %arg0, %arg1, %c0_i32 : i32, i32, i32
  }
  func.func @transform_1(%arg0: i32, %arg1: i32) -> (i32, i32, i32) {
    %c0_i32 = arith.constant 0 : i32
    %c0_i32_0 = arith.constant 0 : i32
    %c0_i32_1 = arith.constant 0 : i32
    return %arg0, %c0_i32, %c0_i32_0 : i32, i32, i32
  }
  func.func @transform_2(%arg0: i32, %arg1: i32) -> (i32, i32, i32) {
    %c0_i32 = arith.constant 0 : i32
    %c0_i32_0 = arith.constant 0 : i32
    %c0_i32_1 = arith.constant 0 : i32
    return %arg0, %c0_i32, %c0_i32_0 : i32, i32, i32
  }
  func.func @transform_3(%arg0: i32, %arg1: i32) -> (i32, i32, i32) {
    %c0_i32 = arith.constant 0 : i32
    %c0_i32_0 = arith.constant 0 : i32
    return %arg0, %arg1, %c0_i32 : i32, i32, i32
  }
}

module attributes {stable_mosaic.version = 11 : i64} {
  func.func @_attn_kernel(%arg0: i32, %arg1: i32, %arg2: memref<1x16x64xbf16, #tpu.memory_space<vmem>>, %arg3: memref<1x16x16x64xbf16, #tpu.memory_space<vmem>>, %arg4: memref<1x16x64xbf16, #tpu.memory_space<vmem>>, %arg5: memref<1x16x16xf32, #tpu.memory_space<vmem>>, %arg6: memref<1x16x16xf32, #tpu.memory_space<vmem>>, %arg7: memref<1x16x16xf32, #tpu.memory_space<vmem>>, %arg8: memref<1x16x128xf32, #tpu.memory_space<vmem>>, %arg9: memref<3x64xf32, #tpu.memory_space<vmem>>, %arg10: memref<1x64xf32, #tpu.memory_space<vmem>>, %arg11: memref<64x64xbf16, #tpu.memory_space<vmem>>, %arg12: memref<1x64xf32, #tpu.memory_space<vmem>>, %arg13: memref<64x256xbf16, #tpu.memory_space<vmem>>, %arg14: memref<1x256xf32, #tpu.memory_space<vmem>>, %arg15: memref<256x64xbf16, #tpu.memory_space<vmem>>, %arg16: memref<1x64xf32, #tpu.memory_space<vmem>>, %arg17: memref<64x128xbf16, #tpu.memory_space<vmem>>, %arg18: memref<1x128xf32, #tpu.memory_space<vmem>>, %arg19: memref<1x16x128xf32, #tpu.memory_space<vmem>>) attributes {dimension_semantics = [#tpu.dimension_semantics<parallel>, #tpu.dimension_semantics<parallel>], iteration_bounds = array<i64: 2, 1>, scalar_prefetch = 0 : i64, scratch_operands = 0 : i64, tpu.core_type = #tpu.core_type<tc>, window_params = [{transform_indices = @transform_0, window_bounds = array<i64: 1, 16, 64>}, {transform_indices = @transform_1, window_bounds = array<i64: 1, 16, 16, 64>}, {transform_indices = @transform_2, window_bounds = array<i64: 1, 16, 64>}, {transform_indices = @transform_3, window_bounds = array<i64: 1, 16, 16>}, {transform_indices = @transform_4, window_bounds = array<i64: 1, 16, 16>}, {transform_indices = @transform_5, window_bounds = array<i64: 1, 16, 16>}, {transform_indices = @transform_6, window_bounds = array<i64: 1, 16, 128>}, {pipeline_mode = #tpu.pipeline_mode<synchronous>, transform_indices = @transform_7, window_bounds = array<i64: 3, 64>}, {pipeline_mode = #tpu.pipeline_mode<synchronous>, transform_indices = @transform_8, window_bounds = array<i64: 1, 64>}, {pipeline_mode = #tpu.pipeline_mode<synchronous>, transform_indices = @transform_9, window_bounds = array<i64: 64, 64>}, {pipeline_mode = #tpu.pipeline_mode<synchronous>, transform_indices = @transform_10, window_bounds = array<i64: 1, 64>}, {pipeline_mode = #tpu.pipeline_mode<synchronous>, transform_indices = @transform_11, window_bounds = array<i64: 64, 256>}, {pipeline_mode = #tpu.pipeline_mode<synchronous>, transform_indices = @transform_12, window_bounds = array<i64: 1, 256>}, {pipeline_mode = #tpu.pipeline_mode<synchronous>, transform_indices = @transform_13, window_bounds = array<i64: 256, 64>}, {pipeline_mode = #tpu.pipeline_mode<synchronous>, transform_indices = @transform_14, window_bounds = array<i64: 1, 64>}, {pipeline_mode = #tpu.pipeline_mode<synchronous>, transform_indices = @transform_15, window_bounds = array<i64: 64, 128>}, {pipeline_mode = #tpu.pipeline_mode<synchronous>, transform_indices = @transform_16, window_bounds = array<i64: 1, 128>}, {transform_indices = @transform_17, window_bounds = array<i64: 1, 16, 128>}]} {
    %c0 = arith.constant 0 : index
    %c0_0 = arith.constant 0 : index
    %c0_1 = arith.constant 0 : index
    %0 = vector.load %arg2[%c0, %c0_0, %c0_1] : memref<1x16x64xbf16, #tpu.memory_space<vmem>>, vector<1x16x64xbf16>
    %1 = vector.shape_cast %0 : vector<1x16x64xbf16> to vector<16x64xbf16>
    %2 = arith.extf %1 : vector<16x64xbf16> to vector<16x64xf32>
    %c0_2 = arith.constant 0 : index
    %c0_3 = arith.constant 0 : index
    %c0_4 = arith.constant 0 : index
    %c0_5 = arith.constant 0 : index
    %3 = vector.load %arg3[%c0_2, %c0_3, %c0_4, %c0_5] : memref<1x16x16x64xbf16, #tpu.memory_space<vmem>>, vector<1x16x16x64xbf16>
    %4 = vector.shape_cast %3 : vector<1x16x16x64xbf16> to vector<16x16x64xbf16>
    %5 = arith.extf %4 : vector<16x16x64xbf16> to vector<16x16x64xf32>
    %6 = vector.shape_cast %2 : vector<16x64xf32> to vector<16x1x64xf32>
    %7 = vector.broadcast %6 : vector<16x1x64xf32> to vector<16x16x64xf32>
    %8 = arith.subf %7, %5 : vector<16x16x64xf32>
    %c0_6 = arith.constant 0 : index
    %c0_7 = arith.constant 0 : index
    %9 = vector.load %arg9[%c0_6, %c0_7] : memref<3x64xf32, #tpu.memory_space<vmem>>, vector<3x64xf32>
    %c0_8 = arith.constant 0 : index
    %c0_9 = arith.constant 0 : index
    %10 = vector.load %arg10[%c0_8, %c0_9] : memref<1x64xf32, #tpu.memory_space<vmem>>, vector<1x64xf32>
    %11 = vector.shape_cast %10 : vector<1x64xf32> to vector<1x1x64xf32>
    %c0_10 = arith.constant 0 : index
    %c0_11 = arith.constant 0 : index
    %c0_12 = arith.constant 0 : index
    %12 = vector.load %arg5[%c0_10, %c0_11, %c0_12] : memref<1x16x16xf32, #tpu.memory_space<vmem>>, vector<1x16x16xf32>
    %13 = vector.shape_cast %12 : vector<1x16x16xf32> to vector<16x16xf32>
    %14 = vector.shape_cast %13 : vector<16x16xf32> to vector<16x16x1xf32>
    %15 = vector.extract_strided_slice %9 {offsets = [0, 0], sizes = [1, 64], strides = [1, 1]} : vector<3x64xf32> to vector<1x64xf32>
    %16 = vector.shape_cast %15 : vector<1x64xf32> to vector<64xf32>
    %17 = vector.shape_cast %16 : vector<64xf32> to vector<1x1x64xf32>
    %18 = vector.broadcast %14 : vector<16x16x1xf32> to vector<16x16x64xf32>
    %19 = vector.broadcast %17 : vector<1x1x64xf32> to vector<16x16x64xf32>
    %20 = arith.mulf %18, %19 : vector<16x16x64xf32>
    %c0_13 = arith.constant 0 : index
    %c0_14 = arith.constant 0 : index
    %c0_15 = arith.constant 0 : index
    %21 = vector.load %arg6[%c0_13, %c0_14, %c0_15] : memref<1x16x16xf32, #tpu.memory_space<vmem>>, vector<1x16x16xf32>
    %22 = vector.shape_cast %21 : vector<1x16x16xf32> to vector<16x16xf32>
    %23 = vector.shape_cast %22 : vector<16x16xf32> to vector<16x16x1xf32>
    %24 = vector.extract_strided_slice %9 {offsets = [1, 0], sizes = [1, 64], strides = [1, 1]} : vector<3x64xf32> to vector<1x64xf32>
    %25 = vector.shape_cast %24 : vector<1x64xf32> to vector<64xf32>
    %26 = vector.shape_cast %25 : vector<64xf32> to vector<1x1x64xf32>
    %27 = vector.broadcast %23 : vector<16x16x1xf32> to vector<16x16x64xf32>
    %28 = vector.broadcast %26 : vector<1x1x64xf32> to vector<16x16x64xf32>
    %29 = arith.mulf %27, %28 : vector<16x16x64xf32>
    %30 = arith.addf %20, %29 : vector<16x16x64xf32>
    %c0_16 = arith.constant 0 : index
    %c0_17 = arith.constant 0 : index
    %c0_18 = arith.constant 0 : index
    %31 = vector.load %arg7[%c0_16, %c0_17, %c0_18] : memref<1x16x16xf32, #tpu.memory_space<vmem>>, vector<1x16x16xf32>
    %32 = vector.shape_cast %31 : vector<1x16x16xf32> to vector<16x16xf32>
    %33 = vector.shape_cast %32 : vector<16x16xf32> to vector<16x16x1xf32>
    %34 = vector.extract_strided_slice %9 {offsets = [2, 0], sizes = [1, 64], strides = [1, 1]} : vector<3x64xf32> to vector<1x64xf32>
    %35 = vector.shape_cast %34 : vector<1x64xf32> to vector<64xf32>
    %36 = vector.shape_cast %35 : vector<64xf32> to vector<1x1x64xf32>
    %37 = vector.broadcast %33 : vector<16x16x1xf32> to vector<16x16x64xf32>
    %38 = vector.broadcast %36 : vector<1x1x64xf32> to vector<16x16x64xf32>
    %39 = arith.mulf %37, %38 : vector<16x16x64xf32>
    %40 = arith.addf %30, %39 : vector<16x16x64xf32>
    %41 = vector.broadcast %11 : vector<1x1x64xf32> to vector<16x16x64xf32>
    %42 = arith.addf %40, %41 : vector<16x16x64xf32>
    %cst = arith.constant 0.000000e+00 : f32
    %43 = vector.broadcast %cst : f32 to vector<16x16x64xf32>
    %44 = arith.maximumf %42, %43 : vector<16x16x64xf32>
    %45 = vector.shape_cast %44 : vector<16x16x64xf32> to vector<256x64xf32>
    %46 = arith.truncf %45 : vector<256x64xf32> to vector<256x64xbf16>
    %c0_19 = arith.constant 0 : index
    %c0_20 = arith.constant 0 : index
    %47 = vector.load %arg11[%c0_19, %c0_20] : memref<64x64xbf16, #tpu.memory_space<vmem>>, vector<64x64xbf16>
    %cst_21 = arith.constant dense<0.000000e+00> : vector<256x64xf32>
    %48 = tpu.matmul %46, %47, %cst_21 {dimension_numbers = #tpu.dot_dimension_numbers<[1], [0], [0], [1], [0, 0, 1, 1], [], []>} : vector<256x64xbf16>, vector<64x64xbf16>, vector<256x64xf32> -> vector<256x64xf32>
    %c0_22 = arith.constant 0 : index
    %c0_23 = arith.constant 0 : index
    %49 = vector.load %arg12[%c0_22, %c0_23] : memref<1x64xf32, #tpu.memory_space<vmem>>, vector<1x64xf32>
    %50 = vector.broadcast %49 : vector<1x64xf32> to vector<256x64xf32>
    %51 = arith.addf %48, %50 : vector<256x64xf32>
    %52 = vector.shape_cast %51 : vector<256x64xf32> to vector<16x16x64xf32>
    %53 = arith.addf %8, %52 : vector<16x16x64xf32>
    %54 = vector.shape_cast %53 : vector<16x16x64xf32> to vector<256x64xf32>
    %55 = arith.truncf %54 : vector<256x64xf32> to vector<256x64xbf16>
    %c0_24 = arith.constant 0 : index
    %c0_25 = arith.constant 0 : index
    %56 = vector.load %arg13[%c0_24, %c0_25] : memref<64x256xbf16, #tpu.memory_space<vmem>>, vector<64x256xbf16>
    %cst_26 = arith.constant dense<0.000000e+00> : vector<256x256xf32>
    %57 = tpu.matmul %55, %56, %cst_26 {dimension_numbers = #tpu.dot_dimension_numbers<[1], [0], [0], [1], [0, 0, 1, 1], [], []>} : vector<256x64xbf16>, vector<64x256xbf16>, vector<256x256xf32> -> vector<256x256xf32>
    %c0_27 = arith.constant 0 : index
    %c0_28 = arith.constant 0 : index
    %58 = vector.load %arg14[%c0_27, %c0_28] : memref<1x256xf32, #tpu.memory_space<vmem>>, vector<1x256xf32>
    %59 = vector.broadcast %58 : vector<1x256xf32> to vector<256x256xf32>
    %60 = arith.addf %57, %59 : vector<256x256xf32>
    %cst_29 = arith.constant 0.000000e+00 : f32
    %61 = vector.broadcast %cst_29 : f32 to vector<256x256xf32>
    %62 = arith.maximumf %60, %61 : vector<256x256xf32>
    %63 = arith.truncf %62 : vector<256x256xf32> to vector<256x256xbf16>
    %c0_30 = arith.constant 0 : index
    %c0_31 = arith.constant 0 : index
    %64 = vector.load %arg15[%c0_30, %c0_31] : memref<256x64xbf16, #tpu.memory_space<vmem>>, vector<256x64xbf16>
    %cst_32 = arith.constant dense<0.000000e+00> : vector<256x64xf32>
    %65 = tpu.matmul %63, %64, %cst_32 {dimension_numbers = #tpu.dot_dimension_numbers<[1], [0], [0], [1], [0, 0, 1, 1], [], []>} : vector<256x256xbf16>, vector<256x64xbf16>, vector<256x64xf32> -> vector<256x64xf32>
    %c0_33 = arith.constant 0 : index
    %c0_34 = arith.constant 0 : index
    %66 = vector.load %arg16[%c0_33, %c0_34] : memref<1x64xf32, #tpu.memory_space<vmem>>, vector<1x64xf32>
    %67 = vector.broadcast %66 : vector<1x64xf32> to vector<256x64xf32>
    %68 = arith.addf %65, %67 : vector<256x64xf32>
    %69 = vector.shape_cast %68 : vector<256x64xf32> to vector<16x16x64xf32>
    %cst_35 = arith.constant dense<0xFF800000> : vector<16x64xf32>
    %70 = vector.multi_reduction <maximumf>, %69, %cst_35 [1] : vector<16x16x64xf32> to vector<16x64xf32>
    %71 = vector.shape_cast %70 : vector<16x64xf32> to vector<16x1x64xf32>
    %72 = vector.broadcast %71 : vector<16x1x64xf32> to vector<16x16x64xf32>
    %73 = arith.subf %69, %72 : vector<16x16x64xf32>
    %74 = math.exp %73 : vector<16x16x64xf32>
    %cst_36 = arith.constant dense<0.000000e+00> : vector<16x64xf32>
    %75 = vector.multi_reduction <add>, %74, %cst_36 [1] : vector<16x16x64xf32> to vector<16x64xf32>
    %76 = vector.shape_cast %75 : vector<16x64xf32> to vector<16x1x64xf32>
    %77 = tpu.reciprocal %76 {approx = true} : vector<16x1x64xf32> -> vector<16x1x64xf32>
    %78 = vector.broadcast %77 : vector<16x1x64xf32> to vector<16x16x64xf32>
    %79 = arith.mulf %74, %78 : vector<16x16x64xf32>
    %c0_37 = arith.constant 0 : index
    %c0_38 = arith.constant 0 : index
    %c0_39 = arith.constant 0 : index
    %80 = vector.load %arg4[%c0_37, %c0_38, %c0_39] : memref<1x16x64xbf16, #tpu.memory_space<vmem>>, vector<1x16x64xbf16>
    %81 = vector.shape_cast %80 : vector<1x16x64xbf16> to vector<16x64xbf16>
    %82 = arith.extf %81 : vector<16x64xbf16> to vector<16x64xf32>
    %83 = vector.shape_cast %82 : vector<16x64xf32> to vector<16x1x64xf32>
    %84 = vector.broadcast %83 : vector<16x1x64xf32> to vector<16x16x64xf32>
    %85 = arith.addf %84, %52 : vector<16x16x64xf32>
    %86 = arith.mulf %79, %85 : vector<16x16x64xf32>
    %cst_40 = arith.constant dense<0.000000e+00> : vector<16x64xf32>
    %87 = vector.multi_reduction <add>, %86, %cst_40 [1] : vector<16x16x64xf32> to vector<16x64xf32>
    %88 = arith.truncf %87 : vector<16x64xf32> to vector<16x64xbf16>
    %c0_41 = arith.constant 0 : index
    %c0_42 = arith.constant 0 : index
    %89 = vector.load %arg17[%c0_41, %c0_42] : memref<64x128xbf16, #tpu.memory_space<vmem>>, vector<64x128xbf16>
    %cst_43 = arith.constant dense<0.000000e+00> : vector<16x128xf32>
    %90 = tpu.matmul %88, %89, %cst_43 {dimension_numbers = #tpu.dot_dimension_numbers<[1], [0], [0], [1], [0, 0, 1, 1], [], []>} : vector<16x64xbf16>, vector<64x128xbf16>, vector<16x128xf32> -> vector<16x128xf32>
    %c0_44 = arith.constant 0 : index
    %c0_45 = arith.constant 0 : index
    %91 = vector.load %arg18[%c0_44, %c0_45] : memref<1x128xf32, #tpu.memory_space<vmem>>, vector<1x128xf32>
    %92 = vector.broadcast %91 : vector<1x128xf32> to vector<16x128xf32>
    %93 = arith.addf %90, %92 : vector<16x128xf32>
    %c0_46 = arith.constant 0 : index
    %c0_47 = arith.constant 0 : index
    %c0_48 = arith.constant 0 : index
    %94 = vector.load %arg8[%c0_46, %c0_47, %c0_48] : memref<1x16x128xf32, #tpu.memory_space<vmem>>, vector<1x16x128xf32>
    %95 = vector.shape_cast %94 : vector<1x16x128xf32> to vector<16x128xf32>
    %96 = arith.addf %93, %95 : vector<16x128xf32>
    %c0_49 = arith.constant 0 : index
    %c0_50 = arith.constant 0 : index
    %c0_51 = arith.constant 0 : index
    %97 = vector.load %arg19[%c0_49, %c0_50, %c0_51] : memref<1x16x128xf32, #tpu.memory_space<vmem>>, vector<1x16x128xf32>
    %98 = vector.shape_cast %97 : vector<1x16x128xf32> to vector<16x128xf32>
    %99 = vector.shape_cast %96 : vector<16x128xf32> to vector<1x16x128xf32>
    tpu.vector_store %arg19[%c0_49, %c0_50, %c0_51], %99 {strides = array<i32>} : memref<1x16x128xf32, #tpu.memory_space<vmem>>, vector<1x16x128xf32>,
    return
  }
  func.func @transform_0(%arg0: i32, %arg1: i32) -> (i32, i32, i32) {
    %c0_i32 = arith.constant 0 : i32
    %c0_i32_0 = arith.constant 0 : i32
    return %arg0, %arg1, %c0_i32 : i32, i32, i32
  }
  func.func @transform_1(%arg0: i32, %arg1: i32) -> (i32, i32, i32, i32) {
    %c0_i32 = arith.constant 0 : i32
    %c0_i32_0 = arith.constant 0 : i32
    %c0_i32_1 = arith.constant 0 : i32
    return %arg0, %arg1, %c0_i32, %c0_i32_0 : i32, i32, i32, i32
  }
  func.func @transform_2(%arg0: i32, %arg1: i32) -> (i32, i32, i32) {
    %c0_i32 = arith.constant 0 : i32
    %c0_i32_0 = arith.constant 0 : i32
    return %arg0, %arg1, %c0_i32 : i32, i32, i32
  }
  func.func @transform_3(%arg0: i32, %arg1: i32) -> (i32, i32, i32) {
    %c0_i32 = arith.constant 0 : i32
    %c0_i32_0 = arith.constant 0 : i32
    return %arg0, %arg1, %c0_i32 : i32, i32, i32
  }
  func.func @transform_4(%arg0: i32, %arg1: i32) -> (i32, i32, i32) {
    %c0_i32 = arith.constant 0 : i32
    %c0_i32_0 = arith.constant 0 : i32
    return %arg0, %arg1, %c0_i32 : i32, i32, i32
  }
  func.func @transform_5(%arg0: i32, %arg1: i32) -> (i32, i32, i32) {
    %c0_i32 = arith.constant 0 : i32
    %c0_i32_0 = arith.constant 0 : i32
    return %arg0, %arg1, %c0_i32 : i32, i32, i32
  }
  func.func @transform_6(%arg0: i32, %arg1: i32) -> (i32, i32, i32) {
    %c0_i32 = arith.constant 0 : i32
    %c0_i32_0 = arith.constant 0 : i32
    return %arg0, %arg1, %c0_i32 : i32, i32, i32
  }
  func.func @transform_7(%arg0: i32, %arg1: i32) -> (i32, i32) {
    %c0_i32 = arith.constant 0 : i32
    %c0_i32_0 = arith.constant 0 : i32
    %c0_i32_1 = arith.constant 0 : i32
    return %c0_i32, %c0_i32_0 : i32, i32
  }
  func.func @transform_8(%arg0: i32, %arg1: i32) -> (i32, i32) {
    %c0_i32 = arith.constant 0 : i32
    %c0_i32_0 = arith.constant 0 : i32
    %c0_i32_1 = arith.constant 0 : i32
    return %c0_i32, %c0_i32_0 : i32, i32
  }
  func.func @transform_9(%arg0: i32, %arg1: i32) -> (i32, i32) {
    %c0_i32 = arith.constant 0 : i32
    %c0_i32_0 = arith.constant 0 : i32
    %c0_i32_1 = arith.constant 0 : i32
    return %c0_i32, %c0_i32_0 : i32, i32
  }
  func.func @transform_10(%arg0: i32, %arg1: i32) -> (i32, i32) {
    %c0_i32 = arith.constant 0 : i32
    %c0_i32_0 = arith.constant 0 : i32
    %c0_i32_1 = arith.constant 0 : i32
    return %c0_i32, %c0_i32_0 : i32, i32
  }
  func.func @transform_11(%arg0: i32, %arg1: i32) -> (i32, i32) {
    %c0_i32 = arith.constant 0 : i32
    %c0_i32_0 = arith.constant 0 : i32
    %c0_i32_1 = arith.constant 0 : i32
    return %c0_i32, %c0_i32_0 : i32, i32
  }
  func.func @transform_12(%arg0: i32, %arg1: i32) -> (i32, i32) {
    %c0_i32 = arith.constant 0 : i32
    %c0_i32_0 = arith.constant 0 : i32
    %c0_i32_1 = arith.constant 0 : i32
    return %c0_i32, %c0_i32_0 : i32, i32
  }
  func.func @transform_13(%arg0: i32, %arg1: i32) -> (i32, i32) {
    %c0_i32 = arith.constant 0 : i32
    %c0_i32_0 = arith.constant 0 : i32
    %c0_i32_1 = arith.constant 0 : i32
    return %c0_i32, %c0_i32_0 : i32, i32
  }
  func.func @transform_14(%arg0: i32, %arg1: i32) -> (i32, i32) {
    %c0_i32 = arith.constant 0 : i32
    %c0_i32_0 = arith.constant 0 : i32
    %c0_i32_1 = arith.constant 0 : i32
    return %c0_i32, %c0_i32_0 : i32, i32
  }
  func.func @transform_15(%arg0: i32, %arg1: i32) -> (i32, i32) {
    %c0_i32 = arith.constant 0 : i32
    %c0_i32_0 = arith.constant 0 : i32
    %c0_i32_1 = arith.constant 0 : i32
    return %c0_i32, %c0_i32_0 : i32, i32
  }
  func.func @transform_16(%arg0: i32, %arg1: i32) -> (i32, i32) {
    %c0_i32 = arith.constant 0 : i32
    %c0_i32_0 = arith.constant 0 : i32
    %c0_i32_1 = arith.constant 0 : i32
    return %c0_i32, %c0_i32_0 : i32, i32
  }
  func.func @transform_17(%arg0: i32, %arg1: i32) -> (i32, i32, i32) {
    %c0_i32 = arith.constant 0 : i32
    %c0_i32_0 = arith.constant 0 : i32
    return %arg0, %arg1, %c0_i32 : i32, i32, i32
  }
}

module attributes {stable_mosaic.version = 11 : i64} {
  func.func @_fused_mlp_kernel(%arg0: i32, %arg1: i32, %arg2: memref<1x16x128xf32, #tpu.memory_space<vmem>>, %arg3: memref<1x16x128xf32, #tpu.memory_space<vmem>>, %arg4: memref<128x128xbf16, #tpu.memory_space<vmem>>, %arg5: memref<128x128xbf16, #tpu.memory_space<vmem>>, %arg6: memref<1x128xf32, #tpu.memory_space<vmem>>, %arg7: memref<1x16x128xf32, #tpu.memory_space<vmem>>) attributes {dimension_semantics = [#tpu.dimension_semantics<parallel>, #tpu.dimension_semantics<parallel>], iteration_bounds = array<i64: 2, 1>, scalar_prefetch = 0 : i64, scratch_operands = 0 : i64, tpu.core_type = #tpu.core_type<tc>, window_params = [{transform_indices = @transform_0, window_bounds = array<i64: 1, 16, 128>}, {transform_indices = @transform_1, window_bounds = array<i64: 1, 16, 128>}, {pipeline_mode = #tpu.pipeline_mode<synchronous>, transform_indices = @transform_2, window_bounds = array<i64: 128, 128>}, {pipeline_mode = #tpu.pipeline_mode<synchronous>, transform_indices = @transform_3, window_bounds = array<i64: 128, 128>}, {pipeline_mode = #tpu.pipeline_mode<synchronous>, transform_indices = @transform_4, window_bounds = array<i64: 1, 128>}, {transform_indices = @transform_5, window_bounds = array<i64: 1, 16, 128>}]} {
    %c0 = arith.constant 0 : index
    %c0_0 = arith.constant 0 : index
    %c0_1 = arith.constant 0 : index
    %0 = vector.load %arg2[%c0, %c0_0, %c0_1] : memref<1x16x128xf32, #tpu.memory_space<vmem>>, vector<1x16x128xf32>
    %1 = vector.shape_cast %0 : vector<1x16x128xf32> to vector<16x128xf32>
    %c0_2 = arith.constant 0 : index
    %c0_3 = arith.constant 0 : index
    %2 = vector.load %arg4[%c0_2, %c0_3] : memref<128x128xbf16, #tpu.memory_space<vmem>>, vector<128x128xbf16>
    %3 = arith.truncf %1 : vector<16x128xf32> to vector<16x128xbf16>
    %cst = arith.constant dense<0.000000e+00> : vector<16x128xf32>
    %4 = tpu.matmul %3, %2, %cst {dimension_numbers = #tpu.dot_dimension_numbers<[1], [0], [0], [1], [0, 0, 1, 1], [], []>} : vector<16x128xbf16>, vector<128x128xbf16>, vector<16x128xf32> -> vector<16x128xf32>
    %c0_4 = arith.constant 0 : index
    %c0_5 = arith.constant 0 : index
    %c0_6 = arith.constant 0 : index
    %5 = vector.load %arg3[%c0_4, %c0_5, %c0_6] : memref<1x16x128xf32, #tpu.memory_space<vmem>>, vector<1x16x128xf32>
    %6 = vector.shape_cast %5 : vector<1x16x128xf32> to vector<16x128xf32>
    %c0_7 = arith.constant 0 : index
    %c0_8 = arith.constant 0 : index
    %7 = vector.load %arg5[%c0_7, %c0_8] : memref<128x128xbf16, #tpu.memory_space<vmem>>, vector<128x128xbf16>
    %8 = arith.truncf %6 : vector<16x128xf32> to vector<16x128xbf16>
    %cst_9 = arith.constant dense<0.000000e+00> : vector<16x128xf32>
    %9 = tpu.matmul %8, %7, %cst_9 {dimension_numbers = #tpu.dot_dimension_numbers<[1], [0], [0], [1], [0, 0, 1, 1], [], []>} : vector<16x128xbf16>, vector<128x128xbf16>, vector<16x128xf32> -> vector<16x128xf32>
    %10 = arith.addf %4, %9 : vector<16x128xf32>
    %c0_10 = arith.constant 0 : index
    %c0_11 = arith.constant 0 : index
    %11 = vector.load %arg6[%c0_10, %c0_11] : memref<1x128xf32, #tpu.memory_space<vmem>>, vector<1x128xf32>
    %12 = vector.broadcast %11 : vector<1x128xf32> to vector<16x128xf32>
    %13 = arith.addf %10, %12 : vector<16x128xf32>
    %cst_12 = arith.constant 0.000000e+00 : f32
    %14 = vector.broadcast %cst_12 : f32 to vector<16x128xf32>
    %15 = arith.maximumf %13, %14 : vector<16x128xf32>
    %c0_13 = arith.constant 0 : index
    %c0_14 = arith.constant 0 : index
    %c0_15 = arith.constant 0 : index
    %16 = vector.load %arg7[%c0_13, %c0_14, %c0_15] : memref<1x16x128xf32, #tpu.memory_space<vmem>>, vector<1x16x128xf32>
    %17 = vector.shape_cast %16 : vector<1x16x128xf32> to vector<16x128xf32>
    %18 = vector.shape_cast %15 : vector<16x128xf32> to vector<1x16x128xf32>
    tpu.vector_store %arg7[%c0_13, %c0_14, %c0_15], %18 {strides = array<i32>} : memref<1x16x128xf32, #tpu.memory_space<vmem>>, vector<1x16x128xf32>,
    return
  }
  func.func @transform_0(%arg0: i32, %arg1: i32) -> (i32, i32, i32) {
    %c0_i32 = arith.constant 0 : i32
    %c0_i32_0 = arith.constant 0 : i32
    return %arg0, %arg1, %c0_i32 : i32, i32, i32
  }
  func.func @transform_1(%arg0: i32, %arg1: i32) -> (i32, i32, i32) {
    %c0_i32 = arith.constant 0 : i32
    %c0_i32_0 = arith.constant 0 : i32
    return %arg0, %arg1, %c0_i32 : i32, i32, i32
  }
  func.func @transform_2(%arg0: i32, %arg1: i32) -> (i32, i32) {
    %c0_i32 = arith.constant 0 : i32
    %c0_i32_0 = arith.constant 0 : i32
    %c0_i32_1 = arith.constant 0 : i32
    return %c0_i32, %c0_i32_0 : i32, i32
  }
  func.func @transform_3(%arg0: i32, %arg1: i32) -> (i32, i32) {
    %c0_i32 = arith.constant 0 : i32
    %c0_i32_0 = arith.constant 0 : i32
    %c0_i32_1 = arith.constant 0 : i32
    return %c0_i32, %c0_i32_0 : i32, i32
  }
  func.func @transform_4(%arg0: i32, %arg1: i32) -> (i32, i32) {
    %c0_i32 = arith.constant 0 : i32
    %c0_i32_0 = arith.constant 0 : i32
    %c0_i32_1 = arith.constant 0 : i32
    return %c0_i32, %c0_i32_0 : i32, i32
  }
  func.func @transform_5(%arg0: i32, %arg1: i32) -> (i32, i32, i32) {
    %c0_i32 = arith.constant 0 : i32
    %c0_i32_0 = arith.constant 0 : i32
    return %arg0, %arg1, %c0_i32 : i32, i32, i32
  }
}

module attributes {stable_mosaic.version = 11 : i64} {
  func.func @_fused_mlp_kernel(%arg0: i32, %arg1: i32, %arg2: memref<1x16x128xf32, #tpu.memory_space<vmem>>, %arg3: memref<1x16x128xf32, #tpu.memory_space<vmem>>, %arg4: memref<1x16x128xf32, #tpu.memory_space<vmem>>, %arg5: memref<128x256xbf16, #tpu.memory_space<vmem>>, %arg6: memref<128x256xbf16, #tpu.memory_space<vmem>>, %arg7: memref<128x256xbf16, #tpu.memory_space<vmem>>, %arg8: memref<1x256xf32, #tpu.memory_space<vmem>>, %arg9: memref<256x128xbf16, #tpu.memory_space<vmem>>, %arg10: memref<1x128xf32, #tpu.memory_space<vmem>>, %arg11: memref<1x16x128xf32, #tpu.memory_space<vmem>>) attributes {dimension_semantics = [#tpu.dimension_semantics<parallel>, #tpu.dimension_semantics<parallel>], iteration_bounds = array<i64: 2, 1>, scalar_prefetch = 0 : i64, scratch_operands = 0 : i64, tpu.core_type = #tpu.core_type<tc>, window_params = [{transform_indices = @transform_0, window_bounds = array<i64: 1, 16, 128>}, {transform_indices = @transform_1, window_bounds = array<i64: 1, 16, 128>}, {transform_indices = @transform_2, window_bounds = array<i64: 1, 16, 128>}, {pipeline_mode = #tpu.pipeline_mode<synchronous>, transform_indices = @transform_3, window_bounds = array<i64: 128, 256>}, {pipeline_mode = #tpu.pipeline_mode<synchronous>, transform_indices = @transform_4, window_bounds = array<i64: 128, 256>}, {pipeline_mode = #tpu.pipeline_mode<synchronous>, transform_indices = @transform_5, window_bounds = array<i64: 128, 256>}, {pipeline_mode = #tpu.pipeline_mode<synchronous>, transform_indices = @transform_6, window_bounds = array<i64: 1, 256>}, {pipeline_mode = #tpu.pipeline_mode<synchronous>, transform_indices = @transform_7, window_bounds = array<i64: 256, 128>}, {pipeline_mode = #tpu.pipeline_mode<synchronous>, transform_indices = @transform_8, window_bounds = array<i64: 1, 128>}, {transform_indices = @transform_9, window_bounds = array<i64: 1, 16, 128>}]} {
    %c0 = arith.constant 0 : index
    %c0_0 = arith.constant 0 : index
    %c0_1 = arith.constant 0 : index
    %0 = vector.load %arg2[%c0, %c0_0, %c0_1] : memref<1x16x128xf32, #tpu.memory_space<vmem>>, vector<1x16x128xf32>
    %1 = vector.shape_cast %0 : vector<1x16x128xf32> to vector<16x128xf32>
    %c0_2 = arith.constant 0 : index
    %c0_3 = arith.constant 0 : index
    %2 = vector.load %arg5[%c0_2, %c0_3] : memref<128x256xbf16, #tpu.memory_space<vmem>>, vector<128x256xbf16>
    %3 = arith.truncf %1 : vector<16x128xf32> to vector<16x128xbf16>
    %cst = arith.constant dense<0.000000e+00> : vector<16x256xf32>
    %4 = tpu.matmul %3, %2, %cst {dimension_numbers = #tpu.dot_dimension_numbers<[1], [0], [0], [1], [0, 0, 1, 1], [], []>} : vector<16x128xbf16>, vector<128x256xbf16>, vector<16x256xf32> -> vector<16x256xf32>
    %c0_4 = arith.constant 0 : index
    %c0_5 = arith.constant 0 : index
    %c0_6 = arith.constant 0 : index
    %5 = vector.load %arg3[%c0_4, %c0_5, %c0_6] : memref<1x16x128xf32, #tpu.memory_space<vmem>>, vector<1x16x128xf32>
    %6 = vector.shape_cast %5 : vector<1x16x128xf32> to vector<16x128xf32>
    %c0_7 = arith.constant 0 : index
    %c0_8 = arith.constant 0 : index
    %7 = vector.load %arg6[%c0_7, %c0_8] : memref<128x256xbf16, #tpu.memory_space<vmem>>, vector<128x256xbf16>
    %8 = arith.truncf %6 : vector<16x128xf32> to vector<16x128xbf16>
    %cst_9 = arith.constant dense<0.000000e+00> : vector<16x256xf32>
    %9 = tpu.matmul %8, %7, %cst_9 {dimension_numbers = #tpu.dot_dimension_numbers<[1], [0], [0], [1], [0, 0, 1, 1], [], []>} : vector<16x128xbf16>, vector<128x256xbf16>, vector<16x256xf32> -> vector<16x256xf32>
    %10 = arith.addf %4, %9 : vector<16x256xf32>
    %c0_10 = arith.constant 0 : index
    %c0_11 = arith.constant 0 : index
    %c0_12 = arith.constant 0 : index
    %11 = vector.load %arg4[%c0_10, %c0_11, %c0_12] : memref<1x16x128xf32, #tpu.memory_space<vmem>>, vector<1x16x128xf32>
    %12 = vector.shape_cast %11 : vector<1x16x128xf32> to vector<16x128xf32>
    %c0_13 = arith.constant 0 : index
    %c0_14 = arith.constant 0 : index
    %13 = vector.load %arg7[%c0_13, %c0_14] : memref<128x256xbf16, #tpu.memory_space<vmem>>, vector<128x256xbf16>
    %14 = arith.truncf %12 : vector<16x128xf32> to vector<16x128xbf16>
    %cst_15 = arith.constant dense<0.000000e+00> : vector<16x256xf32>
    %15 = tpu.matmul %14, %13, %cst_15 {dimension_numbers = #tpu.dot_dimension_numbers<[1], [0], [0], [1], [0, 0, 1, 1], [], []>} : vector<16x128xbf16>, vector<128x256xbf16>, vector<16x256xf32> -> vector<16x256xf32>
    %16 = arith.addf %10, %15 : vector<16x256xf32>
    %c0_16 = arith.constant 0 : index
    %c0_17 = arith.constant 0 : index
    %17 = vector.load %arg8[%c0_16, %c0_17] : memref<1x256xf32, #tpu.memory_space<vmem>>, vector<1x256xf32>
    %18 = vector.broadcast %17 : vector<1x256xf32> to vector<16x256xf32>
    %19 = arith.addf %16, %18 : vector<16x256xf32>
    %cst_18 = arith.constant 0.000000e+00 : f32
    %20 = vector.broadcast %cst_18 : f32 to vector<16x256xf32>
    %21 = arith.maximumf %19, %20 : vector<16x256xf32>
    %c0_19 = arith.constant 0 : index
    %c0_20 = arith.constant 0 : index
    %22 = vector.load %arg9[%c0_19, %c0_20] : memref<256x128xbf16, #tpu.memory_space<vmem>>, vector<256x128xbf16>
    %c0_21 = arith.constant 0 : index
    %c0_22 = arith.constant 0 : index
    %23 = vector.load %arg10[%c0_21, %c0_22] : memref<1x128xf32, #tpu.memory_space<vmem>>, vector<1x128xf32>
    %24 = arith.truncf %21 : vector<16x256xf32> to vector<16x256xbf16>
    %cst_23 = arith.constant dense<0.000000e+00> : vector<16x128xf32>
    %25 = tpu.matmul %24, %22, %cst_23 {dimension_numbers = #tpu.dot_dimension_numbers<[1], [0], [0], [1], [0, 0, 1, 1], [], []>} : vector<16x256xbf16>, vector<256x128xbf16>, vector<16x128xf32> -> vector<16x128xf32>
    %26 = vector.broadcast %23 : vector<1x128xf32> to vector<16x128xf32>
    %27 = arith.addf %25, %26 : vector<16x128xf32>
    %c0_24 = arith.constant 0 : index
    %c0_25 = arith.constant 0 : index
    %c0_26 = arith.constant 0 : index
    %28 = vector.load %arg11[%c0_24, %c0_25, %c0_26] : memref<1x16x128xf32, #tpu.memory_space<vmem>>, vector<1x16x128xf32>
    %29 = vector.shape_cast %28 : vector<1x16x128xf32> to vector<16x128xf32>
    %30 = vector.shape_cast %27 : vector<16x128xf32> to vector<1x16x128xf32>
    tpu.vector_store %arg11[%c0_24, %c0_25, %c0_26], %30 {strides = array<i32>} : memref<1x16x128xf32, #tpu.memory_space<vmem>>, vector<1x16x128xf32>,
    return
  }
  func.func @transform_0(%arg0: i32, %arg1: i32) -> (i32, i32, i32) {
    %c0_i32 = arith.constant 0 : i32
    %c0_i32_0 = arith.constant 0 : i32
    return %arg0, %arg1, %c0_i32 : i32, i32, i32
  }
  func.func @transform_1(%arg0: i32, %arg1: i32) -> (i32, i32, i32) {
    %c0_i32 = arith.constant 0 : i32
    %c0_i32_0 = arith.constant 0 : i32
    return %arg0, %arg1, %c0_i32 : i32, i32, i32
  }
  func.func @transform_2(%arg0: i32, %arg1: i32) -> (i32, i32, i32) {
    %c0_i32 = arith.constant 0 : i32
    %c0_i32_0 = arith.constant 0 : i32
    return %arg0, %arg1, %c0_i32 : i32, i32, i32
  }
  func.func @transform_3(%arg0: i32, %arg1: i32) -> (i32, i32) {
    %c0_i32 = arith.constant 0 : i32
    %c0_i32_0 = arith.constant 0 : i32
    %c0_i32_1 = arith.constant 0 : i32
    return %c0_i32, %c0_i32_0 : i32, i32
  }
  func.func @transform_4(%arg0: i32, %arg1: i32) -> (i32, i32) {
    %c0_i32 = arith.constant 0 : i32
    %c0_i32_0 = arith.constant 0 : i32
    %c0_i32_1 = arith.constant 0 : i32
    return %c0_i32, %c0_i32_0 : i32, i32
  }
  func.func @transform_5(%arg0: i32, %arg1: i32) -> (i32, i32) {
    %c0_i32 = arith.constant 0 : i32
    %c0_i32_0 = arith.constant 0 : i32
    %c0_i32_1 = arith.constant 0 : i32
    return %c0_i32, %c0_i32_0 : i32, i32
  }
  func.func @transform_6(%arg0: i32, %arg1: i32) -> (i32, i32) {
    %c0_i32 = arith.constant 0 : i32
    %c0_i32_0 = arith.constant 0 : i32
    %c0_i32_1 = arith.constant 0 : i32
    return %c0_i32, %c0_i32_0 : i32, i32
  }
  func.func @transform_7(%arg0: i32, %arg1: i32) -> (i32, i32) {
    %c0_i32 = arith.constant 0 : i32
    %c0_i32_0 = arith.constant 0 : i32
    %c0_i32_1 = arith.constant 0 : i32
    return %c0_i32, %c0_i32_0 : i32, i32
  }
  func.func @transform_8(%arg0: i32, %arg1: i32) -> (i32, i32) {
    %c0_i32 = arith.constant 0 : i32
    %c0_i32_0 = arith.constant 0 : i32
    %c0_i32_1 = arith.constant 0 : i32
    return %c0_i32, %c0_i32_0 : i32, i32
  }
  func.func @transform_9(%arg0: i32, %arg1: i32) -> (i32, i32, i32) {
    %c0_i32 = arith.constant 0 : i32
    %c0_i32_0 = arith.constant 0 : i32
    return %arg0, %arg1, %c0_i32 : i32, i32, i32
  }
}

module attributes {stable_mosaic.version = 11 : i64} {
  func.func @_fused_mlp_kernel(%arg0: i32, %arg1: i32, %arg2: memref<1x16x128xf32, #tpu.memory_space<vmem>>, %arg3: memref<1x16x128xf32, #tpu.memory_space<vmem>>, %arg4: memref<1x16x128xf32, #tpu.memory_space<vmem>>, %arg5: memref<1x16x128xf32, #tpu.memory_space<vmem>>, %arg6: memref<128x384xbf16, #tpu.memory_space<vmem>>, %arg7: memref<128x384xbf16, #tpu.memory_space<vmem>>, %arg8: memref<128x384xbf16, #tpu.memory_space<vmem>>, %arg9: memref<128x384xbf16, #tpu.memory_space<vmem>>, %arg10: memref<1x384xf32, #tpu.memory_space<vmem>>, %arg11: memref<384x256xbf16, #tpu.memory_space<vmem>>, %arg12: memref<1x256xf32, #tpu.memory_space<vmem>>, %arg13: memref<256x128xbf16, #tpu.memory_space<vmem>>, %arg14: memref<1x128xf32, #tpu.memory_space<vmem>>, %arg15: memref<1x16x128xf32, #tpu.memory_space<vmem>>) attributes {dimension_semantics = [#tpu.dimension_semantics<parallel>, #tpu.dimension_semantics<parallel>], iteration_bounds = array<i64: 2, 1>, scalar_prefetch = 0 : i64, scratch_operands = 0 : i64, tpu.core_type = #tpu.core_type<tc>, window_params = [{transform_indices = @transform_0, window_bounds = array<i64: 1, 16, 128>}, {transform_indices = @transform_1, window_bounds = array<i64: 1, 16, 128>}, {transform_indices = @transform_2, window_bounds = array<i64: 1, 16, 128>}, {transform_indices = @transform_3, window_bounds = array<i64: 1, 16, 128>}, {pipeline_mode = #tpu.pipeline_mode<synchronous>, transform_indices = @transform_4, window_bounds = array<i64: 128, 384>}, {pipeline_mode = #tpu.pipeline_mode<synchronous>, transform_indices = @transform_5, window_bounds = array<i64: 128, 384>}, {pipeline_mode = #tpu.pipeline_mode<synchronous>, transform_indices = @transform_6, window_bounds = array<i64: 128, 384>}, {pipeline_mode = #tpu.pipeline_mode<synchronous>, transform_indices = @transform_7, window_bounds = array<i64: 128, 384>}, {pipeline_mode = #tpu.pipeline_mode<synchronous>, transform_indices = @transform_8, window_bounds = array<i64: 1, 384>}, {pipeline_mode = #tpu.pipeline_mode<synchronous>, transform_indices = @transform_9, window_bounds = array<i64: 384, 256>}, {pipeline_mode = #tpu.pipeline_mode<synchronous>, transform_indices = @transform_10, window_bounds = array<i64: 1, 256>}, {pipeline_mode = #tpu.pipeline_mode<synchronous>, transform_indices = @transform_11, window_bounds = array<i64: 256, 128>}, {pipeline_mode = #tpu.pipeline_mode<synchronous>, transform_indices = @transform_12, window_bounds = array<i64: 1, 128>}, {transform_indices = @transform_13, window_bounds = array<i64: 1, 16, 128>}]} {
    %c0 = arith.constant 0 : index
    %c0_0 = arith.constant 0 : index
    %c0_1 = arith.constant 0 : index
    %0 = vector.load %arg2[%c0, %c0_0, %c0_1] : memref<1x16x128xf32, #tpu.memory_space<vmem>>, vector<1x16x128xf32>
    %1 = vector.shape_cast %0 : vector<1x16x128xf32> to vector<16x128xf32>
    %c0_2 = arith.constant 0 : index
    %c0_3 = arith.constant 0 : index
    %2 = vector.load %arg6[%c0_2, %c0_3] : memref<128x384xbf16, #tpu.memory_space<vmem>>, vector<128x384xbf16>
    %3 = arith.truncf %1 : vector<16x128xf32> to vector<16x128xbf16>
    %cst = arith.constant dense<0.000000e+00> : vector<16x384xf32>
    %4 = tpu.matmul %3, %2, %cst {dimension_numbers = #tpu.dot_dimension_numbers<[1], [0], [0], [1], [0, 0, 1, 1], [], []>} : vector<16x128xbf16>, vector<128x384xbf16>, vector<16x384xf32> -> vector<16x384xf32>
    %c0_4 = arith.constant 0 : index
    %c0_5 = arith.constant 0 : index
    %c0_6 = arith.constant 0 : index
    %5 = vector.load %arg3[%c0_4, %c0_5, %c0_6] : memref<1x16x128xf32, #tpu.memory_space<vmem>>, vector<1x16x128xf32>
    %6 = vector.shape_cast %5 : vector<1x16x128xf32> to vector<16x128xf32>
    %c0_7 = arith.constant 0 : index
    %c0_8 = arith.constant 0 : index
    %7 = vector.load %arg7[%c0_7, %c0_8] : memref<128x384xbf16, #tpu.memory_space<vmem>>, vector<128x384xbf16>
    %8 = arith.truncf %6 : vector<16x128xf32> to vector<16x128xbf16>
    %cst_9 = arith.constant dense<0.000000e+00> : vector<16x384xf32>
    %9 = tpu.matmul %8, %7, %cst_9 {dimension_numbers = #tpu.dot_dimension_numbers<[1], [0], [0], [1], [0, 0, 1, 1], [], []>} : vector<16x128xbf16>, vector<128x384xbf16>, vector<16x384xf32> -> vector<16x384xf32>
    %10 = arith.addf %4, %9 : vector<16x384xf32>
    %c0_10 = arith.constant 0 : index
    %c0_11 = arith.constant 0 : index
    %c0_12 = arith.constant 0 : index
    %11 = vector.load %arg4[%c0_10, %c0_11, %c0_12] : memref<1x16x128xf32, #tpu.memory_space<vmem>>, vector<1x16x128xf32>
    %12 = vector.shape_cast %11 : vector<1x16x128xf32> to vector<16x128xf32>
    %c0_13 = arith.constant 0 : index
    %c0_14 = arith.constant 0 : index
    %13 = vector.load %arg8[%c0_13, %c0_14] : memref<128x384xbf16, #tpu.memory_space<vmem>>, vector<128x384xbf16>
    %14 = arith.truncf %12 : vector<16x128xf32> to vector<16x128xbf16>
    %cst_15 = arith.constant dense<0.000000e+00> : vector<16x384xf32>
    %15 = tpu.matmul %14, %13, %cst_15 {dimension_numbers = #tpu.dot_dimension_numbers<[1], [0], [0], [1], [0, 0, 1, 1], [], []>} : vector<16x128xbf16>, vector<128x384xbf16>, vector<16x384xf32> -> vector<16x384xf32>
    %16 = arith.addf %10, %15 : vector<16x384xf32>
    %c0_16 = arith.constant 0 : index
    %c0_17 = arith.constant 0 : index
    %c0_18 = arith.constant 0 : index
    %17 = vector.load %arg5[%c0_16, %c0_17, %c0_18] : memref<1x16x128xf32, #tpu.memory_space<vmem>>, vector<1x16x128xf32>
    %18 = vector.shape_cast %17 : vector<1x16x128xf32> to vector<16x128xf32>
    %c0_19 = arith.constant 0 : index
    %c0_20 = arith.constant 0 : index
    %19 = vector.load %arg9[%c0_19, %c0_20] : memref<128x384xbf16, #tpu.memory_space<vmem>>, vector<128x384xbf16>
    %20 = arith.truncf %18 : vector<16x128xf32> to vector<16x128xbf16>
    %cst_21 = arith.constant dense<0.000000e+00> : vector<16x384xf32>
    %21 = tpu.matmul %20, %19, %cst_21 {dimension_numbers = #tpu.dot_dimension_numbers<[1], [0], [0], [1], [0, 0, 1, 1], [], []>} : vector<16x128xbf16>, vector<128x384xbf16>, vector<16x384xf32> -> vector<16x384xf32>
    %22 = arith.addf %16, %21 : vector<16x384xf32>
    %c0_22 = arith.constant 0 : index
    %c0_23 = arith.constant 0 : index
    %23 = vector.load %arg10[%c0_22, %c0_23] : memref<1x384xf32, #tpu.memory_space<vmem>>, vector<1x384xf32>
    %24 = vector.broadcast %23 : vector<1x384xf32> to vector<16x384xf32>
    %25 = arith.addf %22, %24 : vector<16x384xf32>
    %cst_24 = arith.constant 0.000000e+00 : f32
    %26 = vector.broadcast %cst_24 : f32 to vector<16x384xf32>
    %27 = arith.maximumf %25, %26 : vector<16x384xf32>
    %c0_25 = arith.constant 0 : index
    %c0_26 = arith.constant 0 : index
    %28 = vector.load %arg11[%c0_25, %c0_26] : memref<384x256xbf16, #tpu.memory_space<vmem>>, vector<384x256xbf16>
    %c0_27 = arith.constant 0 : index
    %c0_28 = arith.constant 0 : index
    %29 = vector.load %arg12[%c0_27, %c0_28] : memref<1x256xf32, #tpu.memory_space<vmem>>, vector<1x256xf32>
    %30 = arith.truncf %27 : vector<16x384xf32> to vector<16x384xbf16>
    %cst_29 = arith.constant dense<0.000000e+00> : vector<16x256xf32>
    %31 = tpu.matmul %30, %28, %cst_29 {dimension_numbers = #tpu.dot_dimension_numbers<[1], [0], [0], [1], [0, 0, 1, 1], [], []>} : vector<16x384xbf16>, vector<384x256xbf16>, vector<16x256xf32> -> vector<16x256xf32>
    %32 = vector.broadcast %29 : vector<1x256xf32> to vector<16x256xf32>
    %33 = arith.addf %31, %32 : vector<16x256xf32>
    %cst_30 = arith.constant 0.000000e+00 : f32
    %34 = vector.broadcast %cst_30 : f32 to vector<16x256xf32>
    %35 = arith.maximumf %33, %34 : vector<16x256xf32>
    %c0_31 = arith.constant 0 : index
    %c0_32 = arith.constant 0 : index
    %36 = vector.load %arg13[%c0_31, %c0_32] : memref<256x128xbf16, #tpu.memory_space<vmem>>, vector<256x128xbf16>
    %c0_33 = arith.constant 0 : index
    %c0_34 = arith.constant 0 : index
    %37 = vector.load %arg14[%c0_33, %c0_34] : memref<1x128xf32, #tpu.memory_space<vmem>>, vector<1x128xf32>
    %38 = arith.truncf %35 : vector<16x256xf32> to vector<16x256xbf16>
    %cst_35 = arith.constant dense<0.000000e+00> : vector<16x128xf32>
    %39 = tpu.matmul %38, %36, %cst_35 {dimension_numbers = #tpu.dot_dimension_numbers<[1], [0], [0], [1], [0, 0, 1, 1], [], []>} : vector<16x256xbf16>, vector<256x128xbf16>, vector<16x128xf32> -> vector<16x128xf32>
    %40 = vector.broadcast %37 : vector<1x128xf32> to vector<16x128xf32>
    %41 = arith.addf %39, %40 : vector<16x128xf32>
    %c0_36 = arith.constant 0 : index
    %c0_37 = arith.constant 0 : index
    %c0_38 = arith.constant 0 : index
    %42 = vector.load %arg15[%c0_36, %c0_37, %c0_38] : memref<1x16x128xf32, #tpu.memory_space<vmem>>, vector<1x16x128xf32>
    %43 = vector.shape_cast %42 : vector<1x16x128xf32> to vector<16x128xf32>
    %44 = vector.shape_cast %41 : vector<16x128xf32> to vector<1x16x128xf32>
    tpu.vector_store %arg15[%c0_36, %c0_37, %c0_38], %44 {strides = array<i32>} : memref<1x16x128xf32, #tpu.memory_space<vmem>>, vector<1x16x128xf32>,
    return
  }
  func.func @transform_0(%arg0: i32, %arg1: i32) -> (i32, i32, i32) {
    %c0_i32 = arith.constant 0 : i32
    %c0_i32_0 = arith.constant 0 : i32
    return %arg0, %arg1, %c0_i32 : i32, i32, i32
  }
  func.func @transform_1(%arg0: i32, %arg1: i32) -> (i32, i32, i32) {
    %c0_i32 = arith.constant 0 : i32
    %c0_i32_0 = arith.constant 0 : i32
    return %arg0, %arg1, %c0_i32 : i32, i32, i32
  }
  func.func @transform_2(%arg0: i32, %arg1: i32) -> (i32, i32, i32) {
    %c0_i32 = arith.constant 0 : i32
    %c0_i32_0 = arith.constant 0 : i32
    return %arg0, %arg1, %c0_i32 : i32, i32, i32
  }
  func.func @transform_3(%arg0: i32, %arg1: i32) -> (i32, i32, i32) {
    %c0_i32 = arith.constant 0 : i32
    %c0_i32_0 = arith.constant 0 : i32
    return %arg0, %arg1, %c0_i32 : i32, i32, i32
  }
  func.func @transform_4(%arg0: i32, %arg1: i32) -> (i32, i32) {
    %c0_i32 = arith.constant 0 : i32
    %c0_i32_0 = arith.constant 0 : i32
    %c0_i32_1 = arith.constant 0 : i32
    return %c0_i32, %c0_i32_0 : i32, i32
  }
  func.func @transform_5(%arg0: i32, %arg1: i32) -> (i32, i32) {
    %c0_i32 = arith.constant 0 : i32
    %c0_i32_0 = arith.constant 0 : i32
    %c0_i32_1 = arith.constant 0 : i32
    return %c0_i32, %c0_i32_0 : i32, i32
  }
  func.func @transform_6(%arg0: i32, %arg1: i32) -> (i32, i32) {
    %c0_i32 = arith.constant 0 : i32
    %c0_i32_0 = arith.constant 0 : i32
    %c0_i32_1 = arith.constant 0 : i32
    return %c0_i32, %c0_i32_0 : i32, i32
  }
  func.func @transform_7(%arg0: i32, %arg1: i32) -> (i32, i32) {
    %c0_i32 = arith.constant 0 : i32
    %c0_i32_0 = arith.constant 0 : i32
    %c0_i32_1 = arith.constant 0 : i32
    return %c0_i32, %c0_i32_0 : i32, i32
  }
  func.func @transform_8(%arg0: i32, %arg1: i32) -> (i32, i32) {
    %c0_i32 = arith.constant 0 : i32
    %c0_i32_0 = arith.constant 0 : i32
    %c0_i32_1 = arith.constant 0 : i32
    return %c0_i32, %c0_i32_0 : i32, i32
  }
  func.func @transform_9(%arg0: i32, %arg1: i32) -> (i32, i32) {
    %c0_i32 = arith.constant 0 : i32
    %c0_i32_0 = arith.constant 0 : i32
    %c0_i32_1 = arith.constant 0 : i32
    return %c0_i32, %c0_i32_0 : i32, i32
  }
  func.func @transform_10(%arg0: i32, %arg1: i32) -> (i32, i32) {
    %c0_i32 = arith.constant 0 : i32
    %c0_i32_0 = arith.constant 0 : i32
    %c0_i32_1 = arith.constant 0 : i32
    return %c0_i32, %c0_i32_0 : i32, i32
  }
  func.func @transform_11(%arg0: i32, %arg1: i32) -> (i32, i32) {
    %c0_i32 = arith.constant 0 : i32
    %c0_i32_0 = arith.constant 0 : i32
    %c0_i32_1 = arith.constant 0 : i32
    return %c0_i32, %c0_i32_0 : i32, i32
  }
  func.func @transform_12(%arg0: i32, %arg1: i32) -> (i32, i32) {
    %c0_i32 = arith.constant 0 : i32
    %c0_i32_0 = arith.constant 0 : i32
    %c0_i32_1 = arith.constant 0 : i32
    return %c0_i32, %c0_i32_0 : i32, i32
  }
  func.func @transform_13(%arg0: i32, %arg1: i32) -> (i32, i32, i32) {
    %c0_i32 = arith.constant 0 : i32
    %c0_i32_0 = arith.constant 0 : i32
    return %arg0, %arg1, %c0_i32 : i32, i32, i32
  }
}

</mosaic_0001>

<bundles_post_ra>
// kernel: model_forward.12
= control target key start
LH: loop header
LB: loop body
LE: loop exit
PB: predicated region body
PF: predicated region fallthrough
CT: control target
= control target key end

     0   :  { %12 = vsyncpa [#allocation3], 0  ;;  %s798_s21 = smov 0   ;;  %s800_s22 = smov 0   ;;  %s894_s0 = inlined_call_operand.vmem [shape: f32[2,16,3], index: 0, kind: input, shape index: {}]   ;;  %s895_s1 = inlined_call_operand.vmem [shape: bf16[3,64], index: 1, kind: input, shape index: {}]   ;;  %s896_s2 = inlined_call_operand.vmem [shape: f32[1,64], index: 2, kind: input, shape index: {}]   ;;  %s897_s3 = inlined_call_operand.hbm [shape: bf16[64,128], index: 3, kind: input, shape index: {}]   ;;  %s898_s4 = inlined_call_operand.vmem [shape: f32[1,128], index: 4, kind: input, shape index: {}]   ;;  %s899_s5 = inlined_call_operand.vmem [shape: f32[2,16,128], index: 5, kind: output, shape index: {0}]   ;;  %s900_s6 = inlined_call_operand.vmem [shape: f32[2,1,128], index: 6, kind: output, shape index: {1}]  }
   0x1   :  { %s802_s23 = smov 0  }
   0x2 LB: > { %s607_s24 = sadd.s32 4294967295, %s754_s23   ;;  %s30_s25 = sadd.s32 1, %s750_s22  ;;  %s754_s23 = sphi %s802_s23, %s18_s23   ;;  %s750_s22 = sphi %s800_s22, %s910_s22   ;;  %s746_s21 = sphi %s798_s21, %s909_s21  }
   0x3   : > { %p32_p0 = scmp.ge.s32.totalorder %s30_s25, 2  ;;  %p609_p1 = scmp.ge.s32.totalorder %s754_s23, 1 }
   0x4   : > { %p201_p2 = scmp.lt.s32.totalorder %s754_s23, 3  ;;  %p823_p4 = scmp.eq.s32.totalorder %s607_s24, 0 }
   0x5   : > { %s912_s25 = smov (%p32_p0, %s30_s25), 0  ;;  %s756_s28 = smov [#allocation2]  }
   0x6   : > { %p819_p3 = pnand %p609_p1, %p201_p2  ;;  %s219_s29 = sshll.u32 %s756_s28, 4  ;;  %s220_s29 = int_to_ptr.vmem [resolvable:$true] %s219_s29 }
   0x7   : > { %s905_s27 = scalar_select %p823_p4, 1, 0 }
   0x8   : > { %s904_s26 = scalar_select %p819_p3, 1, 0 }
   0x9   : > { %p659_p5 = pneg %p819_p3  ;;  %s700_s9 = scalar_lea.hbm %s897_s3, 512 }
   0xa   : > { %p701_p7 = scmp.ne.s32.totalorder %s897_s3, %s700_s9  ;;  %p707_p11 = scmp.lt.u32.totalorder %s700_s9, %s897_s3 }
   0xb   : > { %p831_p6 = pnand %p823_p4, %p659_p5 }
   0xd   : > { %p702_p8 = pneg %p831_p6 }
   0xf   : > { %p703_p9 = pnand %p702_p8, %p701_p7 }
  0x11   : > { %p704_p10 = pneg %p703_p9 }
  0x13   : > { %p709_p12 = pnand %p707_p11, %p704_p10 }
  0x15   : > { %712 = shalt.err (!%p709_p12)
}
  0x16   : > { %s713_s14 = scalar_lea.vmem %s220_s29, 512  ;;  %p721_p2 = scmp.lt.s32.totalorder %s220_s29, %s220_s29 }
  0x17   : > { %p714_p13 = scmp.ne.s32.totalorder %s220_s29, %s713_s14  ;;  %p722_p5 = scmp.lt.s32.totalorder %s713_s14, %s713_s14 }
  0x19   : > { %p716_p0 = pnand %p714_p13, %p702_p8  ;;  %p723_p4 = por %p722_p5, %p721_p2 }
  0x1b   : > { %p717_p1 = pneg %p716_p0 }
  0x1d   : > { %p724_p3 = pnand %p723_p4, %p717_p1 }
  0x1f   : > { %727 = shalt.err (!%p724_p3)
}
  0x20   : > { %s757_s15 = smov 64   ;;  %s758_s16 = smov 4  }
  0x21   : > { %662 = dma.hbm_to_vmem [thread:$0]  (!%p831_p6), %s897_s3, 512, %s220_s29, [#allocation3], %s757_s15, %s757_s15, %s758_s16  }
  0x22   : > { %p907_p7 = scmp.ne.s32.totalorder %s904_s26, 0 }
  0x23   : > { %p908_p9 = scmp.ne.s32.totalorder (!%p907_p7), %s905_s27, 0 }
  0x24   : > { %251 = sbr.rel (%p907_p7) target bundleno = 506 (0x1fa), region = 40 }
  0x2b   : > { %741 = dma.done.wait (%p908_p9), [#allocation3], 512  }
  0x2c   : > { %743 = vsyncadd (%p908_p9), [#allocation3], 4294966784  ;;  %vm331_vm0 = vcmask 1040384   ;;  %v759_v0 = vmov 0.0   ;;  %p293_p3 = scmp.lt.s32.totalorder %s746_s21, 1  ;;  %vm332_vm1 = vcmask 1041408  }
  0x2d   : > { %637 = vmatprep.subr.bf16.mxu0 %v759_v0  ;;  %643 = vmatprep.subr.bf16.mxu1 %v759_v0  ;;  %v760_v1 = vmov 65535   ;;  %vm761_vm2 = vmmov 0   ;;  %v319_v4 = vld [vmem:[%s895_s1] sm:$0x3]  ;;  %vm327_vm3 = vcmask 23552   ;;  %v697_v10 = vld [vmem:[#allocation2 + $0x8] sm:$0xff]  }
  0x2e   : > { %v333_v2 = vsel %vm331_vm0, 4294967295, %v760_v1  ;;  %639 = vmatprep.mubr.msk.bf16.mxu0 %vm761_vm2, %v759_v0  ;;  %651 = vmatprep.mubr.msk.bf16.mxu1 %vm761_vm2, %v759_v0  ;;  %s914_s21 = smov (!%p293_p3, %s746_s21), 1  ;;  %v696_v8 = vld [vmem:[#allocation2] sm:$0xff]   ;;  %v698_v11 = vld [vmem:[#allocation2 + $0x10] sm:$0xff]   ;;  %v699_v12 = vld [vmem:[#allocation2 + $0x18] sm:$0xff]   ;;  %vm421_vm4 = vcmask 523264  }
  0x2f   : > { %v334_v3 = vsel %vm332_vm1, %v333_v2, 0  ;;  %s628_s19 = sshll.u32 %s914_s21, 4  ;;  %644 = vmatpush3.bf16.msra.mxu1 %v696_v8  ;;  %v618_v13 = vld [vmem:[%s896_s2] ss:$0 sm:$0xff]  ;;  %s314_s9 = scalar_lea.vmem %s900_s6, %s914_s21  ;;  %v762_v23 = vmov -inf  }
  0x30   : > { %s300_s26 = scalar_lea.vmem %s894_s0, %s628_s19  ;;  %v336_v7 = vand.u32 %v334_v3, %v319_v4  ;;  %645 = vmatprep.subr.bf16.mxu1 %v759_v0  ;;  %472 = vst [vmem:[%s314_s9] sm:$0x1] %v762_v23  ;;  %v620_v24 = vld [vmem:[%s898_s4] ss:$0 sm:$0xff]  ;;  %s310_s14 = scalar_lea.vmem %s899_s5, %s628_s19 }
  0x31   : > { %v316_v5 = vld [vmem:[%s300_s26] sm:$0xff]  ;;  %v317_v6 = vld [vmem:[%s300_s26 + $0x8] sm:$0xff] }
  0x32   : > { %v318_v9 = vpack.c.bf16 %v317_v6, %v316_v5  ;;  %638 = vmatpush3.bf16.msra.mxu0 %v336_v7 }
  0x33   : > { %646 = vmatpush3.bf16.msra.mxu1 %v697_v10 }
  0x34   : > { %647 = vmatprep.subr.bf16.mxu1 %v759_v0 }
  0x35   : > { %640 = vmatmul.mubr.msk.bf16.vlgmr.msra.gmra.mrb[0].mxu0 %vm327_vm3, %v318_v9 }
  0x37   : > { %648 = vmatpush3.bf16.msra.mxu1 %v698_v11  ;;  %v473_v37 = vld [vmem:[%s314_s9] sm:$0x1] }
  0x38   : > { %649 = vmatprep.subr.bf16.mxu1 %v759_v0 }
  0x3b   : > { %650 = vmatpush3.bf16.msra.mxu1 %v699_v12 }
 0x108   : > { %v372_v14 = vpop.f32.mrb[0].mxu0 }
 0x109   : > { %v373_v15 = vadd.f32 %v618_v13, %v372_v14  ;;  %v641_v16 = vpop.f32.mrb[1].mxu0 }
 0x10a   : > { %v375_v17 = vpop.f32.mrb[2].mxu0 }
 0x10b   : > { %v376_v18 = vadd.f32 %v618_v13, %v375_v17  ;;  %v642_v19 = vpop.f32.mrb[3].mxu0  ;;  %v379_v20 = vmax.f32 %v373_v15, 0.0 }
 0x10d   : > { %v380_v21 = vmax.f32 %v376_v18, 0.0 }
 0x10f   : > { %v381_v22 = vpack.c.bf16 %v380_v21, %v379_v20 }
 0x111   : > { %652 = vmatmul.mubr.msk.bf16.vlgmr.msra.gmra.mrb[0].mxu1 %vm421_vm4, %v381_v22 }
 0x1e4   : > { %v459_v25 = vpop.f32.mrb[0].mxu1 }
 0x1e5   : > { %v460_v26 = vadd.f32 %v620_v24, %v459_v25  ;;  %v653_v27 = vpop.f32.mrb[1].mxu1 }
 0x1e6   : > { %v462_v28 = vpop.f32.mrb[2].mxu1 }
 0x1e7   : > { %466 = vst [vmem:[%s310_s14] sm:$0xff] %v460_v26  ;;  %v463_v29 = vadd.f32 %v620_v24, %v462_v28  ;;  %v654_v30 = vpop.f32.mrb[3].mxu1 }
 0x1e9   : > { %467 = vst [vmem:[%s310_s14 + $0x8] sm:$0xff] %v463_v29  ;;  %v474_v31 = vmax.f32 %v460_v26, %v463_v29 }
 0x1eb   : > { %v475_v32 = vrot.slane %v474_v31, 4 }
 0x1ed   : > { %v476_v33 = vmax.f32 %v474_v31, %v475_v32 }
 0x1ef   : > { %v477_v34 = vrot.slane %v476_v33, 2 }
 0x1f1   : > { %v478_v35 = vmax.f32 %v476_v33, %v477_v34 }
 0x1f3   : > { %v479_v36 = vrot.slane %v478_v35, 1 }
 0x1f5   : > { %v480_v38 = vmax.f32 %v478_v35, %v479_v36 }
 0x1f7   : > { %v481_v39 = vmax.f32 %v473_v37, %v480_v38 }
 0x1f9   : > { %482 = vst [vmem:[%s314_s9] sm:$0x1] %v481_v39 }
 0x1fa PF: > { %s18_s23 = sadd.s32 1, %s754_s23   ;;  %s909_s21 = smov %s750_s22 }
 0x1fb   : > { %p15_p4 = scmp.ge.s32.totalorder %s18_s23, 4   ;;  %s910_s22 = smov %s912_s25 }
 0x1fd   :  { %17 = sbr.rel (!%p15_p4) target bundleno = 2 (0x2), region = 91 }
 0x204   :  { %525 = vsyncpa [#allocation3], 1 }
 0x205   :  { %527 = vsyncpa [#allocation3 + $0x1], 1 }

// kernel: model_forward.13
= control target key start
LH: loop header
LB: loop body
LE: loop exit
PB: predicated region body
PF: predicated region fallthrough
CT: control target
= control target key end

     0   :  { %s908_s18 = smov 0   ;;  %s910_s19 = smov 0   ;;  %s1055_s0 = inlined_call_operand.vmem [shape: f32[2,16,128], index: 0, kind: input, shape index: {}]   ;;  %s1056_s1 = inlined_call_operand.vmem [shape: bf16[128,256], index: 1, kind: input, shape index: {}]   ;;  %s1057_s2 = inlined_call_operand.vmem [shape: f32[2,1,256], index: 2, kind: input, shape index: {}]   ;;  %s1058_s3 = inlined_call_operand.vmem [shape: bf16[256,128], index: 3, kind: input, shape index: {}]   ;;  %s1059_s4 = inlined_call_operand.vmem [shape: f32[1,128], index: 4, kind: input, shape index: {}]   ;;  %s1060_s5 = inlined_call_operand.vmem [shape: f32[2,16,128], index: 5, kind: output, shape index: {}]  }
   0x1   :  { %s912_s20 = smov 0  }
   0x2 LB: > { %s27_s21 = sadd.s32 1, %s871_s19  ;;  %p723_p0 = scmp.ge.s32.totalorder %s875_s20, 1  ;;  %s875_s20 = sphi %s912_s20, %s15_s20   ;;  %s871_s19 = sphi %s910_s19, %s1062_s19   ;;  %s867_s18 = sphi %s908_s18, %s1061_s18  }
   0x3   : > { %p29_p1 = scmp.ge.s32.totalorder %s27_s21, 2  ;;  %p217_p2 = scmp.lt.s32.totalorder %s875_s20, 3 }
   0x5   : > { %s1064_s21 = smov (%p29_p1, %s27_s21), 0  ;;  %p218_p3 = pnand %p723_p0, %p217_p2 }
   0x6   : > { %v813_v0 = vld [vmem:[%s1056_s1 + $0x4] ss:$8 sps:$4 sm:$0xff] (!%p218_p3)   ;;  %v815_v1 = vld [vmem:[%s1056_s1] ss:$8 sps:$4 sm:$0xff] (!%p218_p3)   ;;  %v877_v2 = vmov (!%p218_p3), 0   ;;  %p258_p4 = scmp.lt.s32.totalorder (!%p218_p3), %s867_s18, 1  ;;  %v303_v36 = vlaneseq (!%p218_p3) }
   0x7   : > { %221 = sbr.rel (%p218_p3) target bundleno = 481 (0x1e1), region = 40  ;;  %425 = vmatprep.mubr.bf16.mxu0 (!%p218_p3), %v877_v2  ;;  %393 = vmatprep.subr.bf16.mxu0 (!%p218_p3), %v813_v0  ;;  %v816_v3 = vld [vmem:[%s1056_s1 + $0x14] ss:$8 sps:$4 sm:$0xff] (!%p218_p3)   ;;  %v818_v4 = vld [vmem:[%s1056_s1 + $0x10] ss:$8 sps:$4 sm:$0xff] (!%p218_p3)   ;;  %v837_v10 = vld [vmem:[%s1058_s3 + $0x40] sm:$0xff] (!%p218_p3)  }
   0x8   : > { %394 = vmatpush1.bf16.msra.mxu0 (!%p218_p3), %v815_v1  ;;  %v819_v5 = vld [vmem:[%s1056_s1 + $0x24] ss:$8 sps:$4 sm:$0xff] (!%p218_p3)   ;;  %v821_v6 = vld [vmem:[%s1056_s1 + $0x20] ss:$8 sps:$4 sm:$0xff] (!%p218_p3)   ;;  %v822_v7 = vld [vmem:[%s1056_s1 + $0x34] ss:$8 sps:$4 sm:$0xff] (!%p218_p3)   ;;  %766 = vmatprep.subr.bf16.mxu1 (!%p218_p3), %v837_v10 }
   0x9   : > { %395 = vmatprep.subr.bf16.mxu0 (!%p218_p3), %v816_v3  ;;  %v824_v8 = vld [vmem:[%s1056_s1 + $0x30] ss:$8 sps:$4 sm:$0xff] (!%p218_p3)   ;;  %v825_v9 = vld [vmem:[%s1056_s1 + $0x44] ss:$8 sps:$4 sm:$0xff] (!%p218_p3)   ;;  %v827_v11 = vld [vmem:[%s1056_s1 + $0x40] ss:$8 sps:$4 sm:$0xff] (!%p218_p3)  }
   0xa   : > { %v838_v12 = vld [vmem:[%s1058_s3] sm:$0xff] (!%p218_p3)   ;;  %v828_v13 = vld [vmem:[%s1056_s1 + $0x54] ss:$8 sps:$4 sm:$0xff] (!%p218_p3)   ;;  %v839_v14 = vld [vmem:[%s1058_s3 + $0x48] sm:$0xff] (!%p218_p3)   ;;  %v304_v37 = vshrl.u32 (!%p218_p3), %v303_v36, 7 }
   0xb   : > { %767 = vmatpush3.bf16.msra.mxu1 (!%p218_p3), %v838_v12  ;;  %v840_v15 = vld [vmem:[%s1058_s3 + $0x8] sm:$0xff] (!%p218_p3)   ;;  %v841_v16 = vld [vmem:[%s1058_s3 + $0x50] sm:$0xff] (!%p218_p3)   ;;  %v843_v20 = vld [vmem:[%s1058_s3 + $0x58] sm:$0xff] (!%p218_p3)  }
   0xc   : > { %396 = vmatpush1.bf16.msra.mxu0 (!%p218_p3), %v818_v4  ;;  %768 = vmatprep.subr.bf16.mxu1 (!%p218_p3), %v839_v14  ;;  %v830_v17 = vld [vmem:[%s1056_s1 + $0x50] ss:$8 sps:$4 sm:$0xff] (!%p218_p3)   ;;  %v831_v18 = vld [vmem:[%s1056_s1 + $0x64] ss:$8 sps:$4 sm:$0xff] (!%p218_p3)   ;;  %v833_v21 = vld [vmem:[%s1056_s1 + $0x60] ss:$8 sps:$4 sm:$0xff] (!%p218_p3)  }
   0xd   : > { %397 = vmatprep.subr.bf16.mxu0 (!%p218_p3), %v819_v5  ;;  %v842_v19 = vld [vmem:[%s1058_s3 + $0x10] sm:$0xff] (!%p218_p3)   ;;  %v844_v23 = vld [vmem:[%s1058_s3 + $0x18] sm:$0xff] (!%p218_p3)   ;;  %v845_v24 = vld [vmem:[%s1058_s3 + $0x60] sm:$0xff] (!%p218_p3)   ;;  %v305_v38 = vsub.s32 (!%p218_p3), 0, %v304_v37  ;;  %v309_v40 = vsub.s32 (!%p218_p3), 1, %v304_v37 }
   0xe   : > { %s1066_s18 = smov (!%p258_p4, %s867_s18), 1  ;;  %v834_v22 = vld [vmem:[%s1056_s1 + $0x74] ss:$8 sps:$4 sm:$0xff]   ;;  %v836_v25 = vld [vmem:[%s1056_s1 + $0x70] ss:$8 sps:$4 sm:$0xff]   ;;  %v846_v28 = vld [vmem:[%s1058_s3 + $0x20] sm:$0xff]  }
   0xf   : > { %769 = vmatpush3.bf16.msra.mxu1 %v840_v15  ;;  %s764_s14 = sshll.u32 %s1066_s18, 4  ;;  %v847_v29 = vld [vmem:[%s1058_s3 + $0x68] sm:$0xff]   ;;  %v849_v32 = vld [vmem:[%s1058_s3 + $0x70] sm:$0xff]   ;;  %v851_v34 = vld [vmem:[%s1058_s3 + $0x78] sm:$0xff]   ;;  %s726_s28 = sshll.u32 %s1066_s18, 1 }
  0x10   : > { %398 = vmatpush1.bf16.msra.mxu0 %v821_v6  ;;  %770 = vmatprep.subr.bf16.mxu1 %v841_v16  ;;  %s265_s6 = scalar_lea.vmem %s1055_s0, %s764_s14  ;;  %v848_v31 = vld [vmem:[%s1058_s3 + $0x28] sm:$0xff]   ;;  %v850_v33 = vld [vmem:[%s1058_s3 + $0x30] sm:$0xff]   ;;  %v852_v35 = vld [vmem:[%s1058_s3 + $0x38] sm:$0xff]   ;;  %s279_s11 = scalar_lea.vmem %s1060_s5, %s764_s14 }
  0x11   : > { %399 = vmatprep.subr.bf16.mxu0 %v822_v7  ;;  %v282_v26 = vld [vmem:[%s265_s6] sm:$0xff]  ;;  %v283_v27 = vld [vmem:[%s265_s6 + $0x8] sm:$0xff]  ;;  %s270_s6 = scalar_lea.vmem %s1057_s2, %s726_s28 }
  0x12   : > { %v300_v30 = vpack.c.bf16 %v283_v27, %v282_v26  ;;  %v301_v39 = vld [vmem:[%s270_s6] sm:$0x3] }
  0x13   : > { %771 = vmatpush3.bf16.msra.mxu1 %v842_v19  ;;  %v306_v41 = vrot.slane %v301_v39, %v305_v38  ;;  %v310_v42 = vrot.slane %v301_v39, %v309_v40  ;;  %v745_v58 = vld [vmem:[%s1059_s4] ss:$0 sm:$0xff] }
  0x14   : > { %400 = vmatpush1.bf16.msra.mxu0 %v824_v8  ;;  %772 = vmatprep.subr.bf16.mxu1 %v843_v20 }
  0x15   : > { %401 = vmatprep.subr.bf16.mxu0 %v825_v9 }
  0x17   : > { %773 = vmatpush3.bf16.msra.mxu1 %v844_v23 }
  0x18   : > { %402 = vmatpush1.bf16.msra.mxu0 %v827_v11  ;;  %774 = vmatprep.subr.bf16.mxu1 %v845_v24 }
  0x19   : > { %403 = vmatprep.subr.bf16.mxu0 %v828_v13 }
  0x1b   : > { %775 = vmatpush3.bf16.msra.mxu1 %v846_v28 }
  0x1c   : > { %404 = vmatpush1.bf16.msra.mxu0 %v830_v17  ;;  %776 = vmatprep.subr.bf16.mxu1 %v847_v29 }
  0x1d   : > { %405 = vmatprep.subr.bf16.mxu0 %v831_v18 }
  0x1f   : > { %777 = vmatpush3.bf16.msra.mxu1 %v848_v31 }
  0x20   : > { %406 = vmatpush1.bf16.msra.mxu0 %v833_v21  ;;  %778 = vmatprep.subr.bf16.mxu1 %v849_v32 }
  0x21   : > { %407 = vmatprep.subr.bf16.mxu0 %v834_v22 }
  0x23   : > { %779 = vmatpush3.bf16.msra.mxu1 %v850_v33 }
  0x24   : > { %408 = vmatpush1.bf16.msra.mxu0 %v836_v25  ;;  %780 = vmatprep.subr.bf16.mxu1 %v851_v34 }
  0x27   : > { %426 = vmatmul.mubr.bf16.vlgmr.msra.gmra.mrb[0].mxu0 %v300_v30  ;;  %781 = vmatpush3.bf16.msra.mxu1 %v852_v35 }
  0xfa   : > { %v427_v43 = vpop.f32.mrb[0].mxu0 }
  0xfb   : > { %v428_v44 = vadd.f32 %v427_v43, %v306_v41  ;;  %v429_v45 = vpop.f32.mrb[1].mxu0 }
  0xfc   : > { %v430_v46 = vadd.f32 %v429_v45, %v310_v42  ;;  %v431_v47 = vpop.f32.mrb[2].mxu0 }
  0xfd   : > { %v432_v48 = vadd.f32 %v431_v47, %v306_v41  ;;  %v433_v49 = vpop.f32.mrb[3].mxu0  ;;  %v436_v51 = vmax.f32 %v428_v44, 0.0 }
  0xfe   : > { %v434_v50 = vadd.f32 %v433_v49, %v310_v42  ;;  %v437_v53 = vmax.f32 %v430_v46, 0.0 }
  0xff   : > { %v438_v52 = vmax.f32 %v432_v48, 0.0 }
 0x100   : > { %v439_v54 = vmax.f32 %v434_v50, 0.0 }
 0x101   : > { %v473_v55 = vpack.c.bf16 %v438_v52, %v436_v51 }
 0x102   : > { %v474_v56 = vpack.c.bf16 %v439_v54, %v437_v53 }
 0x104   : > { %609 = vmatprep.mubr.bf16.mxu1 %v474_v56 }
 0x105   : > { %610 = vmatmul.mubr.bf16.vlgmr.msra.gmra.mrb[0].mxu1 %v473_v55 }
 0x1d8   : > { %v782_v57 = vpop.f32.mrb[0].mxu1 }
 0x1d9   : > { %v783_v59 = vpop.f32.mrb[1].mxu1 }
 0x1da   : > { %v784_v60 = vadd.f32 %v783_v59, %v782_v57  ;;  %v785_v61 = vpop.f32.mrb[2].mxu1 }
 0x1db   : > { %v786_v62 = vpop.f32.mrb[3].mxu1 }
 0x1dc   : > { %v612_v63 = vadd.f32 %v784_v60, %v745_v58  ;;  %v787_v0 = vadd.f32 %v786_v62, %v785_v61 }
 0x1de   : > { %618 = vst [vmem:[%s279_s11] sm:$0xff] %v612_v63  ;;  %v615_v1 = vadd.f32 %v787_v0, %v745_v58 }
 0x1e0   : > { %619 = vst [vmem:[%s279_s11 + $0x8] sm:$0xff] %v615_v1 }
 0x1e1 PF: > { %s15_s20 = sadd.s32 1, %s875_s20   ;;  %s1061_s18 = smov %s871_s19 }
 0x1e2   : > { %p12_p5 = scmp.ge.s32.totalorder %s15_s20, 4   ;;  %s1062_s19 = smov %s1064_s21 }
 0x1e4   :  { %14 = sbr.rel (!%p12_p5) target bundleno = 2 (0x2), region = 73 }

// kernel: model_forward.15
= control target key start
LH: loop header
LB: loop body
LE: loop exit
PB: predicated region body
PF: predicated region fallthrough
CT: control target
= control target key end

     0   :  { %13 = vsyncpa [#allocation3], 0  ;;  %s1355_s0 = inlined_call_operand.vmem [shape: f32[2,16,128], index: 0, kind: input, shape index: {}]   ;;  %s1356_s1 = inlined_call_operand.vmem [shape: bf16[128,64], index: 1, kind: input, shape index: {}]   ;;  %s1357_s2 = inlined_call_operand.vmem [shape: f32[1,64], index: 2, kind: input, shape index: {}]   ;;  %s1358_s3 = inlined_call_operand.vmem [shape: bf16[64,192], index: 3, kind: input, shape index: {}]   ;;  %s1359_s4 = inlined_call_operand.vmem [shape: f32[1,192], index: 4, kind: input, shape index: {}]   ;;  %s1360_s5 = inlined_call_operand.vmem [shape: bf16[2,16,64], index: 5, kind: output, shape index: {0}]   ;;  %s1361_s6 = inlined_call_operand.hbm [shape: bf16[2,16,64], index: 6, kind: output, shape index: {1}]   ;;  %s1362_s7 = inlined_call_operand.hbm [shape: bf16[2,16,64], index: 7, kind: output, shape index: {2}]  }
   0x1   :  { %15 = vsyncpa [#allocation3 + $0x1], 0 }
   0x2   :  { %16 = vsyncpa [#allocation5], 0 }
   0x3   :  { %18 = vsyncpa [#allocation5 + $0x1], 0  ;;  %s1123_s24 = smov 0   ;;  %s1125_s25 = smov 0  }
   0x4   :  { %s1127_s26 = smov 0   ;;  %s1129_s27 = smov 0  }
   0x5   :  { %s1131_s28 = smov 0   ;;  %s1133_s29 = smov 0  }
   0x6 LB: > { %s801_s30 = sadd.s32 4294967295, %s1074_s29   ;;  %s802_s8 = sadd.s32 4294967294, %s1074_s29   ;;  %s1074_s29 = sphi %s1133_s29, %s24_s29   ;;  %s1070_s28 = sphi %s1131_s28, %s1373_s28   ;;  %s1066_s27 = sphi %s1129_s27, %s1372_s27   ;;  %s1062_s26 = sphi %s1127_s26, %s1371_s26   ;;  %s1058_s25 = sphi %s1125_s25, %s1370_s25   ;;  %s1054_s24 = sphi %s1123_s24, %s1369_s24  }
   0x7   : > { %s36_s9 = sadd.s32 1, %s1070_s28  ;;  %s185_s10 = sadd.s32 1, %s1062_s26 }
   0x8   : > { %p38_p0 = scmp.ge.s32.totalorder %s36_s9, 2  ;;  %p195_p1 = scmp.ne.s32.totalorder %s1062_s26, %s1058_s25 }
   0x9   : > { %p196_p2 = scmp.eq.s32.totalorder %s801_s30, 1  ;;  %p201_p3 = scmp.ne.s32.totalorder %s1058_s25, %s1054_s24 }
   0xa   : > { %s1375_s9 = smov (%p38_p0, %s36_s9), 0  ;;  %p202_p5 = scmp.eq.s32.totalorder %s802_s8, 1 }
   0xb   : > { %p1163_p4 = por %p196_p2, %p195_p1  ;;  %s180_s12 = ssub.s32 %s1070_s28, %s1375_s9 }
   0xc   : > { %p805_p6 = scmp.ge.s32.totalorder %s1074_s29, 1  ;;  %p183_p7 = scmp.eq.s32.totalorder %s180_s12, 0 }
   0xd   : > { %p1170_p8 = por %p202_p5, %p201_p3  ;;  %p273_p9 = scmp.lt.s32.totalorder %s1074_s29, 3 }
   0xe   : > { %s1176_s14 = scalar_select %p183_p7, %s1062_s26, %s185_s10  }
   0xf   : > { %p274_p10 = pnand %p805_p6, %p273_p9 }
  0x10   : > { %v944_v0 = vld [vmem:[%s1356_s1] sm:$0xff] (!%p274_p10)   ;;  %v1076_v1 = vmov (!%p274_p10), 0.0   ;;  %v945_v2 = vld [vmem:[%s1356_s1 + $0x8] sm:$0xff] (!%p274_p10)   ;;  %vm1077_vm0 = vmmov (!%p274_p10), 0   ;;  %v946_v3 = vld [vmem:[%s1356_s1 + $0x10] sm:$0xff] (!%p274_p10)   ;;  %p324_p11 = scmp.lt.s32.totalorder (!%p274_p10), %s1066_s27, 1  ;;  %v472_v29 = vlaneseq (!%p274_p10) }
  0x11   : > { %277 = sbr.rel (%p274_p10) target bundleno = 616 (0x268), region = 40  ;;  %859 = vmatprep.subr.bf16.mxu0 (!%p274_p10), %v1076_v1  ;;  %875 = vmatprep.mubr.msk.bf16.mxu0 (!%p274_p10), %vm1077_vm0, %v1076_v1  ;;  %v947_v4 = vld [vmem:[%s1356_s1 + $0x18] sm:$0xff] (!%p274_p10)   ;;  %v952_v5 = vld [vmem:[%s1358_s3 + $0x4] ss:$8 sps:$4 sm:$0xff] (!%p274_p10)   ;;  %v954_v6 = vld [vmem:[%s1358_s3] ss:$8 sps:$4 sm:$0xff] (!%p274_p10)  }
  0x12   : > { %860 = vmatpush3.bf16.msra.mxu0 (!%p274_p10), %v944_v0  ;;  %v955_v7 = vld [vmem:[%s1358_s3 + $0x14] ss:$8 sps:$4 sm:$0xff] (!%p274_p10)   ;;  %526 = vmatprep.subr.bf16.mxu1 (!%p274_p10), %v952_v5  ;;  %v957_v8 = vld [vmem:[%s1358_s3 + $0x10] ss:$8 sps:$4 sm:$0xff] (!%p274_p10)   ;;  %v958_v9 = vld [vmem:[%s1358_s3 + $0x24] ss:$8 sps:$4 sm:$0xff] (!%p274_p10)  }
  0x13   : > { %861 = vmatprep.subr.bf16.mxu0 (!%p274_p10), %v1076_v1  ;;  %527 = vmatpush1.bf16.msra.mxu1 (!%p274_p10), %v954_v6  ;;  %v948_v10 = vld [vmem:[%s1356_s1 + $0x20] sm:$0xff] (!%p274_p10)   ;;  %v949_v11 = vld [vmem:[%s1356_s1 + $0x28] sm:$0xff] (!%p274_p10)   ;;  %v950_v12 = vld [vmem:[%s1356_s1 + $0x30] sm:$0xff] (!%p274_p10)   ;;  %v1078_v20 = vmov (!%p274_p10), 0   ;;  %vm522_vm1 = vcmask (!%p274_p10), 523264   ;;  %v473_v30 = vshrl.u32 (!%p274_p10), %v472_v29, 7 }
  0x14   : > { %528 = vmatprep.subr.bf16.mxu1 (!%p274_p10), %v955_v7  ;;  %v951_v13 = vld [vmem:[%s1356_s1 + $0x38] sm:$0xff] (!%p274_p10)   ;;  %v960_v17 = vld [vmem:[%s1358_s3 + $0x20] ss:$8 sps:$4 sm:$0xff] (!%p274_p10)   ;;  %558 = vmatprep.mubr.bf16.mxu1 (!%p274_p10), %v1078_v20  ;;  %s1241_s18 = sand.u32 (!%p274_p10), 1, %s1058_s25   ;;  %vm577_vm2 = vcmask (!%p274_p10), 519168   ;;  %s1364_s10 = sshll.u32 (!%p274_p10), %s1066_s27, 7 }
  0x15   : > { %v961_v18 = vld [vmem:[%s1358_s3 + $0x34] ss:$8 sps:$4 sm:$0xff] (!%p274_p10)   ;;  %v963_v19 = vld [vmem:[%s1358_s3 + $0x30] ss:$8 sps:$4 sm:$0xff] (!%p274_p10)   ;;  %v812_v21 = vld [vmem:[%s1357_s2] ss:$0 sm:$0xff] (!%p274_p10) }
  0x16   : > { %862 = vmatpush3.bf16.msra.mxu0 (!%p274_p10), %v945_v2  ;;  %v474_v31 = vsub.s32 (!%p274_p10), 0, %v473_v30  ;;  %v470_v32 = vld [vmem:[%s1359_s4] sm:$0x3] (!%p274_p10)  ;;  %v478_v33 = vsub.s32 (!%p274_p10), 1, %v473_v30  ;;  %s1363_s20 = sshll.u32 (!%p274_p10), %s1241_s18, 3  ;;  %s1079_s12 = smov (!%p274_p10), 64  }
  0x17   : > { %863 = vmatprep.subr.bf16.mxu0 (!%p274_p10), %v1076_v1  ;;  %529 = vmatpush1.bf16.msra.mxu1 (!%p274_p10), %v957_v8  ;;  %s1080_s23 = smov (!%p274_p10), [#allocation4]  }
  0x18   : > { %s1210_s22 = scalar_select %p324_p11, %s1066_s27, 1  ;;  %530 = vmatprep.subr.bf16.mxu1 %v958_v9  ;;  %v475_v34 = vrot.slane %v470_v32, %v474_v31  ;;  %v479_v35 = vrot.slane %v470_v32, %v478_v33 }
  0x1a   : > { %864 = vmatpush3.bf16.msra.mxu0 %v946_v3  ;;  %s842_s8 = sshll.u32 %s1210_s22, 4  ;;  %s843_s19 = sshll.u32 %s1210_s22, 3 }
  0x1b   : > { %865 = vmatprep.subr.bf16.mxu0 %v1076_v1  ;;  %s331_s17 = scalar_lea.vmem %s1355_s0, %s842_s8  ;;  %531 = vmatpush1.bf16.msra.mxu1 %v960_v17  ;;  %s341_s30 = scalar_lea.vmem %s1360_s5, %s843_s19 }
  0x1c   : > { %v346_v14 = vld [vmem:[%s331_s17] sm:$0xff]  ;;  %v347_v15 = vld [vmem:[%s331_s17 + $0x8] sm:$0xff]  ;;  %532 = vmatprep.subr.bf16.mxu1 %v961_v18  ;;  %s322_s8 = scalar_lea.vmem [#allocation4], %s1363_s20  ;;  %s1262_s17 = scalar_lea.hbm %s1362_s7, %s1364_s10 }
  0x1d   : > { %v348_v16 = vpack.c.bf16 %v347_v15, %v346_v14  ;;  %s650_s22 = sshll.u32 %s322_s8, 4  ;;  %s613_s19 = scalar_lea.sflag [#allocation5], %s1241_s18  ;;  %s1254_s22 = int_to_ptr.vmem [resolvable:$true] %s650_s22 }
  0x1e   : > { %866 = vmatpush3.bf16.msra.mxu0 %v947_v4  ;;  %s964_s21 = scalar_lea.vmem %s1254_s22, 128  ;;  %s968_s20 = sshll.u32 %s1080_s23, 4  ;;  %s969_s20 = int_to_ptr.vmem [resolvable:$false] %s968_s20 }
  0x1f   : > { %867 = vmatprep.subr.bf16.mxu0 %v1076_v1  ;;  %533 = vmatpush1.bf16.msra.mxu1 %v963_v19  ;;  %p965_p12 = scmp.ne.s32.totalorder %s1254_s22, %s964_s21  ;;  %p971_p1 = scmp.lt.s32.totalorder %s1254_s22, %s969_s20 }
  0x21   : > { %p966_p13 = pnand %p965_p12, %p1163_p4 }
  0x22   : > { %868 = vmatpush3.bf16.msra.mxu0 %v948_v10 }
  0x23   : > { %869 = vmatprep.subr.bf16.mxu0 %v1076_v1  ;;  %p967_p0 = pneg %p966_p13 }
  0x26   : > { %870 = vmatpush3.bf16.msra.mxu0 %v949_v11 }
  0x27   : > { %871 = vmatprep.subr.bf16.mxu0 %v1076_v1 }
  0x2a   : > { %872 = vmatpush3.bf16.msra.mxu0 %v950_v12 }
  0x2b   : > { %873 = vmatprep.subr.bf16.mxu0 %v1076_v1 }
  0x2e   : > { %874 = vmatpush3.bf16.msra.mxu0 %v951_v13 }
  0x31   : > { %876 = vmatmul.mubr.bf16.vlgmr.msra.gmra.mrb[0].mxu0 %v348_v16 }
 0x104   : > { %v454_v22 = vpop.f32.mrb[0].mxu0 }
 0x105   : > { %v877_v23 = vpop.f32.mrb[1].mxu0  ;;  %v455_v25 = vadd.f32 %v812_v21, %v454_v22 }
 0x106   : > { %v457_v24 = vpop.f32.mrb[2].mxu0 }
 0x107   : > { %v458_v26 = vadd.f32 %v812_v21, %v457_v24  ;;  %v878_v27 = vpop.f32.mrb[3].mxu0 }
 0x109   : > { %v461_v28 = vpack.c.bf16 %v458_v26, %v455_v25 }
 0x10b   : > { %829 = vmatmul.mubr.msk.bf16.vlgmr.msra.gmra.mrb[0].mxu1 %vm522_vm1, %v461_v28 }
 0x1de   : > { %v560_v36 = vpop.f32.mrb[0].mxu1 }
 0x1df   : > { %v561_v37 = vadd.f32 %v560_v36, %v475_v34  ;;  %v562_v38 = vpop.f32.mrb[1].mxu1 }
 0x1e0   : > { %v563_v39 = vadd.f32 %v562_v38, %v479_v35  ;;  %v564_v40 = vpop.f32.mrb[2].mxu1 }
 0x1e1   : > { %v844_v41 = vpack.c.bf16 %v561_v37, %v561_v37  ;;  %v565_v42 = vadd.f32 %v564_v40, %v475_v34  ;;  %v566_v43 = vpop.f32.mrb[3].mxu1 }
 0x1e2   : > { %v846_v44 = vpack.c.bf16 %v563_v39, %v563_v39  ;;  %v567_v45 = vadd.f32 %v566_v43, %v479_v35 }
 0x1e3   : > { %578 = vst.msk [vmem:[%s341_s30] sm:$0xf] %vm577_vm2, %v844_v41  ;;  %v845_v46 = vpack.c.bf16 %v565_v42, %v565_v42  ;;  %580 = vrot.lane.b32.xlu0 %v844_v41, %s1079_s12 }
 0x1e4   : > { %v847_v47 = vpack.c.bf16 %v567_v45, %v567_v45  ;;  %596 = vst.msk [vmem:[%s322_s8] sm:$0xf] %vm577_vm2, %v846_v44 }
 0x1e5   : > { %579 = vst.msk [vmem:[%s341_s30 + $0x4] sm:$0xf] %vm577_vm2, %v845_v46  ;;  %s970_s30 = scalar_lea.vmem %s969_s20, 256 }
 0x1e6   : > { %597 = vst.msk [vmem:[%s322_s8 + $0x4] sm:$0xf] %vm577_vm2, %v847_v47  ;;  %p972_p2 = scmp.lt.s32.totalorder %s970_s30, %s964_s21 }
 0x1e7   : > { %582 = vrot.lane.b32.xlu0 %v845_v46, %s1079_s12 }
 0x1e8   : > { %p973_p3 = por %p972_p2, %p971_p1 }
 0x1ea   : > { %p974_p5 = pnand %p973_p3, %p967_p0 }
 0x1ec   : > { %977 = shalt.err (!%p974_p5)
}
 0x1ed   : > { %s978_s8 = scalar_lea.hbm %s1262_s17, 128  ;;  %s982_s23 = scalar_lea.hbm %s1362_s7, 256 }
 0x1ee   : > { %p979_p6 = scmp.ne.s32.totalorder %s1262_s17, %s978_s8  ;;  %p983_p10 = scmp.lt.u32.totalorder %s1262_s17, %s1362_s7 }
 0x1ef   : > { %p984_p11 = scmp.lt.u32.totalorder %s982_s23, %s978_s8  ;;  %p986_p13 = scmp.lt.u32.totalorder %s978_s8, %s1262_s17 }
 0x1f0   : > { %p980_p7 = pnand %p979_p6, %p1163_p4 }
 0x1f1   : > { %p985_p12 = por %p984_p11, %p983_p10 }
 0x1f2   : > { %p981_p9 = pneg %p980_p7 }
 0x1f3   : > { %p987_p0 = por %p986_p13, %p985_p12 }
 0x1f5   : > { %p988_p1 = pnand %p987_p0, %p981_p9 }
 0x1f7   : > { %991 = shalt.err (!%p988_p1)
}
 0x1f8   : > { %s1081_s21 = smov 4   ;;  %s1367_s10 = sshll.u32 %s1241_s18, 3 }
 0x1f9   : > { %880 = dma.vmem_to_hbm [thread:$0]  (%p1163_p4), %s1254_s22, 128, %s1262_s17, %s613_s19, %s1079_s12, %s1079_s12, %s1081_s21  }
 0x1fa   : > { %s315_s30 = scalar_lea.vmem [#allocation2], %s1367_s10  ;;  %s1368_s15 = sshll.u32 %s1066_s27, 7 }
 0x1fb   : > { %s632_s8 = sshll.u32 %s315_s30, 4  ;;  %s1303_s20 = scalar_lea.hbm %s1361_s6, %s1368_s15  ;;  %s1296_s8 = int_to_ptr.vmem [resolvable:$true] %s632_s8 }
 0x1fc   : > { %s608_s22 = scalar_lea.sflag [#allocation3], %s1241_s18  ;;  %s992_s17 = scalar_lea.vmem %s1296_s8, 128 }
 0x1fd   : > { %p993_p2 = scmp.ne.s32.totalorder %s1296_s8, %s992_s17  ;;  %s1082_s19 = smov [#allocation2]  }
 0x1fe   : > { %s996_s10 = sshll.u32 %s1082_s19, 4  ;;  %s997_s10 = int_to_ptr.vmem [resolvable:$false] %s996_s10 }
 0x1ff   : > { %p994_p3 = pnand %p993_p2, %p1163_p4  ;;  %s998_s27 = scalar_lea.vmem %s997_s10, 256 }
 0x200   : > { %p999_p6 = scmp.lt.s32.totalorder %s1296_s8, %s997_s10  ;;  %p1000_p7 = scmp.lt.s32.totalorder %s998_s27, %s992_s17 }
 0x201   : > { %p995_p5 = pneg %p994_p3 }
 0x202   : > { %p1001_p9 = por %p1000_p7, %p999_p6 }
 0x204   : > { %p1002_p10 = pnand %p1001_p9, %p995_p5 }
 0x255   : > { %v581_v48 = vpop.permute.xlu0 %580 }
 0x256   : > { %586 = vst.msk [vmem:[%s315_s30] sm:$0xf] %vm577_vm2, %v581_v48 }
 0x259   : > { %v583_v49 = vpop.permute.xlu0 %582 }
 0x25a   : > { %587 = vst.msk [vmem:[%s315_s30 + $0x4] sm:$0xf] %vm577_vm2, %v583_v49 }
 0x25b   : > { %1005 = shalt.err (!%p1002_p10)
}
 0x25c   : > { %s1006_s30 = scalar_lea.hbm %s1303_s20, 128  ;;  %s1010_s23 = scalar_lea.hbm %s1361_s6, 256 }
 0x25d   : > { %p1007_p11 = scmp.ne.s32.totalorder %s1303_s20, %s1006_s30  ;;  %p1011_p0 = scmp.lt.u32.totalorder %s1303_s20, %s1361_s6 }
 0x25e   : > { %p1012_p1 = scmp.lt.u32.totalorder %s1010_s23, %s1006_s30  ;;  %p1014_p3 = scmp.lt.u32.totalorder %s1006_s30, %s1303_s20 }
 0x25f   : > { %p1008_p12 = pnand %p1007_p11, %p1163_p4 }
 0x260   : > { %p1013_p2 = por %p1012_p1, %p1011_p0 }
 0x261   : > { %p1009_p13 = pneg %p1008_p12 }
 0x262   : > { %p1015_p5 = por %p1014_p3, %p1013_p2 }
 0x264   : > { %p1016_p6 = pnand %p1015_p5, %p1009_p13 }
 0x266   : > { %1019 = shalt.err (!%p1016_p6)
}
 0x267   : > { %879 = dma.vmem_to_hbm [thread:$0]  (%p1163_p4), %s1296_s8, 128, %s1303_s20, %s608_s22, %s1079_s12, %s1079_s12, %s1081_s21  }
 0x268 PF: > { %p890_p7 = scmp.ge.s32.totalorder %s1074_s29, 2  ;;  %s677_s17 = sand.u32 1, %s1054_s24  }
 0x269   : > { %s678_s27 = scalar_lea.sflag [#allocation3], %s677_s17 }
 0x26a   : > { %p884_p9 = pnand %p890_p7, %p1170_p8 }
 0x26c   : > { %1045 = dma.done.wait (!%p884_p9), %s678_s27, 128  }
 0x26d   : > { %1047 = vsyncadd (!%p884_p9), %s678_s27, 4294967168  ;;  %s687_s11 = scalar_lea.sflag [#allocation5], %s677_s17 }
 0x26e   : > { %1049 = dma.done.wait (!%p884_p9), %s687_s11, 128  }
 0x26f   : > { %1051 = vsyncadd (!%p884_p9), %s687_s11, 4294967168  ;;  %s24_s29 = sadd.s32 1, %s1074_s29   ;;  %s1369_s24 = smov %s1058_s25 }
 0x270   : > { %p21_p10 = scmp.ge.s32.totalorder %s24_s29, 4   ;;  %s1370_s25 = smov %s1062_s26 }
 0x271   : > { %s1371_s26 = smov %s1176_s14  ;;  %s1372_s27 = smov %s1070_s28 }
 0x272   : > { %s1373_s28 = smov %s1375_s9  ;;  %23 = sbr.rel (!%p21_p10) target bundleno = 6 (0x6), region = 104 }
 0x279   :  { %692 = vsyncpa [#allocation3], 1 }
 0x27a   :  { %694 = vsyncpa [#allocation3 + $0x1], 1 }
 0x27b   :  { %695 = vsyncpa [#allocation5], 1 }
 0x27c   :  { %697 = vsyncpa [#allocation5 + $0x1], 1 }

// kernel: model_forward.14
= control target key start
LH: loop header
LB: loop body
LE: loop exit
PB: predicated region body
PF: predicated region fallthrough
CT: control target
= control target key end

     0   :  { %s933_s12 = smov 0   ;;  %s935_s13 = smov 0   ;;  %s1245_s0 = inlined_call_operand.vmem [shape: f32[2,16,3], index: 0, kind: input, shape index: {}, may-alias: {0,1}]   ;;  %s1246_s1 = inlined_call_operand.vmem [shape: f32[2,16,3], index: 1, kind: input, shape index: {}, may-alias: {0,1}]   ;;  %s1247_s2 = inlined_call_operand.vmem [shape: f32[2,1,16], index: 2, kind: input, shape index: {}]   ;;  %s1248_s3 = inlined_call_operand.vmem [shape: s32[2,16,16], index: 3, kind: output, shape index: {}]  }
   0x1   :  { %s937_s14 = smov 0  }
   0x2 LB: > { %s25_s15 = sadd.s32 1, %s907_s13  ;;  %p827_p0 = scmp.ge.s32.totalorder %s911_s14, 1  ;;  %s911_s14 = sphi %s937_s14, %s13_s14   ;;  %s907_s13 = sphi %s935_s13, %s1250_s13   ;;  %s903_s12 = sphi %s933_s12, %s1249_s12  }
   0x3   : > { %p27_p1 = scmp.ge.s32.totalorder %s25_s15, 2  ;;  %p176_p2 = scmp.lt.s32.totalorder %s911_s14, 3 }
   0x5   : > { %s1252_s15 = smov (%p27_p1, %s25_s15), 0  ;;  %p177_p3 = pnand %p827_p0, %p176_p2 }
   0x6   : > { %p217_p4 = scmp.lt.s32.totalorder (!%p177_p3), %s903_s12, 1  ;;  %vm248_vm0 = vcmask (!%p177_p3), 23552   ;;  %vm350_vm2 = vcmask (!%p177_p3), 130048   ;;  %v347_v14 = vlaneseq (!%p177_p3) }
   0x7   : > { %180 = sbr.rel (%p177_p3) target bundleno = 4893 (0x131d), region = 32  ;;  %vm856_vm1 = vmpackc.low (!%p177_p3), %vm248_vm0, %vm248_vm0 }
   0x8   : > { %v348_v15 = vand.u32 (!%p177_p3), 127, %v347_v14 }
   0xa   : > { %v970_v16 = vcvt.s32.f32 (!%p177_p3), %v348_v15 }
   0xe   : > { %s1254_s12 = smov (!%p217_p4, %s903_s12), 1 }
   0xf   : > { %s951_s16 = sshll.u32 %s1254_s12, 4  ;;  %s233_s25 = scalar_lea.vmem %s1247_s2, %s1254_s12 }
  0x10   : > { %s230_s19 = scalar_lea.vmem %s1246_s1, %s951_s16  ;;  %s224_s22 = scalar_lea.vmem %s1245_s0, %s951_s16  ;;  %v838_v6 = vld [vmem:[%s233_s25] ss:$0 sm:$0xff] }
  0x11   : > { %v246_v0 = vld [vmem:[%s230_s19] sm:$0xff]  ;;  %v247_v1 = vld [vmem:[%s230_s19 + $0x8] sm:$0xff]  ;;  %s242_s28 = scalar_lea.vmem %s1248_s3, %s951_s16 }
  0x12   : > { %v855_v2 = vpack.c.bf16 %v247_v1, %v246_v0  ;;  %v244_v3 = vld [vmem:[%s224_s22] sm:$0xff]  ;;  %v245_v4 = vld [vmem:[%s224_s22 + $0x8] sm:$0xff] }
  0x13   : > { %852 = vmatprep.mubr.msk.f32.mxu0 %vm248_vm0, %v244_v3 }
  0x14   : > { %857 = vmatprep.subr.msk.bf16.mxu0 %vm856_vm1, %v855_v2 }
  0x15   : > { %860 = vmatpush3.bf16.xpose.msk.msra.mxu0 %vm856_vm1, %v855_v2 }
  0x1c   : > { %853 = vmatmul.mubr.msk.f32.vlgmr.msra.gmra.mrb[0].mxu0 %vm248_vm0, %v245_v4 }
  0xef   : > { %v854_v5 = vpop.f32.mrb[0].mxu0 }
  0xf0   : > { %v338_v7 = vmul.f32 2.0, %v854_v5  ;;  %v327_v8 = vpop.f32.mrb[1].mxu0 }
  0xf1   : > { %v337_v9 = vmul.f32 2.0, %v327_v8 }
  0xf2   : > { %v346_v10 = vsub.f32 %v838_v6, %v338_v7 }
  0xf3   : > { %v345_v11 = vsub.f32 %v838_v6, %v337_v9 }
  0xf4   : > { %v354_v13 = vsel %vm350_vm2, %v346_v10, inf }
  0xf5   : > { %v351_v12 = vsel %vm350_vm2, %v345_v11, inf }
  0xf6   : > { %352 = vmin.xlane.f32.xlu0 %v351_v12 }
  0xfa   : > { %355 = vmin.xlane.f32.xlu0 %v354_v13 }
 0x183   : > { %v353_v17 = vpop.xlane.xlu0 %352 }
 0x184   : > { %vm357_vm3 = vcmp.le.f32.partialorder %v345_v11, %v353_v17 }
 0x185   : > { %v359_v18 = vsel %vm357_vm3, %v970_v16, 16.0 }
 0x186   : > { %v361_v19 = vsel %vm350_vm2, %v359_v18, inf }
 0x187   : > { %362 = vmin.xlane.f32.xlu1 %v361_v19  ;;  %v356_v20 = vpop.xlane.xlu0 %355 }
 0x188   : > { %vm358_vm4 = vcmp.le.f32.partialorder %v346_v10, %v356_v20 }
 0x189   : > { %v360_v21 = vsel %vm358_vm4, %v970_v16, 16.0 }
 0x18a   : > { %v364_v22 = vsel %vm350_vm2, %v360_v21, inf }
 0x18b   : > { %365 = vmin.xlane.f32.xlu1 %v364_v22 }
 0x214   : > { %v976_v23 = vpop.xlane.xlu1 %362 }
 0x215   : > { %vm367_vm5 = vcmp.eq.f32.partialorder %v970_v16, %v976_v23 }
 0x216   : > { %v369_v24 = vsel %vm367_vm5, inf, %v345_v11 }
 0x217   : > { %v371_v25 = vsel %vm350_vm2, %v369_v24, inf }
 0x218   : > { %372 = vmin.xlane.f32.xlu0 %v371_v25  ;;  %v981_v26 = vpop.xlane.xlu1 %365 }
 0x219   : > { %vm368_vm6 = vcmp.eq.f32.partialorder %v970_v16, %v981_v26 }
 0x21a   : > { %v370_v27 = vsel %vm368_vm6, inf, %v346_v10 }
 0x21b   : > { %v374_v28 = vsel %vm350_vm2, %v370_v27, inf }
 0x21c   : > { %375 = vmin.xlane.f32.xlu1 %v374_v28 }
 0x2a5   : > { %v373_v29 = vpop.xlane.xlu0 %372 }
 0x2a6   : > { %vm377_vm7 = vcmp.le.f32.partialorder %v369_v24, %v373_v29 }
 0x2a7   : > { %v379_v30 = vsel %vm377_vm7, %v970_v16, 16.0 }
 0x2a8   : > { %v381_v31 = vsel %vm350_vm2, %v379_v30, inf }
 0x2a9   : > { %v376_v32 = vpop.xlane.xlu1 %375  ;;  %382 = vmin.xlane.f32.xlu0 %v381_v31 }
 0x2aa   : > { %vm378_vm8 = vcmp.le.f32.partialorder %v370_v27, %v376_v32 }
 0x2ab   : > { %v380_v33 = vsel %vm378_vm8, %v970_v16, 16.0 }
 0x2ac   : > { %v384_v34 = vsel %vm350_vm2, %v380_v33, inf }
 0x2ad   : > { %385 = vmin.xlane.f32.xlu1 %v384_v34 }
 0x336   : > { %v990_v35 = vpop.xlane.xlu0 %382 }
 0x337   : > { %vm387_vm9 = vcmp.eq.f32.partialorder %v970_v16, %v990_v35 }
 0x338   : > { %v389_v36 = vsel %vm387_vm9, inf, %v369_v24 }
 0x339   : > { %v391_v37 = vsel %vm350_vm2, %v389_v36, inf }
 0x33a   : > { %v995_v38 = vpop.xlane.xlu1 %385  ;;  %392 = vmin.xlane.f32.xlu0 %v391_v37 }
 0x33b   : > { %vm388_vm10 = vcmp.eq.f32.partialorder %v970_v16, %v995_v38 }
 0x33c   : > { %v390_v39 = vsel %vm388_vm10, inf, %v370_v27 }
 0x33d   : > { %v394_v40 = vsel %vm350_vm2, %v390_v39, inf }
 0x33e   : > { %395 = vmin.xlane.f32.xlu1 %v394_v40 }
 0x3c7   : > { %v393_v41 = vpop.xlane.xlu0 %392 }
 0x3c8   : > { %vm397_vm11 = vcmp.le.f32.partialorder %v389_v36, %v393_v41 }
 0x3c9   : > { %v399_v42 = vsel %vm397_vm11, %v970_v16, 16.0 }
 0x3ca   : > { %v401_v43 = vsel %vm350_vm2, %v399_v42, inf }
 0x3cb   : > { %v396_v44 = vpop.xlane.xlu1 %395  ;;  %402 = vmin.xlane.f32.xlu0 %v401_v43 }
 0x3cc   : > { %vm398_vm12 = vcmp.le.f32.partialorder %v390_v39, %v396_v44 }
 0x3cd   : > { %v400_v45 = vsel %vm398_vm12, %v970_v16, 16.0 }
 0x3ce   : > { %v404_v46 = vsel %vm350_vm2, %v400_v45, inf }
 0x3cf   : > { %405 = vmin.xlane.f32.xlu1 %v404_v46 }
 0x458   : > { %v1004_v47 = vpop.xlane.xlu0 %402 }
 0x459   : > { %vm407_vm13 = vcmp.eq.f32.partialorder %v970_v16, %v1004_v47 }
 0x45a   : > { %v409_v48 = vsel %vm407_vm13, inf, %v389_v36 }
 0x45b   : > { %v411_v49 = vsel %vm350_vm2, %v409_v48, inf }
 0x45c   : > { %v1009_v50 = vpop.xlane.xlu1 %405  ;;  %412 = vmin.xlane.f32.xlu0 %v411_v49 }
 0x45d   : > { %vm408_vm14 = vcmp.eq.f32.partialorder %v970_v16, %v1009_v50 }
 0x45e   : > { %v410_v51 = vsel %vm408_vm14, inf, %v390_v39 }
 0x45f   : > { %v414_v52 = vsel %vm350_vm2, %v410_v51, inf }
 0x460   : > { %415 = vmin.xlane.f32.xlu1 %v414_v52 }
 0x4e9   : > { %v413_v53 = vpop.xlane.xlu0 %412 }
 0x4ea   : > { %vm417_vm15 = vcmp.le.f32.partialorder %v409_v48, %v413_v53 }
 0x4eb   : > { %v419_v54 = vsel %vm417_vm15, %v970_v16, 16.0 }
 0x4ec   : > { %v421_v55 = vsel %vm350_vm2, %v419_v54, inf }
 0x4ed   : > { %v416_v56 = vpop.xlane.xlu1 %415  ;;  %422 = vmin.xlane.f32.xlu0 %v421_v55 }
 0x4ee   : > { %vm418_vm1 = vcmp.le.f32.partialorder %v410_v51, %v416_v56 }
 0x4ef   : > { %v420_v57 = vsel %vm418_vm1, %v970_v16, 16.0 }
 0x4f0   : > { %v424_v58 = vsel %vm350_vm2, %v420_v57, inf }
 0x4f1   : > { %425 = vmin.xlane.f32.xlu1 %v424_v58 }
 0x57a   : > { %v1018_v59 = vpop.xlane.xlu0 %422 }
 0x57b   : > { %vm427_vm3 = vcmp.eq.f32.partialorder %v970_v16, %v1018_v59 }
 0x57c   : > { %v429_v60 = vsel %vm427_vm3, inf, %v409_v48 }
 0x57d   : > { %v431_v61 = vsel %vm350_vm2, %v429_v60, inf }
 0x57e   : > { %v1023_v62 = vpop.xlane.xlu1 %425  ;;  %432 = vmin.xlane.f32.xlu0 %v431_v61 }
 0x57f   : > { %vm428_vm4 = vcmp.eq.f32.partialorder %v970_v16, %v1023_v62 }
 0x580   : > { %v430_v63 = vsel %vm428_vm4, inf, %v410_v51 }
 0x581   : > { %v434_v0 = vsel %vm350_vm2, %v430_v63, inf }
 0x582   : > { %435 = vmin.xlane.f32.xlu1 %v434_v0 }
 0x60b   : > { %v433_v1 = vpop.xlane.xlu0 %432 }
 0x60c   : > { %vm437_vm5 = vcmp.le.f32.partialorder %v429_v60, %v433_v1 }
 0x60d   : > { %v439_v2 = vsel %vm437_vm5, %v970_v16, 16.0 }
 0x60e   : > { %v441_v3 = vsel %vm350_vm2, %v439_v2, inf }
 0x60f   : > { %v436_v4 = vpop.xlane.xlu1 %435  ;;  %442 = vmin.xlane.f32.xlu0 %v441_v3 }
 0x610   : > { %vm438_vm6 = vcmp.le.f32.partialorder %v430_v63, %v436_v4 }
 0x611   : > { %v440_v5 = vsel %vm438_vm6, %v970_v16, 16.0 }
 0x612   : > { %v444_v6 = vsel %vm350_vm2, %v440_v5, inf }
 0x613   : > { %445 = vmin.xlane.f32.xlu1 %v444_v6 }
 0x69c   : > { %v1032_v7 = vpop.xlane.xlu0 %442 }
 0x69d   : > { %vm447_vm7 = vcmp.eq.f32.partialorder %v970_v16, %v1032_v7 }
 0x69e   : > { %v449_v8 = vsel %vm447_vm7, inf, %v429_v60 }
 0x69f   : > { %v451_v9 = vsel %vm350_vm2, %v449_v8, inf }
 0x6a0   : > { %v1037_v10 = vpop.xlane.xlu1 %445  ;;  %452 = vmin.xlane.f32.xlu0 %v451_v9 }
 0x6a1   : > { %vm448_vm8 = vcmp.eq.f32.partialorder %v970_v16, %v1037_v10 }
 0x6a2   : > { %v450_v11 = vsel %vm448_vm8, inf, %v430_v63 }
 0x6a3   : > { %v454_v12 = vsel %vm350_vm2, %v450_v11, inf }
 0x6a4   : > { %455 = vmin.xlane.f32.xlu1 %v454_v12 }
 0x72d   : > { %v453_v13 = vpop.xlane.xlu0 %452 }
 0x72e   : > { %vm457_vm9 = vcmp.le.f32.partialorder %v449_v8, %v453_v13 }
 0x72f   : > { %v459_v14 = vsel %vm457_vm9, %v970_v16, 16.0 }
 0x730   : > { %v461_v15 = vsel %vm350_vm2, %v459_v14, inf }
 0x731   : > { %v456_v17 = vpop.xlane.xlu1 %455  ;;  %462 = vmin.xlane.f32.xlu0 %v461_v15 }
 0x732   : > { %vm458_vm10 = vcmp.le.f32.partialorder %v450_v11, %v456_v17 }
 0x733   : > { %v460_v18 = vsel %vm458_vm10, %v970_v16, 16.0 }
 0x734   : > { %v464_v19 = vsel %vm350_vm2, %v460_v18, inf }
 0x735   : > { %465 = vmin.xlane.f32.xlu1 %v464_v19 }
 0x7be   : > { %v1046_v20 = vpop.xlane.xlu0 %462 }
 0x7bf   : > { %vm467_vm11 = vcmp.eq.f32.partialorder %v970_v16, %v1046_v20 }
 0x7c0   : > { %v469_v21 = vsel %vm467_vm11, inf, %v449_v8 }
 0x7c1   : > { %v471_v22 = vsel %vm350_vm2, %v469_v21, inf }
 0x7c2   : > { %v1051_v24 = vpop.xlane.xlu1 %465  ;;  %472 = vmin.xlane.f32.xlu0 %v471_v22 }
 0x7c3   : > { %vm468_vm12 = vcmp.eq.f32.partialorder %v970_v16, %v1051_v24 }
 0x7c4   : > { %v470_v25 = vsel %vm468_vm12, inf, %v450_v11 }
 0x7c5   : > { %v474_v27 = vsel %vm350_vm2, %v470_v25, inf }
 0x7c6   : > { %475 = vmin.xlane.f32.xlu1 %v474_v27 }
 0x84f   : > { %v473_v28 = vpop.xlane.xlu0 %472 }
 0x850   : > { %vm477_vm13 = vcmp.le.f32.partialorder %v469_v21, %v473_v28 }
 0x851   : > { %v479_v29 = vsel %vm477_vm13, %v970_v16, 16.0 }
 0x852   : > { %v481_v30 = vsel %vm350_vm2, %v479_v29, inf }
 0x853   : > { %v476_v31 = vpop.xlane.xlu1 %475  ;;  %482 = vmin.xlane.f32.xlu0 %v481_v30 }
 0x854   : > { %vm478_vm14 = vcmp.le.f32.partialorder %v470_v25, %v476_v31 }
 0x855   : > { %v480_v32 = vsel %vm478_vm14, %v970_v16, 16.0 }
 0x856   : > { %v484_v33 = vsel %vm350_vm2, %v480_v32, inf }
 0x857   : > { %485 = vmin.xlane.f32.xlu1 %v484_v33 }
 0x8e0   : > { %v1060_v34 = vpop.xlane.xlu0 %482 }
 0x8e1   : > { %vm487_vm15 = vcmp.eq.f32.partialorder %v970_v16, %v1060_v34 }
 0x8e2   : > { %v489_v36 = vsel %vm487_vm15, inf, %v469_v21 }
 0x8e3   : > { %v491_v37 = vsel %vm350_vm2, %v489_v36, inf }
 0x8e4   : > { %v1065_v39 = vpop.xlane.xlu1 %485  ;;  %492 = vmin.xlane.f32.xlu0 %v491_v37 }
 0x8e5   : > { %vm488_vm1 = vcmp.eq.f32.partialorder %v970_v16, %v1065_v39 }
 0x8e6   : > { %v490_v40 = vsel %vm488_vm1, inf, %v470_v25 }
 0x8e7   : > { %v494_v41 = vsel %vm350_vm2, %v490_v40, inf }
 0x8e8   : > { %495 = vmin.xlane.f32.xlu1 %v494_v41 }
 0x971   : > { %v493_v42 = vpop.xlane.xlu0 %492 }
 0x972   : > { %vm497_vm3 = vcmp.le.f32.partialorder %v489_v36, %v493_v42 }
 0x973   : > { %v499_v43 = vsel %vm497_vm3, %v970_v16, 16.0 }
 0x974   : > { %v501_v44 = vsel %vm350_vm2, %v499_v43, inf }
 0x975   : > { %v496_v45 = vpop.xlane.xlu1 %495  ;;  %502 = vmin.xlane.f32.xlu0 %v501_v44 }
 0x976   : > { %vm498_vm4 = vcmp.le.f32.partialorder %v490_v40, %v496_v45 }
 0x977   : > { %v500_v46 = vsel %vm498_vm4, %v970_v16, 16.0 }
 0x978   : > { %v504_v48 = vsel %vm350_vm2, %v500_v46, inf }
 0x979   : > { %505 = vmin.xlane.f32.xlu1 %v504_v48 }
 0xa02   : > { %v1074_v49 = vpop.xlane.xlu0 %502 }
 0xa03   : > { %vm507_vm5 = vcmp.eq.f32.partialorder %v970_v16, %v1074_v49 }
 0xa04   : > { %v509_v51 = vsel %vm507_vm5, inf, %v489_v36 }
 0xa05   : > { %v511_v52 = vsel %vm350_vm2, %v509_v51, inf }
 0xa06   : > { %v1079_v53 = vpop.xlane.xlu1 %505  ;;  %512 = vmin.xlane.f32.xlu0 %v511_v52 }
 0xa07   : > { %vm508_vm6 = vcmp.eq.f32.partialorder %v970_v16, %v1079_v53 }
 0xa08   : > { %v510_v54 = vsel %vm508_vm6, inf, %v490_v40 }
 0xa09   : > { %v514_v55 = vsel %vm350_vm2, %v510_v54, inf }
 0xa0a   : > { %515 = vmin.xlane.f32.xlu1 %v514_v55 }
 0xa93   : > { %v513_v56 = vpop.xlane.xlu0 %512 }
 0xa94   : > { %vm517_vm7 = vcmp.le.f32.partialorder %v509_v51, %v513_v56 }
 0xa95   : > { %v519_v57 = vsel %vm517_vm7, %v970_v16, 16.0 }
 0xa96   : > { %v521_v58 = vsel %vm350_vm2, %v519_v57, inf }
 0xa97   : > { %v516_v60 = vpop.xlane.xlu1 %515  ;;  %522 = vmin.xlane.f32.xlu0 %v521_v58 }
 0xa98   : > { %vm518_vm8 = vcmp.le.f32.partialorder %v510_v54, %v516_v60 }
 0xa99   : > { %v520_v61 = vsel %vm518_vm8, %v970_v16, 16.0 }
 0xa9a   : > { %v524_v63 = vsel %vm350_vm2, %v520_v61, inf }
 0xa9b   : > { %525 = vmin.xlane.f32.xlu1 %v524_v63 }
 0xb24   : > { %v1088_v0 = vpop.xlane.xlu0 %522 }
 0xb25   : > { %vm527_vm9 = vcmp.eq.f32.partialorder %v970_v16, %v1088_v0 }
 0xb26   : > { %v529_v1 = vsel %vm527_vm9, inf, %v509_v51 }
 0xb27   : > { %v531_v2 = vsel %vm350_vm2, %v529_v1, inf }
 0xb28   : > { %v1093_v3 = vpop.xlane.xlu1 %525  ;;  %532 = vmin.xlane.f32.xlu0 %v531_v2 }
 0xb29   : > { %vm528_vm10 = vcmp.eq.f32.partialorder %v970_v16, %v1093_v3 }
 0xb2a   : > { %v530_v4 = vsel %vm528_vm10, inf, %v510_v54 }
 0xb2b   : > { %v534_v5 = vsel %vm350_vm2, %v530_v4, inf }
 0xb2c   : > { %535 = vmin.xlane.f32.xlu1 %v534_v5 }
 0xbb5   : > { %v533_v6 = vpop.xlane.xlu0 %532 }
 0xbb6   : > { %vm537_vm11 = vcmp.le.f32.partialorder %v529_v1, %v533_v6 }
 0xbb7   : > { %v539_v8 = vsel %vm537_vm11, %v970_v16, 16.0 }
 0xbb8   : > { %v541_v9 = vsel %vm350_vm2, %v539_v8, inf }
 0xbb9   : > { %v536_v11 = vpop.xlane.xlu1 %535  ;;  %542 = vmin.xlane.f32.xlu0 %v541_v9 }
 0xbba   : > { %vm538_vm12 = vcmp.le.f32.partialorder %v530_v4, %v536_v11 }
 0xbbb   : > { %v540_v12 = vsel %vm538_vm12, %v970_v16, 16.0 }
 0xbbc   : > { %v544_v13 = vsel %vm350_vm2, %v540_v12, inf }
 0xbbd   : > { %545 = vmin.xlane.f32.xlu1 %v544_v13 }
 0xc46   : > { %v1102_v14 = vpop.xlane.xlu0 %542 }
 0xc47   : > { %vm547_vm13 = vcmp.eq.f32.partialorder %v970_v16, %v1102_v14 }
 0xc48   : > { %v549_v15 = vsel %vm547_vm13, inf, %v529_v1 }
 0xc49   : > { %v551_v17 = vsel %vm350_vm2, %v549_v15, inf }
 0xc4a   : > { %v1107_v18 = vpop.xlane.xlu1 %545  ;;  %552 = vmin.xlane.f32.xlu0 %v551_v17 }
 0xc4b   : > { %vm548_vm14 = vcmp.eq.f32.partialorder %v970_v16, %v1107_v18 }
 0xc4c   : > { %v550_v19 = vsel %vm548_vm14, inf, %v530_v4 }
 0xc4d   : > { %v554_v21 = vsel %vm350_vm2, %v550_v19, inf }
 0xc4e   : > { %555 = vmin.xlane.f32.xlu1 %v554_v21 }
 0xcd7   : > { %v553_v22 = vpop.xlane.xlu0 %552 }
 0xcd8   : > { %vm557_vm15 = vcmp.le.f32.partialorder %v549_v15, %v553_v22 }
 0xcd9   : > { %v559_v25 = vsel %vm557_vm15, %v970_v16, 16.0 }
 0xcda   : > { %v561_v27 = vsel %vm350_vm2, %v559_v25, inf }
 0xcdb   : > { %v556_v28 = vpop.xlane.xlu1 %555  ;;  %562 = vmin.xlane.f32.xlu0 %v561_v27 }
 0xcdc   : > { %vm558_vm1 = vcmp.le.f32.partialorder %v550_v19, %v556_v28 }
 0xcdd   : > { %v560_v29 = vsel %vm558_vm1, %v970_v16, 16.0 }
 0xcde   : > { %v564_v30 = vsel %vm350_vm2, %v560_v29, inf }
 0xcdf   : > { %565 = vmin.xlane.f32.xlu1 %v564_v30 }
 0xd68   : > { %v1116_v31 = vpop.xlane.xlu0 %562 }
 0xd69   : > { %vm567_vm3 = vcmp.eq.f32.partialorder %v970_v16, %v1116_v31 }
 0xd6a   : > { %v569_v32 = vsel %vm567_vm3, inf, %v549_v15 }
 0xd6b   : > { %v571_v33 = vsel %vm350_vm2, %v569_v32, inf }
 0xd6c   : > { %v1121_v36 = vpop.xlane.xlu1 %565  ;;  %572 = vmin.xlane.f32.xlu0 %v571_v33 }
 0xd6d   : > { %vm568_vm4 = vcmp.eq.f32.partialorder %v970_v16, %v1121_v36 }
 0xd6e   : > { %v570_v37 = vsel %vm568_vm4, inf, %v550_v19 }
 0xd6f   : > { %v574_v40 = vsel %vm350_vm2, %v570_v37, inf }
 0xd70   : > { %575 = vmin.xlane.f32.xlu1 %v574_v40 }
 0xdf9   : > { %v573_v41 = vpop.xlane.xlu0 %572 }
 0xdfa   : > { %vm577_vm5 = vcmp.le.f32.partialorder %v569_v32, %v573_v41 }
 0xdfb   : > { %v579_v42 = vsel %vm577_vm5, %v970_v16, 16.0 }
 0xdfc   : > { %v581_v43 = vsel %vm350_vm2, %v579_v42, inf }
 0xdfd   : > { %v576_v44 = vpop.xlane.xlu1 %575  ;;  %582 = vmin.xlane.f32.xlu0 %v581_v43 }
 0xdfe   : > { %vm578_vm6 = vcmp.le.f32.partialorder %v570_v37, %v576_v44 }
 0xdff   : > { %v580_v45 = vsel %vm578_vm6, %v970_v16, 16.0 }
 0xe00   : > { %v584_v46 = vsel %vm350_vm2, %v580_v45, inf }
 0xe01   : > { %585 = vmin.xlane.f32.xlu1 %v584_v46 }
 0xe8a   : > { %v1130_v48 = vpop.xlane.xlu0 %582 }
 0xe8b   : > { %vm587_vm7 = vcmp.eq.f32.partialorder %v970_v16, %v1130_v48 }
 0xe8c   : > { %v589_v51 = vsel %vm587_vm7, inf, %v569_v32 }
 0xe8d   : > { %v591_v52 = vsel %vm350_vm2, %v589_v51, inf }
 0xe8e   : > { %v1135_v54 = vpop.xlane.xlu1 %585  ;;  %592 = vmin.xlane.f32.xlu0 %v591_v52 }
 0xe8f   : > { %vm588_vm8 = vcmp.eq.f32.partialorder %v970_v16, %v1135_v54 }
 0xe90   : > { %v590_v55 = vsel %vm588_vm8, inf, %v570_v37 }
 0xe91   : > { %v594_v56 = vsel %vm350_vm2, %v590_v55, inf }
 0xe92   : > { %595 = vmin.xlane.f32.xlu1 %v594_v56 }
 0xf1b   : > { %v593_v57 = vpop.xlane.xlu0 %592 }
 0xf1c   : > { %vm597_vm9 = vcmp.le.f32.partialorder %v589_v51, %v593_v57 }
 0xf1d   : > { %v599_v58 = vsel %vm597_vm9, %v970_v16, 16.0  ;;  %vm667_vm9 = vcmask 7168  }
 0xf1e   : > { %v601_v60 = vsel %vm350_vm2, %v599_v58, inf }
 0xf1f   : > { %v596_v61 = vpop.xlane.xlu1 %595  ;;  %602 = vmin.xlane.f32.xlu0 %v601_v60 }
 0xf20   : > { %vm598_vm10 = vcmp.le.f32.partialorder %v590_v55, %v596_v61  ;;  %v668_v61 = vsel %vm667_vm9, %v976_v23, %v990_v35 }
 0xf21   : > { %v600_v63 = vsel %vm598_vm10, %v970_v16, 16.0  ;;  %vm670_vm10 = vcmask 15360  }
 0xf22   : > { %v604_v1 = vsel %vm350_vm2, %v600_v63, inf  ;;  %v671_v63 = vsel %vm670_vm10, %v668_v61, %v1004_v47 }
 0xf23   : > { %605 = vmin.xlane.f32.xlu1 %v604_v1  ;;  %v673_v1 = vsel %vm248_vm0, %v671_v63, %v1018_v59 }
 0xfac   : > { %v1144_v2 = vpop.xlane.xlu0 %602 }
 0xfad   : > { %vm607_vm11 = vcmp.eq.f32.partialorder %v970_v16, %v1144_v2 }
 0xfae   : > { %v609_v4 = vsel %vm607_vm11, inf, %v589_v51  ;;  %vm675_vm11 = vcmask 31744  }
 0xfaf   : > { %v611_v5 = vsel %vm350_vm2, %v609_v4, inf }
 0xfb0   : > { %v1149_v6 = vpop.xlane.xlu1 %605  ;;  %612 = vmin.xlane.f32.xlu0 %v611_v5 }
 0xfb1   : > { %vm608_vm12 = vcmp.eq.f32.partialorder %v970_v16, %v1149_v6 }
 0xfb2   : > { %v610_v8 = vsel %vm608_vm12, inf, %v590_v55  ;;  %vm678_vm12 = vcmask 39936  }
 0xfb3   : > { %v614_v9 = vsel %vm350_vm2, %v610_v8, inf }
 0xfb4   : > { %615 = vmin.xlane.f32.xlu1 %v614_v9 }
0x103d   : > { %v613_v11 = vpop.xlane.xlu0 %612 }
0x103e   : > { %vm617_vm13 = vcmp.le.f32.partialorder %v609_v4, %v613_v11 }
0x103f   : > { %v619_v12 = vsel %vm617_vm13, %v970_v16, 16.0  ;;  %vm681_vm13 = vcmask 48128  }
0x1040   : > { %v621_v13 = vsel %vm350_vm2, %v619_v12, inf }
0x1041   : > { %v616_v15 = vpop.xlane.xlu1 %615  ;;  %622 = vmin.xlane.f32.xlu0 %v621_v13 }
0x1042   : > { %vm618_vm14 = vcmp.le.f32.partialorder %v610_v8, %v616_v15 }
0x1043   : > { %v620_v17 = vsel %vm618_vm14, %v970_v16, 16.0  ;;  %vm684_vm14 = vcmask 56320  }
0x1044   : > { %v624_v19 = vsel %vm350_vm2, %v620_v17, inf }
0x1045   : > { %625 = vmin.xlane.f32.xlu1 %v624_v19 }
0x10ce   : > { %v1158_v21 = vpop.xlane.xlu0 %622 }
0x10cf   : > { %vm627_vm15 = vcmp.eq.f32.partialorder %v970_v16, %v1158_v21 }
0x10d0   : > { %v629_v22 = vsel %vm627_vm15, inf, %v609_v4  ;;  %v676_v4 = vsel %vm675_vm11, %v673_v1, %v1032_v7  ;;  %vm687_vm15 = vcmask 64512  }
0x10d1   : > { %v631_v25 = vsel %vm350_vm2, %v629_v22, inf  ;;  %v679_v5 = vsel %vm678_vm12, %v676_v4, %v1046_v20 }
0x10d2   : > { %v1163_v27 = vpop.xlane.xlu1 %625  ;;  %632 = vmin.xlane.f32.xlu0 %v631_v25  ;;  %v682_v35 = vsel %vm681_vm13, %v679_v5, %v1060_v34 }
0x10d3   : > { %vm628_vm1 = vcmp.eq.f32.partialorder %v970_v16, %v1163_v27  ;;  %v685_v59 = vsel %vm684_vm14, %v682_v35, %v1074_v49 }
0x10d4   : > { %v630_v28 = vsel %vm628_vm1, inf, %v610_v8  ;;  %vm690_vm1 = vcmask 72704  }
0x10d5   : > { %v634_v29 = vsel %vm350_vm2, %v630_v28, inf }
0x10d6   : > { %635 = vmin.xlane.f32.xlu1 %v634_v29 }
0x115f   : > { %v633_v30 = vpop.xlane.xlu0 %632 }
0x1160   : > { %vm637_vm3 = vcmp.le.f32.partialorder %v629_v22, %v633_v30 }
0x1161   : > { %v639_v32 = vsel %vm637_vm3, %v970_v16, 16.0  ;;  %vm693_vm3 = vcmask 80896  }
0x1162   : > { %v641_v33 = vsel %vm350_vm2, %v639_v32, inf }
0x1163   : > { %v636_v37 = vpop.xlane.xlu1 %635  ;;  %642 = vmin.xlane.f32.xlu0 %v641_v33 }
0x1164   : > { %vm638_vm4 = vcmp.le.f32.partialorder %v630_v28, %v636_v37 }
0x1165   : > { %v640_v40 = vsel %vm638_vm4, %v970_v16, 16.0  ;;  %vm696_vm4 = vcmask 89088  }
0x1166   : > { %v644_v41 = vsel %vm350_vm2, %v640_v40, inf }
0x1167   : > { %645 = vmin.xlane.f32.xlu1 %v644_v41 }
0x11f0   : > { %v643_v42 = vpop.xlane.xlu0 %642 }
0x11f1   : > { %vm647_vm5 = vcmp.eq.f32.partialorder %v970_v16, %v643_v42 }
0x11f2   : > { %v649_v43 = vsel %vm647_vm5, inf, %v629_v22  ;;  %vm699_vm5 = vcmask 97280  }
0x11f3   : > { %v651_v44 = vsel %vm350_vm2, %v649_v43, inf }
0x11f4   : > { %v646_v45 = vpop.xlane.xlu1 %645  ;;  %652 = vmin.xlane.f32.xlu0 %v651_v44 }
0x11f5   : > { %vm648_vm6 = vcmp.eq.f32.partialorder %v970_v16, %v646_v45 }
0x11f6   : > { %v650_v46 = vsel %vm648_vm6, inf, %v630_v28  ;;  %vm705_vm6 = vcmask 113664  }
0x11f7   : > { %v654_v51 = vsel %vm350_vm2, %v650_v46, inf }
0x11f8   : > { %655 = vmin.xlane.f32.xlu1 %v654_v51 }
0x1281   : > { %v653_v52 = vpop.xlane.xlu0 %652 }
0x1282   : > { %vm657_vm7 = vcmp.le.f32.partialorder %v649_v43, %v653_v52 }
0x1283   : > { %v659_v55 = vsel %vm657_vm7, %v970_v16, 16.0  ;;  %vm708_vm7 = vcmask 121856  }
0x1284   : > { %v661_v56 = vsel %vm350_vm2, %v659_v55, inf }
0x1285   : > { %v656_v57 = vpop.xlane.xlu1 %655  ;;  %662 = vmin.xlane.f32.xlu0 %v661_v56 }
0x1286   : > { %vm658_vm8 = vcmp.le.f32.partialorder %v650_v46, %v656_v57 }
0x1287   : > { %v660_v58 = vsel %vm658_vm8, %v970_v16, 16.0  ;;  %v669_v16 = vsel %vm667_vm9, %v981_v26, %v995_v38  ;;  %v688_v38 = vsel %vm687_vm15, %v685_v59, %v1088_v0 }
0x1288   : > { %v664_v60 = vsel %vm350_vm2, %v660_v58, inf  ;;  %v672_v23 = vsel %vm670_vm10, %v669_v16, %v1009_v50  ;;  %v691_v7 = vsel %vm690_vm1, %v688_v38, %v1102_v14 }
0x1289   : > { %665 = vmin.xlane.f32.xlu1 %v664_v60  ;;  %v674_v47 = vsel %vm248_vm0, %v672_v23, %v1023_v62  ;;  %v694_v20 = vsel %vm693_vm3, %v691_v7, %v1116_v31  ;;  %vm702_vm0 = vcmask 105472  }
0x128a   : > { %v677_v26 = vsel %vm675_vm11, %v674_v47, %v1037_v10  ;;  %v697_v34 = vsel %vm696_vm4, %v694_v20, %v1130_v48 }
0x128b   : > { %v680_v50 = vsel %vm678_vm12, %v677_v26, %v1051_v24  ;;  %v700_v49 = vsel %vm699_vm5, %v697_v34, %v1144_v2 }
0x128c   : > { %v683_v62 = vsel %vm681_vm13, %v680_v50, %v1065_v39  ;;  %v703_v0 = vsel %vm702_vm0, %v700_v49, %v1158_v21 }
0x128d   : > { %v686_v10 = vsel %vm684_vm14, %v683_v62, %v1079_v53  ;;  %v706_v14 = vsel %vm705_vm6, %v703_v0, %v643_v42 }
0x128e   : > { %v689_v24 = vsel %vm687_vm15, %v686_v10, %v1093_v3 }
0x128f   : > { %v692_v39 = vsel %vm690_vm1, %v689_v24, %v1107_v18 }
0x1290   : > { %v695_v53 = vsel %vm693_vm3, %v692_v39, %v1121_v36 }
0x1291   : > { %v698_v48 = vsel %vm696_vm4, %v695_v53, %v1135_v54 }
0x1292   : > { %v701_v3 = vsel %vm699_vm5, %v698_v48, %v1149_v6 }
0x1293   : > { %v704_v18 = vsel %vm702_vm0, %v701_v3, %v1163_v27 }
0x1294   : > { %v707_v9 = vsel %vm705_vm6, %v704_v18, %v646_v45 }
0x1312   : > { %v663_v31 = vpop.xlane.xlu0 %662 }
0x1313   : > { %v709_v8 = vsel %vm708_vm7, %v706_v14, %v663_v31 }
0x1314   : > { %v861_v2 = vtrunc.f32 %v709_v8 }
0x1316   : > { %v862_v11 = vcvt.f32.s32 %v861_v2  ;;  %v666_v36 = vpop.xlane.xlu1 %665 }
0x1317   : > { %v710_v12 = vsel %vm708_vm7, %v707_v9, %v666_v36 }
0x1318   : > { %713 = vst.msk [vmem:[%s242_s28] sm:$0xff] %vm350_vm2, %v862_v11  ;;  %v863_v13 = vtrunc.f32 %v710_v12 }
0x131a   : > { %v864_v54 = vcvt.f32.s32 %v863_v13 }
0x131c   : > { %714 = vst.msk [vmem:[%s242_s28 + $0x8] sm:$0xff] %vm350_vm2, %v864_v54 }
0x131d PF: > { %s13_s14 = sadd.s32 1, %s911_s14   ;;  %s1249_s12 = smov %s907_s13 }
0x131e   : > { %p10_p5 = scmp.ge.s32.totalorder %s13_s14, 4   ;;  %s1250_s13 = smov %s1252_s15 }
0x1320   :  { %12 = sbr.rel (!%p10_p5) target bundleno = 2 (0x2), region = 68 }

// kernel: model_forward.17
= control target key start
LH: loop header
LB: loop body
LE: loop exit
PB: predicated region body
PF: predicated region fallthrough
CT: control target
= control target key end

     0   :  { %s1407_s0 = inlined_call_operand.hbm [shape: f32[2,16,128], index: 0, kind: input, shape index: {}]   ;;  %s1408_s1 = inlined_call_operand.hbm [shape: f32[2,16,128], index: 1, kind: input, shape index: {}]   ;;  %s1409_s2 = inlined_call_operand.hbm [shape: bf16[128,128], index: 2, kind: input, shape index: {}]   ;;  %s1410_s3 = inlined_call_operand.hbm [shape: bf16[128,128], index: 3, kind: input, shape index: {}]   ;;  %s1411_s4 = inlined_call_operand.vmem [shape: f32[1,128], index: 4, kind: input, shape index: {}]   ;;  %s1412_s5 = inlined_call_operand.vmem [shape: f32[2,16,128], index: 5, kind: output, shape index: {}]  }
   0x1   :  { %1418 = sst [smem:[#allocation13_spill]] %s1407_s0 }
   0x2   :  { %10 = vsyncpa [#allocation3], 0 }
   0x3   :  { %12 = vsyncpa [#allocation3 + $0x1], 0 }
   0x4   :  { %13 = vsyncpa [#allocation5], 0 }
   0x5   :  { %15 = vsyncpa [#allocation5 + $0x1], 0 }
   0x6   :  { %16 = vsyncpa [#allocation8], 0  ;;  %s1139_s18 = smov 0   ;;  %s1141_s19 = smov 0  }
   0x7   :  { %s1143_s20 = smov 0   ;;  %s1145_s21 = smov 0  }
   0x8   :  { %s1147_s22 = smov 0   ;;  %s1149_s23 = smov 0  }
   0x9 LB: > { %s1417_s24 = sadd.s32 4294967295, %s1097_s23   ;;  %p56_p0 = scmp.ne.s32.totalorder %s1081_s19, %s1077_s18  ;;  %s1097_s23 = sphi %s1149_s23, %s22_s23   ;;  %s1093_s22 = sphi %s1147_s22, %s1434_s22   ;;  %s1089_s21 = sphi %s1145_s21, %s1433_s21   ;;  %s1085_s20 = sphi %s1143_s20, %s1432_s20   ;;  %s1081_s19 = sphi %s1141_s19, %s1431_s19   ;;  %s1077_s18 = sphi %s1139_s18, %s1430_s18  }
   0xa   : > { %p1171_p1 = scmp.eq.s32.totalorder %s1417_s24, 0  ;;  %p719_p2 = scmp.ge.s32.totalorder %s1097_s23, 1 }
   0xb   : > { %p186_p3 = scmp.lt.s32.totalorder %s1097_s23, 3  ;;  %s1099_s28 = smov [#allocation6]  }
   0xc   : > { %s1419_s25 = scalar_select %p1171_p1, 1, 0 }
   0xd   : > { %p1179_p4 = por %p1171_p1, %p56_p0  ;;  %p1183_p5 = pnand %p719_p2, %p186_p3 }
   0xe   : > { %s198_s29 = sshll.u32 %s1099_s28, 4  ;;  %s1100_s6 = smov [#allocation7]   ;;  %s199_s29 = int_to_ptr.vmem [resolvable:$true] %s198_s29 }
   0xf   : > { %s1420_s26 = scalar_select %p1179_p4, 1, 0 }
  0x10   : > { %s1421_s27 = scalar_select %p1183_p5, 1, 0 }
  0x11   : > { %p828_p6 = pneg %p1183_p5  ;;  %s211_s7 = sshll.u32 %s1100_s6, 4  ;;  %s1195_s7 = int_to_ptr.vmem [resolvable:$true] %s211_s7 }
  0x12   : > { %s919_s10 = scalar_lea.hbm %s1409_s2, 1024 }
  0x13   : > { %p1191_p7 = pnand %p828_p6, %p1171_p1  ;;  %p920_p8 = scmp.ne.s32.totalorder %s1409_s2, %s919_s10 }
  0x14   : > { %p926_p12 = scmp.lt.u32.totalorder %s919_s10, %s1409_s2 }
  0x15   : > { %p921_p9 = pneg %p1191_p7 }
  0x17   : > { %p922_p10 = pnand %p921_p9, %p920_p8 }
  0x19   : > { %p923_p11 = pneg %p922_p10 }
  0x1b   : > { %p928_p13 = pnand %p926_p12, %p923_p11 }
  0x1d   : > { %931 = shalt.err (!%p928_p13)
}
  0x1e   : > { %s932_s15 = scalar_lea.vmem %s199_s29, 1024  ;;  %p940_p6 = scmp.lt.s32.totalorder %s199_s29, %s199_s29 }
  0x1f   : > { %p933_p0 = scmp.ne.s32.totalorder %s199_s29, %s932_s15  ;;  %p941_p1 = scmp.lt.s32.totalorder %s932_s15, %s932_s15 }
  0x21   : > { %p935_p2 = pnand %p933_p0, %p921_p9  ;;  %p942_p4 = por %p941_p1, %p940_p6 }
  0x23   : > { %p936_p3 = pneg %p935_p2 }
  0x25   : > { %p943_p5 = pnand %p942_p4, %p936_p3 }
  0x27   : > { %946 = shalt.err (!%p943_p5)
}
  0x28   : > { %s1101_s16 = smov 64   ;;  %s1102_s17 = smov 4  }
  0x29   : > { %831 = dma.hbm_to_vmem [thread:$0]  (!%p1191_p7), %s1409_s2, 1024, %s199_s29, [#allocation5], %s1101_s16, %s1101_s16, %s1102_s17  }
  0x2a   : > { %s947_s9 = scalar_lea.hbm %s1410_s3, 1024 }
  0x2b   : > { %p948_p8 = scmp.ne.s32.totalorder %s1410_s3, %s947_s9  ;;  %p954_p5 = scmp.lt.u32.totalorder %s947_s9, %s1410_s3 }
  0x2d   : > { %p950_p1 = pnand %p948_p8, %p921_p9 }
  0x2f   : > { %p951_p4 = pneg %p950_p1 }
  0x31   : > { %p956_p10 = pnand %p954_p5, %p951_p4 }
  0x33   : > { %959 = shalt.err (!%p956_p10)
}
  0x34   : > { %s960_s29 = scalar_lea.vmem %s1195_s7, 1024  ;;  %p968_p0 = scmp.lt.s32.totalorder %s1195_s7, %s1195_s7 }
  0x35   : > { %p961_p11 = scmp.ne.s32.totalorder %s1195_s7, %s960_s29  ;;  %p969_p2 = scmp.lt.s32.totalorder %s960_s29, %s960_s29 }
  0x37   : > { %p963_p12 = pnand %p961_p11, %p921_p9  ;;  %p970_p3 = por %p969_p2, %p968_p0 }
  0x39   : > { %p964_p13 = pneg %p963_p12 }
  0x3b   : > { %p971_p6 = pnand %p970_p3, %p964_p13 }
  0x3d   : > { %974 = shalt.err (!%p971_p6)
}
  0x3e   : > { %834 = dma.hbm_to_vmem [thread:$0]  (!%p1191_p7), %s1410_s3, 1024, %s1195_s7, [#allocation8], %s1101_s16, %s1101_s16, %s1102_s17  }
  0x3f   : > { %s34_s18 = sadd.s32 1, %s1093_s22  ;;  %s43_s28 = sadd.s32 1, %s1085_s20 }
  0x40   : > { %p36_p9 = scmp.ge.s32.totalorder %s34_s18, 2  ;;  %p50_p8 = scmp.ne.s32.totalorder %s1085_s20, %s1081_s19 }
  0x41   : > { %p51_p1 = scmp.eq.s32.totalorder %s1097_s23, 0  ;;  %p844_p4 = scmp.lt.s32.totalorder %s1097_s23, 2 }
  0x42   : > { %s1436_s18 = smov (%p36_p9, %s34_s18), 0  ;;  %s228_s30 = sand.u32 1, %s1085_s20  }
  0x43   : > { %p52_p5 = por %p51_p1, %p50_p8  ;;  %s38_s6 = ssub.s32 %s1093_s22, %s1436_s18 }
  0x44   : > { %p41_p10 = scmp.eq.s32.totalorder %s38_s6, 0  ;;  %s1255_s8 = sshll.u32 %s228_s30, 4 }
  0x45   : > { %s755_s9 = sshll.u32 %s1093_s22, 8  ;;  %s1423_s0 = sld [smem:[#allocation13_spill]] }
  0x46   : > { %s1259_s10 = scalar_select %p41_p10, %s1085_s20, %s43_s28  }
  0x47   : > { %s232_s11 = scalar_lea.vmem [#allocation2], %s1255_s8  ;;  %p1273_p7 = pnand %p844_p4, %p52_p5 }
  0x48   : > { %s241_s12 = sshll.u32 %s232_s11, 4  ;;  %s1277_s29 = scalar_lea.sflag [#allocation3], %s228_s30  ;;  %s1269_s12 = int_to_ptr.vmem [resolvable:$true] %s241_s12 }
  0x49   : > { %p977_p12 = pneg %p1273_p7 }
  0x4b   : > { %s1266_s17 = scalar_lea.hbm %s1423_s0, %s755_s9  ;;  %s980_s6 = scalar_lea.hbm %s1423_s0, 512 }
  0x4c   : > { %s975_s14 = scalar_lea.hbm %s1266_s17, 256  ;;  %p981_p2 = scmp.lt.u32.totalorder %s1266_s17, %s1423_s0 }
  0x4d   : > { %p976_p11 = scmp.ne.s32.totalorder %s1266_s17, %s975_s14  ;;  %p982_p3 = scmp.lt.u32.totalorder %s980_s6, %s975_s14 }
  0x4e   : > { %p984_p9 = scmp.lt.u32.totalorder %s975_s14, %s1266_s17 }
  0x4f   : > { %p978_p13 = pnand %p977_p12, %p976_p11  ;;  %p983_p6 = por %p982_p3, %p981_p2 }
  0x51   : > { %p979_p0 = pneg %p978_p13  ;;  %p985_p8 = por %p984_p9, %p983_p6 }
  0x53   : > { %p986_p1 = pnand %p985_p8, %p979_p0 }
  0x55   : > { %989 = shalt.err (!%p986_p1)
}
  0x56   : > { %s990_s30 = scalar_lea.vmem %s1269_s12, 256  ;;  %s1103_s11 = smov [#allocation2]  }
  0x57   : > { %p991_p4 = scmp.ne.s32.totalorder %s1269_s12, %s990_s30  ;;  %s995_s15 = sshll.u32 %s1103_s11, 4  ;;  %s996_s15 = int_to_ptr.vmem [resolvable:$false] %s995_s15 }
  0x58   : > { %s997_s28 = scalar_lea.vmem %s996_s15, 512  ;;  %p998_p11 = scmp.lt.s32.totalorder %s1269_s12, %s996_s15 }
  0x59   : > { %p993_p5 = pnand %p991_p4, %p977_p12  ;;  %p999_p13 = scmp.lt.s32.totalorder %s997_s28, %s990_s30 }
  0x5b   : > { %p994_p10 = pneg %p993_p5  ;;  %p1000_p2 = por %p999_p13, %p998_p11 }
  0x5d   : > { %p1001_p3 = pnand %p1000_p2, %p994_p10 }
  0x5f   : > { %1004 = shalt.err (!%p1001_p3)
}
  0x60   : > { %s1104_s14 = smov 128   ;;  %s1105_s6 = smov 8  }
  0x61   : > { %838 = dma.hbm_to_vmem [thread:$0]  (!%p1273_p7), %s1266_s17, 256, %s1269_s12, %s1277_s29, %s1104_s14, %s1104_s14, %s1105_s6  }
  0x62   : > { %s1313_s30 = scalar_lea.hbm %s1408_s1, %s755_s9  ;;  %s255_s11 = scalar_lea.vmem [#allocation4], %s1255_s8 }
  0x63   : > { %s264_s15 = sshll.u32 %s255_s11, 4  ;;  %s251_s28 = sand.u32 1, %s1097_s23   ;;  %s1316_s15 = int_to_ptr.vmem [resolvable:$true] %s264_s15 }
  0x64   : > { %s1319_s24 = scalar_lea.sflag [#allocation5], %s251_s28  ;;  %s1005_s0 = scalar_lea.hbm %s1313_s30, 256 }
  0x65   : > { %p1006_p0 = scmp.ne.s32.totalorder %s1313_s30, %s1005_s0  ;;  %s1010_s12 = scalar_lea.hbm %s1408_s1, 512 }
  0x66   : > { %p1011_p8 = scmp.lt.u32.totalorder %s1313_s30, %s1408_s1  ;;  %p1012_p1 = scmp.lt.u32.totalorder %s1010_s12, %s1005_s0 }
  0x67   : > { %p1008_p6 = pnand %p1006_p0, %p977_p12  ;;  %p1014_p5 = scmp.lt.u32.totalorder %s1005_s0, %s1313_s30 }
  0x68   : > { %p1013_p4 = por %p1012_p1, %p1011_p8 }
  0x69   : > { %p1009_p9 = pneg %p1008_p6 }
  0x6a   : > { %p1015_p10 = por %p1014_p5, %p1013_p4 }
  0x6c   : > { %p1016_p11 = pnand %p1015_p10, %p1009_p9 }
  0x6e   : > { %1019 = shalt.err (!%p1016_p11)
}
  0x6f   : > { %s1020_s8 = scalar_lea.vmem %s1316_s15, 256  ;;  %s1106_s16 = smov [#allocation4]  }
  0x70   : > { %p1021_p13 = scmp.ne.s32.totalorder %s1316_s15, %s1020_s8  ;;  %s1025_s11 = sshll.u32 %s1106_s16, 4  ;;  %s1026_s11 = int_to_ptr.vmem [resolvable:$false] %s1025_s11 }
  0x71   : > { %s1027_s28 = scalar_lea.vmem %s1026_s11, 512  ;;  %p1028_p0 = scmp.lt.s32.totalorder %s1316_s15, %s1026_s11 }
  0x72   : > { %p1023_p2 = pnand %p1021_p13, %p977_p12  ;;  %p1029_p6 = scmp.lt.s32.totalorder %s1027_s28, %s1020_s8 }
  0x74   : > { %p1024_p3 = pneg %p1023_p2  ;;  %p1030_p8 = por %p1029_p6, %p1028_p0 }
  0x76   : > { %p1031_p1 = pnand %p1030_p8, %p1024_p3 }
  0x78   : > { %1034 = shalt.err (!%p1031_p1)
}
  0x79   : > { %841 = dma.hbm_to_vmem [thread:$0]  (!%p1273_p7), %s1313_s30, 256, %s1316_s15, %s1319_s24, %s1104_s14, %s1104_s14, %s1105_s6  }
  0x7a   : > { %p1425_p12 = scmp.ne.s32.totalorder %s1421_s27, 0 }
  0x7b   : > { %s278_s0 = sand.u32 (!%p1425_p12), 1, %s1081_s19   ;;  %p1426_p9 = scmp.ne.s32.totalorder (!%p1425_p12), %s1420_s26, 0 }
  0x7c   : > { %276 = sbr.rel (%p1425_p12) target bundleno = 396 (0x18c), region = 40  ;;  %s1351_s17 = sshll.u32 (!%p1425_p12), %s278_s0, 4 }
  0x7d   : > { %s279_s9 = scalar_lea.sflag (!%p1425_p12), [#allocation3], %s278_s0  ;;  %s282_s12 = scalar_lea.vmem (!%p1425_p12), [#allocation2], %s1351_s17 }
  0x83   : > { %1060 = dma.done.wait (%p1426_p9), %s279_s9, 256  }
  0x84   : > { %1062 = vsyncadd (%p1426_p9), %s279_s9, 4294967040  ;;  %s1427_s13 = sadd.s32 4294967295, %s1097_s23   ;;  %s291_s14 = scalar_lea.vmem [#allocation4], %s1351_s17 }
  0x85   : > { %s287_s24 = sand.u32 1, %s1427_s13  }
  0x86   : > { %s288_s27 = scalar_lea.sflag [#allocation5], %s287_s24 }
  0x87   : > { %1064 = dma.done.wait (%p1426_p9), %s288_s27, 256  }
  0x88   : > { %1066 = vsyncadd (%p1426_p9), %s288_s27, 4294967040  ;;  %p1428_p7 = scmp.ne.s32.totalorder %s1419_s25, 0 }
  0x8a   : > { %1068 = dma.done.wait (%p1428_p7), [#allocation5], 1024  }
  0x8b   : > { %1070 = vsyncadd (%p1428_p7), [#allocation5], 4294966272 }
  0x8c   : > { %1072 = dma.done.wait (%p1428_p7), [#allocation8], 1024  }
  0x8d   : > { %1074 = vsyncadd (%p1428_p7), [#allocation8], 4294966272  ;;  %v1107_v0 = vmov 0.0   ;;  %vm1108_vm0 = vmmov 0   ;;  %v903_v1 = vld [vmem:[#allocation7] sm:$0xff]   ;;  %v905_v3 = vld [vmem:[#allocation7 + $0x8] sm:$0xff]  }
  0x8e   : > { %776 = vmatprep.subr.bf16.mxu0 %v1107_v0  ;;  %796 = vmatprep.subr.bf16.mxu1 %v1107_v0  ;;  %v904_v2 = vld [vmem:[#allocation6] sm:$0xff]   ;;  %v906_v4 = vld [vmem:[#allocation6 + $0x8] sm:$0xff]   ;;  %v907_v5 = vld [vmem:[#allocation7 + $0x10] sm:$0xff]   ;;  %p338_p4 = scmp.lt.s32.totalorder %s1089_s21, 1 }
  0x8f   : > { %792 = vmatprep.mubr.msk.bf16.mxu0 %vm1108_vm0, %v1107_v0  ;;  %812 = vmatprep.mubr.msk.bf16.mxu1 %vm1108_vm0, %v1107_v0  ;;  %v908_v6 = vld [vmem:[#allocation6 + $0x10] sm:$0xff]   ;;  %v909_v7 = vld [vmem:[#allocation7 + $0x18] sm:$0xff]   ;;  %v911_v9 = vld [vmem:[#allocation7 + $0x20] sm:$0xff]  }
  0x90   : > { %777 = vmatpush3.bf16.msra.mxu0 %v903_v1  ;;  %797 = vmatpush3.bf16.msra.mxu1 %v904_v2  ;;  %v910_v8 = vld [vmem:[#allocation6 + $0x18] sm:$0xff]   ;;  %v912_v10 = vld [vmem:[#allocation6 + $0x20] sm:$0xff]   ;;  %v913_v11 = vld [vmem:[#allocation7 + $0x28] sm:$0xff]   ;;  %s1438_s21 = smov (!%p338_p4, %s1089_s21), 1 }
  0x91   : > { %778 = vmatprep.subr.bf16.mxu0 %v1107_v0  ;;  %798 = vmatprep.subr.bf16.mxu1 %v1107_v0  ;;  %v914_v12 = vld [vmem:[#allocation6 + $0x28] sm:$0xff]   ;;  %v915_v13 = vld [vmem:[#allocation7 + $0x30] sm:$0xff]   ;;  %v917_v15 = vld [vmem:[#allocation7 + $0x38] sm:$0xff]   ;;  %s757_s6 = sshll.u32 %s1438_s21, 4 }
  0x92   : > { %v916_v14 = vld [vmem:[#allocation6 + $0x30] sm:$0xff]   ;;  %v368_v17 = vld [vmem:[%s291_s14 + $0x8] sm:$0xff]  ;;  %v752_v25 = vld [vmem:[%s1411_s4] ss:$0 sm:$0xff]  ;;  %s345_s29 = scalar_lea.vmem %s1412_s5, %s757_s6 }
  0x93   : > { %v367_v16 = vld [vmem:[%s291_s14] sm:$0xff]  ;;  %v918_v18 = vld [vmem:[#allocation6 + $0x38] sm:$0xff]  }
  0x94   : > { %779 = vmatpush3.bf16.msra.mxu0 %v905_v3  ;;  %799 = vmatpush3.bf16.msra.mxu1 %v906_v4  ;;  %v348_v19 = vld [vmem:[%s282_s12] sm:$0xff]  ;;  %v349_v20 = vld [vmem:[%s282_s12 + $0x8] sm:$0xff]  ;;  %v385_v21 = vpack.c.bf16 %v368_v17, %v367_v16 }
  0x95   : > { %780 = vmatprep.subr.bf16.mxu0 %v1107_v0  ;;  %800 = vmatprep.subr.bf16.mxu1 %v1107_v0  ;;  %v366_v22 = vpack.c.bf16 %v349_v20, %v348_v19 }
  0x98   : > { %781 = vmatpush3.bf16.msra.mxu0 %v907_v5  ;;  %801 = vmatpush3.bf16.msra.mxu1 %v908_v6 }
  0x99   : > { %782 = vmatprep.subr.bf16.mxu0 %v1107_v0  ;;  %802 = vmatprep.subr.bf16.mxu1 %v1107_v0 }
  0x9c   : > { %783 = vmatpush3.bf16.msra.mxu0 %v909_v7  ;;  %803 = vmatpush3.bf16.msra.mxu1 %v910_v8 }
  0x9d   : > { %784 = vmatprep.subr.bf16.mxu0 %v1107_v0  ;;  %804 = vmatprep.subr.bf16.mxu1 %v1107_v0 }
  0xa0   : > { %785 = vmatpush3.bf16.msra.mxu0 %v911_v9  ;;  %805 = vmatpush3.bf16.msra.mxu1 %v912_v10 }
  0xa1   : > { %786 = vmatprep.subr.bf16.mxu0 %v1107_v0  ;;  %806 = vmatprep.subr.bf16.mxu1 %v1107_v0 }
  0xa4   : > { %787 = vmatpush3.bf16.msra.mxu0 %v913_v11  ;;  %807 = vmatpush3.bf16.msra.mxu1 %v914_v12 }
  0xa5   : > { %788 = vmatprep.subr.bf16.mxu0 %v1107_v0  ;;  %808 = vmatprep.subr.bf16.mxu1 %v1107_v0 }
  0xa8   : > { %789 = vmatpush3.bf16.msra.mxu0 %v915_v13  ;;  %809 = vmatpush3.bf16.msra.mxu1 %v916_v14 }
  0xa9   : > { %790 = vmatprep.subr.bf16.mxu0 %v1107_v0  ;;  %810 = vmatprep.subr.bf16.mxu1 %v1107_v0 }
  0xac   : > { %791 = vmatpush3.bf16.msra.mxu0 %v917_v15  ;;  %811 = vmatpush3.bf16.msra.mxu1 %v918_v18 }
  0xaf   : > { %793 = vmatmul.mubr.bf16.vlgmr.msra.gmra.mrb[0].mxu0 %v385_v21  ;;  %813 = vmatmul.mubr.bf16.vlgmr.msra.gmra.mrb[0].mxu1 %v366_v22 }
 0x182   : > { %v468_v23 = vpop.f32.mrb[0].mxu0  ;;  %v557_v24 = vpop.f32.mrb[0].mxu1 }
 0x183   : > { %v794_v26 = vpop.f32.mrb[1].mxu0  ;;  %v558_v27 = vadd.f32 %v557_v24, %v468_v23  ;;  %v814_v28 = vpop.f32.mrb[1].mxu1 }
 0x184   : > { %v471_v29 = vpop.f32.mrb[2].mxu0  ;;  %v560_v30 = vpop.f32.mrb[2].mxu1 }
 0x185   : > { %v795_v31 = vpop.f32.mrb[3].mxu0  ;;  %v571_v32 = vadd.f32 %v752_v25, %v558_v27  ;;  %v561_v33 = vadd.f32 %v560_v30, %v471_v29  ;;  %v815_v34 = vpop.f32.mrb[3].mxu1 }
 0x187   : > { %v573_v35 = vmax.f32 %v571_v32, 0.0  ;;  %v572_v36 = vadd.f32 %v752_v25, %v561_v33 }
 0x189   : > { %575 = vst [vmem:[%s345_s29] sm:$0xff] %v573_v35  ;;  %v574_v37 = vmax.f32 %v572_v36, 0.0 }
 0x18b   : > { %576 = vst [vmem:[%s345_s29 + $0x8] sm:$0xff] %v574_v37 }
 0x18c PF: > { %s22_s23 = sadd.s32 1, %s1097_s23   ;;  %s1429_s7 = smov %s1436_s18 }
 0x18d   : > { %p19_p5 = scmp.ge.s32.totalorder %s22_s23, 4   ;;  %s1430_s18 = smov %s1081_s19 }
 0x18e   : > { %s1431_s19 = smov %s1085_s20  ;;  %s1432_s20 = smov %s1259_s10 }
 0x18f   : > { %s1433_s21 = smov %s1093_s22  ;;  %s1434_s22 = smov %s1429_s7 }
 0x190   :  { %21 = sbr.rel (!%p19_p5) target bundleno = 9 (0x9), region = 101 }
 0x197   :  { %607 = vsyncpa [#allocation3], 1 }
 0x198   :  { %609 = vsyncpa [#allocation3 + $0x1], 1 }
 0x199   :  { %610 = vsyncpa [#allocation5], 1 }
 0x19a   :  { %612 = vsyncpa [#allocation5 + $0x1], 1 }
 0x19b   :  { %613 = vsyncpa [#allocation8], 1 }

// kernel: model_forward.16
= control target key start
LH: loop header
LB: loop body
LE: loop exit
PB: predicated region body
PF: predicated region fallthrough
CT: control target
= control target key end

     0   :  { %s7666_s0 = inlined_call_operand.hbm [shape: bf16[2,16,64], index: 0, kind: input, shape index: {}]   ;;  %s7667_s1 = inlined_call_operand.hbm [shape: bf16[2,16,16,64], index: 1, kind: input, shape index: {}]   ;;  %s7668_s2 = inlined_call_operand.hbm [shape: bf16[2,16,64], index: 2, kind: input, shape index: {}]   ;;  %s7669_s3 = inlined_call_operand.hbm [shape: f32[2,16,16], index: 3, kind: input, shape index: {}]   ;;  %s7670_s4 = inlined_call_operand.hbm [shape: f32[2,16,16], index: 4, kind: input, shape index: {}]   ;;  %s7671_s5 = inlined_call_operand.hbm [shape: f32[2,16,16], index: 5, kind: input, shape index: {}]   ;;  %s7672_s6 = inlined_call_operand.hbm [shape: f32[2,16,128], index: 6, kind: input, shape index: {}]   ;;  %s7673_s7 = inlined_call_operand.hbm [shape: f32[3,64], index: 7, kind: input, shape index: {}]   ;;  %s7674_s8 = inlined_call_operand.hbm [shape: f32[1,64], index: 8, kind: input, shape index: {}]   ;;  %s7675_s9 = inlined_call_operand.hbm [shape: bf16[64,64], index: 9, kind: input, shape index: {}]   ;;  %s7676_s10 = inlined_call_operand.hbm [shape: f32[1,64], index: 10, kind: input, shape index: {}]   ;;  %s7677_s11 = inlined_call_operand.hbm [shape: bf16[64,256], index: 11, kind: input, shape index: {}]   ;;  %s7678_s12 = inlined_call_operand.hbm [shape: f32[1,256], index: 12, kind: input, shape index: {}]   ;;  %s7679_s13 = inlined_call_operand.hbm [shape: bf16[256,64], index: 13, kind: input, shape index: {}]   ;;  %s7680_s14 = inlined_call_operand.hbm [shape: f32[1,64], index: 14, kind: input, shape index: {}]   ;;  %s7681_s15 = inlined_call_operand.hbm [shape: bf16[64,128], index: 15, kind: input, shape index: {}]   ;;  %s7682_s16 = inlined_call_operand.hbm [shape: f32[1,128], index: 16, kind: input, shape index: {}]   ;;  %s7683_s17 = inlined_call_operand.hbm [shape: f32[2,16,128], index: 17, kind: output, shape index: {}]  }
   0x1   :  { %7740 = sst [smem:[#allocation60_spill]] %s7666_s0 }
   0x2   :  { %7741 = sst [smem:[#allocation61_spill]] %s7667_s1 }
   0x3   :  { %7742 = sst [smem:[#allocation62_spill]] %s7668_s2 }
   0x4   :  { %7743 = sst [smem:[#allocation63_spill]] %s7669_s3 }
   0x5   :  { %7744 = sst [smem:[#allocation64_spill]] %s7670_s4 }
   0x6   :  { %7745 = sst [smem:[#allocation65_spill]] %s7671_s5 }
   0x7   :  { %7746 = sst [smem:[#allocation66_spill]] %s7672_s6 }
   0x8   :  { %7747 = sst [smem:[#allocation67_spill]] %s7673_s7 }
   0x9   :  { %7748 = sst [smem:[#allocation68_spill]] %s7674_s8 }
   0xa   :  { %7749 = sst [smem:[#allocation69_spill]] %s7675_s9 }
   0xb   :  { %7750 = sst [smem:[#allocation70_spill]] %s7676_s10 }
   0xc   :  { %7751 = sst [smem:[#allocation71_spill]] %s7677_s11 }
   0xd   :  { %7752 = sst [smem:[#allocation72_spill]] %s7678_s12 }
   0xe   :  { %7753 = sst [smem:[#allocation73_spill]] %s7679_s13 }
   0xf   :  { %7754 = sst [smem:[#allocation74_spill]] %s7680_s14 }
  0x10   :  { %7755 = sst [smem:[#allocation75_spill]] %s7681_s15 }
  0x11   :  { %7756 = sst [smem:[#allocation76_spill]] %s7682_s16 }
  0x12   :  { %7757 = sst [smem:[#allocation77_spill]] %s7683_s17 }
  0x13   :  { %22 = vsyncpa [#allocation3], 0 }
  0x14   :  { %24 = vsyncpa [#allocation3 + $0x1], 0 }
  0x15   :  { %25 = vsyncpa [#allocation6], 0 }
  0x16   :  { %27 = vsyncpa [#allocation6 + $0x1], 0 }
  0x17   :  { %28 = vsyncpa [#allocation9], 0 }
  0x18   :  { %30 = vsyncpa [#allocation9 + $0x1], 0 }
  0x19   :  { %31 = vsyncpa [#allocation12], 0 }
  0x1a   :  { %33 = vsyncpa [#allocation12 + $0x1], 0 }
  0x1b   :  { %34 = vsyncpa [#allocation15], 0 }
  0x1c   :  { %35 = vsyncpa [#allocation18], 0 }
  0x1d   :  { %36 = vsyncpa [#allocation21], 0 }
  0x1e   :  { %37 = vsyncpa [#allocation24], 0 }
  0x1f   :  { %38 = vsyncpa [#allocation27], 0 }
  0x20   :  { %39 = vsyncpa [#allocation4], 0 }
  0x21   :  { %41 = vsyncpa [#allocation4 + $0x1], 0  ;;  %s5855_s24 = smov 0   ;;  %s5857_s25 = smov 0  }
  0x22   :  { %s5859_s26 = smov 0   ;;  %s5861_s27 = smov 0  }
  0x23   :  { %s5863_s28 = smov 0   ;;  %s5865_s29 = smov 0  }
  0x24 LB: > { %7758 = sst [smem:[#allocation40_spill]] %s5715_s24  ;;  %s5886_s0 = sadd.s32 4294967295, %s5735_s29   ;;  %s5735_s29 = sphi %s5865_s29, %s47_s29   ;;  %s5731_s28 = sphi %s5863_s28, %s7859_s28   ;;  %s5727_s27 = sphi %s5861_s27, %s7858_s27   ;;  %s5723_s26 = sphi %s5859_s26, %s7854_s26   ;;  %s5719_s25 = sphi %s5857_s25, %s7857_s25   ;;  %s5715_s24 = sphi %s5855_s24, %s7856_s24  }
  0x25   : > { %7759 = sst [smem:[#allocation41_spill]] %s5723_s26  ;;  %p4377_p0 = scmp.ge.s32.totalorder %s5735_s29, 1 }
  0x26   : > { %7760 = sst [smem:[#allocation42_spill]] %s5727_s27  ;;  %p7690_p1 = scmp.eq.s32.totalorder %s5886_s0, 0 }
  0x27   : > { %7761 = sst [smem:[#allocation43_spill]] %s5735_s29  ;;  %p498_p2 = scmp.lt.s32.totalorder %s5735_s29, 3 }
  0x28   : > { %7762 = sst [smem:[#allocation44_spill]] %s5886_s0  ;;  %s5737_s18 = smov [#allocation14]  }
  0x29   : > { %p5891_p3 = pnand %p4377_p0, %p498_p2  ;;  %s511_s19 = sshll.u32 %s5737_s18, 4  ;;  %s512_s19 = int_to_ptr.vmem [resolvable:$true] %s511_s19 }
  0x2a   : > { %s5738_s1 = smov [#allocation17]   ;;  %s5739_s22 = smov [#allocation20]  }
  0x2b   : > { %s7763_s30 = scalar_select %p5891_p3, 1, 0 }
  0x2c   : > { %p4851_p5 = pneg %p5891_p3  ;;  %s532_s20 = sshll.u32 %s5738_s1, 4  ;;  %s5904_s20 = int_to_ptr.vmem [resolvable:$true] %s532_s20 }
  0x2d   : > { %7764 = sst [smem:[#allocation45_spill]] %s7763_s30  ;;  %s5906_s23 = sshll.u32 %s5739_s22, 4  ;;  %s557_s23 = int_to_ptr.vmem [resolvable:$true] %s5906_s23 }
  0x2e   : > { %p5900_p6 = pnand %p4851_p5, %p7690_p1  ;;  %s7766_s7 = sld [smem:[#allocation67_spill]] }
  0x30   : > { %s7765_s21 = scalar_select %p5900_p6, 1, 0 }
  0x31   : > { %p5916_p8 = pneg %p5900_p6 }
  0x33   : > { %s7767_s1 = scalar_select %p5916_p8, 1, 0 }
  0x34   : > { %s5131_s18 = scalar_lea.hbm %s7766_s7, 64 }
  0x35   : > { %p5132_p7 = scmp.ne.s32.totalorder %s7766_s7, %s5131_s18  ;;  %p5138_p11 = scmp.lt.u32.totalorder %s5131_s18, %s7766_s7 }
  0x37   : > { %p5134_p9 = pnand %p5916_p8, %p5132_p7 }
  0x39   : > { %p5135_p10 = pneg %p5134_p9 }
  0x3b   : > { %p5140_p12 = pnand %p5138_p11, %p5135_p10 }
  0x3d   : > { %5143 = shalt.err (!%p5140_p12)
}
  0x3e   : > { %s5144_s17 = scalar_lea.vmem %s512_s19, 64  ;;  %p5152_p5 = scmp.lt.s32.totalorder %s512_s19, %s512_s19 }
  0x3f   : > { %p5145_p13 = scmp.ne.s32.totalorder %s512_s19, %s5144_s17  ;;  %p5153_p4 = scmp.lt.s32.totalorder %s5144_s17, %s5144_s17 }
  0x41   : > { %p5147_p0 = pnand %p5145_p13, %p5916_p8  ;;  %p5154_p1 = por %p5153_p4, %p5152_p5 }
  0x43   : > { %p5148_p2 = pneg %p5147_p0 }
  0x45   : > { %p5155_p3 = pnand %p5154_p1, %p5148_p2 }
  0x47   : > { %5158 = shalt.err (!%p5155_p3)
}
  0x48   : > { %4854 = dma.hbm_to_vmem [thread:$0]  (!%p5900_p6), %s7766_s7, 64, %s512_s19, [#allocation15]  }
  0x49   : > { %s7768_s9 = sld [smem:[#allocation69_spill]] }
  0x4f   : > { %s5159_s18 = scalar_lea.hbm %s7768_s9, 512 }
  0x50   : > { %p5160_p7 = scmp.ne.s32.totalorder %s7768_s9, %s5159_s18  ;;  %p5166_p1 = scmp.lt.u32.totalorder %s5159_s18, %s7768_s9 }
  0x52   : > { %p5162_p9 = pnand %p5160_p7, %p5916_p8 }
  0x54   : > { %p5163_p4 = pneg %p5162_p9 }
  0x56   : > { %p5168_p3 = pnand %p5166_p1, %p5163_p4 }
  0x58   : > { %5171 = shalt.err (!%p5168_p3)
}
  0x59   : > { %s5172_s19 = scalar_lea.vmem %s5904_s20, 512  ;;  %p5180_p13 = scmp.lt.s32.totalorder %s5904_s20, %s5904_s20 }
  0x5a   : > { %p5173_p10 = scmp.ne.s32.totalorder %s5904_s20, %s5172_s19  ;;  %p5181_p0 = scmp.lt.s32.totalorder %s5172_s19, %s5172_s19 }
  0x5c   : > { %p5175_p11 = pnand %p5173_p10, %p5916_p8  ;;  %p5182_p2 = por %p5181_p0, %p5180_p13 }
  0x5e   : > { %p5176_p12 = pneg %p5175_p11 }
  0x60   : > { %p5183_p5 = pnand %p5182_p2, %p5176_p12 }
  0x62   : > { %5186 = shalt.err (!%p5183_p5)
}
  0x63   : > { %s7694_s2 = smov 64   ;;  %s7696_s16 = smov 4  }
  0x64   : > { %4860 = dma.hbm_to_vmem [thread:$0]  (!%p5900_p6), %s7768_s9, 512, %s5904_s20, [#allocation18], %s7694_s2, %s7694_s2, %s7696_s16  }
  0x65   : > { %s7769_s11 = sld [smem:[#allocation71_spill]] }
  0x6b   : > { %s5187_s18 = scalar_lea.hbm %s7769_s11, 1024 }
  0x6c   : > { %p5188_p7 = scmp.ne.s32.totalorder %s7769_s11, %s5187_s18  ;;  %p5194_p1 = scmp.lt.u32.totalorder %s5187_s18, %s7769_s11 }
  0x6e   : > { %p5190_p9 = pnand %p5188_p7, %p5916_p8 }
  0x70   : > { %p5191_p4 = pneg %p5190_p9 }
  0x72   : > { %p5196_p3 = pnand %p5194_p1, %p5191_p4 }
  0x74   : > { %5199 = shalt.err (!%p5196_p3)
}
  0x75   : > { %s5200_s6 = scalar_lea.vmem %s557_s23, 1024  ;;  %p5208_p13 = scmp.lt.s32.totalorder %s557_s23, %s557_s23 }
  0x76   : > { %p5201_p10 = scmp.ne.s32.totalorder %s557_s23, %s5200_s6  ;;  %p5209_p0 = scmp.lt.s32.totalorder %s5200_s6, %s5200_s6 }
  0x78   : > { %p5203_p11 = pnand %p5201_p10, %p5916_p8  ;;  %p5210_p2 = por %p5209_p0, %p5208_p13 }
  0x7a   : > { %p5204_p12 = pneg %p5203_p11 }
  0x7c   : > { %p5211_p5 = pnand %p5210_p2, %p5204_p12 }
  0x7e   : > { %5214 = shalt.err (!%p5211_p5)
}
  0x7f   : > { %s7700_s20 = smov 128   ;;  %s7702_s27 = smov 8  }
  0x80   : > { %4866 = dma.hbm_to_vmem [thread:$0]  (!%p5900_p6), %s7769_s11, 1024, %s557_s23, [#allocation21], %s7700_s20, %s7700_s20, %s7702_s27  }
  0x81   : > { %s5744_s30 = smov [#allocation23]   ;;  %s5745_s22 = smov [#allocation26]  }
  0x82   : > { %s580_s18 = sshll.u32 %s5744_s30, 4  ;;  %s604_s17 = sshll.u32 %s5745_s22, 4  ;;  %s581_s18 = int_to_ptr.vmem [resolvable:$true] %s580_s18  ;;  %s605_s17 = int_to_ptr.vmem [resolvable:$true] %s604_s17 }
  0x83   : > { %s7770_s13 = sld [smem:[#allocation73_spill]] }
  0x89   : > { %s5215_s2 = scalar_lea.hbm %s7770_s13, 2048 }
  0x8a   : > { %p5216_p7 = scmp.ne.s32.totalorder %s7770_s13, %s5215_s2  ;;  %p5222_p1 = scmp.lt.u32.totalorder %s5215_s2, %s7770_s13 }
  0x8c   : > { %p5218_p9 = pnand %p5216_p7, %p5916_p8 }
  0x8e   : > { %p5219_p4 = pneg %p5218_p9 }
  0x90   : > { %p5224_p3 = pnand %p5222_p1, %p5219_p4 }
  0x92   : > { %5227 = shalt.err (!%p5224_p3)
}
  0x93   : > { %s5228_s23 = scalar_lea.vmem %s581_s18, 2048  ;;  %p5236_p13 = scmp.lt.s32.totalorder %s581_s18, %s581_s18 }
  0x94   : > { %p5229_p10 = scmp.ne.s32.totalorder %s581_s18, %s5228_s23  ;;  %p5237_p0 = scmp.lt.s32.totalorder %s5228_s23, %s5228_s23 }
  0x96   : > { %p5231_p11 = pnand %p5229_p10, %p5916_p8  ;;  %p5238_p2 = por %p5237_p0, %p5236_p13 }
  0x98   : > { %p5232_p12 = pneg %p5231_p11 }
  0x9a   : > { %p5239_p5 = pnand %p5238_p2, %p5232_p12 }
  0x9c   : > { %5242 = shalt.err (!%p5239_p5)
}
  0x9d   : > { %s7771_s9 = smov 4   ;;  %s7772_s16 = smov 64  }
  0x9e   : > { %4872 = dma.hbm_to_vmem [thread:$0]  (!%p5900_p6), %s7770_s13, 2048, %s581_s18, [#allocation24], %s7772_s16, %s7772_s16, %s7771_s9  }
  0x9f   : > { %s7773_s15 = sld [smem:[#allocation75_spill]] }
  0xa5   : > { %s5243_s4 = scalar_lea.hbm %s7773_s15, 512 }
  0xa6   : > { %p5244_p7 = scmp.ne.s32.totalorder %s7773_s15, %s5243_s4  ;;  %p5250_p1 = scmp.lt.u32.totalorder %s5243_s4, %s7773_s15 }
  0xa8   : > { %p5246_p9 = pnand %p5244_p7, %p5916_p8 }
  0xaa   : > { %p5247_p4 = pneg %p5246_p9 }
  0xac   : > { %p5252_p3 = pnand %p5250_p1, %p5247_p4 }
  0xae   : > { %5255 = shalt.err (!%p5252_p3)
}
  0xaf   : > { %s5256_s23 = scalar_lea.vmem %s605_s17, 512  ;;  %p5264_p13 = scmp.lt.s32.totalorder %s605_s17, %s605_s17 }
  0xb0   : > { %p5257_p10 = scmp.ne.s32.totalorder %s605_s17, %s5256_s23  ;;  %p5265_p0 = scmp.lt.s32.totalorder %s5256_s23, %s5256_s23 }
  0xb2   : > { %p5259_p11 = pnand %p5257_p10, %p5916_p8  ;;  %p5266_p2 = por %p5265_p0, %p5264_p13 }
  0xb4   : > { %p5260_p12 = pneg %p5259_p11 }
  0xb6   : > { %p5267_p5 = pnand %p5266_p2, %p5260_p12 }
  0xb8   : > { %5270 = shalt.err (!%p5267_p5)
}
  0xb9   : > { %4878 = dma.hbm_to_vmem [thread:$0]  (!%p5900_p6), %s7773_s15, 512, %s605_s17, [#allocation27], %s7772_s16, %s7772_s16, %s7771_s9  }
  0xba   : > { %s4376_s14 = sadd.s32 4294967294, %s5735_s29   ;;  %s59_s2 = sadd.s32 1, %s5731_s28 }
  0xbb   : > { %s68_s7 = sadd.s32 1, %s5723_s26  ;;  %p61_p7 = scmp.ge.s32.totalorder %s59_s2, 2 }
  0xbc   : > { %p75_p9 = scmp.ne.s32.totalorder %s5723_s26, %s5719_s25  ;;  %p76_p4 = scmp.eq.s32.totalorder %s5735_s29, 0 }
  0xbd   : > { %p81_p1 = scmp.ne.s32.totalorder %s5719_s25, %s5715_s24  ;;  %s7861_s2 = smov (%p61_p7, %s59_s2), 0 }
  0xbe   : > { %7774 = sst [smem:[#allocation46_spill]] %s7861_s2  ;;  %p77_p3 = por %p76_p4, %p75_p9 }
  0xbf   : > { %p7775_p10 = scmp.eq.s32.totalorder %s5886_s0, 0  ;;  %s63_s17 = ssub.s32 %s5731_s28, %s7861_s2 }
  0xc0   : > { %p485_p12 = scmp.eq.s32.totalorder %s5886_s0, 1  ;;  %p66_p13 = scmp.eq.s32.totalorder %s63_s17, 0 }
  0xc1   : > { %p6034_p11 = por %p7775_p10, %p81_p1  ;;  %p491_p0 = scmp.eq.s32.totalorder %s4376_s14, 1 }
  0xc2   : > { %p6041_p2 = por %p485_p12, %p75_p9  ;;  %p4918_p5 = scmp.lt.s32.totalorder %s5735_s29, 2 }
  0xc3   : > { %s7776_s4 = scalar_select %p6034_p11, 1, 0 }
  0xc4   : > { %s7777_s30 = scalar_select %p6041_p2, 1, 0 }
  0xc5   : > { %s6047_s22 = scalar_select %p66_p13, %s5723_s26, %s68_s7  }
  0xc6   : > { %7778 = sst [smem:[#allocation47_spill]] %s7777_s30  ;;  %p6049_p7 = por %p491_p0, %p81_p1 }
  0xc7   : > { %7779 = sst [smem:[#allocation48_spill]] %s6047_s22  ;;  %s6054_s6 = sand.u32 1, %s5723_s26  }
  0xc8   : > { %s7780_s19 = scalar_select %p6049_p7, 1, 0 }
  0xc9   : > { %p6056_p4 = pnand %p4918_p5, %p77_p3  ;;  %s6061_s18 = sand.u32 1, %s5735_s29  }
  0xca   : > { %7781 = sst [smem:[#allocation49_spill]] %s7780_s19  ;;  %s4392_s12 = sshll.u32 %s6054_s6, 7 }
  0xcb   : > { %s7782_s23 = scalar_select %p6056_p4, 1, 0 }
  0xcc   : > { %s4504_s14 = sshll.u32 %s5731_s28, 11  ;;  %s656_s17 = scalar_lea.vmem [#allocation5], %s4392_s12 }
  0xcd   : > { %s666_s7 = sshll.u32 %s656_s17, 4  ;;  %s7783_s11 = sld [smem:[#allocation61_spill]]  ;;  %s6070_s7 = int_to_ptr.vmem [resolvable:$true] %s666_s7 }
  0xce   : > { %p6077_p1 = pneg %p6056_p4 }
  0xd0   : > { %s7784_s22 = scalar_select %p6077_p1, 1, 0 }
  0xd3   : > { %s6068_s13 = scalar_lea.hbm %s7783_s11, %s4504_s14  ;;  %s5276_s12 = scalar_lea.hbm %s7783_s11, 4096 }
  0xd4   : > { %s5271_s2 = scalar_lea.hbm %s6068_s13, 2048  ;;  %p5277_p12 = scmp.lt.u32.totalorder %s6068_s13, %s7783_s11 }
  0xd5   : > { %p5272_p9 = scmp.ne.s32.totalorder %s6068_s13, %s5271_s2  ;;  %p5278_p13 = scmp.lt.u32.totalorder %s5276_s12, %s5271_s2 }
  0xd6   : > { %p5280_p5 = scmp.lt.u32.totalorder %s5271_s2, %s6068_s13 }
  0xd7   : > { %p5274_p3 = pnand %p6077_p1, %p5272_p9  ;;  %p5279_p0 = por %p5278_p13, %p5277_p12 }
  0xd9   : > { %p5275_p10 = pneg %p5274_p3  ;;  %p5281_p7 = por %p5280_p5, %p5279_p0 }
  0xdb   : > { %p5282_p2 = pnand %p5281_p7, %p5275_p10 }
  0xdd   : > { %5285 = shalt.err (!%p5282_p2)
}
  0xde   : > { %s5286_s15 = scalar_lea.vmem %s6070_s7, 2048  ;;  %s5746_s20 = smov [#allocation5]  }
  0xdf   : > { %p5287_p9 = scmp.ne.s32.totalorder %s6070_s7, %s5286_s15  ;;  %s5291_s27 = sshll.u32 %s5746_s20, 4  ;;  %s5292_s27 = int_to_ptr.vmem [resolvable:$false] %s5291_s27 }
  0xe0   : > { %s5293_s14 = scalar_lea.vmem %s5292_s27, 4096  ;;  %p5294_p6 = scmp.lt.s32.totalorder %s6070_s7, %s5292_s27 }
  0xe1   : > { %p5289_p3 = pnand %p5287_p9, %p6077_p1  ;;  %p5295_p8 = scmp.lt.s32.totalorder %s5293_s14, %s5286_s15 }
  0xe3   : > { %p5290_p11 = pneg %p5289_p3  ;;  %p5296_p12 = por %p5295_p8, %p5294_p6 }
  0xe5   : > { %p5297_p13 = pnand %p5296_p12, %p5290_p11 }
  0xe7   : > { %5300 = shalt.err (!%p5297_p13)
}
  0xe8   : > { %s7785_s2 = scalar_lea.sflag [#allocation6], %s6061_s18  ;;  %s6106_s12 = sshll.u32 %s6054_s6, 4 }
  0xe9   : > { %4888 = dma.hbm_to_vmem [thread:$0]  (!%p6056_p4), %s6068_s13, 2048, %s6070_s7, %s7785_s2, %s7772_s16, %s7772_s16, %s7771_s9  }
  0xea   : > { %s6109_s15 = sshll.u32 %s5731_s28, 8  ;;  %s7786_s3 = sld [smem:[#allocation63_spill]] }
  0xeb   : > { %s703_s14 = scalar_lea.vmem [#allocation8], %s6106_s12  ;;  %s7719_s13 = scalar_lea.sflag [#allocation9], %s6061_s18 }
  0xec   : > { %s712_s11 = sshll.u32 %s703_s14, 4  ;;  %s6118_s11 = int_to_ptr.vmem [resolvable:$true] %s712_s11 }
  0xf0   : > { %s6115_s27 = scalar_lea.hbm %s7786_s3, %s6109_s15  ;;  %s5306_s17 = scalar_lea.hbm %s7786_s3, 512 }
  0xf1   : > { %s5301_s7 = scalar_lea.hbm %s6115_s27, 256  ;;  %p5307_p2 = scmp.lt.u32.totalorder %s6115_s27, %s7786_s3 }
  0xf2   : > { %p5302_p6 = scmp.ne.s32.totalorder %s6115_s27, %s5301_s7  ;;  %p5308_p7 = scmp.lt.u32.totalorder %s5306_s17, %s5301_s7 }
  0xf3   : > { %p5310_p0 = scmp.lt.u32.totalorder %s5301_s7, %s6115_s27 }
  0xf4   : > { %p5304_p8 = pnand %p5302_p6, %p6077_p1  ;;  %p5309_p10 = por %p5308_p7, %p5307_p2 }
  0xf6   : > { %p5305_p11 = pneg %p5304_p8  ;;  %p5311_p5 = por %p5310_p0, %p5309_p10 }
  0xf8   : > { %p5312_p9 = pnand %p5311_p5, %p5305_p11 }
  0xfa   : > { %5315 = shalt.err (!%p5312_p9)
}
  0xfb   : > { %s5316_s14 = scalar_lea.vmem %s6118_s11, 256  ;;  %s5747_s26 = smov [#allocation8]  }
  0xfc   : > { %p5317_p3 = scmp.ne.s32.totalorder %s6118_s11, %s5316_s14  ;;  %s5321_s2 = sshll.u32 %s5747_s26, 4  ;;  %s5322_s2 = int_to_ptr.vmem [resolvable:$false] %s5321_s2 }
  0xfd   : > { %s5323_s29 = scalar_lea.vmem %s5322_s2, 512  ;;  %p5324_p6 = scmp.lt.s32.totalorder %s6118_s11, %s5322_s2 }
  0xfe   : > { %p5319_p12 = pnand %p5317_p3, %p6077_p1  ;;  %p5325_p8 = scmp.lt.s32.totalorder %s5323_s29, %s5316_s14 }
 0x100   : > { %p5320_p13 = pneg %p5319_p12  ;;  %p5326_p2 = por %p5325_p8, %p5324_p6 }
 0x102   : > { %p5327_p7 = pnand %p5326_p2, %p5320_p13 }
 0x104   : > { %5330 = shalt.err (!%p5327_p7)
}
 0x105   : > { %s7787_s7 = smov 8   ;;  %s7788_s17 = smov 128  }
 0x106   : > { %4894 = dma.hbm_to_vmem [thread:$0]  (!%p6056_p4), %s6115_s27, 256, %s6118_s11, %s7719_s13, %s7788_s17, %s7788_s17, %s7787_s7  }
 0x107   : > { %s7789_s5 = sld [smem:[#allocation65_spill]]  ;;  %s749_s2 = scalar_lea.vmem [#allocation11], %s6106_s12 }
 0x108   : > { %s758_s29 = sshll.u32 %s749_s2, 4  ;;  %s5748_s3 = smov [#allocation16]   ;;  %s6154_s29 = int_to_ptr.vmem [resolvable:$true] %s758_s29 }
 0x109   : > { %s6156_s19 = sshll.u32 %s5748_s3, 4  ;;  %s7722_s24 = scalar_lea.sflag [#allocation12], %s6061_s18  ;;  %s523_s19 = int_to_ptr.vmem [resolvable:$true] %s6156_s19 }
 0x10d   : > { %s6151_s14 = scalar_lea.hbm %s7789_s5, %s6109_s15  ;;  %s5336_s20 = scalar_lea.hbm %s7789_s5, 512 }
 0x10e   : > { %s5331_s30 = scalar_lea.hbm %s6151_s14, 256  ;;  %p5337_p5 = scmp.lt.u32.totalorder %s6151_s14, %s7789_s5 }
 0x10f   : > { %p5332_p11 = scmp.ne.s32.totalorder %s6151_s14, %s5331_s30  ;;  %p5338_p9 = scmp.lt.u32.totalorder %s5336_s20, %s5331_s30 }
 0x110   : > { %p5340_p12 = scmp.lt.u32.totalorder %s5331_s30, %s6151_s14 }
 0x111   : > { %p5334_p10 = pnand %p5332_p11, %p6077_p1  ;;  %p5339_p3 = por %p5338_p9, %p5337_p5 }
 0x113   : > { %p5335_p0 = pneg %p5334_p10  ;;  %p5341_p13 = por %p5340_p12, %p5339_p3 }
 0x115   : > { %p5342_p6 = pnand %p5341_p13, %p5335_p0 }
 0x117   : > { %5345 = shalt.err (!%p5342_p6)
}
 0x118   : > { %s5346_s3 = scalar_lea.vmem %s6154_s29, 256  ;;  %s5749_s2 = smov [#allocation11]  }
 0x119   : > { %p5347_p8 = scmp.ne.s32.totalorder %s6154_s29, %s5346_s3  ;;  %s5351_s11 = sshll.u32 %s5749_s2, 4  ;;  %s5352_s11 = int_to_ptr.vmem [resolvable:$false] %s5351_s11 }
 0x11a   : > { %s5353_s13 = scalar_lea.vmem %s5352_s11, 512  ;;  %p5354_p11 = scmp.lt.s32.totalorder %s6154_s29, %s5352_s11 }
 0x11b   : > { %p5349_p2 = pnand %p5347_p8, %p6077_p1  ;;  %p5355_p10 = scmp.lt.s32.totalorder %s5353_s13, %s5346_s3 }
 0x11d   : > { %p5350_p7 = pneg %p5349_p2  ;;  %p5356_p5 = por %p5355_p10, %p5354_p11 }
 0x11f   : > { %p5357_p9 = pnand %p5356_p5, %p5350_p7 }
 0x121   : > { %5360 = shalt.err (!%p5357_p9)
}
 0x122   : > { %4900 = dma.hbm_to_vmem [thread:$0]  (!%p6056_p4), %s6151_s14, 256, %s6154_s29, %s7722_s24, %s7788_s17, %s7788_s17, %s7787_s7  }
 0x123   : > { %s7790_s8 = sld [smem:[#allocation68_spill]]  ;;  %p7791_p3 = scmp.ne.s32.totalorder %s7767_s1, 0 }
 0x129   : > { %s5361_s20 = scalar_lea.hbm %s7790_s8, 16 }
 0x12a   : > { %p5362_p0 = scmp.ne.s32.totalorder %s7790_s8, %s5361_s20  ;;  %p5368_p6 = scmp.lt.u32.totalorder %s5361_s20, %s7790_s8 }
 0x12c   : > { %p5364_p12 = pnand %p5362_p0, %p7791_p3 }
 0x12e   : > { %p5365_p13 = pneg %p5364_p12 }
 0x130   : > { %p5370_p8 = pnand %p5368_p6, %p5365_p13 }
 0x132   : > { %5373 = shalt.err (!%p5370_p8)
}
 0x133   : > { %s5374_s13 = scalar_lea.vmem %s523_s19, 16  ;;  %s5381_s14 = scalar_lea.vmem %s523_s19, 32 }
 0x134   : > { %p5375_p2 = scmp.ne.s32.totalorder %s523_s19, %s5374_s13  ;;  %p5382_p10 = scmp.lt.s32.totalorder %s523_s19, %s523_s19 }
 0x135   : > { %p5383_p5 = scmp.lt.s32.totalorder %s5381_s14, %s5374_s13 }
 0x136   : > { %p5377_p7 = pnand %p5375_p2, %p7791_p3 }
 0x137   : > { %p5384_p9 = por %p5383_p5, %p5382_p10 }
 0x138   : > { %p5378_p11 = pneg %p5377_p7 }
 0x13a   : > { %p5385_p4 = pnand %p5384_p9, %p5378_p11 }
 0x13c   : > { %5388 = shalt.err (!%p5385_p4)
}
 0x13d   : > { %p7792_p0 = scmp.ne.s32.totalorder %s7765_s21, 0  ;;  %s5750_s27 = smov [#allocation19]  }
 0x13e   : > { %s546_s20 = sshll.u32 %s5750_s27, 4  ;;  %s5751_s26 = smov [#allocation22]   ;;  %s547_s20 = int_to_ptr.vmem [resolvable:$true] %s546_s20 }
 0x13f   : > { %4857 = dma.hbm_to_vmem [thread:$0]  (!%p7792_p0), %s7790_s8, 16, %s523_s19, [#allocation15]  }
 0x140   : > { %s570_s3 = sshll.u32 %s5751_s26, 4  ;;  %s7793_s10 = sld [smem:[#allocation70_spill]]  ;;  %s571_s3 = int_to_ptr.vmem [resolvable:$true] %s570_s3 }
 0x146   : > { %s5389_s24 = scalar_lea.hbm %s7793_s10, 16 }
 0x147   : > { %p5390_p4 = scmp.ne.s32.totalorder %s7793_s10, %s5389_s24  ;;  %p5396_p6 = scmp.lt.u32.totalorder %s5389_s24, %s7793_s10 }
 0x149   : > { %p5392_p12 = pnand %p5390_p4, %p7791_p3 }
 0x14b   : > { %p5393_p13 = pneg %p5392_p12 }
 0x14d   : > { %p5398_p8 = pnand %p5396_p6, %p5393_p13 }
 0x14f   : > { %5401 = shalt.err (!%p5398_p8)
}
 0x150   : > { %s5402_s19 = scalar_lea.vmem %s547_s20, 16  ;;  %s5409_s30 = scalar_lea.vmem %s547_s20, 32 }
 0x151   : > { %p5403_p2 = scmp.ne.s32.totalorder %s547_s20, %s5402_s19  ;;  %p5410_p10 = scmp.lt.s32.totalorder %s547_s20, %s547_s20 }
 0x152   : > { %p5411_p5 = scmp.lt.s32.totalorder %s5409_s30, %s5402_s19 }
 0x153   : > { %p5405_p7 = pnand %p5403_p2, %p7791_p3 }
 0x154   : > { %p5412_p9 = por %p5411_p5, %p5410_p10 }
 0x155   : > { %p5406_p11 = pneg %p5405_p7 }
 0x157   : > { %p5413_p1 = pnand %p5412_p9, %p5406_p11 }
 0x159   : > { %5416 = shalt.err (!%p5413_p1)
}
 0x15a   : > { %4863 = dma.hbm_to_vmem [thread:$0]  (!%p7792_p0), %s7793_s10, 16, %s547_s20, [#allocation18]  }
 0x15b   : > { %s7794_s2 = sld [smem:[#allocation72_spill]] }
 0x161   : > { %s5417_s11 = scalar_lea.hbm %s7794_s2, 32 }
 0x162   : > { %p5418_p4 = scmp.ne.s32.totalorder %s7794_s2, %s5417_s11  ;;  %p5424_p1 = scmp.lt.u32.totalorder %s5417_s11, %s7794_s2 }
 0x164   : > { %p5420_p12 = pnand %p5418_p4, %p7791_p3 }
 0x166   : > { %p5421_p13 = pneg %p5420_p12 }
 0x168   : > { %p5426_p6 = pnand %p5424_p1, %p5421_p13 }
 0x16a   : > { %5429 = shalt.err (!%p5426_p6)
}
 0x16b   : > { %s5430_s30 = scalar_lea.vmem %s571_s3, 32  ;;  %p5438_p11 = scmp.lt.s32.totalorder %s571_s3, %s571_s3 }
 0x16c   : > { %p5431_p8 = scmp.ne.s32.totalorder %s571_s3, %s5430_s30  ;;  %p5439_p10 = scmp.lt.s32.totalorder %s5430_s30, %s5430_s30 }
 0x16e   : > { %p5433_p2 = pnand %p5431_p8, %p7791_p3  ;;  %p5440_p5 = por %p5439_p10, %p5438_p11 }
 0x170   : > { %p5434_p7 = pneg %p5433_p2 }
 0x172   : > { %p5441_p9 = pnand %p5440_p5, %p5434_p7 }
 0x174   : > { %5444 = shalt.err (!%p5441_p9)
}
 0x175   : > { %4869 = dma.hbm_to_vmem [thread:$0]  (!%p7792_p0), %s7794_s2, 32, %s571_s3, [#allocation21]  }
 0x176   : > { %s5752_s26 = smov [#allocation25]   ;;  %s5753_s24 = smov [#allocation28]  }
 0x177   : > { %s594_s5 = sshll.u32 %s5752_s26, 4  ;;  %s618_s11 = sshll.u32 %s5753_s24, 4  ;;  %s595_s5 = int_to_ptr.vmem [resolvable:$true] %s594_s5  ;;  %s619_s11 = int_to_ptr.vmem [resolvable:$true] %s618_s11 }
 0x178   : > { %s7795_s29 = sld [smem:[#allocation74_spill]] }
 0x17e   : > { %s7796_s19 = smov %s7795_s29  ;;  %s5445_s8 = scalar_lea.hbm %s7795_s29, 16 }
 0x17f   : > { %p5446_p4 = scmp.ne.s32.totalorder %s7796_s19, %s5445_s8  ;;  %p5452_p1 = scmp.lt.u32.totalorder %s5445_s8, %s7796_s19 }
 0x181   : > { %p5448_p12 = pnand %p5446_p4, %p7791_p3 }
 0x183   : > { %p5449_p13 = pneg %p5448_p12 }
 0x185   : > { %p5454_p6 = pnand %p5452_p1, %p5449_p13 }
 0x187   : > { %5457 = shalt.err (!%p5454_p6)
}
 0x188   : > { %s5458_s3 = scalar_lea.vmem %s595_s5, 16  ;;  %s5465_s27 = scalar_lea.vmem %s595_s5, 32 }
 0x189   : > { %p5459_p8 = scmp.ne.s32.totalorder %s595_s5, %s5458_s3  ;;  %p5466_p11 = scmp.lt.s32.totalorder %s595_s5, %s595_s5 }
 0x18a   : > { %p5467_p10 = scmp.lt.s32.totalorder %s5465_s27, %s5458_s3 }
 0x18b   : > { %p5461_p2 = pnand %p5459_p8, %p7791_p3 }
 0x18c   : > { %p5468_p5 = por %p5467_p10, %p5466_p11 }
 0x18d   : > { %p5462_p7 = pneg %p5461_p2 }
 0x18f   : > { %p5469_p9 = pnand %p5468_p5, %p5462_p7 }
 0x191   : > { %5472 = shalt.err (!%p5469_p9)
}
 0x192   : > { %4875 = dma.hbm_to_vmem [thread:$0]  (!%p7792_p0), %s7796_s19, 16, %s595_s5, [#allocation24]  }
 0x193   : > { %s7797_s24 = sld [smem:[#allocation76_spill]] }
 0x199   : > { %s7798_s13 = smov %s7797_s24  ;;  %s5473_s14 = scalar_lea.hbm %s7797_s24, 16 }
 0x19a   : > { %p5474_p4 = scmp.ne.s32.totalorder %s7798_s13, %s5473_s14  ;;  %p5480_p1 = scmp.lt.u32.totalorder %s5473_s14, %s7798_s13 }
 0x19c   : > { %p5476_p12 = pnand %p5474_p4, %p7791_p3 }
 0x19e   : > { %p5477_p13 = pneg %p5476_p12 }
 0x1a0   : > { %p5482_p6 = pnand %p5480_p1, %p5477_p13 }
 0x1a2   : > { %5485 = shalt.err (!%p5482_p6)
}
 0x1a3   : > { %s5486_s27 = scalar_lea.vmem %s619_s11, 16  ;;  %s5493_s5 = scalar_lea.vmem %s619_s11, 32 }
 0x1a4   : > { %p5487_p8 = scmp.ne.s32.totalorder %s619_s11, %s5486_s27  ;;  %p5494_p11 = scmp.lt.s32.totalorder %s619_s11, %s619_s11 }
 0x1a5   : > { %p5495_p10 = scmp.lt.s32.totalorder %s5493_s5, %s5486_s27 }
 0x1a6   : > { %p5489_p2 = pnand %p5487_p8, %p7791_p3 }
 0x1a7   : > { %p5496_p5 = por %p5495_p10, %p5494_p11 }
 0x1a8   : > { %p5490_p7 = pneg %p5489_p2 }
 0x1aa   : > { %p5497_p9 = pnand %p5496_p5, %p5490_p7 }
 0x1ac   : > { %5500 = shalt.err (!%p5497_p9)
}
 0x1ad   : > { %4881 = dma.hbm_to_vmem [thread:$0]  (!%p7792_p0), %s7798_s13, 16, %s619_s11, [#allocation27]  }
 0x1ae   : > { %s7729_s1 = sshll.u32 %s6054_s6, 3  ;;  %s4503_s8 = sshll.u32 %s5731_s28, 7 }
 0x1af   : > { %s7799_s14 = sld [smem:[#allocation60_spill]]  ;;  %s633_s21 = scalar_lea.vmem [#allocation2], %s7729_s1 }
 0x1b0   : > { %s642_s30 = sshll.u32 %s633_s21, 4  ;;  %s7800_s27 = sld [smem:[#allocation62_spill]]  ;;  %s6285_s30 = int_to_ptr.vmem [resolvable:$true] %s642_s30 }
 0x1b1   : > { %s630_s10 = scalar_lea.sflag [#allocation3], %s6054_s6  ;;  %p7802_p0 = scmp.ne.s32.totalorder %s7784_s22, 0 }
 0x1b5   : > { %s6281_s29 = scalar_lea.hbm %s7799_s14, %s4503_s8  ;;  %s5506_s2 = scalar_lea.hbm %s7799_s14, 256 }
 0x1b6   : > { %s7801_s5 = smov %s7800_s27  ;;  %s6290_s11 = scalar_lea.hbm %s7800_s27, %s4503_s8 }
 0x1b7   : > { %s5501_s26 = scalar_lea.hbm %s6281_s29, 128  ;;  %p5507_p13 = scmp.lt.u32.totalorder %s6281_s29, %s7799_s14 }
 0x1b8   : > { %p5502_p3 = scmp.ne.s32.totalorder %s6281_s29, %s5501_s26  ;;  %p5508_p1 = scmp.lt.u32.totalorder %s5506_s2, %s5501_s26 }
 0x1b9   : > { %p5510_p8 = scmp.lt.u32.totalorder %s5501_s26, %s6281_s29 }
 0x1ba   : > { %p5504_p4 = pnand %p5502_p3, %p7802_p0  ;;  %p5509_p6 = por %p5508_p1, %p5507_p13 }
 0x1bc   : > { %p5505_p12 = pneg %p5504_p4  ;;  %p5511_p2 = por %p5510_p8, %p5509_p6 }
 0x1be   : > { %p5512_p7 = pnand %p5511_p2, %p5505_p12 }
 0x1c0   : > { %5515 = shalt.err (!%p5512_p7)
}
 0x1c1   : > { %s5516_s8 = scalar_lea.vmem %s6285_s30, 128  ;;  %s5754_s21 = smov [#allocation2]  }
 0x1c2   : > { %p5517_p11 = scmp.ne.s32.totalorder %s6285_s30, %s5516_s8  ;;  %s5521_s20 = sshll.u32 %s5754_s21, 4  ;;  %s5522_s20 = int_to_ptr.vmem [resolvable:$false] %s5521_s20 }
 0x1c3   : > { %s5523_s13 = scalar_lea.vmem %s5522_s20, 256  ;;  %p5524_p9 = scmp.lt.s32.totalorder %s6285_s30, %s5522_s20 }
 0x1c4   : > { %p5519_p10 = pnand %p5517_p11, %p7802_p0  ;;  %p5525_p3 = scmp.lt.s32.totalorder %s5523_s13, %s5516_s8 }
 0x1c6   : > { %p5520_p5 = pneg %p5519_p10  ;;  %p5526_p4 = por %p5525_p3, %p5524_p9 }
 0x1c8   : > { %p5527_p13 = pnand %p5526_p4, %p5520_p5 }
 0x1ca   : > { %5530 = shalt.err (!%p5527_p13)
}
 0x1cb   : > { %p7803_p12 = scmp.ne.s32.totalorder %s7782_s23, 0  ;;  %s7804_s2 = sshll.u32 %s6054_s6, 3 }
 0x1cc   : > { %s680_s1 = scalar_lea.vmem [#allocation7], %s7804_s2  ;;  %s7805_s0 = sld [smem:[#allocation64_spill]] }
 0x1cd   : > { %4885 = dma.hbm_to_vmem [thread:$0]  (!%p7803_p12), %s6281_s29, 128, %s6285_s30, %s630_s10, %s7772_s16, %s7772_s16, %s7771_s9  }
 0x1ce   : > { %s689_s3 = sshll.u32 %s680_s1, 4  ;;  %s5531_s8 = scalar_lea.hbm %s6290_s11, 128  ;;  %s6321_s3 = int_to_ptr.vmem [resolvable:$true] %s689_s3 }
 0x1cf   : > { %p5532_p1 = scmp.ne.s32.totalorder %s6290_s11, %s5531_s8  ;;  %s5536_s13 = scalar_lea.hbm %s7801_s5, 256 }
 0x1d0   : > { %p5537_p2 = scmp.lt.u32.totalorder %s6290_s11, %s7801_s5  ;;  %p5538_p7 = scmp.lt.u32.totalorder %s5536_s13, %s5531_s8 }
 0x1d1   : > { %p5534_p6 = pnand %p5532_p1, %p7802_p0  ;;  %p5540_p10 = scmp.lt.u32.totalorder %s5531_s8, %s6290_s11 }
 0x1d2   : > { %s6327_s24 = scalar_lea.hbm %s7805_s0, %s6109_s15  ;;  %p5539_p11 = por %p5538_p7, %p5537_p2 }
 0x1d3   : > { %p5535_p8 = pneg %p5534_p6 }
 0x1d4   : > { %p5541_p5 = por %p5540_p10, %p5539_p11 }
 0x1d6   : > { %p5542_p9 = pnand %p5541_p5, %p5535_p8 }
 0x1d8   : > { %5545 = shalt.err (!%p5542_p9)
}
 0x1d9   : > { %s5546_s30 = scalar_lea.vmem %s6321_s3, 128  ;;  %s5755_s10 = smov [#allocation7]  }
 0x1da   : > { %p5547_p3 = scmp.ne.s32.totalorder %s6321_s3, %s5546_s30  ;;  %s5551_s2 = sshll.u32 %s5755_s10, 4  ;;  %s5552_s2 = int_to_ptr.vmem [resolvable:$false] %s5551_s2 }
 0x1db   : > { %s5553_s1 = scalar_lea.vmem %s5552_s2, 256  ;;  %p5554_p1 = scmp.lt.s32.totalorder %s6321_s3, %s5552_s2 }
 0x1dc   : > { %p5549_p4 = pnand %p5547_p3, %p7802_p0  ;;  %p5555_p6 = scmp.lt.s32.totalorder %s5553_s1, %s5546_s30 }
 0x1de   : > { %p5550_p13 = pneg %p5549_p4  ;;  %p5556_p2 = por %p5555_p6, %p5554_p1 }
 0x1e0   : > { %p5557_p7 = pnand %p5556_p2, %p5550_p13 }
 0x1e2   : > { %5560 = shalt.err (!%p5557_p7)
}
 0x1e3   : > { %s7806_s27 = scalar_lea.sflag [#allocation6], %s6061_s18  ;;  %s726_s26 = scalar_lea.vmem [#allocation10], %s6106_s12 }
 0x1e4   : > { %4891 = dma.hbm_to_vmem [thread:$0]  (!%p7803_p12), %s6290_s11, 128, %s6321_s3, %s7806_s27, %s7772_s16, %s7772_s16, %s7771_s9  }
 0x1e5   : > { %s735_s8 = sshll.u32 %s726_s26, 4  ;;  %s7807_s13 = sld [smem:[#allocation66_spill]]  ;;  %s6356_s8 = int_to_ptr.vmem [resolvable:$true] %s735_s8 }
 0x1e6   : > { %s5561_s6 = scalar_lea.hbm %s6327_s24, 256  ;;  %s5566_s2 = scalar_lea.hbm %s7805_s0, 512 }
 0x1e7   : > { %p5562_p8 = scmp.ne.s32.totalorder %s6327_s24, %s5561_s6  ;;  %p5567_p5 = scmp.lt.u32.totalorder %s6327_s24, %s7805_s0 }
 0x1e8   : > { %p5568_p9 = scmp.lt.u32.totalorder %s5566_s2, %s5561_s6  ;;  %p5570_p4 = scmp.lt.u32.totalorder %s5561_s6, %s6327_s24 }
 0x1e9   : > { %p5564_p11 = pnand %p5562_p8, %p7802_p0 }
 0x1ea   : > { %p5569_p3 = por %p5568_p9, %p5567_p5 }
 0x1eb   : > { %s6362_s29 = scalar_lea.hbm %s7807_s13, %s6109_s15  ;;  %p5565_p10 = pneg %p5564_p11 }
 0x1ec   : > { %p5571_p13 = por %p5570_p4, %p5569_p3 }
 0x1ee   : > { %p5572_p1 = pnand %p5571_p13, %p5565_p10 }
 0x1f0   : > { %5575 = shalt.err (!%p5572_p1)
}
 0x1f1   : > { %s5576_s16 = scalar_lea.vmem %s6356_s8, 256  ;;  %s5756_s15 = smov [#allocation10]  }
 0x1f2   : > { %p5577_p6 = scmp.ne.s32.totalorder %s6356_s8, %s5576_s16  ;;  %s5581_s11 = sshll.u32 %s5756_s15, 4  ;;  %s5582_s11 = int_to_ptr.vmem [resolvable:$false] %s5581_s11 }
 0x1f3   : > { %s5583_s3 = scalar_lea.vmem %s5582_s11, 512  ;;  %p5584_p8 = scmp.lt.s32.totalorder %s6356_s8, %s5582_s11 }
 0x1f4   : > { %p5579_p2 = pnand %p5577_p6, %p7802_p0  ;;  %p5585_p11 = scmp.lt.s32.totalorder %s5583_s3, %s5576_s16 }
 0x1f6   : > { %p5580_p7 = pneg %p5579_p2  ;;  %p5586_p5 = por %p5585_p11, %p5584_p8 }
 0x1f8   : > { %p5587_p9 = pnand %p5586_p5, %p5580_p7 }
 0x1fa   : > { %5590 = shalt.err (!%p5587_p9)
}
 0x1fb   : > { %s7808_s27 = scalar_lea.sflag [#allocation9], %s6061_s18  ;;  %s772_s26 = scalar_lea.vmem [#allocation13], %s6106_s12 }
 0x1fc   : > { %4897 = dma.hbm_to_vmem [thread:$0]  (!%p7803_p12), %s6327_s24, 256, %s6356_s8, %s7808_s27, %s7788_s17, %s7788_s17, %s7787_s7  }
 0x1fd   : > { %s781_s21 = sshll.u32 %s772_s26, 4  ;;  %s5591_s20 = scalar_lea.hbm %s6362_s29, 256  ;;  %s6391_s21 = int_to_ptr.vmem [resolvable:$true] %s781_s21 }
 0x1fe   : > { %p5592_p10 = scmp.ne.s32.totalorder %s6362_s29, %s5591_s20  ;;  %s5596_s10 = scalar_lea.hbm %s7807_s13, 512 }
 0x1ff   : > { %p5597_p13 = scmp.lt.u32.totalorder %s6362_s29, %s7807_s13  ;;  %p5598_p1 = scmp.lt.u32.totalorder %s5596_s10, %s5591_s20 }
 0x200   : > { %p5594_p3 = pnand %p5592_p10, %p7802_p0  ;;  %p5600_p2 = scmp.lt.u32.totalorder %s5591_s20, %s6362_s29 }
 0x201   : > { %p5599_p6 = por %p5598_p1, %p5597_p13 }
 0x202   : > { %p5595_p4 = pneg %p5594_p3 }
 0x203   : > { %p5601_p7 = por %p5600_p2, %p5599_p6 }
 0x205   : > { %p5602_p8 = pnand %p5601_p7, %p5595_p4 }
 0x207   : > { %5605 = shalt.err (!%p5602_p8)
}
 0x208   : > { %s5606_s12 = scalar_lea.vmem %s6391_s21, 256  ;;  %s5757_s24 = smov [#allocation13]  }
 0x209   : > { %p5607_p11 = scmp.ne.s32.totalorder %s6391_s21, %s5606_s12  ;;  %s5611_s8 = sshll.u32 %s5757_s24, 4  ;;  %s5612_s8 = int_to_ptr.vmem [resolvable:$false] %s5611_s8 }
 0x20a   : > { %s5613_s9 = scalar_lea.vmem %s5612_s8, 512  ;;  %p5614_p10 = scmp.lt.s32.totalorder %s6391_s21, %s5612_s8 }
 0x20b   : > { %p5609_p5 = pnand %p5607_p11, %p7802_p0  ;;  %p5615_p3 = scmp.lt.s32.totalorder %s5613_s9, %s5606_s12 }
 0x20d   : > { %p5610_p9 = pneg %p5609_p5  ;;  %p5616_p13 = por %p5615_p3, %p5614_p10 }
 0x20f   : > { %p5617_p1 = pnand %p5616_p13, %p5610_p9 }
 0x211   : > { %5620 = shalt.err (!%p5617_p1)
}
 0x212   : > { %s7809_s16 = scalar_lea.sflag [#allocation12], %s6061_s18  ;;  %s7810_s22 = sld [smem:[#allocation45_spill]] }
 0x213   : > { %4903 = dma.hbm_to_vmem [thread:$0]  (!%p7803_p12), %s6362_s29, 256, %s6391_s21, %s7809_s16, %s7788_s17, %s7788_s17, %s7787_s7  }
 0x218   : > { %p7811_p0 = scmp.ne.s32.totalorder %s7810_s22, 0 }
 0x21a   : > { %793 = sbr.rel (%p7811_p0) target bundleno = 1895 (0x767), region = 88 }
 0x221   : > { %s6422_s15 = sand.u32 1, %s5719_s25   ;;  %p7812_p4 = scmp.ne.s32.totalorder %s7776_s4, 0 }
 0x222   : > { %s4411_s11 = sshll.u32 %s6422_s15, 3  ;;  %s796_s3 = scalar_lea.sflag [#allocation3], %s6422_s15 }
 0x223   : > { %s6426_s23 = scalar_lea.vmem [#allocation2], %s4411_s11 }
 0x224   : > { %5674 = dma.done.wait (%p7812_p4), %s796_s3, 128  }
 0x225   : > { %5676 = vsyncadd (%p7812_p4), %s796_s3, 4294967168  ;;  %s7813_s18 = sld [smem:[#allocation44_spill]]  ;;  %s4412_s17 = sshll.u32 %s6422_s15, 7 }
 0x226   : > { %s6434_s27 = scalar_lea.vmem [#allocation5], %s4412_s17 }
 0x22b   : > { %s804_s7 = sand.u32 1, %s7813_s18  }
 0x22c   : > { %s805_s29 = scalar_lea.sflag [#allocation6], %s804_s7 }
 0x22d   : > { %5678 = dma.done.wait (%p7812_p4), %s805_s29, 2176  }
 0x22e   : > { %5680 = vsyncadd (%p7812_p4), %s805_s29, 4294965120  ;;  %s6441_s26 = sshll.u32 %s6422_s15, 4  ;;  %s6443_s21 = scalar_lea.vmem [#allocation7], %s4411_s11 }
 0x22f   : > { %s823_s20 = scalar_lea.sflag [#allocation9], %s804_s7  ;;  %s826_s6 = scalar_lea.vmem [#allocation8], %s6441_s26 }
 0x230   : > { %5682 = dma.done.wait (%p7812_p4), %s823_s20, 512  }
 0x231   : > { %5684 = vsyncadd (%p7812_p4), %s823_s20, 4294966784  ;;  %s835_s30 = scalar_lea.vmem [#allocation10], %s6441_s26  ;;  %s841_s10 = scalar_lea.sflag [#allocation12], %s804_s7 }
 0x232   : > { %s844_s2 = scalar_lea.vmem [#allocation11], %s6441_s26 }
 0x233   : > { %5686 = dma.done.wait (%p7812_p4), %s841_s10, 512  }
 0x234   : > { %5688 = vsyncadd (%p7812_p4), %s841_s10, 4294966784  ;;  %s853_s1 = scalar_lea.vmem [#allocation13], %s6441_s26  ;;  %p7814_p12 = scmp.eq.s32.totalorder %s7813_s18, 0 }
 0x236   : > { %5690 = dma.done.wait (%p7814_p12), [#allocation15], 80   ;;  %p7815_p6 = pmov %p7814_p12 }
 0x238   : > { %5692 = vsyncadd (%p7815_p6), [#allocation15], 4294967216  ;;  %p7816_p2 = pmov %p7815_p6 }
 0x23a   : > { %5694 = dma.done.wait (%p7816_p2), [#allocation18], 528   ;;  %p7817_p7 = pmov %p7816_p2 }
 0x23b   : > { %p7818_p8 = pmov %p7816_p2 }
 0x23c   : > { %5696 = vsyncadd (%p7817_p7), [#allocation18], 4294966768 }
 0x23d   : > { %5698 = dma.done.wait (%p7818_p8), [#allocation21], 1056   ;;  %p7819_p11 = pmov %p7816_p2 }
 0x23e   : > { %p7820_p5 = pmov %p7816_p2 }
 0x23f   : > { %5700 = vsyncadd (%p7819_p11), [#allocation21], 4294966240 }
 0x240   : > { %5702 = dma.done.wait (%p7820_p5), [#allocation24], 2064   ;;  %p7821_p9 = pmov %p7816_p2 }
 0x241   : > { %p7822_p10 = pmov %p7816_p2 }
 0x242   : > { %5704 = vsyncadd (%p7821_p9), [#allocation24], 4294965232 }
 0x243   : > { %5706 = dma.done.wait (%p7822_p10), [#allocation27], 528   ;;  %p7823_p3 = pmov %p7816_p2 }
 0x244   : > { %v1057_v0 = vlaneseq  ;;  %v6484_v3 = vld [vmem:[%s835_s30] sm:$0xff]  ;;  %v6528_v25 = vld [vmem:[%s826_s6 + $0x8] sm:$0xff]  ;;  %vm2096_vm0 = vcmask 523264   ;;  %vm3934_vm1 = vcmask 1041409   ;;  %vm3936_vm2 = vcmask 1042434   ;;  %s7844_s4 = sld [smem:[#allocation42_spill]] }
 0x245   : > { %5708 = vsyncadd (%p7823_p3), [#allocation27], 4294966768  ;;  %v6488_v4 = vld [vmem:[%s826_s6] sm:$0xff]  ;;  %v6540_v29 = vld [vmem:[%s835_s30 + $0x8] sm:$0xff]  ;;  %vm3938_vm3 = vcmask 1043459   ;;  %vm3940_vm4 = vcmask 1044484  }
 0x246   : > { %v6477_v1 = vshrl.u32 %v1057_v0, 7  ;;  %v4998_v8 = vld [vmem:[#allocation17] sm:$0xff]   ;;  %v4999_v9 = vld [vmem:[#allocation17 + $0x8] sm:$0xff]   ;;  %v5000_v12 = vld [vmem:[#allocation17 + $0x10] sm:$0xff]   ;;  %vm5761_vm5 = vmmov 0   ;;  %vm3942_vm6 = vcmask 1045509  }
 0x247   : > { %4735 = vmatprep.subr.bf16.mxu0 %v4998_v8  ;;  %4787 = vmatprep.subr.bf16.mxu1 %v4998_v8  ;;  %v6501_v11 = vld [vmem:[%s844_s2] sm:$0xff]  ;;  %v6563_v38 = vld [vmem:[%s844_s2 + $0x8] sm:$0xff]  ;;  %vm3944_vm7 = vcmask 1046534   ;;  %vm3946_vm8 = vcmask 1047559   ;;  %s973_s12 = scalar_lea.vmem [#allocation29], %s6441_s26  ;;  %s7845_s8 = sld [smem:[#allocation47_spill]] }
 0x248   : > { %v6480_v2 = vsub.s32 0, %v6477_v1  ;;  %v6495_v7 = vsub.s32 1, %v6477_v1  ;;  %4736 = vmatpush3.bf16.msra.mxu0 %v4998_v8  ;;  %4791 = vmatpush3.bf16.msra.mxu1 %v4998_v8  ;;  %v5001_v14 = vld [vmem:[#allocation17 + $0x18] sm:$0xff]   ;;  %v6508_v16 = vsub.s32 2, %v6477_v1  ;;  %v6517_v20 = vsub.s32 3, %v6477_v1  ;;  %s4046_s24 = sshll.u32 %s973_s12, 4  ;;  %s7612_s24 = int_to_ptr.vmem [resolvable:$true] %s4046_s24 }
 0x249   : > { %4737 = vmatprep.subr.bf16.mxu0 %v4999_v9  ;;  %4788 = vmatprep.subr.bf16.mxu1 %v4999_v9  ;;  %v1335_v24 = vsub.s32 6, %v6477_v1  ;;  %v6536_v28 = vsub.s32 4, %v6477_v1  ;;  %v1346_v32 = vsub.s32 7, %v6477_v1  ;;  %v6554_v35 = vsub.s32 5, %v6477_v1  ;;  %v1263_v61 = vld [vmem:[#allocation14] sm:$0x7] }
 0x24a   : > { %v1484_v5 = vrot.slane %v6484_v3, %v6480_v2  ;;  %v1270_v6 = vrot.slane %v6488_v4, %v6480_v2  ;;  %v1281_v10 = vrot.slane %v6488_v4, %v6495_v7  ;;  %v1495_v13 = vrot.slane %v6484_v3, %v6495_v7  ;;  %s4510_s9 = sshll.u32 %s7844_s4, 8  ;;  %s7846_s11 = sld [smem:[#allocation77_spill]] }
 0x24b   : > { %v1730_v15 = vrot.slane %v6501_v11, %v6480_v2  ;;  %v1741_v17 = vrot.slane %v6501_v11, %v6495_v7  ;;  %v1292_v18 = vrot.slane %v6488_v4, %v6508_v16  ;;  %v1506_v19 = vrot.slane %v6484_v3, %v6508_v16  ;;  %s5621_s18 = scalar_lea.vmem %s7612_s24, 256  ;;  %s5762_s7 = smov [#allocation29]  }
 0x24c   : > { %1486 = vbcast.lane.b32.xlu1 %v1484_v5, 256  ;;  %1272 = vbcast.lane.b32.xlu0 %v1270_v6, 256  ;;  %v1303_v21 = vrot.slane %v6488_v4, %v6517_v20  ;;  %v1517_v22 = vrot.slane %v6484_v3, %v6517_v20  ;;  %v1752_v23 = vrot.slane %v6501_v11, %v6508_v16  ;;  %p5622_p13 = scmp.ne.s32.totalorder %s7612_s24, %s5621_s18  ;;  %s5625_s17 = sshll.u32 %s5762_s7, 4  ;;  %s5626_s17 = int_to_ptr.vmem [resolvable:$false] %s5625_s17 }
 0x24d   : > { %4738 = vmatpush3.bf16.msra.mxu0 %v4999_v9  ;;  %4792 = vmatpush3.bf16.msra.mxu1 %v4999_v9  ;;  %v6531_v26 = vrot.slane %v6528_v25, %v1335_v24  ;;  %v1763_v27 = vrot.slane %v6501_v11, %v6517_v20  ;;  %v6543_v30 = vrot.slane %v6540_v29, %v1335_v24  ;;  %p7847_p1 = scmp.ne.s32.totalorder %s7845_s8, 0  ;;  %s5627_s29 = scalar_lea.vmem %s5626_s17, 512 }
 0x24e   : > { %4739 = vmatprep.subr.bf16.mxu0 %v5000_v12  ;;  %4789 = vmatprep.subr.bf16.mxu1 %v5000_v12  ;;  %v1314_v31 = vrot.slane %v6488_v4, %v6536_v28  ;;  %v6549_v33 = vrot.slane %v6528_v25, %v1346_v32  ;;  %v1528_v34 = vrot.slane %v6484_v3, %v6536_v28  ;;  %p5628_p12 = scmp.lt.s32.totalorder %s7612_s24, %s5626_s17  ;;  %p5629_p6 = scmp.lt.s32.totalorder %s5627_s29, %s5621_s18 }
 0x24f   : > { %v6557_v36 = vrot.slane %v6540_v29, %v1346_v32  ;;  %v1325_v37 = vrot.slane %v6488_v4, %v6554_v35  ;;  %v6566_v39 = vrot.slane %v6563_v38, %v1335_v24  ;;  %v1539_v40 = vrot.slane %v6484_v3, %v6554_v35  ;;  %p5623_p0 = pnand %p5622_p13, %p7847_p1 }
 0x250   : > { %1490 = vbcast.lane.b32.xlu1 %v1484_v5, 264  ;;  %1276 = vbcast.lane.b32.xlu0 %v1270_v6, 264  ;;  %v6571_v41 = vrot.slane %v6563_v38, %v1346_v32  ;;  %v1774_v42 = vrot.slane %v6501_v11, %v6536_v28  ;;  %v1785_v43 = vrot.slane %v6501_v11, %v6554_v35  ;;  %s7617_s3 = scalar_lea.hbm %s7846_s11, %s4510_s9  ;;  %p5630_p2 = por %p5629_p6, %p5628_p12 }
 0x251   : > { %4740 = vmatpush3.bf16.msra.mxu0 %v5000_v12  ;;  %4793 = vmatpush3.bf16.msra.mxu1 %v5000_v12  ;;  %v1336_v44 = vrot.slane %v6488_v4, %v1335_v24  ;;  %v1550_v45 = vrot.slane %v6484_v3, %v1335_v24  ;;  %v1347_v46 = vrot.slane %v6488_v4, %v1346_v32  ;;  %p5624_p4 = pneg %p5623_p0 }
 0x252   : > { %4741 = vmatprep.subr.bf16.mxu0 %v5001_v14  ;;  %4790 = vmatprep.subr.bf16.mxu1 %v5001_v14  ;;  %v1561_v47 = vrot.slane %v6484_v3, %v1346_v32  ;;  %v1796_v48 = vrot.slane %v6501_v11, %v1335_v24  ;;  %v1807_v49 = vrot.slane %v6501_v11, %v1346_v32  ;;  %v6622_v32 = vld [vmem:[#allocation16] ss:$0 sm:$0xff] }
 0x253   : > { %v1358_v50 = vrot.slane %v6528_v25, %v6480_v2  ;;  %v1572_v51 = vrot.slane %v6540_v29, %v6480_v2  ;;  %v1369_v52 = vrot.slane %v6528_v25, %v6495_v7  ;;  %v1583_v53 = vrot.slane %v6540_v29, %v6495_v7  ;;  %p5631_p7 = pnand %p5630_p2, %p5624_p4 }
 0x254   : > { %1287 = vbcast.lane.b32.xlu1 %v1281_v10, 264  ;;  %1283 = vbcast.lane.b32.xlu0 %v1281_v10, 256  ;;  %v1818_v54 = vrot.slane %v6563_v38, %v6480_v2  ;;  %v1829_v55 = vrot.slane %v6563_v38, %v6495_v7  ;;  %v1380_v58 = vrot.slane %v6528_v25, %v6508_v16 }
 0x255   : > { %4742 = vmatpush3.bf16.msra.mxu0 %v5001_v14  ;;  %4794 = vmatpush3.bf16.msra.mxu1 %v5001_v14  ;;  %v1594_v62 = vrot.slane %v6540_v29, %v6508_v16  ;;  %v6600_v3 = vrot.slane %v1263_v61, %v6495_v7  ;;  %v6603_v4 = vrot.slane %v1263_v61, %v6480_v2 }
 0x256   : > { %v1391_v5 = vrot.slane %v6528_v25, %v6517_v20  ;;  %v6608_v6 = vrot.slane %v1263_v61, %v6508_v16  ;;  %v1605_v14 = vrot.slane %v6540_v29, %v6517_v20 }
 0x258   : > { %1501 = vbcast.lane.b32.xlu1 %v1495_v13, 264  ;;  %1497 = vbcast.lane.b32.xlu0 %v1495_v13, 256 }
 0x25c   : > { %1736 = vbcast.lane.b32.xlu1 %v1730_v15, 264  ;;  %1732 = vbcast.lane.b32.xlu0 %v1730_v15, 256 }
 0x260   : > { %1747 = vbcast.lane.b32.xlu1 %v1741_v17, 264  ;;  %1743 = vbcast.lane.b32.xlu0 %v1741_v17, 256 }
 0x264   : > { %1298 = vbcast.lane.b32.xlu1 %v1292_v18, 264  ;;  %1294 = vbcast.lane.b32.xlu0 %v1292_v18, 256 }
 0x268   : > { %1512 = vbcast.lane.b32.xlu1 %v1506_v19, 264  ;;  %1508 = vbcast.lane.b32.xlu0 %v1506_v19, 256 }
 0x26c   : > { %1309 = vbcast.lane.b32.xlu1 %v1303_v21, 264  ;;  %1305 = vbcast.lane.b32.xlu0 %v1303_v21, 256 }
 0x270   : > { %1523 = vbcast.lane.b32.xlu1 %v1517_v22, 264  ;;  %1519 = vbcast.lane.b32.xlu0 %v1517_v22, 256 }
 0x274   : > { %1758 = vbcast.lane.b32.xlu1 %v1752_v23, 264  ;;  %1754 = vbcast.lane.b32.xlu0 %v1752_v23, 256 }
 0x278   : > { %1769 = vbcast.lane.b32.xlu1 %v1763_v27, 264  ;;  %1765 = vbcast.lane.b32.xlu0 %v1763_v27, 256 }
 0x27c   : > { %1320 = vbcast.lane.b32.xlu1 %v1314_v31, 264  ;;  %1316 = vbcast.lane.b32.xlu0 %v1314_v31, 256 }
 0x280   : > { %1534 = vbcast.lane.b32.xlu1 %v1528_v34, 264  ;;  %1530 = vbcast.lane.b32.xlu0 %v1528_v34, 256  ;;  %v1840_v34 = vrot.slane %v6563_v38, %v6508_v16 }
 0x284   : > { %1331 = vbcast.lane.b32.xlu1 %v1325_v37, 264  ;;  %1327 = vbcast.lane.b32.xlu0 %v1325_v37, 256 }
 0x288   : > { %1545 = vbcast.lane.b32.xlu1 %v1539_v40, 264  ;;  %1541 = vbcast.lane.b32.xlu0 %v1539_v40, 256 }
 0x28c   : > { %1780 = vbcast.lane.b32.xlu1 %v1774_v42, 264  ;;  %1776 = vbcast.lane.b32.xlu0 %v1774_v42, 256 }
 0x290   : > { %1791 = vbcast.lane.b32.xlu1 %v1785_v43, 264  ;;  %1787 = vbcast.lane.b32.xlu0 %v1785_v43, 256 }
 0x294   : > { %1342 = vbcast.lane.b32.xlu1 %v1336_v44, 264  ;;  %1338 = vbcast.lane.b32.xlu0 %v1336_v44, 256 }
 0x298   : > { %1556 = vbcast.lane.b32.xlu1 %v1550_v45, 264  ;;  %1552 = vbcast.lane.b32.xlu0 %v1550_v45, 256 }
 0x29c   : > { %1353 = vbcast.lane.b32.xlu1 %v1347_v46, 264  ;;  %1349 = vbcast.lane.b32.xlu0 %v1347_v46, 256 }
 0x2a0   : > { %1567 = vbcast.lane.b32.xlu1 %v1561_v47, 264  ;;  %1563 = vbcast.lane.b32.xlu0 %v1561_v47, 256 }
 0x2a4   : > { %1802 = vbcast.lane.b32.xlu1 %v1796_v48, 264  ;;  %1798 = vbcast.lane.b32.xlu0 %v1796_v48, 256 }
 0x2a8   : > { %1813 = vbcast.lane.b32.xlu1 %v1807_v49, 264  ;;  %1809 = vbcast.lane.b32.xlu0 %v1807_v49, 256 }
 0x2ac   : > { %1364 = vbcast.lane.b32.xlu1 %v1358_v50, 264  ;;  %1360 = vbcast.lane.b32.xlu0 %v1358_v50, 256  ;;  %v1851_v50 = vrot.slane %v6563_v38, %v6517_v20 }
 0x2b0   : > { %1578 = vbcast.lane.b32.xlu1 %v1572_v51, 264  ;;  %1574 = vbcast.lane.b32.xlu0 %v1572_v51, 256 }
 0x2b4   : > { %1375 = vbcast.lane.b32.xlu1 %v1369_v52, 264  ;;  %1371 = vbcast.lane.b32.xlu0 %v1369_v52, 256 }
 0x2b8   : > { %1589 = vbcast.lane.b32.xlu1 %v1583_v53, 264  ;;  %1585 = vbcast.lane.b32.xlu0 %v1583_v53, 256 }
 0x2bc   : > { %1824 = vbcast.lane.b32.xlu1 %v1818_v54, 264  ;;  %1820 = vbcast.lane.b32.xlu0 %v1818_v54, 256 }
 0x2be   : > { %v1487_v56 = vpop.permute.xlu1 %1486  ;;  %v1273_v57 = vpop.permute.xlu0 %1272 }
 0x2bf   : > { %v1661_v10 = vmul.f32 %v6600_v3, %v1487_v56  ;;  %v1447_v11 = vmul.f32 %v6603_v4, %v1273_v57 }
 0x2c0   : > { %1835 = vbcast.lane.b32.xlu1 %v1829_v55, 264  ;;  %1831 = vbcast.lane.b32.xlu0 %v1829_v55, 256 }
 0x2c1   : > { %v1693_v21 = vadd.f32 %v1661_v10, %v1447_v11 }
 0x2c2   : > { %v1491_v59 = vpop.permute.xlu1 %1490  ;;  %v1277_v60 = vpop.permute.xlu0 %1276 }
 0x2c3   : > { %v1662_v12 = vmul.f32 %v6600_v3, %v1491_v59  ;;  %v1448_v13 = vmul.f32 %v6603_v4, %v1277_v60  ;;  %v1402_v59 = vrot.slane %v6528_v25, %v6536_v28 }
 0x2c4   : > { %1386 = vbcast.lane.b32.xlu1 %v1380_v58, 264  ;;  %1382 = vbcast.lane.b32.xlu0 %v1380_v58, 256 }
 0x2c5   : > { %v1694_v22 = vadd.f32 %v1662_v12, %v1448_v13 }
 0x2c6   : > { %v1288_v63 = vpop.permute.xlu1 %1287  ;;  %v1284_v0 = vpop.permute.xlu0 %1283 }
 0x2c7   : > { %v1450_v27 = vmul.f32 %v6603_v4, %v1288_v63  ;;  %v1449_v31 = vmul.f32 %v6603_v4, %v1284_v0  ;;  %v1616_v0 = vrot.slane %v6540_v29, %v6536_v28 }
 0x2c8   : > { %1600 = vbcast.lane.b32.xlu1 %v1594_v62, 264  ;;  %1596 = vbcast.lane.b32.xlu0 %v1594_v62, 256 }
 0x2ca   : > { %v1502_v8 = vpop.permute.xlu1 %1501  ;;  %v1498_v9 = vpop.permute.xlu0 %1497 }
 0x2cb   : > { %v1664_v15 = vmul.f32 %v6600_v3, %v1502_v8  ;;  %v1663_v17 = vmul.f32 %v6600_v3, %v1498_v9  ;;  %v1413_v9 = vrot.slane %v6528_v25, %v6554_v35 }
 0x2cc   : > { %1397 = vbcast.lane.b32.xlu1 %v1391_v5, 264  ;;  %1393 = vbcast.lane.b32.xlu0 %v1391_v5, 256 }
 0x2cd   : > { %v1696_v42 = vadd.f32 %v1664_v15, %v1450_v27  ;;  %v1695_v43 = vadd.f32 %v1663_v17, %v1449_v31 }
 0x2ce   : > { %v1737_v18 = vpop.permute.xlu1 %1736  ;;  %v1733_v19 = vpop.permute.xlu0 %1732 }
 0x2cf   : > { %v1908_v23 = vmul.f32 %v6608_v6, %v1737_v18  ;;  %v1907_v24 = vmul.f32 %v6608_v6, %v1733_v19 }
 0x2d0   : > { %1611 = vbcast.lane.b32.xlu1 %v1605_v14, 264  ;;  %1607 = vbcast.lane.b32.xlu0 %v1605_v14, 256  ;;  %v1627_v14 = vrot.slane %v6540_v29, %v6554_v35 }
 0x2d1   : > { %v1940_v37 = vadd.f32 %v1908_v23, %v1694_v22  ;;  %v1939_v40 = vadd.f32 %v1907_v24, %v1693_v21 }
 0x2d2   : > { %v1748_v44 = vpop.permute.xlu1 %1747  ;;  %v1744_v45 = vpop.permute.xlu0 %1743 }
 0x2d3   : > { %v1910_v46 = vmul.f32 %v6608_v6, %v1748_v44  ;;  %v1909_v47 = vmul.f32 %v6608_v6, %v1744_v45  ;;  %v1977_v48 = vadd.f32 %v6622_v32, %v1939_v40  ;;  %v1978_v49 = vadd.f32 %v6622_v32, %v1940_v37 }
 0x2d4   : > { %1846 = vbcast.lane.b32.xlu1 %v1840_v34, 264  ;;  %1842 = vbcast.lane.b32.xlu0 %v1840_v34, 256  ;;  %v1862_v34 = vrot.slane %v6563_v38, %v6536_v28 }
 0x2d5   : > { %v1942_v16 = vadd.f32 %v1910_v46, %v1696_v42  ;;  %v1941_v51 = vadd.f32 %v1909_v47, %v1695_v43  ;;  %v2009_v52 = vmax.f32 %v1977_v48, 0.0  ;;  %v2010_v53 = vmax.f32 %v1978_v49, 0.0 }
 0x2d6   : > { %v1299_v54 = vpop.permute.xlu1 %1298  ;;  %v1295_v55 = vpop.permute.xlu0 %1294 }
 0x2d7   : > { %v1980_v56 = vadd.f32 %v6622_v32, %v1942_v16  ;;  %v1979_v57 = vadd.f32 %v6622_v32, %v1941_v51  ;;  %v2041_v58 = vpack.c.bf16 %v2010_v53, %v2009_v52  ;;  %v1452_v15 = vmul.f32 %v6603_v4, %v1299_v54 }
 0x2d8   : > { %1857 = vbcast.lane.b32.xlu1 %v1851_v50, 264  ;;  %1853 = vbcast.lane.b32.xlu0 %v1851_v50, 256  ;;  %v1451_v17 = vmul.f32 %v6603_v4, %v1295_v55  ;;  %v1873_v50 = vrot.slane %v6563_v38, %v6554_v35 }
 0x2d9   : > { %v2012_v60 = vmax.f32 %v1980_v56, 0.0  ;;  %v2011_v61 = vmax.f32 %v1979_v57, 0.0  ;;  %4743 = vmatprep.mubr.msk.bf16.mxu0 %vm2096_vm0, %v2041_v58 }
 0x2da   : > { %v1513_v20 = vpop.permute.xlu1 %1512  ;;  %v1509_v62 = vpop.permute.xlu0 %1508 }
 0x2db   : > { %v2042_v63 = vpack.c.bf16 %v2012_v60, %v2011_v61  ;;  %v1666_v12 = vmul.f32 %v6600_v3, %v1513_v20  ;;  %v1665_v13 = vmul.f32 %v6600_v3, %v1509_v62 }
 0x2dc   : > { %1408 = vbcast.lane.b32.xlu1 %v1402_v59, 264  ;;  %1404 = vbcast.lane.b32.xlu0 %v1402_v59, 256 }
 0x2dd   : > { %4744 = vmatmul.mubr.msk.bf16.vlgmr.msra.gmra.mrb[0].mxu0 %vm2096_vm0, %v2042_v63  ;;  %v1698_v22 = vadd.f32 %v1666_v12, %v1452_v15  ;;  %v1697_v23 = vadd.f32 %v1665_v13, %v1451_v17 }
 0x2de   : > { %v1310_v5 = vpop.permute.xlu1 %1309  ;;  %v1306_v8 = vpop.permute.xlu0 %1305 }
 0x2df   : > { %v1454_v31 = vmul.f32 %v6603_v4, %v1310_v5  ;;  %v1453_v29 = vmul.f32 %v6603_v4, %v1306_v8 }
 0x2e0   : > { %1622 = vbcast.lane.b32.xlu1 %v1616_v0, 264  ;;  %1618 = vbcast.lane.b32.xlu0 %v1616_v0, 256 }
 0x2e2   : > { %v1524_v10 = vpop.permute.xlu1 %1523  ;;  %v1520_v11 = vpop.permute.xlu0 %1519 }
 0x2e3   : > { %v1668_v18 = vmul.f32 %v6600_v3, %v1524_v10  ;;  %v1667_v19 = vmul.f32 %v6600_v3, %v1520_v11 }
 0x2e4   : > { %1419 = vbcast.lane.b32.xlu1 %v1413_v9, 264  ;;  %1415 = vbcast.lane.b32.xlu0 %v1413_v9, 256 }
 0x2e5   : > { %v1700_v42 = vadd.f32 %v1668_v18, %v1454_v31  ;;  %v1699_v43 = vadd.f32 %v1667_v19, %v1453_v29 }
 0x2e6   : > { %v1759_v25 = vpop.permute.xlu1 %1758  ;;  %v1755_v21 = vpop.permute.xlu0 %1754 }
 0x2e7   : > { %v1912_v24 = vmul.f32 %v6608_v6, %v1759_v25  ;;  %v1911_v27 = vmul.f32 %v6608_v6, %v1755_v21 }
 0x2e8   : > { %1633 = vbcast.lane.b32.xlu1 %v1627_v14, 264  ;;  %1629 = vbcast.lane.b32.xlu0 %v1627_v14, 256 }
 0x2e9   : > { %v1944_v37 = vadd.f32 %v1912_v24, %v1698_v22  ;;  %v1943_v40 = vadd.f32 %v1911_v27, %v1697_v23 }
 0x2ea   : > { %v1770_v44 = vpop.permute.xlu1 %1769  ;;  %v1766_v45 = vpop.permute.xlu0 %1765 }
 0x2eb   : > { %v1982_v46 = vadd.f32 %v6622_v32, %v1944_v37  ;;  %v1981_v47 = vadd.f32 %v6622_v32, %v1943_v40  ;;  %v1914_v48 = vmul.f32 %v6608_v6, %v1770_v44  ;;  %v1913_v49 = vmul.f32 %v6608_v6, %v1766_v45 }
 0x2ec   : > { %1868 = vbcast.lane.b32.xlu1 %v1862_v34, 264  ;;  %1864 = vbcast.lane.b32.xlu0 %v1862_v34, 256 }
 0x2ed   : > { %v2014_v28 = vmax.f32 %v1982_v46, 0.0  ;;  %v2013_v16 = vmax.f32 %v1981_v47, 0.0  ;;  %v1946_v51 = vadd.f32 %v1914_v48, %v1700_v42  ;;  %v1945_v52 = vadd.f32 %v1913_v49, %v1699_v43  ;;  %v5004_v42 = vld [vmem:[#allocation20 + $0x4] ss:$8 sps:$4 sm:$0xff]  }
 0x2ee   : > { %v1321_v53 = vpop.permute.xlu1 %1320  ;;  %v1317_v54 = vpop.permute.xlu0 %1316  ;;  %2462 = vmatprep.subr.bf16.mxu1 %v5004_v42 }
 0x2ef   : > { %v2043_v55 = vpack.c.bf16 %v2014_v28, %v2013_v16  ;;  %v1984_v56 = vadd.f32 %v6622_v32, %v1946_v51  ;;  %v1983_v57 = vadd.f32 %v6622_v32, %v1945_v52  ;;  %v1455_v8 = vmul.f32 %v6603_v4, %v1317_v54 }
 0x2f0   : > { %1879 = vbcast.lane.b32.xlu1 %v1873_v50, 264  ;;  %1875 = vbcast.lane.b32.xlu0 %v1873_v50, 256 }
 0x2f1   : > { %v2016_v58 = vmax.f32 %v1984_v56, 0.0  ;;  %v2015_v59 = vmax.f32 %v1983_v57, 0.0  ;;  %4747 = vmatprep.mubr.msk.bf16.mxu0 %vm2096_vm0, %v2043_v55 }
 0x2f2   : > { %v1535_v60 = vpop.permute.xlu1 %1534  ;;  %v1531_v61 = vpop.permute.xlu0 %1530 }
 0x2f3   : > { %v2044_v35 = vpack.c.bf16 %v2016_v58, %v2015_v59  ;;  %v1670_v0 = vmul.f32 %v6600_v3, %v1535_v60  ;;  %v1669_v5 = vmul.f32 %v6600_v3, %v1531_v61 }
 0x2f4   : > { %1430 = vbcast.lane.b32.xlu1 %v6531_v26, 264  ;;  %1426 = vbcast.lane.b32.xlu0 %v6531_v26, 256  ;;  %v1456_v26 = vmul.f32 %v6603_v4, %v1321_v53 }
 0x2f5   : > { %4748 = vmatmul.mubr.msk.bf16.gmra.mrb[4].mxu0 %vm2096_vm0, %v2044_v35  ;;  %v1701_v13 = vadd.f32 %v1669_v5, %v1455_v8 }
 0x2f6   : > { %v1332_v38 = vpop.permute.xlu1 %1331  ;;  %v1328_v20 = vpop.permute.xlu0 %1327  ;;  %v1702_v12 = vadd.f32 %v1670_v0, %v1456_v26 }
 0x2f7   : > { %v1458_v17 = vmul.f32 %v6603_v4, %v1332_v38 }
 0x2f8   : > { %1644 = vbcast.lane.b32.xlu1 %v6543_v30, 264  ;;  %1640 = vbcast.lane.b32.xlu0 %v6543_v30, 256 }
 0x2fa   : > { %v1546_v62 = vpop.permute.xlu1 %1545  ;;  %v1542_v63 = vpop.permute.xlu0 %1541 }
 0x2fb   : > { %v1672_v9 = vmul.f32 %v6600_v3, %v1546_v62  ;;  %v1671_v10 = vmul.f32 %v6600_v3, %v1542_v63 }
 0x2fc   : > { %1441 = vbcast.lane.b32.xlu1 %v6549_v33, 264  ;;  %1437 = vbcast.lane.b32.xlu0 %v6549_v33, 256  ;;  %v1457_v33 = vmul.f32 %v6603_v4, %v1328_v20 }
 0x2fd   : > { %v1704_v25 = vadd.f32 %v1672_v9, %v1458_v17 }
 0x2fe   : > { %v1781_v11 = vpop.permute.xlu1 %1780  ;;  %v1777_v30 = vpop.permute.xlu0 %1776  ;;  %v1703_v21 = vadd.f32 %v1671_v10, %v1457_v33 }
 0x2ff   : > { %v1916_v14 = vmul.f32 %v6608_v6, %v1781_v11  ;;  %v1915_v15 = vmul.f32 %v6608_v6, %v1777_v30 }
 0x300   : > { %1655 = vbcast.lane.b32.xlu1 %v6557_v36, 264  ;;  %1651 = vbcast.lane.b32.xlu0 %v6557_v36, 256 }
 0x301   : > { %v1948_v18 = vadd.f32 %v1916_v14, %v1702_v12  ;;  %v1947_v19 = vadd.f32 %v1915_v15, %v1701_v13 }
 0x302   : > { %v1792_v22 = vpop.permute.xlu1 %1791  ;;  %v1788_v23 = vpop.permute.xlu0 %1787 }
 0x303   : > { %v1986_v24 = vadd.f32 %v6622_v32, %v1948_v18  ;;  %v1985_v27 = vadd.f32 %v6622_v32, %v1947_v19  ;;  %v1918_v31 = vmul.f32 %v6608_v6, %v1792_v22  ;;  %v1917_v29 = vmul.f32 %v6608_v6, %v1788_v23 }
 0x304   : > { %1890 = vbcast.lane.b32.xlu1 %v6566_v39, 264  ;;  %1886 = vbcast.lane.b32.xlu0 %v6566_v39, 256 }
 0x305   : > { %v2018_v34 = vmax.f32 %v1986_v24, 0.0  ;;  %v2017_v36 = vmax.f32 %v1985_v27, 0.0  ;;  %v1950_v37 = vadd.f32 %v1918_v31, %v1704_v25  ;;  %v1949_v40 = vadd.f32 %v1917_v29, %v1703_v21 }
 0x306   : > { %v1343_v43 = vpop.permute.xlu1 %1342  ;;  %v1339_v44 = vpop.permute.xlu0 %1338 }
 0x307   : > { %v2045_v45 = vpack.c.bf16 %v2018_v34, %v2017_v36  ;;  %v1988_v46 = vadd.f32 %v6622_v32, %v1950_v37  ;;  %v1987_v47 = vadd.f32 %v6622_v32, %v1949_v40  ;;  %v1460_v56 = vmul.f32 %v6603_v4, %v1343_v43 }
 0x308   : > { %1901 = vbcast.lane.b32.xlu1 %v6571_v41, 264  ;;  %1897 = vbcast.lane.b32.xlu0 %v6571_v41, 256  ;;  %v1459_v41 = vmul.f32 %v6603_v4, %v1339_v44 }
 0x309   : > { %v2020_v48 = vmax.f32 %v1988_v46, 0.0  ;;  %v2019_v49 = vmax.f32 %v1987_v47, 0.0  ;;  %4751 = vmatprep.mubr.msk.bf16.mxu0 %vm2096_vm0, %v2045_v45 }
 0x30a   : > { %v1557_v39 = vpop.permute.xlu1 %1556  ;;  %v1553_v50 = vpop.permute.xlu0 %1552 }
 0x30b   : > { %v2046_v28 = vpack.c.bf16 %v2020_v48, %v2019_v49  ;;  %v1674_v54 = vmul.f32 %v6600_v3, %v1557_v39  ;;  %v1673_v55 = vmul.f32 %v6600_v3, %v1553_v50 }
 0x30d   : > { %4752 = vmatmul.mubr.msk.bf16.gmra.mrb[8].mxu0 %vm2096_vm0, %v2046_v28  ;;  %v1706_v61 = vadd.f32 %v1674_v54, %v1460_v56  ;;  %v1705_v35 = vadd.f32 %v1673_v55, %v1459_v41 }
 0x30e   : > { %v1354_v16 = vpop.permute.xlu1 %1353  ;;  %v1350_v51 = vpop.permute.xlu0 %1349 }
 0x30f   : > { %v1462_v62 = vmul.f32 %v6603_v4, %v1354_v16  ;;  %v1461_v63 = vmul.f32 %v6603_v4, %v1350_v51 }
 0x312   : > { %v1568_v52 = vpop.permute.xlu1 %1567  ;;  %v1564_v53 = vpop.permute.xlu0 %1563 }
 0x313   : > { %v1676_v57 = vmul.f32 %v6600_v3, %v1568_v52  ;;  %v1675_v58 = vmul.f32 %v6600_v3, %v1564_v53 }
 0x315   : > { %v1708_v26 = vadd.f32 %v1676_v57, %v1462_v62  ;;  %v1707_v8 = vadd.f32 %v1675_v58, %v1461_v63 }
 0x316   : > { %v1803_v59 = vpop.permute.xlu1 %1802  ;;  %v1799_v60 = vpop.permute.xlu0 %1798 }
 0x317   : > { %v1920_v38 = vmul.f32 %v6608_v6, %v1803_v59  ;;  %v1919_v20 = vmul.f32 %v6608_v6, %v1799_v60 }
 0x319   : > { %v1952_v0 = vadd.f32 %v1920_v38, %v1706_v61  ;;  %v1951_v5 = vadd.f32 %v1919_v20, %v1705_v35 }
 0x31a   : > { %v1814_v9 = vpop.permute.xlu1 %1813  ;;  %v1810_v10 = vpop.permute.xlu0 %1809 }
 0x31b   : > { %v1990_v11 = vadd.f32 %v6622_v32, %v1952_v0  ;;  %v1989_v30 = vadd.f32 %v6622_v32, %v1951_v5  ;;  %v1922_v12 = vmul.f32 %v6608_v6, %v1814_v9  ;;  %v1921_v13 = vmul.f32 %v6608_v6, %v1810_v10 }
 0x31d   : > { %v2022_v14 = vmax.f32 %v1990_v11, 0.0  ;;  %v2021_v15 = vmax.f32 %v1989_v30, 0.0  ;;  %v1954_v17 = vadd.f32 %v1922_v12, %v1708_v26  ;;  %v1953_v33 = vadd.f32 %v1921_v13, %v1707_v8  ;;  %v5002_v12 = vld [vmem:[#allocation20] ss:$8 sps:$4 sm:$0xff]  }
 0x31e   : > { %v1365_v18 = vpop.permute.xlu1 %1364  ;;  %v1361_v19 = vpop.permute.xlu0 %1360 }
 0x31f   : > { %v2047_v25 = vpack.c.bf16 %v2022_v14, %v2021_v15  ;;  %v1992_v21 = vadd.f32 %v6622_v32, %v1954_v17  ;;  %v1991_v22 = vadd.f32 %v6622_v32, %v1953_v33  ;;  %v1464_v44 = vmul.f32 %v6603_v4, %v1365_v18  ;;  %v5007_v14 = vld [vmem:[#allocation20 + $0x14] ss:$8 sps:$4 sm:$0xff]   ;;  %v5005_v33 = vld [vmem:[#allocation20 + $0x10] ss:$8 sps:$4 sm:$0xff]   ;;  %v5010_v18 = vld [vmem:[#allocation20 + $0x24] ss:$8 sps:$4 sm:$0xff]  }
 0x320   : > { %v1463_v45 = vmul.f32 %v6603_v4, %v1361_v19 }
 0x321   : > { %v2024_v23 = vmax.f32 %v1992_v21, 0.0  ;;  %v2023_v24 = vmax.f32 %v1991_v22, 0.0  ;;  %4755 = vmatprep.mubr.msk.bf16.mxu0 %vm2096_vm0, %v2047_v25  ;;  %v5008_v21 = vld [vmem:[#allocation20 + $0x20] ss:$8 sps:$4 sm:$0xff]  }
 0x322   : > { %v1579_v27 = vpop.permute.xlu1 %1578  ;;  %v1575_v31 = vpop.permute.xlu0 %1574 }
 0x323   : > { %v2048_v29 = vpack.c.bf16 %v2024_v23, %v2023_v24  ;;  %v1678_v42 = vmul.f32 %v6600_v3, %v1579_v27  ;;  %v1677_v43 = vmul.f32 %v6600_v3, %v1575_v31  ;;  %v5013_v24 = vld [vmem:[#allocation20 + $0x34] ss:$8 sps:$4 sm:$0xff]  }
 0x325   : > { %4756 = vmatmul.mubr.msk.bf16.gmra.mrb[12].mxu0 %vm2096_vm0, %v2048_v29  ;;  %v1710_v39 = vadd.f32 %v1678_v42, %v1464_v44  ;;  %v1709_v50 = vadd.f32 %v1677_v43, %v1463_v45 }
 0x326   : > { %v1376_v34 = vpop.permute.xlu1 %1375  ;;  %v1372_v36 = vpop.permute.xlu0 %1371 }
 0x327   : > { %v1466_v51 = vmul.f32 %v6603_v4, %v1376_v34  ;;  %v1465_v52 = vmul.f32 %v6603_v4, %v1372_v36 }
 0x32a   : > { %v1590_v37 = vpop.permute.xlu1 %1589  ;;  %v1586_v40 = vpop.permute.xlu0 %1585 }
 0x32b   : > { %v1680_v46 = vmul.f32 %v6600_v3, %v1590_v37  ;;  %v1679_v47 = vmul.f32 %v6600_v3, %v1586_v40  ;;  %v5011_v40 = vld [vmem:[#allocation20 + $0x30] ss:$8 sps:$4 sm:$0xff]  }
 0x32d   : > { %v1712_v55 = vadd.f32 %v1680_v46, %v1466_v51  ;;  %v1711_v56 = vadd.f32 %v1679_v47, %v1465_v52 }
 0x32e   : > { %v1825_v48 = vpop.permute.xlu1 %1824  ;;  %v1821_v49 = vpop.permute.xlu0 %1820 }
 0x32f   : > { %v1924_v28 = vmul.f32 %v6608_v6, %v1825_v48  ;;  %v1923_v16 = vmul.f32 %v6608_v6, %v1821_v49 }
 0x331   : > { %v1956_v53 = vadd.f32 %v1924_v28, %v1710_v39  ;;  %v1955_v54 = vadd.f32 %v1923_v16, %v1709_v50 }
 0x332   : > { %v1836_v41 = vpop.permute.xlu1 %1835  ;;  %v1832_v57 = vpop.permute.xlu0 %1831 }
 0x333   : > { %v1926_v58 = vmul.f32 %v6608_v6, %v1836_v41  ;;  %v1925_v59 = vmul.f32 %v6608_v6, %v1832_v57  ;;  %v1993_v60 = vadd.f32 %v6622_v32, %v1955_v54  ;;  %v1994_v61 = vadd.f32 %v6622_v32, %v1956_v53 }
 0x335   : > { %v1958_v35 = vadd.f32 %v1926_v58, %v1712_v55  ;;  %v1957_v38 = vadd.f32 %v1925_v59, %v1711_v56  ;;  %v2025_v20 = vmax.f32 %v1993_v60, 0.0  ;;  %v2026_v62 = vmax.f32 %v1994_v61, 0.0 }
 0x336   : > { %v1387_v63 = vpop.permute.xlu1 %1386  ;;  %v1383_v0 = vpop.permute.xlu0 %1382 }
 0x337   : > { %v1996_v5 = vadd.f32 %v6622_v32, %v1958_v35  ;;  %v1995_v26 = vadd.f32 %v6622_v32, %v1957_v38  ;;  %v2049_v8 = vpack.c.bf16 %v2026_v62, %v2025_v20  ;;  %v1468_v27 = vmul.f32 %v6603_v4, %v1387_v63 }
 0x338   : > { %v1467_v31 = vmul.f32 %v6603_v4, %v1383_v0 }
 0x339   : > { %v2028_v9 = vmax.f32 %v1996_v5, 0.0  ;;  %v2027_v10 = vmax.f32 %v1995_v26, 0.0  ;;  %4759 = vmatprep.mubr.msk.bf16.mxu1 %vm2096_vm0, %v2049_v8 }
 0x33a   : > { %v1601_v11 = vpop.permute.xlu1 %1600  ;;  %v1597_v30 = vpop.permute.xlu0 %1596 }
 0x33b   : > { %v2050_v13 = vpack.c.bf16 %v2028_v9, %v2027_v10  ;;  %v1682_v22 = vmul.f32 %v6600_v3, %v1601_v11  ;;  %v1681_v23 = vmul.f32 %v6600_v3, %v1597_v30 }
 0x33d   : > { %4760 = vmatmul.mubr.msk.bf16.vlgmr.msra.gmra.mrb[0].mxu1 %vm2096_vm0, %v2050_v13  ;;  %v1714_v42 = vadd.f32 %v1682_v22, %v1468_v27  ;;  %v1713_v43 = vadd.f32 %v1681_v23, %v1467_v31 }
 0x33e   : > { %v1398_v15 = vpop.permute.xlu1 %1397  ;;  %v1394_v17 = vpop.permute.xlu0 %1393  ;;  %2463 = vmatpush1.bf16.msra.mxu1 %v5002_v12 }
 0x33f   : > { %2464 = vmatprep.subr.bf16.mxu1 %v5007_v14  ;;  %v1470_v46 = vmul.f32 %v6603_v4, %v1398_v15  ;;  %v1469_v47 = vmul.f32 %v6603_v4, %v1394_v17 }
 0x342   : > { %v1612_v19 = vpop.permute.xlu1 %1611  ;;  %v1608_v25 = vpop.permute.xlu0 %1607  ;;  %2465 = vmatpush1.bf16.msra.mxu1 %v5005_v33 }
 0x343   : > { %2466 = vmatprep.subr.bf16.mxu1 %v5010_v18  ;;  %v1684_v29 = vmul.f32 %v6600_v3, %v1612_v19  ;;  %v1683_v34 = vmul.f32 %v6600_v3, %v1608_v25 }
 0x345   : > { %v1716_v39 = vadd.f32 %v1684_v29, %v1470_v46  ;;  %v1715_v50 = vadd.f32 %v1683_v34, %v1469_v47 }
 0x346   : > { %v1847_v36 = vpop.permute.xlu1 %1846  ;;  %v1843_v37 = vpop.permute.xlu0 %1842  ;;  %2467 = vmatpush1.bf16.msra.mxu1 %v5008_v21 }
 0x347   : > { %v1928_v44 = vmul.f32 %v6608_v6, %v1847_v36  ;;  %v1927_v45 = vmul.f32 %v6608_v6, %v1843_v37  ;;  %2468 = vmatprep.subr.bf16.mxu1 %v5013_v24 }
 0x349   : > { %v1960_v48 = vadd.f32 %v1928_v44, %v1714_v42  ;;  %v1959_v49 = vadd.f32 %v1927_v45, %v1713_v43 }
 0x34a   : > { %v1858_v28 = vpop.permute.xlu1 %1857  ;;  %v1854_v16 = vpop.permute.xlu0 %1853  ;;  %2469 = vmatpush1.bf16.msra.mxu1 %v5011_v40 }
 0x34b   : > { %v1998_v51 = vadd.f32 %v6622_v32, %v1960_v48  ;;  %v1997_v52 = vadd.f32 %v6622_v32, %v1959_v49  ;;  %v1930_v53 = vmul.f32 %v6608_v6, %v1858_v28  ;;  %v1929_v54 = vmul.f32 %v6608_v6, %v1854_v16 }
 0x34d   : > { %v2030_v55 = vmax.f32 %v1998_v51, 0.0  ;;  %v2029_v56 = vmax.f32 %v1997_v52, 0.0  ;;  %v1962_v41 = vadd.f32 %v1930_v53, %v1716_v39  ;;  %v1961_v57 = vadd.f32 %v1929_v54, %v1715_v50 }
 0x34e   : > { %v1409_v58 = vpop.permute.xlu1 %1408  ;;  %v1405_v59 = vpop.permute.xlu0 %1404 }
 0x34f   : > { %v2051_v60 = vpack.c.bf16 %v2030_v55, %v2029_v56  ;;  %v2000_v61 = vadd.f32 %v6622_v32, %v1962_v41  ;;  %v1999_v35 = vadd.f32 %v6622_v32, %v1961_v57  ;;  %v1472_v30 = vmul.f32 %v6603_v4, %v1409_v58 }
 0x350   : > { %v1471_v12 = vmul.f32 %v6603_v4, %v1405_v59 }
 0x351   : > { %v2032_v38 = vmax.f32 %v2000_v61, 0.0  ;;  %v2031_v20 = vmax.f32 %v1999_v35, 0.0  ;;  %4763 = vmatprep.mubr.msk.bf16.mxu1 %vm2096_vm0, %v2051_v60 }
 0x352   : > { %v1623_v62 = vpop.permute.xlu1 %1622  ;;  %v1619_v63 = vpop.permute.xlu0 %1618 }
 0x353   : > { %v2052_v0 = vpack.c.bf16 %v2032_v38, %v2031_v20  ;;  %v1686_v10 = vmul.f32 %v6600_v3, %v1623_v62  ;;  %v1685_v11 = vmul.f32 %v6600_v3, %v1619_v63 }
 0x355   : > { %4764 = vmatmul.mubr.msk.bf16.gmra.mrb[4].mxu1 %vm2096_vm0, %v2052_v0  ;;  %v1718_v33 = vadd.f32 %v1686_v10, %v1472_v30  ;;  %v1717_v18 = vadd.f32 %v1685_v11, %v1471_v12 }
 0x356   : > { %v1420_v5 = vpop.permute.xlu1 %1419  ;;  %v1416_v26 = vpop.permute.xlu0 %1415 }
 0x357   : > { %v1474_v21 = vmul.f32 %v6603_v4, %v1420_v5  ;;  %v1473_v22 = vmul.f32 %v6603_v4, %v1416_v26 }
 0x35a   : > { %v1634_v8 = vpop.permute.xlu1 %1633  ;;  %v1630_v9 = vpop.permute.xlu0 %1629 }
 0x35b   : > { %v1688_v13 = vmul.f32 %v6600_v3, %v1634_v8  ;;  %v1687_v14 = vmul.f32 %v6600_v3, %v1630_v9 }
 0x35d   : > { %v1720_v27 = vadd.f32 %v1688_v13, %v1474_v21  ;;  %v1719_v31 = vadd.f32 %v1687_v14, %v1473_v22 }
 0x35e   : > { %v1869_v15 = vpop.permute.xlu1 %1868  ;;  %v1865_v17 = vpop.permute.xlu0 %1864 }
 0x35f   : > { %v1932_v19 = vmul.f32 %v6608_v6, %v1869_v15  ;;  %v1931_v25 = vmul.f32 %v6608_v6, %v1865_v17 }
 0x361   : > { %v1964_v23 = vadd.f32 %v1932_v19, %v1718_v33  ;;  %v1963_v24 = vadd.f32 %v1931_v25, %v1717_v18 }
 0x362   : > { %v1880_v29 = vpop.permute.xlu1 %1879  ;;  %v1876_v34 = vpop.permute.xlu0 %1875 }
 0x363   : > { %v2002_v36 = vadd.f32 %v6622_v32, %v1964_v23  ;;  %v2001_v37 = vadd.f32 %v6622_v32, %v1963_v24  ;;  %v1934_v40 = vmul.f32 %v6608_v6, %v1880_v29  ;;  %v1933_v42 = vmul.f32 %v6608_v6, %v1876_v34 }
 0x365   : > { %v2034_v43 = vmax.f32 %v2002_v36, 0.0  ;;  %v2033_v44 = vmax.f32 %v2001_v37, 0.0  ;;  %v1966_v45 = vadd.f32 %v1934_v40, %v1720_v27  ;;  %v1965_v46 = vadd.f32 %v1933_v42, %v1719_v31  ;;  %v6788_v36 = vld [vmem:[%s6426_s23] sm:$0xff]   ;;  %s4031_s23 = scalar_lea.sflag [#allocation4], %s6422_s15 }
 0x366   : > { %v1431_v47 = vpop.permute.xlu1 %1430  ;;  %v1427_v48 = vpop.permute.xlu0 %1426  ;;  %v5759_v31 = vmov 1966171168   ;;  %v6791_v37 = vunpack.c.l.bf16 %v6788_v36 }
 0x367   : > { %v2053_v49 = vpack.c.bf16 %v2034_v43, %v2033_v44  ;;  %v2004_v39 = vadd.f32 %v6622_v32, %v1966_v45  ;;  %v2003_v50 = vadd.f32 %v6622_v32, %v1965_v46  ;;  %v1476_v59 = vmul.f32 %v6603_v4, %v1431_v47  ;;  %v4583_v44 = vld [vmem:[%s6434_s27 + $0x8] sm:$0xff]   ;;  %v4516_v46 = vld [vmem:[%s6434_s27] sm:$0xff]  }
 0x368   : > { %v1475_v60 = vmul.f32 %v6603_v4, %v1427_v48  ;;  %v1055_v29 = vunpack.c.l.s4 %v5759_v31  ;;  %v4521_v47 = vunpack.c.l.bf16 %v4583_v44  ;;  %v1053_v31 = vcombine.high %v6791_v37, %v6791_v37 }
 0x369   : > { %v2036_v28 = vmax.f32 %v2004_v39, 0.0  ;;  %v2035_v16 = vmax.f32 %v2003_v50, 0.0  ;;  %4767 = vmatprep.mubr.msk.bf16.mxu1 %vm2096_vm0, %v2053_v49  ;;  %v4522_v49 = vunpack.c.h.bf16 %v4583_v44  ;;  %v6803_v39 = vld [vmem:[#allocation19] ss:$0 sm:$0xff]  ;;  %v4517_v50 = vunpack.c.l.bf16 %v4516_v46 }
 0x36a   : > { %v1645_v51 = vpop.permute.xlu1 %1644  ;;  %v1641_v52 = vpop.permute.xlu0 %1640  ;;  %v1056_v34 = vunpack.c.0.s8 %v1055_v29 }
 0x36b   : > { %v2054_v53 = vpack.c.bf16 %v2036_v28, %v2035_v16  ;;  %v1690_v57 = vmul.f32 %v6600_v3, %v1645_v51  ;;  %v1689_v58 = vmul.f32 %v6600_v3, %v1641_v52  ;;  %v4518_v28 = vunpack.c.h.bf16 %v4516_v46  ;;  %v4587_v46 = vld [vmem:[%s6434_s27 + $0x28] sm:$0xff]  }
 0x36d   : > { %4768 = vmatmul.mubr.msk.bf16.gmra.mrb[8].mxu1 %vm2096_vm0, %v2054_v53  ;;  %v1722_v62 = vadd.f32 %v1690_v57, %v1476_v59  ;;  %v1721_v63 = vadd.f32 %v1689_v58, %v1475_v60 }
 0x36e   : > { %v1442_v54 = vpop.permute.xlu1 %1441  ;;  %v1438_v55 = vpop.permute.xlu0 %1437 }
 0x36f   : > { %v1478_v26 = vmul.f32 %v6603_v4, %v1442_v54  ;;  %v1477_v8 = vmul.f32 %v6603_v4, %v1438_v55 }
 0x372   : > { %v1656_v56 = vpop.permute.xlu1 %1655  ;;  %v1652_v41 = vpop.permute.xlu0 %1651 }
 0x373   : > { %v1692_v61 = vmul.f32 %v6600_v3, %v1656_v56  ;;  %v1691_v35 = vmul.f32 %v6600_v3, %v1652_v41 }
 0x375   : > { %v1724_v11 = vadd.f32 %v1692_v61, %v1478_v26  ;;  %v1723_v30 = vadd.f32 %v1691_v35, %v1477_v8  ;;  %v4584_v8 = vld [vmem:[%s6434_s27 + $0x10] sm:$0xff]  }
 0x376   : > { %v1891_v38 = vpop.permute.xlu1 %1890  ;;  %v1887_v20 = vpop.permute.xlu0 %1886 }
 0x377   : > { %v1936_v0 = vmul.f32 %v6608_v6, %v1891_v38  ;;  %v1935_v5 = vmul.f32 %v6608_v6, %v1887_v20 }
 0x379   : > { %v1968_v9 = vadd.f32 %v1936_v0, %v1722_v62  ;;  %v1967_v10 = vadd.f32 %v1935_v5, %v1721_v63  ;;  %v4585_v5 = vld [vmem:[%s6434_s27 + $0x18] sm:$0xff]  }
 0x37a   : > { %v1902_v12 = vpop.permute.xlu1 %1901  ;;  %v1898_v13 = vpop.permute.xlu0 %1897 }
 0x37b   : > { %v2006_v3 = vadd.f32 %v6622_v32, %v1968_v9  ;;  %v2005_v14 = vadd.f32 %v6622_v32, %v1967_v10  ;;  %v1938_v15 = vmul.f32 %v6608_v6, %v1902_v12  ;;  %v1937_v17 = vmul.f32 %v6608_v6, %v1898_v13 }
 0x37c   : > { %v5758_v6 = vmov 0   ;;  %v4529_v9 = vunpack.c.l.bf16 %v4585_v5  ;;  %v4526_v13 = vunpack.c.h.bf16 %v4584_v8 }
 0x37d   : > { %v2038_v33 = vmax.f32 %v2006_v3, 0.0  ;;  %v2037_v18 = vmax.f32 %v2005_v14, 0.0  ;;  %v1970_v19 = vadd.f32 %v1938_v15, %v1724_v11  ;;  %v1969_v25 = vadd.f32 %v1937_v17, %v1723_v30 }
 0x37e   : > { %v4530_v11 = vunpack.c.h.bf16 %v4585_v5  ;;  %v4525_v30 = vunpack.c.l.bf16 %v4584_v8 }
 0x37f   : > { %v2055_v4 = vpack.c.bf16 %v2038_v33, %v2037_v18  ;;  %v2008_v21 = vadd.f32 %v6622_v32, %v1970_v19  ;;  %v2007_v22 = vadd.f32 %v6622_v32, %v1969_v25  ;;  %v6794_v32 = vsub.s32 %v1056_v34, %v6477_v1 }
 0x381   : > { %v2040_v23 = vmax.f32 %v2008_v21, 0.0  ;;  %v2039_v24 = vmax.f32 %v2007_v22, 0.0  ;;  %4771 = vmatprep.mubr.msk.bf16.mxu1 %vm2096_vm0, %v2055_v4  ;;  %v1060_v40 = vrot.slane %v6791_v37, %v6794_v32 }
 0x383   : > { %v2056_v27 = vpack.c.bf16 %v2040_v23, %v2039_v24  ;;  %v1068_v42 = vcombine.high %v1060_v40, %v1060_v40  ;;  %v1076_v45 = vrot.slane %v1060_v40, %v6794_v32 }
 0x385   : > { %4772 = vmatmul.mubr.msk.bf16.gmra.mrb[12].mxu1 %vm2096_vm0, %v2056_v27  ;;  %v1090_v43 = vrot.slane %v1068_v42, %v6794_v32  ;;  %v1154_v1 = vrot.slane %v1076_v45, %v6480_v2  ;;  %v1098_v26 = vcombine.high %v1076_v45, %v1076_v45 }
 0x386   : > { %2494 = vmatprep.mubr.bf16.mxu1 %v5758_v6 }
 0x387   : > { %v1158_v48 = vrot.slane %v1090_v43, %v6480_v2  ;;  %v1231_v55 = vsub.f32 %v1154_v1, %v4517_v50  ;;  %v1232_v57 = vsub.f32 %v1154_v1, %v4518_v28  ;;  %v1100_v0 = vcombine.high %v1090_v43, %v1090_v43 }
 0x388   : > { %v1162_v12 = vrot.slane %v1098_v26, %v6480_v2  ;;  %v1067_v43 = vrot.slane %v1053_v31, %v6794_v32  ;;  %v4538_v50 = vunpack.c.h.bf16 %v4587_v46 }
 0x389   : > { %v1233_v51 = vsub.f32 %v1158_v48, %v4521_v47  ;;  %v1234_v54 = vsub.f32 %v1158_v48, %v4522_v49  ;;  %v1166_v10 = vrot.slane %v1100_v0, %v6480_v2  ;;  %v4586_v47 = vld [vmem:[%s6434_s27 + $0x20] sm:$0xff]   ;;  %v4537_v48 = vunpack.c.l.bf16 %v4587_v46 }
 0x38a   : > { %v1235_v18 = vsub.f32 %v1162_v12, %v4525_v30  ;;  %v1236_v4 = vsub.f32 %v1162_v12, %v4526_v13  ;;  %v1069_v44 = vcombine.high %v1067_v43, %v1067_v43  ;;  %v1083_v37 = vrot.slane %v1067_v43, %v6794_v32  ;;  %v5016_v30 = vld [vmem:[#allocation23 + $0x48] sm:$0xff]   ;;  %v5018_v13 = vld [vmem:[#allocation23 + $0x50] sm:$0xff]  }
 0x38b   : > { %v1237_v14 = vsub.f32 %v1166_v10, %v4529_v9  ;;  %v1238_v33 = vsub.f32 %v1166_v10, %v4530_v11  ;;  %v4533_v1 = vunpack.c.l.bf16 %v4586_v47  ;;  %v5014_v10 = vld [vmem:[#allocation23 + $0x40] sm:$0xff]   ;;  %v5017_v12 = vld [vmem:[#allocation23 + $0x8] sm:$0xff]  }
 0x38c   : > { %v1097_v45 = vrot.slane %v1069_v44, %v6794_v32  ;;  %v1170_v28 = vrot.slane %v1083_v37, %v6480_v2  ;;  %v5015_v11 = vld [vmem:[#allocation23] sm:$0xff]   ;;  %4618 = vmatprep.subr.bf16.mxu0 %v5014_v10 }
 0x38d   : > { %4619 = vmatpush3.bf16.msra.mxu0 %v5015_v11 }
 0x38e   : > { %v1174_v49 = vrot.slane %v1097_v45, %v6480_v2  ;;  %4620 = vmatprep.subr.bf16.mxu0 %v5016_v30 }
 0x391   : > { %4621 = vmatpush3.bf16.msra.mxu0 %v5017_v12 }
 0x392   : > { %4622 = vmatprep.subr.bf16.mxu0 %v5018_v13 }
 0x3b0   : > { %v4745_v16 = vpop.f32.mrb[0].mxu0 }
 0x3b1   : > { %v6807_v52 = vadd.f32 %v4745_v16, %v6803_v39  ;;  %v2179_v53 = vpop.f32.mrb[1].mxu0  ;;  %v4534_v16 = vunpack.c.h.bf16 %v4586_v47 }
 0x3b2   : > { %v6810_v56 = vadd.f32 %v6803_v39, %v2179_v53  ;;  %v4746_v41 = vpop.f32.mrb[2].mxu0  ;;  %v1241_v53 = vsub.f32 %v1174_v49, %v4537_v48 }
 0x3b3   : > { %v6813_v58 = vadd.f32 %v4746_v41, %v6803_v39  ;;  %v2182_v59 = vpop.f32.mrb[3].mxu0  ;;  %v2308_v61 = vadd.f32 %v6807_v52, %v1233_v51  ;;  %v1242_v41 = vsub.f32 %v1174_v49, %v4538_v50 }
 0x3b4   : > { %v6816_v60 = vadd.f32 %v6803_v39, %v2182_v59  ;;  %v2306_v38 = vadd.f32 %v6810_v56, %v1231_v55 }
 0x3b5   : > { %v2309_v35 = vadd.f32 %v6813_v58, %v1234_v54 }
 0x3b6   : > { %v2307_v20 = vadd.f32 %v6816_v60, %v1232_v57  ;;  %v1239_v57 = vsub.f32 %v1170_v28, %v4533_v1  ;;  %v5024_v1 = vld [vmem:[#allocation23 + $0x68] sm:$0xff]  }
 0x3b7   : > { %v2339_v62 = vpack.c.bf16 %v2309_v35, %v2308_v61  ;;  %v1240_v35 = vsub.f32 %v1170_v28, %v4534_v16 }
 0x3b8   : > { %v2338_v63 = vpack.c.bf16 %v2307_v20, %v2306_v38 }
 0x3ba   : > { %4459 = vmatmul.mubr.msk.bf16.vlgmr.msra.gmra.mrb[16].mxu1 %vm2096_vm0, %v2338_v63 }
 0x3bb   : > { %2504 = vmatprep.mubr.bf16.mxu1 %v5758_v6 }
 0x3c2   : > { %4460 = vmatmul.mubr.msk.bf16.gmra.mrb[20].mxu1 %vm2096_vm0, %v2339_v62 }
 0x3c3   : > { %2514 = vmatprep.mubr.bf16.mxu1 %v5758_v6 }
 0x3c8   : > { %v4749_v3 = vpop.f32.mrb[4].mxu0 }
 0x3c9   : > { %v6831_v15 = vadd.f32 %v4749_v3, %v6803_v39  ;;  %v2195_v17 = vpop.f32.mrb[5].mxu0  ;;  %v1101_v3 = vcombine.high %v1097_v45, %v1097_v45 }
 0x3ca   : > { %v6834_v19 = vadd.f32 %v6803_v39, %v2195_v17  ;;  %v4750_v25 = vpop.f32.mrb[6].mxu0  ;;  %v4589_v17 = vld [vmem:[%s6434_s27 + $0x38] sm:$0xff]  }
 0x3cb   : > { %v6837_v21 = vadd.f32 %v4750_v25, %v6803_v39  ;;  %v2198_v22 = vpop.f32.mrb[7].mxu0  ;;  %v2312_v24 = vadd.f32 %v6831_v15, %v1237_v14  ;;  %v5019_v14 = vld [vmem:[#allocation23 + $0x10] sm:$0xff]  }
 0x3cc   : > { %v6840_v23 = vadd.f32 %v6803_v39, %v2198_v22  ;;  %v2310_v29 = vadd.f32 %v6834_v19, %v1235_v18  ;;  %v5020_v18 = vld [vmem:[#allocation23 + $0x58] sm:$0xff]   ;;  %v1182_v22 = vrot.slane %v1101_v3, %v6480_v2  ;;  %4623 = vmatpush3.bf16.msra.mxu0 %v5019_v14  ;;  %v5026_v14 = vld [vmem:[#allocation23 + $0x70] sm:$0xff]  }
 0x3cd   : > { %v2313_v27 = vadd.f32 %v6837_v21, %v1238_v33  ;;  %v1099_v33 = vcombine.high %v1083_v37, %v1083_v37  ;;  %v4588_v25 = vld [vmem:[%s6434_s27 + $0x30] sm:$0xff]   ;;  %4624 = vmatprep.subr.bf16.mxu0 %v5020_v18  ;;  %v5023_v37 = vld [vmem:[#allocation23 + $0x20] sm:$0xff]  }
 0x3ce   : > { %v2311_v34 = vadd.f32 %v6840_v23, %v1236_v4  ;;  %v4545_v4 = vunpack.c.l.bf16 %v4589_v17  ;;  %v4541_v31 = vunpack.c.l.bf16 %v4588_v25 }
 0x3cf   : > { %v2341_v40 = vpack.c.bf16 %v2313_v27, %v2312_v24  ;;  %v4546_v24 = vunpack.c.h.bf16 %v4589_v17  ;;  %v5021_v27 = vld [vmem:[#allocation23 + $0x18] sm:$0xff]  }
 0x3d0   : > { %v2340_v42 = vpack.c.bf16 %v2311_v34, %v2310_v29  ;;  %v1178_v29 = vrot.slane %v1099_v33, %v6480_v2  ;;  %v4542_v34 = vunpack.c.h.bf16 %v4588_v25  ;;  %v1245_v43 = vsub.f32 %v1182_v22, %v4545_v4  ;;  %4625 = vmatpush3.bf16.msra.mxu0 %v5021_v27  ;;  %v5027_v33 = vld [vmem:[#allocation23 + $0x30] sm:$0xff]  }
 0x3d1   : > { %v1246_v46 = vsub.f32 %v1182_v22, %v4546_v24 }
 0x3d2   : > { %4461 = vmatmul.mubr.msk.bf16.gmra.mrb[24].mxu1 %vm2096_vm0, %v2340_v42  ;;  %v1243_v47 = vsub.f32 %v1178_v29, %v4541_v31  ;;  %v1244_v50 = vsub.f32 %v1178_v29, %v4542_v34 }
 0x3d3   : > { %2524 = vmatprep.mubr.bf16.mxu1 %v5758_v6 }
 0x3da   : > { %4462 = vmatmul.mubr.msk.bf16.gmra.mrb[28].mxu1 %vm2096_vm0, %v2341_v40  ;;  %v5022_v40 = vld [vmem:[#allocation23 + $0x60] sm:$0xff]  }
 0x3db   : > { %2534 = vmatprep.mubr.bf16.mxu1 %v5758_v6  ;;  %4626 = vmatprep.subr.bf16.mxu0 %v5022_v40 }
 0x3dc   : > { %4627 = vmatpush3.bf16.msra.mxu0 %v5023_v37 }
 0x3dd   : > { %4628 = vmatprep.subr.bf16.mxu0 %v5024_v1 }
 0x3e0   : > { %v4753_v51 = vpop.f32.mrb[8].mxu0 }
 0x3e1   : > { %v6860_v54 = vadd.f32 %v4753_v51, %v6803_v39  ;;  %v2211_v55 = vpop.f32.mrb[9].mxu0 }
 0x3e2   : > { %v6863_v59 = vadd.f32 %v6803_v39, %v2211_v55  ;;  %v4754_v61 = vpop.f32.mrb[10].mxu0 }
 0x3e3   : > { %v6866_v38 = vadd.f32 %v4754_v61, %v6803_v39  ;;  %v2214_v20 = vpop.f32.mrb[11].mxu0  ;;  %v2316_v63 = vadd.f32 %v6860_v54, %v1241_v53 }
 0x3e4   : > { %v6869_v62 = vadd.f32 %v6803_v39, %v2214_v20  ;;  %v2314_v5 = vadd.f32 %v6863_v59, %v1239_v57 }
 0x3e5   : > { %v2317_v0 = vadd.f32 %v6866_v38, %v1242_v41  ;;  %v6898_v41 = vunpack.c.h.bf16 %v6788_v36  ;;  %v4591_v36 = vld [vmem:[%s6434_s27 + $0x48] sm:$0xff]  }
 0x3e6   : > { %v2315_v26 = vadd.f32 %v6869_v62, %v1240_v35  ;;  %v4553_v10 = vunpack.c.l.bf16 %v4591_v36  ;;  %v4554_v30 = vunpack.c.h.bf16 %v4591_v36 }
 0x3e7   : > { %v2343_v8 = vpack.c.bf16 %v2317_v0, %v2316_v63  ;;  %v1109_v63 = vrot.slane %v6898_v41, %v6794_v32 }
 0x3e8   : > { %v2342_v9 = vpack.c.bf16 %v2315_v26, %v2314_v5 }
 0x3e9   : > { %v1117_v0 = vcombine.high %v1109_v63, %v1109_v63  ;;  %v1125_v26 = vrot.slane %v1109_v63, %v6794_v32 }
 0x3ea   : > { %4463 = vmatmul.mubr.msk.bf16.gmra.mrb[32].mxu1 %vm2096_vm0, %v2342_v9  ;;  %v5025_v9 = vld [vmem:[#allocation23 + $0x28] sm:$0xff]  }
 0x3eb   : > { %2544 = vmatprep.mubr.bf16.mxu1 %v5758_v6  ;;  %v1139_v5 = vrot.slane %v1117_v0, %v6794_v32  ;;  %v1186_v13 = vrot.slane %v1125_v26, %v6480_v2  ;;  %4629 = vmatpush3.bf16.msra.mxu0 %v5025_v9 }
 0x3ec   : > { %4630 = vmatprep.subr.bf16.mxu0 %v5026_v14 }
 0x3ed   : > { %v1190_v11 = vrot.slane %v1139_v5, %v6480_v2 }
 0x3ef   : > { %v1249_v18 = vsub.f32 %v1190_v11, %v4553_v10  ;;  %v1250_v22 = vsub.f32 %v1190_v11, %v4554_v30  ;;  %4631 = vmatpush3.bf16.msra.mxu0 %v5027_v33 }
 0x3f2   : > { %4464 = vmatmul.mubr.msk.bf16.gmra.mrb[36].mxu1 %vm2096_vm0, %v2343_v8  ;;  %v4590_v8 = vld [vmem:[%s6434_s27 + $0x40] sm:$0xff]  }
 0x3f3   : > { %2554 = vmatprep.mubr.bf16.mxu1 %v5758_v6  ;;  %v4549_v12 = vunpack.c.l.bf16 %v4590_v8  ;;  %v4550_v3 = vunpack.c.h.bf16 %v4590_v8 }
 0x3f5   : > { %v1247_v24 = vsub.f32 %v1186_v13, %v4549_v12  ;;  %v1248_v29 = vsub.f32 %v1186_v13, %v4550_v3 }
 0x3f8   : > { %v4757_v42 = vpop.f32.mrb[12].mxu0 }
 0x3f9   : > { %v6884_v44 = vadd.f32 %v4757_v42, %v6803_v39  ;;  %v2227_v45 = vpop.f32.mrb[13].mxu0  ;;  %v5028_v42 = vld [vmem:[#allocation23 + $0x78] sm:$0xff]  }
 0x3fa   : > { %v6887_v48 = vadd.f32 %v6803_v39, %v2227_v45  ;;  %v4758_v49 = vpop.f32.mrb[14].mxu0  ;;  %v5029_v45 = vld [vmem:[#allocation23 + $0x38] sm:$0xff]   ;;  %4632 = vmatprep.subr.bf16.mxu0 %v5028_v42 }
 0x3fb   : > { %v6890_v28 = vadd.f32 %v4758_v49, %v6803_v39  ;;  %v2230_v16 = vpop.f32.mrb[15].mxu0  ;;  %v2320_v53 = vadd.f32 %v6884_v44, %v1245_v43  ;;  %4633 = vmatpush3.bf16.msra.mxu0 %v5029_v45 }
 0x3fc   : > { %v6893_v51 = vadd.f32 %v6803_v39, %v2230_v16  ;;  %v2318_v57 = vadd.f32 %v6887_v48, %v1243_v47  ;;  %v1149_v16 = vcombine.high %v1139_v5, %v1139_v5 }
 0x3fd   : > { %v2321_v55 = vadd.f32 %v6890_v28, %v1246_v46 }
 0x3fe   : > { %v2319_v61 = vadd.f32 %v6893_v51, %v1244_v50 }
 0x3ff   : > { %v2345_v35 = vpack.c.bf16 %v2321_v55, %v2320_v53  ;;  %v4593_v53 = vld [vmem:[%s6434_s27 + $0x58] sm:$0xff]   ;;  %v1147_v55 = vcombine.high %v1125_v26, %v1125_v26 }
 0x400   : > { %v2344_v20 = vpack.c.bf16 %v2319_v61, %v2318_v57  ;;  %v4592_v57 = vld [vmem:[%s6434_s27 + $0x50] sm:$0xff]   ;;  %v4561_v61 = vunpack.c.l.bf16 %v4593_v53 }
 0x401   : > { %v4557_v63 = vunpack.c.l.bf16 %v4592_v57  ;;  %v1194_v0 = vrot.slane %v1147_v55, %v6480_v2  ;;  %v4558_v36 = vunpack.c.h.bf16 %v4592_v57 }
 0x402   : > { %4465 = vmatmul.mubr.msk.bf16.gmra.mrb[40].mxu1 %vm2096_vm0, %v2344_v20  ;;  %v4562_v20 = vunpack.c.h.bf16 %v4593_v53 }
 0x403   : > { %2564 = vmatprep.mubr.bf16.mxu1 %v5758_v6  ;;  %v1251_v30 = vsub.f32 %v1194_v0, %v4557_v63  ;;  %v1252_v13 = vsub.f32 %v1194_v0, %v4558_v36 }
 0x40a   : > { %4466 = vmatmul.mubr.msk.bf16.gmra.mrb[44].mxu1 %vm2096_vm0, %v2345_v35  ;;  %v1198_v35 = vrot.slane %v1149_v16, %v6480_v2 }
 0x40b   : > { %2574 = vmatprep.mubr.bf16.mxu1 %v5758_v6 }
 0x40c   : > { %v1253_v9 = vsub.f32 %v1198_v35, %v4561_v61  ;;  %v1254_v11 = vsub.f32 %v1198_v35, %v4562_v20 }
 0x410   : > { %v4761_v17 = vpop.f32.mrb[0].mxu1 }
 0x411   : > { %v6915_v25 = vadd.f32 %v4761_v17, %v6803_v39  ;;  %v2243_v4 = vpop.f32.mrb[1].mxu1 }
 0x412   : > { %v6918_v27 = vadd.f32 %v6803_v39, %v2243_v4  ;;  %v4762_v31 = vpop.f32.mrb[2].mxu1  ;;  %v1102_v4 = vcombine.high %v6898_v41, %v6898_v41 }
 0x413   : > { %v6921_v34 = vadd.f32 %v4762_v31, %v6803_v39  ;;  %v2246_v40 = vpop.f32.mrb[3].mxu1  ;;  %v2324_v46 = vadd.f32 %v6915_v25, %v1249_v18 }
 0x414   : > { %v6924_v43 = vadd.f32 %v6803_v39, %v2246_v40  ;;  %v2322_v47 = vadd.f32 %v6918_v27, %v1247_v24  ;;  %v1116_v40 = vrot.slane %v1102_v4, %v6794_v32 }
 0x415   : > { %v2325_v37 = vadd.f32 %v6921_v34, %v1250_v22 }
 0x416   : > { %v2323_v49 = vadd.f32 %v6924_v43, %v1248_v29  ;;  %v1118_v42 = vcombine.high %v1116_v40, %v1116_v40  ;;  %v1132_v41 = vrot.slane %v1116_v40, %v6794_v32 }
 0x417   : > { %v2347_v50 = vpack.c.bf16 %v2325_v37, %v2324_v46  ;;  %v4595_v46 = vld [vmem:[%s6434_s27 + $0x68] sm:$0xff]   ;;  %v4594_v37 = vld [vmem:[%s6434_s27 + $0x60] sm:$0xff]  }
 0x418   : > { %v2346_v1 = vpack.c.bf16 %v2323_v49, %v2322_v47  ;;  %v1146_v45 = vrot.slane %v1118_v42, %v6794_v32  ;;  %v4569_v47 = vunpack.c.l.bf16 %v4595_v46  ;;  %v1202_v16 = vrot.slane %v1132_v41, %v6480_v2 }
 0x419   : > { %v4566_v53 = vunpack.c.h.bf16 %v4594_v37 }
 0x41a   : > { %4467 = vmatmul.mubr.msk.bf16.gmra.mrb[48].mxu1 %vm2096_vm0, %v2346_v1  ;;  %v1206_v49 = vrot.slane %v1146_v45, %v6480_v2  ;;  %v4565_v1 = vunpack.c.l.bf16 %v4594_v37  ;;  %v1150_v4 = vcombine.high %v1146_v45, %v1146_v45 }
 0x41b   : > { %2584 = vmatprep.mubr.bf16.mxu1 %v5758_v6 }
 0x41c   : > { %v1257_v57 = vsub.f32 %v1206_v49, %v4569_v47  ;;  %v1255_v63 = vsub.f32 %v1202_v16, %v4565_v1  ;;  %v1214_v40 = vrot.slane %v1150_v4, %v6480_v2 }
 0x422   : > { %4468 = vmatmul.mubr.msk.bf16.gmra.mrb[52].mxu1 %vm2096_vm0, %v2347_v50  ;;  %v4570_v50 = vunpack.c.h.bf16 %v4595_v46 }
 0x423   : > { %2594 = vmatprep.mubr.bf16.mxu1 %v5758_v6 }
 0x424   : > { %v1258_v20 = vsub.f32 %v1206_v49, %v4570_v50 }
 0x428   : > { %v4765_v8 = vpop.f32.mrb[4].mxu1 }
 0x429   : > { %v6939_v10 = vadd.f32 %v4765_v8, %v6803_v39  ;;  %v2259_v5 = vpop.f32.mrb[5].mxu1  ;;  %v1256_v8 = vsub.f32 %v1202_v16, %v4566_v53 }
 0x42a   : > { %v6942_v26 = vadd.f32 %v6803_v39, %v2259_v5  ;;  %v4766_v12 = vpop.f32.mrb[6].mxu1 }
 0x42b   : > { %v6945_v3 = vadd.f32 %v4766_v12, %v6803_v39  ;;  %v2262_v14 = vpop.f32.mrb[7].mxu1  ;;  %v2328_v33 = vadd.f32 %v6939_v10, %v1253_v9 }
 0x42c   : > { %v6948_v17 = vadd.f32 %v6803_v39, %v2262_v14  ;;  %v2326_v22 = vadd.f32 %v6942_v26, %v1251_v30 }
 0x42d   : > { %7824 = vst [vmem:[#allocation50_spill] sm:$0xff] %v6945_v3  ;;  %v2329_v18 = vadd.f32 %v6945_v3, %v1254_v11 }
 0x42e   : > { %7825 = vst [vmem:[#allocation51_spill] sm:$0xff] %v6948_v17  ;;  %v2327_v24 = vadd.f32 %v6948_v17, %v1252_v13 }
 0x42f   : > { %v2349_v31 = vpack.c.bf16 %v2329_v18, %v2328_v33 }
 0x430   : > { %v2348_v29 = vpack.c.bf16 %v2327_v24, %v2326_v22  ;;  %v4597_v22 = vld [vmem:[%s6434_s27 + $0x78] sm:$0xff]   ;;  %v1148_v24 = vcombine.high %v1132_v41, %v1132_v41 }
 0x431   : > { %v4578_v42 = vunpack.c.h.bf16 %v4597_v22 }
 0x432   : > { %4469 = vmatmul.mubr.msk.bf16.gmra.mrb[56].mxu1 %vm2096_vm0, %v2348_v29  ;;  %v4577_v29 = vunpack.c.l.bf16 %v4597_v22  ;;  %v1210_v37 = vrot.slane %v1148_v24, %v6480_v2 }
 0x433   : > { %2604 = vmatprep.mubr.bf16.mxu1 %v5758_v6  ;;  %v1262_v16 = vsub.f32 %v1214_v40, %v4578_v42 }
 0x434   : > { %v1261_v50 = vsub.f32 %v1214_v40, %v4577_v29 }
 0x43a   : > { %4470 = vmatmul.mubr.msk.bf16.gmra.mrb[60].mxu1 %vm2096_vm0, %v2349_v31  ;;  %v4596_v31 = vld [vmem:[%s6434_s27 + $0x70] sm:$0xff]  }
 0x43b   : > { %2614 = vmatprep.mubr.bf16.mxu1 %v5758_v6  ;;  %v4573_v46 = vunpack.c.l.bf16 %v4596_v31  ;;  %v4574_v47 = vunpack.c.h.bf16 %v4596_v31 }
 0x43d   : > { %v1259_v53 = vsub.f32 %v1210_v37, %v4573_v46 }
 0x440   : > { %v4769_v55 = vpop.f32.mrb[8].mxu1 }
 0x441   : > { %v6968_v61 = vadd.f32 %v4769_v55, %v6803_v39  ;;  %v2275_v35 = vpop.f32.mrb[9].mxu1 }
 0x442   : > { %v6971_v0 = vadd.f32 %v6803_v39, %v2275_v35  ;;  %v4770_v36 = vpop.f32.mrb[10].mxu1 }
 0x443   : > { %7826 = vst [vmem:[#allocation52_spill] sm:$0xff] %v6968_v61  ;;  %v6974_v9 = vadd.f32 %v4770_v36, %v6803_v39  ;;  %v2278_v5 = vpop.f32.mrb[11].mxu1  ;;  %v2332_v30 = vadd.f32 %v6968_v61, %v1257_v57  ;;  %v1260_v57 = vsub.f32 %v1210_v37, %v4574_v47 }
 0x444   : > { %7827 = vst [vmem:[#allocation53_spill] sm:$0xff] %v6971_v0  ;;  %v6977_v11 = vadd.f32 %v6803_v39, %v2278_v5  ;;  %v2330_v13 = vadd.f32 %v6971_v0, %v1255_v63 }
 0x445   : > { %7828 = vst [vmem:[#allocation54_spill] sm:$0xff] %v6974_v9  ;;  %v2333_v12 = vadd.f32 %v6974_v9, %v1258_v20 }
 0x446   : > { %7829 = vst [vmem:[#allocation55_spill] sm:$0xff] %v6977_v11  ;;  %v2331_v14 = vadd.f32 %v6977_v11, %v1256_v8 }
 0x447   : > { %v2351_v33 = vpack.c.bf16 %v2333_v12, %v2332_v30 }
 0x448   : > { %v2350_v18 = vpack.c.bf16 %v2331_v14, %v2330_v13  ;;  %v2362_v14 = vld [vmem:[#allocation22] sm:$0x3] }
 0x44a   : > { %4471 = vmatmul.mubr.msk.bf16.gmra.mrb[64].mxu1 %vm2096_vm0, %v2350_v18 }
 0x44b   : > { %2624 = vmatprep.mubr.bf16.mxu1 %v5758_v6 }
 0x452   : > { %4472 = vmatmul.mubr.msk.bf16.gmra.mrb[68].mxu1 %vm2096_vm0, %v2351_v33  ;;  %v7014_v33 = vrot.slane %v2362_v14, %v6495_v7 }
 0x453   : > { %2634 = vmatprep.mubr.bf16.mxu1 %v5758_v6 }
 0x458   : > { %v4773_v49 = vpop.f32.mrb[12].mxu1 }
 0x459   : > { %v6992_v1 = vadd.f32 %v4773_v49, %v6803_v39  ;;  %v2291_v45 = vpop.f32.mrb[13].mxu1 }
 0x45a   : > { %v6995_v41 = vadd.f32 %v6803_v39, %v2291_v45  ;;  %v4774_v55 = vpop.f32.mrb[14].mxu1 }
 0x45b   : > { %7830 = vst [vmem:[#allocation56_spill] sm:$0xff] %v6992_v1  ;;  %v6998_v35 = vadd.f32 %v4774_v55, %v6803_v39  ;;  %v2294_v20 = vpop.f32.mrb[15].mxu1  ;;  %v2336_v36 = vadd.f32 %v6992_v1, %v1261_v50 }
 0x45c   : > { %7831 = vst [vmem:[#allocation57_spill] sm:$0xff] %v6995_v41  ;;  %v7001_v63 = vadd.f32 %v6803_v39, %v2294_v20  ;;  %v2334_v5 = vadd.f32 %v6995_v41, %v1259_v53  ;;  %v7011_v39 = vrot.slane %v2362_v14, %v6480_v2 }
 0x45d   : > { %7832 = vst [vmem:[#allocation58_spill] sm:$0xff] %v6998_v35  ;;  %v2337_v8 = vadd.f32 %v6998_v35, %v1262_v16 }
 0x45e   : > { %7833 = vst [vmem:[#allocation59_spill] sm:$0xff] %v7001_v63  ;;  %v2335_v30 = vadd.f32 %v7001_v63, %v1260_v57 }
 0x45f   : > { %v2353_v12 = vpack.c.bf16 %v2337_v8, %v2336_v36 }
 0x460   : > { %v2352_v13 = vpack.c.bf16 %v2335_v30, %v2334_v5 }
 0x462   : > { %4473 = vmatmul.mubr.msk.bf16.gmra.mrb[72].mxu1 %vm2096_vm0, %v2352_v13 }
 0x463   : > { %2644 = vmatprep.mubr.bf16.mxu1 %v5758_v6 }
 0x46a   : > { %4474 = vmatmul.mubr.msk.bf16.gmra.mrb[76].mxu1 %vm2096_vm0, %v2353_v12 }
 0x48d   : > { %v2496_v18 = vpop.f32.mrb[16].mxu1 }
 0x48e   : > { %v2497_v4 = vadd.f32 %v2496_v18, %v7011_v39  ;;  %v2498_v22 = vpop.f32.mrb[17].mxu1 }
 0x48f   : > { %v2499_v24 = vadd.f32 %v2498_v22, %v7014_v33  ;;  %v2500_v31 = vpop.f32.mrb[18].mxu1 }
 0x490   : > { %v2501_v29 = vadd.f32 %v2500_v31, %v7011_v39  ;;  %v2502_v40 = vpop.f32.mrb[19].mxu1  ;;  %v2655_v42 = vmax.f32 %v2497_v4, 0.0 }
 0x491   : > { %v2503_v6 = vadd.f32 %v2502_v40, %v7014_v33  ;;  %v2656_v37 = vmax.f32 %v2499_v24, 0.0 }
 0x492   : > { %v2657_v46 = vmax.f32 %v2501_v29, 0.0 }
 0x493   : > { %v2658_v47 = vmax.f32 %v2503_v6, 0.0 }
 0x494   : > { %v2719_v49 = vpack.c.bf16 %v2657_v46, %v2655_v42 }
 0x495   : > { %v2720_v50 = vpack.c.bf16 %v2658_v47, %v2656_v37  ;;  %v2506_v7 = vpop.f32.mrb[20].mxu1 }
 0x496   : > { %v2507_v45 = vadd.f32 %v2506_v7, %v7011_v39  ;;  %v2508_v16 = vpop.f32.mrb[21].mxu1 }
 0x497   : > { %v2509_v53 = vadd.f32 %v2508_v16, %v7014_v33  ;;  %v2510_v55 = vpop.f32.mrb[22].mxu1  ;;  %2918 = vmatprep.mubr.bf16.mxu0 %v2720_v50 }
 0x498   : > { %v2511_v57 = vadd.f32 %v2510_v55, %v7011_v39  ;;  %v2512_v20 = vpop.f32.mrb[23].mxu1  ;;  %2919 = vmatmul.mubr.bf16.vlgmr.msra.gmra.mrb[16].mxu0 %v2719_v49  ;;  %v2659_v8 = vmax.f32 %v2507_v45, 0.0 }
 0x499   : > { %v2513_v36 = vadd.f32 %v2512_v20, %v7014_v33  ;;  %v2660_v30 = vmax.f32 %v2509_v53, 0.0 }
 0x49a   : > { %v2661_v5 = vmax.f32 %v2511_v57, 0.0 }
 0x49b   : > { %v2662_v12 = vmax.f32 %v2513_v36, 0.0 }
 0x49c   : > { %v2721_v13 = vpack.c.bf16 %v2661_v5, %v2659_v8 }
 0x49d   : > { %v2722_v14 = vpack.c.bf16 %v2662_v12, %v2660_v30 }
 0x49f   : > { %2926 = vmatprep.mubr.bf16.mxu0 %v2722_v14 }
 0x4a0   : > { %2927 = vmatmul.mubr.bf16.gmra.mrb[20].mxu0 %v2721_v13 }
 0x4a5   : > { %v2516_v18 = vpop.f32.mrb[24].mxu1 }
 0x4a6   : > { %v2517_v4 = vadd.f32 %v2516_v18, %v7011_v39  ;;  %v2518_v22 = vpop.f32.mrb[25].mxu1 }
 0x4a7   : > { %v2519_v24 = vadd.f32 %v2518_v22, %v7014_v33  ;;  %v2520_v31 = vpop.f32.mrb[26].mxu1 }
 0x4a8   : > { %v2521_v29 = vadd.f32 %v2520_v31, %v7011_v39  ;;  %v2522_v40 = vpop.f32.mrb[27].mxu1  ;;  %v2663_v42 = vmax.f32 %v2517_v4, 0.0 }
 0x4a9   : > { %v2523_v6 = vadd.f32 %v2522_v40, %v7014_v33  ;;  %v2664_v37 = vmax.f32 %v2519_v24, 0.0 }
 0x4aa   : > { %v2665_v46 = vmax.f32 %v2521_v29, 0.0 }
 0x4ab   : > { %v2666_v47 = vmax.f32 %v2523_v6, 0.0 }
 0x4ac   : > { %v2723_v49 = vpack.c.bf16 %v2665_v46, %v2663_v42 }
 0x4ad   : > { %v2724_v50 = vpack.c.bf16 %v2666_v47, %v2664_v37  ;;  %v2526_v7 = vpop.f32.mrb[28].mxu1 }
 0x4ae   : > { %v2527_v45 = vadd.f32 %v2526_v7, %v7011_v39  ;;  %v2528_v16 = vpop.f32.mrb[29].mxu1 }
 0x4af   : > { %v2529_v53 = vadd.f32 %v2528_v16, %v7014_v33  ;;  %v2530_v55 = vpop.f32.mrb[30].mxu1  ;;  %2934 = vmatprep.mubr.bf16.mxu0 %v2724_v50 }
 0x4b0   : > { %v2531_v57 = vadd.f32 %v2530_v55, %v7011_v39  ;;  %v2532_v20 = vpop.f32.mrb[31].mxu1  ;;  %2935 = vmatmul.mubr.bf16.gmra.mrb[24].mxu0 %v2723_v49  ;;  %v2667_v8 = vmax.f32 %v2527_v45, 0.0 }
 0x4b1   : > { %v2533_v36 = vadd.f32 %v2532_v20, %v7014_v33  ;;  %v2668_v30 = vmax.f32 %v2529_v53, 0.0 }
 0x4b2   : > { %v2669_v5 = vmax.f32 %v2531_v57, 0.0 }
 0x4b3   : > { %v2670_v12 = vmax.f32 %v2533_v36, 0.0 }
 0x4b4   : > { %v2725_v13 = vpack.c.bf16 %v2669_v5, %v2667_v8 }
 0x4b5   : > { %v2726_v14 = vpack.c.bf16 %v2670_v12, %v2668_v30 }
 0x4b7   : > { %2942 = vmatprep.mubr.bf16.mxu0 %v2726_v14 }
 0x4b8   : > { %2943 = vmatmul.mubr.bf16.gmra.mrb[28].mxu0 %v2725_v13 }
 0x4bd   : > { %v2536_v18 = vpop.f32.mrb[32].mxu1 }
 0x4be   : > { %v2537_v4 = vadd.f32 %v2536_v18, %v7011_v39  ;;  %v2538_v22 = vpop.f32.mrb[33].mxu1 }
 0x4bf   : > { %v2539_v24 = vadd.f32 %v2538_v22, %v7014_v33  ;;  %v2540_v31 = vpop.f32.mrb[34].mxu1 }
 0x4c0   : > { %v2541_v29 = vadd.f32 %v2540_v31, %v7011_v39  ;;  %v2542_v40 = vpop.f32.mrb[35].mxu1  ;;  %v2671_v42 = vmax.f32 %v2537_v4, 0.0 }
 0x4c1   : > { %v2543_v6 = vadd.f32 %v2542_v40, %v7014_v33  ;;  %v2672_v37 = vmax.f32 %v2539_v24, 0.0 }
 0x4c2   : > { %v2673_v46 = vmax.f32 %v2541_v29, 0.0 }
 0x4c3   : > { %v2674_v47 = vmax.f32 %v2543_v6, 0.0 }
 0x4c4   : > { %v2727_v49 = vpack.c.bf16 %v2673_v46, %v2671_v42 }
 0x4c5   : > { %v2728_v50 = vpack.c.bf16 %v2674_v47, %v2672_v37  ;;  %v2546_v7 = vpop.f32.mrb[36].mxu1 }
 0x4c6   : > { %v2547_v45 = vadd.f32 %v2546_v7, %v7011_v39  ;;  %v2548_v16 = vpop.f32.mrb[37].mxu1 }
 0x4c7   : > { %v2549_v53 = vadd.f32 %v2548_v16, %v7014_v33  ;;  %v2550_v55 = vpop.f32.mrb[38].mxu1  ;;  %2950 = vmatprep.mubr.bf16.mxu0 %v2728_v50 }
 0x4c8   : > { %v2551_v57 = vadd.f32 %v2550_v55, %v7011_v39  ;;  %v2552_v20 = vpop.f32.mrb[39].mxu1  ;;  %2951 = vmatmul.mubr.bf16.gmra.mrb[32].mxu0 %v2727_v49  ;;  %v2675_v8 = vmax.f32 %v2547_v45, 0.0 }
 0x4c9   : > { %v2553_v36 = vadd.f32 %v2552_v20, %v7014_v33  ;;  %v2676_v30 = vmax.f32 %v2549_v53, 0.0 }
 0x4ca   : > { %v2677_v5 = vmax.f32 %v2551_v57, 0.0 }
 0x4cb   : > { %v2678_v12 = vmax.f32 %v2553_v36, 0.0 }
 0x4cc   : > { %v2729_v13 = vpack.c.bf16 %v2677_v5, %v2675_v8 }
 0x4cd   : > { %v2730_v14 = vpack.c.bf16 %v2678_v12, %v2676_v30 }
 0x4cf   : > { %2958 = vmatprep.mubr.bf16.mxu0 %v2730_v14 }
 0x4d0   : > { %2959 = vmatmul.mubr.bf16.gmra.mrb[36].mxu0 %v2729_v13 }
 0x4d5   : > { %v2556_v18 = vpop.f32.mrb[40].mxu1 }
 0x4d6   : > { %v2557_v4 = vadd.f32 %v2556_v18, %v7011_v39  ;;  %v2558_v22 = vpop.f32.mrb[41].mxu1 }
 0x4d7   : > { %v2559_v24 = vadd.f32 %v2558_v22, %v7014_v33  ;;  %v2560_v31 = vpop.f32.mrb[42].mxu1 }
 0x4d8   : > { %v2561_v29 = vadd.f32 %v2560_v31, %v7011_v39  ;;  %v2562_v40 = vpop.f32.mrb[43].mxu1  ;;  %v2679_v42 = vmax.f32 %v2557_v4, 0.0 }
 0x4d9   : > { %v2563_v6 = vadd.f32 %v2562_v40, %v7014_v33  ;;  %v2680_v37 = vmax.f32 %v2559_v24, 0.0 }
 0x4da   : > { %v2681_v46 = vmax.f32 %v2561_v29, 0.0 }
 0x4db   : > { %v2682_v47 = vmax.f32 %v2563_v6, 0.0 }
 0x4dc   : > { %v2731_v49 = vpack.c.bf16 %v2681_v46, %v2679_v42 }
 0x4dd   : > { %v2732_v50 = vpack.c.bf16 %v2682_v47, %v2680_v37  ;;  %v2566_v7 = vpop.f32.mrb[44].mxu1 }
 0x4de   : > { %v2567_v45 = vadd.f32 %v2566_v7, %v7011_v39  ;;  %v2568_v16 = vpop.f32.mrb[45].mxu1 }
 0x4df   : > { %v2569_v53 = vadd.f32 %v2568_v16, %v7014_v33  ;;  %v2570_v55 = vpop.f32.mrb[46].mxu1  ;;  %2966 = vmatprep.mubr.bf16.mxu0 %v2732_v50 }
 0x4e0   : > { %v2571_v57 = vadd.f32 %v2570_v55, %v7011_v39  ;;  %v2572_v20 = vpop.f32.mrb[47].mxu1  ;;  %2967 = vmatmul.mubr.bf16.gmra.mrb[40].mxu0 %v2731_v49  ;;  %v2683_v8 = vmax.f32 %v2567_v45, 0.0 }
 0x4e1   : > { %v2573_v36 = vadd.f32 %v2572_v20, %v7014_v33  ;;  %v2684_v30 = vmax.f32 %v2569_v53, 0.0 }
 0x4e2   : > { %v2685_v5 = vmax.f32 %v2571_v57, 0.0 }
 0x4e3   : > { %v2686_v12 = vmax.f32 %v2573_v36, 0.0 }
 0x4e4   : > { %v2733_v13 = vpack.c.bf16 %v2685_v5, %v2683_v8 }
 0x4e5   : > { %v2734_v14 = vpack.c.bf16 %v2686_v12, %v2684_v30 }
 0x4e7   : > { %2974 = vmatprep.mubr.bf16.mxu0 %v2734_v14 }
 0x4e8   : > { %2975 = vmatmul.mubr.bf16.gmra.mrb[44].mxu0 %v2733_v13 }
 0x4ed   : > { %v2576_v18 = vpop.f32.mrb[48].mxu1 }
 0x4ee   : > { %v2577_v4 = vadd.f32 %v2576_v18, %v7011_v39  ;;  %v2578_v22 = vpop.f32.mrb[49].mxu1 }
 0x4ef   : > { %v2579_v24 = vadd.f32 %v2578_v22, %v7014_v33  ;;  %v2580_v31 = vpop.f32.mrb[50].mxu1 }
 0x4f0   : > { %v2581_v29 = vadd.f32 %v2580_v31, %v7011_v39  ;;  %v2582_v40 = vpop.f32.mrb[51].mxu1  ;;  %v2687_v42 = vmax.f32 %v2577_v4, 0.0 }
 0x4f1   : > { %v2583_v6 = vadd.f32 %v2582_v40, %v7014_v33  ;;  %v2688_v37 = vmax.f32 %v2579_v24, 0.0 }
 0x4f2   : > { %v2689_v46 = vmax.f32 %v2581_v29, 0.0 }
 0x4f3   : > { %v2690_v47 = vmax.f32 %v2583_v6, 0.0 }
 0x4f4   : > { %v2735_v49 = vpack.c.bf16 %v2689_v46, %v2687_v42 }
 0x4f5   : > { %v2736_v50 = vpack.c.bf16 %v2690_v47, %v2688_v37  ;;  %v2586_v7 = vpop.f32.mrb[52].mxu1 }
 0x4f6   : > { %v2587_v45 = vadd.f32 %v2586_v7, %v7011_v39  ;;  %v2588_v16 = vpop.f32.mrb[53].mxu1 }
 0x4f7   : > { %v2589_v53 = vadd.f32 %v2588_v16, %v7014_v33  ;;  %v2590_v55 = vpop.f32.mrb[54].mxu1  ;;  %2982 = vmatprep.mubr.bf16.mxu0 %v2736_v50 }
 0x4f8   : > { %v2591_v57 = vadd.f32 %v2590_v55, %v7011_v39  ;;  %v2592_v20 = vpop.f32.mrb[55].mxu1  ;;  %2983 = vmatmul.mubr.bf16.gmra.mrb[48].mxu0 %v2735_v49  ;;  %v2691_v8 = vmax.f32 %v2587_v45, 0.0 }
 0x4f9   : > { %v2593_v36 = vadd.f32 %v2592_v20, %v7014_v33  ;;  %v2692_v30 = vmax.f32 %v2589_v53, 0.0 }
 0x4fa   : > { %v2693_v5 = vmax.f32 %v2591_v57, 0.0 }
 0x4fb   : > { %v2694_v12 = vmax.f32 %v2593_v36, 0.0 }
 0x4fc   : > { %v2737_v13 = vpack.c.bf16 %v2693_v5, %v2691_v8 }
 0x4fd   : > { %v2738_v14 = vpack.c.bf16 %v2694_v12, %v2692_v30 }
 0x4ff   : > { %2990 = vmatprep.mubr.bf16.mxu0 %v2738_v14 }
 0x500   : > { %2991 = vmatmul.mubr.bf16.gmra.mrb[52].mxu0 %v2737_v13 }
 0x505   : > { %v2596_v18 = vpop.f32.mrb[56].mxu1 }
 0x506   : > { %v2597_v4 = vadd.f32 %v2596_v18, %v7011_v39  ;;  %v2598_v22 = vpop.f32.mrb[57].mxu1 }
 0x507   : > { %v2599_v24 = vadd.f32 %v2598_v22, %v7014_v33  ;;  %v2600_v31 = vpop.f32.mrb[58].mxu1 }
 0x508   : > { %v2601_v29 = vadd.f32 %v2600_v31, %v7011_v39  ;;  %v2602_v40 = vpop.f32.mrb[59].mxu1  ;;  %v2695_v42 = vmax.f32 %v2597_v4, 0.0 }
 0x509   : > { %v2603_v6 = vadd.f32 %v2602_v40, %v7014_v33  ;;  %v2696_v37 = vmax.f32 %v2599_v24, 0.0 }
 0x50a   : > { %v2697_v46 = vmax.f32 %v2601_v29, 0.0 }
 0x50b   : > { %v2698_v47 = vmax.f32 %v2603_v6, 0.0 }
 0x50c   : > { %v2739_v49 = vpack.c.bf16 %v2697_v46, %v2695_v42 }
 0x50d   : > { %v2740_v50 = vpack.c.bf16 %v2698_v47, %v2696_v37  ;;  %v2606_v7 = vpop.f32.mrb[60].mxu1 }
 0x50e   : > { %v2607_v45 = vadd.f32 %v2606_v7, %v7011_v39  ;;  %v2608_v16 = vpop.f32.mrb[61].mxu1 }
 0x50f   : > { %v2609_v53 = vadd.f32 %v2608_v16, %v7014_v33  ;;  %v2610_v55 = vpop.f32.mrb[62].mxu1  ;;  %2998 = vmatprep.mubr.bf16.mxu0 %v2740_v50 }
 0x510   : > { %v2611_v57 = vadd.f32 %v2610_v55, %v7011_v39  ;;  %v2612_v20 = vpop.f32.mrb[63].mxu1  ;;  %2999 = vmatmul.mubr.bf16.gmra.mrb[56].mxu0 %v2739_v49  ;;  %v2699_v8 = vmax.f32 %v2607_v45, 0.0 }
 0x511   : > { %v2613_v36 = vadd.f32 %v2612_v20, %v7014_v33  ;;  %v2700_v30 = vmax.f32 %v2609_v53, 0.0 }
 0x512   : > { %v2701_v5 = vmax.f32 %v2611_v57, 0.0 }
 0x513   : > { %v2702_v12 = vmax.f32 %v2613_v36, 0.0 }
 0x514   : > { %v2741_v13 = vpack.c.bf16 %v2701_v5, %v2699_v8 }
 0x515   : > { %v2742_v14 = vpack.c.bf16 %v2702_v12, %v2700_v30 }
 0x517   : > { %3006 = vmatprep.mubr.bf16.mxu0 %v2742_v14 }
 0x518   : > { %3007 = vmatmul.mubr.bf16.gmra.mrb[60].mxu0 %v2741_v13 }
 0x51d   : > { %v2616_v18 = vpop.f32.mrb[64].mxu1 }
 0x51e   : > { %v2617_v4 = vadd.f32 %v2616_v18, %v7011_v39  ;;  %v2618_v22 = vpop.f32.mrb[65].mxu1 }
 0x51f   : > { %v2619_v24 = vadd.f32 %v2618_v22, %v7014_v33  ;;  %v2620_v31 = vpop.f32.mrb[66].mxu1 }
 0x520   : > { %v2621_v29 = vadd.f32 %v2620_v31, %v7011_v39  ;;  %v2622_v40 = vpop.f32.mrb[67].mxu1  ;;  %v2703_v42 = vmax.f32 %v2617_v4, 0.0 }
 0x521   : > { %v2623_v6 = vadd.f32 %v2622_v40, %v7014_v33  ;;  %v2704_v37 = vmax.f32 %v2619_v24, 0.0 }
 0x522   : > { %v2705_v46 = vmax.f32 %v2621_v29, 0.0 }
 0x523   : > { %v2706_v47 = vmax.f32 %v2623_v6, 0.0 }
 0x524   : > { %v2743_v49 = vpack.c.bf16 %v2705_v46, %v2703_v42 }
 0x525   : > { %v2744_v50 = vpack.c.bf16 %v2706_v47, %v2704_v37  ;;  %v2626_v7 = vpop.f32.mrb[68].mxu1 }
 0x526   : > { %v2627_v45 = vadd.f32 %v2626_v7, %v7011_v39  ;;  %v2628_v16 = vpop.f32.mrb[69].mxu1 }
 0x527   : > { %v2629_v53 = vadd.f32 %v2628_v16, %v7014_v33  ;;  %v2630_v55 = vpop.f32.mrb[70].mxu1  ;;  %3014 = vmatprep.mubr.bf16.mxu0 %v2744_v50 }
 0x528   : > { %v2631_v57 = vadd.f32 %v2630_v55, %v7011_v39  ;;  %v2632_v20 = vpop.f32.mrb[71].mxu1  ;;  %3015 = vmatmul.mubr.bf16.gmra.mrb[64].mxu0 %v2743_v49  ;;  %v2707_v8 = vmax.f32 %v2627_v45, 0.0 }
 0x529   : > { %v2633_v36 = vadd.f32 %v2632_v20, %v7014_v33  ;;  %v2708_v30 = vmax.f32 %v2629_v53, 0.0 }
 0x52a   : > { %v2709_v5 = vmax.f32 %v2631_v57, 0.0 }
 0x52b   : > { %v2710_v12 = vmax.f32 %v2633_v36, 0.0 }
 0x52c   : > { %v2745_v13 = vpack.c.bf16 %v2709_v5, %v2707_v8 }
 0x52d   : > { %v2746_v14 = vpack.c.bf16 %v2710_v12, %v2708_v30 }
 0x52f   : > { %3022 = vmatprep.mubr.bf16.mxu0 %v2746_v14 }
 0x530   : > { %3023 = vmatmul.mubr.bf16.gmra.mrb[68].mxu0 %v2745_v13 }
 0x535   : > { %v2636_v18 = vpop.f32.mrb[72].mxu1 }
 0x536   : > { %v2637_v4 = vadd.f32 %v2636_v18, %v7011_v39  ;;  %v2638_v22 = vpop.f32.mrb[73].mxu1 }
 0x537   : > { %v2639_v24 = vadd.f32 %v2638_v22, %v7014_v33  ;;  %v2640_v31 = vpop.f32.mrb[74].mxu1 }
 0x538   : > { %v2641_v29 = vadd.f32 %v2640_v31, %v7011_v39  ;;  %v2642_v40 = vpop.f32.mrb[75].mxu1  ;;  %v2711_v42 = vmax.f32 %v2637_v4, 0.0  ;;  %v7080_v4 = vld [vmem:[#allocation25] ss:$0 sm:$0xff] }
 0x539   : > { %v2643_v6 = vadd.f32 %v2642_v40, %v7014_v33  ;;  %v2712_v37 = vmax.f32 %v2639_v24, 0.0 }
 0x53a   : > { %v2713_v46 = vmax.f32 %v2641_v29, 0.0 }
 0x53b   : > { %v2714_v47 = vmax.f32 %v2643_v6, 0.0 }
 0x53c   : > { %v2747_v49 = vpack.c.bf16 %v2713_v46, %v2711_v42 }
 0x53d   : > { %v2748_v50 = vpack.c.bf16 %v2714_v47, %v2712_v37  ;;  %v2646_v7 = vpop.f32.mrb[76].mxu1 }
 0x53e   : > { %v2647_v45 = vadd.f32 %v2646_v7, %v7011_v39  ;;  %v2648_v16 = vpop.f32.mrb[77].mxu1 }
 0x53f   : > { %v2649_v53 = vadd.f32 %v2648_v16, %v7014_v33  ;;  %v2650_v55 = vpop.f32.mrb[78].mxu1  ;;  %3030 = vmatprep.mubr.bf16.mxu0 %v2748_v50 }
 0x540   : > { %v2651_v57 = vadd.f32 %v2650_v55, %v7011_v39  ;;  %v2652_v20 = vpop.f32.mrb[79].mxu1  ;;  %3031 = vmatmul.mubr.bf16.gmra.mrb[72].mxu0 %v2747_v49  ;;  %v2715_v8 = vmax.f32 %v2647_v45, 0.0 }
 0x541   : > { %v2653_v36 = vadd.f32 %v2652_v20, %v7014_v33  ;;  %v2716_v30 = vmax.f32 %v2649_v53, 0.0 }
 0x542   : > { %v2717_v5 = vmax.f32 %v2651_v57, 0.0 }
 0x543   : > { %v2718_v12 = vmax.f32 %v2653_v36, 0.0 }
 0x544   : > { %v2749_v13 = vpack.c.bf16 %v2717_v5, %v2715_v8 }
 0x545   : > { %v2750_v14 = vpack.c.bf16 %v2718_v12, %v2716_v30 }
 0x547   : > { %3038 = vmatprep.mubr.bf16.mxu0 %v2750_v14 }
 0x548   : > { %3039 = vmatmul.mubr.bf16.gmra.mrb[76].mxu0 %v2749_v13 }
 0x56b   : > { %v4634_v18 = vpop.f32.mrb[16].mxu0 }
 0x56c   : > { %v4635_v22 = vpop.f32.mrb[17].mxu0 }
 0x56d   : > { %v4636_v24 = vadd.f32 %v4635_v22, %v4634_v18  ;;  %v4637_v31 = vpop.f32.mrb[18].mxu0 }
 0x56e   : > { %v4638_v29 = vpop.f32.mrb[19].mxu0 }
 0x56f   : > { %v2921_v39 = vadd.f32 %v4636_v24, %v7080_v4  ;;  %v4639_v40 = vadd.f32 %v4638_v29, %v4637_v31 }
 0x571   : > { %v2924_v33 = vadd.f32 %v4639_v40, %v7080_v4  ;;  %v3047_v6 = vsel %vm2096_vm0, %v2921_v39, -inf }
 0x573   : > { %v3048_v42 = vsel %vm2096_vm0, %v2924_v33, -inf  ;;  %v4640_v46 = vpop.f32.mrb[20].mxu0 }
 0x574   : > { %v3049_v37 = vmax.f32 %v3047_v6, %v3048_v42  ;;  %v4641_v47 = vpop.f32.mrb[21].mxu0 }
 0x575   : > { %v4642_v49 = vadd.f32 %v4641_v47, %v4640_v46  ;;  %v4643_v50 = vpop.f32.mrb[22].mxu0 }
 0x576   : > { %v3050_v7 = vrot.slane %v3049_v37, 4  ;;  %v4644_v45 = vpop.f32.mrb[23].mxu0 }
 0x577   : > { %v2929_v16 = vadd.f32 %v4642_v49, %v7080_v4  ;;  %v4645_v53 = vadd.f32 %v4644_v45, %v4643_v50 }
 0x578   : > { %v3051_v55 = vmax.f32 %v3049_v37, %v3050_v7 }
 0x579   : > { %v2932_v57 = vadd.f32 %v4645_v53, %v7080_v4  ;;  %v3056_v36 = vsel %vm2096_vm0, %v2929_v16, -inf }
 0x57a   : > { %v3052_v20 = vrot.slane %v3051_v55, 2 }
 0x57b   : > { %v3057_v8 = vsel %vm2096_vm0, %v2932_v57, -inf }
 0x57c   : > { %v3053_v5 = vmax.f32 %v3051_v55, %v3052_v20  ;;  %v3058_v30 = vmax.f32 %v3056_v36, %v3057_v8 }
 0x57e   : > { %v3054_v12 = vrot.slane %v3053_v5, 1  ;;  %v3059_v13 = vrot.slane %v3058_v30, 4 }
 0x580   : > { %v3055_v14 = vmax.f32 %v3053_v5, %v3054_v12  ;;  %v3060_v18 = vmax.f32 %v3058_v30, %v3059_v13 }
 0x582   : > { %v3191_v22 = vsub.f32 %v2921_v39, %v3055_v14  ;;  %v3192_v24 = vsub.f32 %v2924_v33, %v3055_v14  ;;  %v3061_v31 = vrot.slane %v3060_v18, 2 }
 0x583   : > { %v4646_v29 = vpop.f32.mrb[24].mxu0 }
 0x584   : > { %v3223_v40 = vmul.f32 1.442695, %v3191_v22  ;;  %v3225_v6 = vmul.f32 1.442695, %v3192_v24  ;;  %v3062_v42 = vmax.f32 %v3060_v18, %v3061_v31  ;;  %v4647_v46 = vpop.f32.mrb[25].mxu0 }
 0x585   : > { %v4648_v37 = vadd.f32 %v4647_v46, %v4646_v29  ;;  %v4649_v47 = vpop.f32.mrb[26].mxu0 }
 0x586   : > { %5034 = vpow2.f32 %v3223_v40  ;;  %v3063_v49 = vrot.slane %v3062_v42, 1  ;;  %v4650_v50 = vpop.f32.mrb[27].mxu0 }
 0x587   : > { %5036 = vpow2.f32 %v3225_v6  ;;  %v2937_v7 = vadd.f32 %v4648_v37, %v7080_v4  ;;  %v4651_v45 = vadd.f32 %v4650_v50, %v4649_v47 }
 0x588   : > { %v3064_v53 = vmax.f32 %v3062_v42, %v3063_v49 }
 0x589   : > { %v2940_v55 = vadd.f32 %v4651_v45, %v7080_v4  ;;  %v3065_v20 = vsel %vm2096_vm0, %v2937_v7, -inf }
 0x58a   : > { %v3193_v39 = vsub.f32 %v2929_v16, %v3064_v53  ;;  %v3194_v33 = vsub.f32 %v2932_v57, %v3064_v53 }
 0x58b   : > { %v3066_v36 = vsel %vm2096_vm0, %v2940_v55, -inf  ;;  %v4652_v8 = vpop.f32.mrb[28].mxu0 }
 0x58c   : > { %v3227_v5 = vmul.f32 1.442695, %v3193_v39  ;;  %v3229_v30 = vmul.f32 1.442695, %v3194_v33  ;;  %v3067_v12 = vmax.f32 %v3065_v20, %v3066_v36  ;;  %v4653_v13 = vpop.f32.mrb[29].mxu0 }
 0x58d   : > { %v4654_v14 = vadd.f32 %v4653_v13, %v4652_v8  ;;  %v4655_v18 = vpop.f32.mrb[30].mxu0 }
 0x58e   : > { %5038 = vpow2.f32 %v3227_v5  ;;  %v3068_v22 = vrot.slane %v3067_v12, 4  ;;  %v4656_v24 = vpop.f32.mrb[31].mxu0 }
 0x58f   : > { %5040 = vpow2.f32 %v3229_v30  ;;  %v2945_v31 = vadd.f32 %v4654_v14, %v7080_v4  ;;  %v4657_v29 = vadd.f32 %v4656_v24, %v4655_v18  ;;  %v7113_v18 = vld [vmem:[%s6443_s21] sm:$0xff]  }
 0x590   : > { %v7095_v16 = vpop.eup %5034  ;;  %v3069_v57 = vmax.f32 %v3067_v12, %v3068_v22 }
 0x591   : > { %v7097_v40 = vpop.eup %5036  ;;  %v3287_v6 = vsel %vm2096_vm0, %v7095_v16, 0.0  ;;  %v2948_v42 = vadd.f32 %v4657_v29, %v7080_v4  ;;  %v3074_v49 = vsel %vm2096_vm0, %v2945_v31, -inf }
 0x592   : > { %v3288_v46 = vsel %vm2096_vm0, %v7097_v40, 0.0  ;;  %v3070_v37 = vrot.slane %v3069_v57, 2 }
 0x593   : > { %v3289_v47 = vadd.f32 %v3288_v46, %v3287_v6  ;;  %v3075_v50 = vsel %vm2096_vm0, %v2948_v42, -inf }
 0x594   : > { %v3071_v45 = vmax.f32 %v3069_v57, %v3070_v37  ;;  %v3076_v53 = vmax.f32 %v3074_v49, %v3075_v50 }
 0x595   : > { %v3290_v39 = vrot.slane %v3289_v47, 4 }
 0x596   : > { %v3072_v33 = vrot.slane %v3071_v45, 1  ;;  %v3077_v20 = vrot.slane %v3076_v53, 4 }
 0x597   : > { %v3291_v36 = vadd.f32 %v3290_v39, %v3289_v47 }
 0x598   : > { %v7106_v8 = vpop.eup %5038  ;;  %v3073_v5 = vmax.f32 %v3071_v45, %v3072_v33  ;;  %v3078_v30 = vmax.f32 %v3076_v53, %v3077_v20  ;;  %v4581_v53 = vunpack.c.l.bf16 %v7113_v18 }
 0x599   : > { %v7108_v12 = vpop.eup %5040  ;;  %v3292_v13 = vrot.slane %v3291_v36, 2  ;;  %v3296_v14 = vsel %vm2096_vm0, %v7106_v8, 0.0 }
 0x59a   : > { %v3297_v22 = vsel %vm2096_vm0, %v7108_v12, 0.0  ;;  %v3195_v24 = vsub.f32 %v2937_v7, %v3073_v5  ;;  %v3196_v29 = vsub.f32 %v2940_v55, %v3073_v5  ;;  %v3079_v57 = vrot.slane %v3078_v30, 2 }
 0x59b   : > { %v3293_v6 = vadd.f32 %v3292_v13, %v3291_v36  ;;  %v3298_v46 = vadd.f32 %v3297_v22, %v3296_v14  ;;  %v4658_v37 = vpop.f32.mrb[32].mxu0  ;;  %v3485_v14 = vcombine.high %v4581_v53, %v4581_v53 }
 0x59c   : > { %v3231_v47 = vmul.f32 1.442695, %v3195_v24  ;;  %v3233_v49 = vmul.f32 1.442695, %v3196_v29  ;;  %v3080_v50 = vmax.f32 %v3078_v30, %v3079_v57  ;;  %v4659_v45 = vpop.f32.mrb[33].mxu0  ;;  %v3492_v30 = vrot.slane %v4581_v53, %v6794_v32 }
 0x59d   : > { %v3294_v39 = vrot.slane %v3293_v6, 1  ;;  %v3299_v33 = vrot.slane %v3298_v46, 4  ;;  %v4660_v20 = vadd.f32 %v4659_v45, %v4658_v37  ;;  %v4661_v35 = vpop.f32.mrb[34].mxu0  ;;  %v7133_v45 = vrot.slane %v3485_v14, %v6794_v32 }
 0x59e   : > { %5042 = vpow2.f32 %v3231_v47  ;;  %v3081_v1 = vrot.slane %v3080_v50, 1  ;;  %v4662_v63 = vpop.f32.mrb[35].mxu0  ;;  %v7126_v57 = vrot.slane %v3492_v30, %v6794_v32 }
 0x59f   : > { %v3295_v41 = vadd.f32 %v3294_v39, %v3293_v6  ;;  %v3300_v7 = vadd.f32 %v3299_v33, %v3298_v46  ;;  %5044 = vpow2.f32 %v3233_v49  ;;  %v7119_v55 = vadd.f32 %v4660_v20, %v7080_v4 }
 0x5a0   : > { %v3082_v36 = vmax.f32 %v3080_v50, %v3081_v1  ;;  %v4663_v5 = vadd.f32 %v4662_v63, %v4661_v35  ;;  %v3500_v50 = vcombine.high %v3492_v30, %v3492_v30  ;;  %v3586_v39 = vrot.slane %v7126_v57, %v6480_v2 }
 0x5a1   : > { %5046 = vrcp.f32 %v3295_v41  ;;  %v3301_v13 = vrot.slane %v3300_v7, 2  ;;  %v3083_v46 = vsel %vm2096_vm0, %v7119_v55, -inf }
 0x5a2   : > { %v3197_v22 = vsub.f32 %v2945_v31, %v3082_v36  ;;  %v3198_v24 = vsub.f32 %v2948_v42, %v3082_v36  ;;  %v7123_v29 = vadd.f32 %v4663_v5, %v7080_v4 }
 0x5a3   : > { %v3302_v6 = vadd.f32 %v3301_v13, %v3300_v7  ;;  %v4664_v37 = vpop.f32.mrb[36].mxu0 }
 0x5a4   : > { %v3235_v1 = vmul.f32 1.442695, %v3197_v22  ;;  %v3237_v35 = vmul.f32 1.442695, %v3198_v24  ;;  %v3084_v41 = vsel %vm2096_vm0, %v7123_v29, -inf  ;;  %v4665_v63 = vpop.f32.mrb[37].mxu0  ;;  %v7147_v22 = vrot.slane %v3500_v50, %v6794_v32 }
 0x5a5   : > { %v3303_v47 = vrot.slane %v3302_v6, 1  ;;  %v3085_v31 = vmax.f32 %v3083_v46, %v3084_v41  ;;  %v4666_v42 = vadd.f32 %v4665_v63, %v4664_v37  ;;  %v4667_v49 = vpop.f32.mrb[38].mxu0  ;;  %v3501_v24 = vcombine.high %v7133_v45, %v7133_v45 }
 0x5a6   : > { %5048 = vpow2.f32 %v3235_v1  ;;  %v4668_v53 = vpop.f32.mrb[39].mxu0  ;;  %v3663_v1 = vadd.f32 %v3586_v39, %v6810_v56  ;;  %v3590_v56 = vrot.slane %v7147_v22, %v6480_v2 }
 0x5a7   : > { %v3304_v33 = vadd.f32 %v3303_v47, %v3302_v6  ;;  %5050 = vpow2.f32 %v3237_v35  ;;  %v3086_v20 = vrot.slane %v3085_v31, 4  ;;  %v7140_v36 = vadd.f32 %v4666_v42, %v7080_v4 }
 0x5a8   : > { %v7137_v7 = vpop.eup %5042  ;;  %v4669_v5 = vadd.f32 %v4668_v53, %v4667_v49  ;;  %v3664_v35 = vadd.f32 %v3586_v39, %v6816_v60  ;;  %v3532_v39 = vcombine.high %v7147_v22, %v7147_v22 }
 0x5a9   : > { %v7142_v13 = vpop.eup %5044  ;;  %5052 = vrcp.f32 %v3304_v33  ;;  %v3305_v30 = vsel %vm2096_vm0, %v7137_v7, 0.0  ;;  %v3087_v14 = vmax.f32 %v3085_v31, %v3086_v20  ;;  %v3092_v42 = vsel %vm2096_vm0, %v7140_v36, -inf }
 0x5aa   : > { %v3306_v6 = vsel %vm2096_vm0, %v7142_v13, 0.0  ;;  %v7154_v46 = vadd.f32 %v4669_v5, %v7080_v4 }
 0x5ab   : > { %v5047_v37 = vpop.eup %5046  ;;  %v3307_v41 = vadd.f32 %v3306_v6, %v3305_v30  ;;  %v3088_v63 = vrot.slane %v3087_v14, 2  ;;  %v3530_v6 = vcombine.high %v7126_v57, %v7126_v57 }
 0x5ac   : > { %v3447_v47 = vmul.f32 %v5047_v37, %v7095_v16  ;;  %v3448_v31 = vmul.f32 %v5047_v37, %v7097_v40  ;;  %v3093_v49 = vsel %vm2096_vm0, %v7154_v46, -inf  ;;  %v7173_v37 = vrot.slane %v3501_v24, %v6794_v32 }
 0x5ad   : > { %v3308_v50 = vrot.slane %v3307_v41, 4  ;;  %v3089_v53 = vmax.f32 %v3087_v14, %v3088_v63  ;;  %v3094_v33 = vmax.f32 %v3092_v42, %v3093_v49  ;;  %v3666_v42 = vadd.f32 %v3590_v56, %v6813_v58 }
 0x5ae   : > { %v3695_v20 = vmul.f32 %v3663_v1, %v3447_v47  ;;  %v3696_v60 = vmul.f32 %v3664_v35, %v3448_v31  ;;  %v3665_v31 = vadd.f32 %v3590_v56, %v6807_v52 }
 0x5af   : > { %v3309_v16 = vadd.f32 %v3308_v50, %v3307_v41  ;;  %v3090_v5 = vrot.slane %v3089_v53, 1  ;;  %v3095_v40 = vrot.slane %v3094_v33, 4 }
 0x5b0   : > { %v7168_v30 = vpop.eup %5048  ;;  %v3727_v14 = vsel %vm2096_vm0, %v3695_v20, 0.0  ;;  %v3728_v63 = vsel %vm2096_vm0, %v3696_v60, 0.0 }
 0x5b1   : > { %v7177_v1 = vpop.eup %5050  ;;  %v3729_v35 = vadd.f32 %v3728_v63, %v3727_v14  ;;  %v3310_v47 = vrot.slane %v3309_v16, 2  ;;  %v3314_v22 = vsel %vm2096_vm0, %v7168_v30, 0.0  ;;  %v3091_v41 = vmax.f32 %v3089_v53, %v3090_v5 }
 0x5b2   : > { %v3315_v57 = vsel %vm2096_vm0, %v7177_v1, 0.0  ;;  %v3096_v24 = vmax.f32 %v3094_v33, %v3095_v40 }
 0x5b3   : > { %v5053_v49 = vpop.eup %5052  ;;  %v3730_v50 = vrot.slane %v3729_v35, 4  ;;  %v3311_v20 = vadd.f32 %v3310_v47, %v3309_v16  ;;  %v3316_v60 = vadd.f32 %v3315_v57, %v3314_v22  ;;  %v3199_v9 = vsub.f32 %v7119_v55, %v3091_v41  ;;  %v4670_v14 = vpop.f32.mrb[40].mxu0 }
 0x5b4   : > { %v3449_v63 = vmul.f32 %v5053_v49, %v7106_v8  ;;  %v3450_v61 = vmul.f32 %v5053_v49, %v7108_v12  ;;  %v3200_v53 = vsub.f32 %v7123_v29, %v3091_v41  ;;  %v3097_v52 = vrot.slane %v3096_v24, 2  ;;  %v4671_v5 = vpop.f32.mrb[41].mxu0 }
 0x5b5   : > { %v3731_v58 = vadd.f32 %v3730_v50, %v3729_v35  ;;  %v3312_v56 = vrot.slane %v3311_v20, 1  ;;  %v3317_v11 = vrot.slane %v3316_v60, 4  ;;  %v3239_v0 = vmul.f32 1.442695, %v3199_v9  ;;  %v4673_v33 = vpop.f32.mrb[42].mxu0 }
 0x5b6   : > { %v3697_v40 = vmul.f32 %v3665_v31, %v3449_v63  ;;  %v3698_v17 = vmul.f32 %v3666_v42, %v3450_v61  ;;  %v3241_v16 = vmul.f32 1.442695, %v3200_v53  ;;  %v3098_v47 = vmax.f32 %v3096_v24, %v3097_v52  ;;  %v4674_v22 = vpop.f32.mrb[43].mxu0 }
 0x5b7   : > { %v3732_v55 = vrot.slane %v3731_v58, 2  ;;  %v3313_v57 = vadd.f32 %v3312_v56, %v3311_v20  ;;  %v3318_v3 = vadd.f32 %v3317_v11, %v3316_v60  ;;  %5054 = vpow2.f32 %v3239_v0 }
 0x5b8   : > { %v3736_v8 = vsel %vm2096_vm0, %v3697_v40, 0.0  ;;  %v3737_v12 = vsel %vm2096_vm0, %v3698_v17, 0.0  ;;  %5056 = vpow2.f32 %v3241_v16  ;;  %v3099_v29 = vrot.slane %v3098_v47, 1 }
 0x5b9   : > { %v3733_v35 = vadd.f32 %v3732_v55, %v3731_v58  ;;  %v3738_v41 = vadd.f32 %v3737_v12, %v3736_v8  ;;  %5058 = vrcp.f32 %v3313_v57  ;;  %v3319_v9 = vrot.slane %v3318_v3, 2 }
 0x5ba   : > { %v7192_v31 = vrot.slane %v3532_v39, %v6480_v2  ;;  %v3100_v61 = vmax.f32 %v3098_v47, %v3099_v29  ;;  %v4672_v42 = vadd.f32 %v4671_v5, %v4670_v14  ;;  %v4675_v24 = vadd.f32 %v4674_v22, %v4673_v33 }
 0x5bb   : > { %v3594_v49 = vrot.slane %v3530_v6, %v6480_v2  ;;  %v7197_v0 = vrot.slane %v7173_v37, %v6480_v2  ;;  %v3739_v11 = vrot.slane %v3738_v41, 4  ;;  %v3320_v17 = vadd.f32 %v3319_v9, %v3318_v3  ;;  %v4676_v50 = vpop.f32.mrb[44].mxu0 }
 0x5bc   : > { %v3201_v20 = vsub.f32 %v7140_v36, %v3100_v61  ;;  %v3202_v60 = vsub.f32 %v7154_v46, %v3100_v61  ;;  %v7202_v63 = vadd.f32 %v4672_v42, %v7080_v4  ;;  %v7205_v39 = vadd.f32 %v4675_v24, %v7080_v4  ;;  %v4677_v14 = vpop.f32.mrb[45].mxu0 }
 0x5bd   : > { %v3734_v53 = vrot.slane %v3733_v35, 1  ;;  %v3740_v6 = vadd.f32 %v3739_v11, %v3738_v41  ;;  %v3321_v52 = vrot.slane %v3320_v17, 1  ;;  %v4678_v5 = vadd.f32 %v4677_v14, %v4676_v50  ;;  %v4679_v58 = vpop.f32.mrb[46].mxu0  ;;  %v5030_v14 = vld [vmem:[#allocation26] sm:$0xff]  }
 0x5be   : > { %v3243_v56 = vmul.f32 1.442695, %v3201_v20  ;;  %v3245_v33 = vmul.f32 1.442695, %v3202_v60  ;;  %v3101_v3 = vsel %vm2096_vm0, %v7202_v63, -inf  ;;  %v3102_v36 = vsel %vm2096_vm0, %v7205_v39, -inf }
 0x5bf   : > { %v7213_v46 = vrot.slane %v7133_v45, %v6794_v32  ;;  %v3741_v40 = vrot.slane %v3740_v6, 2  ;;  %v3322_v16 = vadd.f32 %v3321_v52, %v3320_v17  ;;  %v3103_v47 = vmax.f32 %v3101_v3, %v3102_v36  ;;  %v4680_v22 = vpop.f32.mrb[47].mxu0 }
 0x5c0   : > { %v3667_v55 = vadd.f32 %v3594_v49, %v6834_v19  ;;  %5060 = vpow2.f32 %v3243_v56  ;;  %v7217_v57 = vadd.f32 %v4678_v5, %v7080_v4  ;;  %v4681_v8 = vadd.f32 %v4680_v22, %v4679_v58 }
 0x5c1   : > { %v7219_v12 = vpop.eup %5054  ;;  %v3668_v29 = vadd.f32 %v3594_v49, %v6840_v23  ;;  %v3742_v41 = vadd.f32 %v3741_v40, %v3740_v6  ;;  %5062 = vrcp.f32 %v3322_v16  ;;  %v3104_v9 = vrot.slane %v3103_v47, 4 }
 0x5c2   : > { %v7222_v45 = vpop.eup %5056  ;;  %v3735_v61 = vadd.f32 %v3734_v53, %v3733_v35  ;;  %v3323_v42 = vsel %vm2096_vm0, %v7219_v12, 0.0  ;;  %5064 = vpow2.f32 %v3245_v33  ;;  %v7227_v19 = vadd.f32 %v4681_v8, %v7080_v4 }
 0x5c3   : > { %v5059_v24 = vpop.eup %5058  ;;  %v3743_v11 = vrot.slane %v3742_v41, 1  ;;  %v3324_v17 = vsel %vm2096_vm0, %v7222_v45, 0.0  ;;  %v3105_v50 = vmax.f32 %v3103_v47, %v3104_v9  ;;  %v3110_v23 = vsel %vm2096_vm0, %v7217_v57, -inf }
 0x5c4   : > { %v3451_v49 = vmul.f32 %v5059_v24, %v7137_v7  ;;  %v3452_v35 = vmul.f32 %v5059_v24, %v7142_v13  ;;  %v3325_v20 = vadd.f32 %v3324_v17, %v3323_v42  ;;  %v3111_v60 = vsel %vm2096_vm0, %v7227_v19, -inf }
 0x5c5   : > { %v3744_v53 = vadd.f32 %v3743_v11, %v3742_v41  ;;  %v3106_v6 = vrot.slane %v3105_v50, 2  ;;  %v3112_v52 = vmax.f32 %v3110_v23, %v3111_v60  ;;  %v3871_v5 = vpack.c.bf16 %v3735_v61, %v3735_v61 }
 0x5c6   : > { %v3699_v58 = vmul.f32 %v3667_v55, %v3451_v49  ;;  %v3700_v56 = vmul.f32 %v3668_v29, %v3452_v35  ;;  %v3326_v33 = vrot.slane %v3325_v20, 4  ;;  %v5760_v3 = vmov 0.0  }
 0x5c7   : > { %4775 = vmatprep.subr.bf16.mxu1 %v5760_v3  ;;  %v7240_v7 = vrot.slane %v7213_v46, %v6480_v2  ;;  %v3872_v13 = vpack.c.bf16 %v3744_v53, %v3744_v53  ;;  %v3107_v36 = vmax.f32 %v3105_v50, %v3106_v6  ;;  %v3113_v40 = vrot.slane %v3112_v52, 4  ;;  %4783 = vmatprep.mubr.msk.bf16.mxu1 %vm5761_vm5, %v5760_v3 }
 0x5c8   : > { %4776 = vmatpush3.bf16.msra.mxu1 %v5030_v14  ;;  %v3745_v16 = vsel %vm2096_vm0, %v3699_v58, 0.0  ;;  %v3746_v47 = vsel %vm2096_vm0, %v3700_v56, 0.0  ;;  %v3327_v22 = vadd.f32 %v3326_v33, %v3325_v20  ;;  %v3669_v61 = vadd.f32 %v7192_v31, %v6831_v15 }
 0x5c9   : > { %4777 = vmatprep.subr.bf16.mxu1 %v5760_v3  ;;  %v3919_v55 = vunpack.c.l.b16 %v3872_v13  ;;  %v3747_v8 = vadd.f32 %v3746_v47, %v3745_v16  ;;  %v3108_v29 = vrot.slane %v3107_v36, 1  ;;  %v3114_v41 = vmax.f32 %v3112_v52, %v3113_v40 }
 0x5ca   : > { %v7245_v9 = vpop.eup %5060  ;;  %v3670_v42 = vadd.f32 %v7192_v31, %v6837_v21  ;;  %v3918_v24 = vunpack.c.l.b16 %v3871_v5  ;;  %v3328_v11 = vrot.slane %v3327_v22, 2 }
 0x5cb   : > { %v5063_v17 = vpop.eup %5062  ;;  %v3748_v50 = vrot.slane %v3747_v8, 4  ;;  %v3332_v23 = vsel %vm2096_vm0, %v7245_v9, 0.0  ;;  %v3109_v49 = vmax.f32 %v3107_v36, %v3108_v29  ;;  %v3115_v35 = vrot.slane %v3114_v41, 2  ;;  %v4682_v20 = vpop.f32.mrb[48].mxu0 }
 0x5cc   : > { %v7253_v60 = vpop.eup %5064  ;;  %v3453_v14 = vmul.f32 %v5063_v17, %v7168_v30  ;;  %v3454_v53 = vmul.f32 %v5063_v17, %v7177_v1  ;;  %v3329_v15 = vadd.f32 %v3328_v11, %v3327_v22  ;;  %v4683_v6 = vpop.f32.mrb[49].mxu0  ;;  %v7258_v21 = vsel %vm3934_vm1, %v3919_v55, %v3918_v24 }
 0x5cd   : > { %v3749_v31 = vadd.f32 %v3748_v50, %v3747_v8  ;;  %v3333_v52 = vsel %vm2096_vm0, %v7253_v60, 0.0  ;;  %v3203_v5 = vsub.f32 %v7202_v63, %v3109_v49  ;;  %v3204_v58 = vsub.f32 %v7205_v39, %v3109_v49  ;;  %v4685_v56 = vpop.f32.mrb[50].mxu0 }
 0x5ce   : > { %v3701_v33 = vmul.f32 %v3669_v61, %v3453_v14  ;;  %v3702_v13 = vmul.f32 %v3670_v42, %v3454_v53  ;;  %v3330_v36 = vrot.slane %v3329_v15, 1  ;;  %v3334_v30 = vadd.f32 %v3333_v52, %v3332_v23  ;;  %v4686_v40 = vpop.f32.mrb[51].mxu0 }
 0x5cf   : > { %v3750_v1 = vrot.slane %v3749_v31, 2  ;;  %v3247_v16 = vmul.f32 1.442695, %v3203_v5  ;;  %v3249_v47 = vmul.f32 1.442695, %v3204_v58  ;;  %v3116_v22 = vmax.f32 %v3114_v41, %v3115_v35 }
 0x5d0   : > { %v3754_v55 = vsel %vm2096_vm0, %v3701_v33, 0.0  ;;  %v3755_v8 = vsel %vm2096_vm0, %v3702_v13, 0.0  ;;  %v3331_v29 = vadd.f32 %v3330_v36, %v3329_v15  ;;  %v3335_v24 = vrot.slane %v3334_v30, 4 }
 0x5d1   : > { %v3751_v11 = vadd.f32 %v3750_v1, %v3749_v31  ;;  %v3756_v63 = vadd.f32 %v3755_v8, %v3754_v55  ;;  %5066 = vpow2.f32 %v3247_v16  ;;  %v3117_v39 = vrot.slane %v3116_v22, 1 }
 0x5d2   : > { %5068 = vrcp.f32 %v3331_v29  ;;  %v3336_v61 = vadd.f32 %v3335_v24, %v3334_v30  ;;  %v4684_v42 = vadd.f32 %v4683_v6, %v4682_v20  ;;  %v4687_v17 = vadd.f32 %v4686_v40, %v4685_v56 }
 0x5d3   : > { %v3752_v50 = vrot.slane %v3751_v11, 1  ;;  %v3757_v23 = vrot.slane %v3756_v63, 4  ;;  %5070 = vpow2.f32 %v3249_v47  ;;  %v3118_v49 = vmax.f32 %v3116_v22, %v3117_v39  ;;  %v4688_v14 = vpop.f32.mrb[52].mxu0  ;;  %v5031_v39 = vld [vmem:[#allocation26 + $0x8] sm:$0xff]  }
 0x5d4   : > { %v3337_v41 = vrot.slane %v3336_v61, 2  ;;  %v7267_v35 = vadd.f32 %v4684_v42, %v7080_v4  ;;  %v7270_v53 = vadd.f32 %v4687_v17, %v7080_v4  ;;  %v4689_v15 = vpop.f32.mrb[53].mxu0  ;;  %v3531_v55 = vcombine.high %v7213_v46, %v7213_v46  ;;  %4778 = vmatpush3.bf16.msra.mxu1 %v5031_v39 }
 0x5d5   : > { %v3753_v31 = vadd.f32 %v3752_v50, %v3751_v11  ;;  %v3758_v52 = vadd.f32 %v3757_v23, %v3756_v63  ;;  %v3205_v5 = vsub.f32 %v7217_v57, %v3118_v49  ;;  %v3206_v20 = vsub.f32 %v7227_v19, %v3118_v49  ;;  %v4691_v6 = vpop.f32.mrb[54].mxu0  ;;  %4779 = vmatprep.subr.bf16.mxu1 %v5760_v3 }
 0x5d6   : > { %v3338_v58 = vadd.f32 %v3337_v41, %v3336_v61  ;;  %v3119_v56 = vsel %vm2096_vm0, %v7267_v35, -inf  ;;  %v3120_v33 = vsel %vm2096_vm0, %v7270_v53, -inf  ;;  %v4690_v13 = vadd.f32 %v4689_v15, %v4688_v14  ;;  %v4692_v36 = vpop.f32.mrb[55].mxu0 }
 0x5d7   : > { %v3873_v30 = vpack.c.bf16 %v3753_v31, %v3753_v31  ;;  %v3759_v40 = vrot.slane %v3758_v52, 2  ;;  %v3251_v1 = vmul.f32 1.442695, %v3205_v5  ;;  %v3253_v16 = vmul.f32 1.442695, %v3206_v20 }
 0x5d8   : > { %v3339_v47 = vrot.slane %v3338_v58, 1  ;;  %v3121_v22 = vmax.f32 %v3119_v56, %v3120_v33  ;;  %v7279_v57 = vadd.f32 %v4690_v13, %v7080_v4  ;;  %v4693_v19 = vadd.f32 %v4692_v36, %v4691_v6 }
 0x5d9   : > { %v3920_v8 = vunpack.c.l.b16 %v3873_v30  ;;  %v3760_v29 = vadd.f32 %v3759_v40, %v3758_v52  ;;  %5072 = vpow2.f32 %v3251_v1  ;;  %v3671_v24 = vadd.f32 %v7240_v7, %v6863_v59 }
 0x5da   : > { %v3340_v11 = vadd.f32 %v3339_v47, %v3338_v58  ;;  %5074 = vpow2.f32 %v3253_v16  ;;  %v3122_v63 = vrot.slane %v3121_v22, 4  ;;  %v3672_v42 = vadd.f32 %v7240_v7, %v6869_v62 }
 0x5db   : > { %v7285_v61 = vpop.eup %5066  ;;  %v3761_v17 = vrot.slane %v3760_v29, 1  ;;  %v7290_v50 = vadd.f32 %v4693_v19, %v7080_v4  ;;  %v3937_v46 = vsel %vm3936_vm2, %v3920_v8, %v7258_v21  ;;  %v3128_v14 = vsel %vm2096_vm0, %v7279_v57, -inf }
 0x5dc   : > { %v5069_v23 = vpop.eup %5068  ;;  %5076 = vrcp.f32 %v3340_v11  ;;  %v3341_v59 = vsel %vm2096_vm0, %v7285_v61, 0.0  ;;  %v3123_v49 = vmax.f32 %v3121_v22, %v3122_v63  ;;  %v7306_v31 = vunpack.c.h.bf16 %v7113_v18 }
 0x5dd   : > { %v7298_v41 = vpop.eup %5070  ;;  %v3762_v62 = vadd.f32 %v3761_v17, %v3760_v29  ;;  %v3455_v7 = vmul.f32 %v5069_v23, %v7219_v12  ;;  %v3456_v15 = vmul.f32 %v5069_v23, %v7222_v45  ;;  %v3129_v21 = vsel %vm2096_vm0, %v7290_v50, -inf }
 0x5de   : > { %v3342_v52 = vsel %vm2096_vm0, %v7298_v41, 0.0  ;;  %v3124_v5 = vrot.slane %v3123_v49, 2  ;;  %v3130_v20 = vmax.f32 %v3128_v14, %v3129_v21  ;;  %v3533_v12 = vcombine.high %v7173_v37, %v7173_v37 }
 0x5df   : > { %v3874_v6 = vpack.c.bf16 %v3762_v62, %v3762_v62  ;;  %v3703_v58 = vmul.f32 %v3671_v24, %v3455_v7  ;;  %v3704_v56 = vmul.f32 %v3672_v42, %v3456_v15  ;;  %v3343_v33 = vadd.f32 %v3342_v52, %v3341_v59 }
 0x5e0   : > { %v3125_v45 = vmax.f32 %v3123_v49, %v3124_v5  ;;  %v3131_v13 = vrot.slane %v3130_v20, 4  ;;  %v7315_v1 = vrot.slane %v3531_v55, %v6480_v2  ;;  %v3673_v8 = vadd.f32 %v7197_v0, %v6860_v54 }
 0x5e1   : > { %v3921_v36 = vunpack.c.l.b16 %v3874_v6  ;;  %v3763_v30 = vsel %vm2096_vm0, %v3703_v58, 0.0  ;;  %v3764_v18 = vsel %vm2096_vm0, %v3704_v56, 0.0  ;;  %v3344_v40 = vrot.slane %v3343_v33, 4 }
 0x5e2   : > { %v3765_v16 = vadd.f32 %v3764_v18, %v3763_v30  ;;  %v3126_v47 = vrot.slane %v3125_v45, 1  ;;  %v3132_v22 = vmax.f32 %v3130_v20, %v3131_v13  ;;  %v7323_v29 = vrot.slane %v7306_v31, %v6794_v32 }
 0x5e3   : > { %v7317_v19 = vpop.eup %5072  ;;  %v3345_v24 = vadd.f32 %v3344_v40, %v3343_v33  ;;  %v4694_v11 = vpop.f32.mrb[56].mxu0  ;;  %v7326_v63 = vsel %vm3938_vm3, %v3921_v36, %v3937_v46  ;;  %v3674_v54 = vadd.f32 %v7197_v0, %v6866_v38  ;;  %v3676_v37 = vadd.f32 %v7315_v1, %v6893_v51 }
 0x5e4   : > { %v7328_v39 = vpop.eup %5074  ;;  %v3766_v55 = vrot.slane %v3765_v16, 4  ;;  %v3350_v42 = vsel %vm2096_vm0, %v7317_v19, 0.0  ;;  %v3127_v17 = vmax.f32 %v3125_v45, %v3126_v47  ;;  %v3133_v23 = vrot.slane %v3132_v22, 2  ;;  %v4695_v59 = vpop.f32.mrb[57].mxu0 }
 0x5e5   : > { %v3346_v49 = vrot.slane %v3345_v24, 2  ;;  %v3351_v14 = vsel %vm2096_vm0, %v7328_v39, 0.0  ;;  %v4696_v62 = vadd.f32 %v4695_v59, %v4694_v11  ;;  %v4697_v7 = vpop.f32.mrb[58].mxu0 }
 0x5e6   : > { %v5077_v46 = vpop.eup %5076  ;;  %v3767_v15 = vadd.f32 %v3766_v55, %v3765_v16  ;;  %v3352_v21 = vadd.f32 %v3351_v14, %v3350_v42  ;;  %v3207_v52 = vsub.f32 %v7267_v35, %v3127_v17  ;;  %v3208_v5 = vsub.f32 %v7270_v53, %v3127_v17  ;;  %v4698_v20 = vpop.f32.mrb[59].mxu0 }
 0x5e7   : > { %v3457_v6 = vmul.f32 %v5077_v46, %v7245_v9  ;;  %v3458_v58 = vmul.f32 %v5077_v46, %v7253_v60  ;;  %v3347_v56 = vadd.f32 %v3346_v49, %v3345_v24  ;;  %v3134_v38 = vmax.f32 %v3132_v22, %v3133_v23 }
 0x5e8   : > { %v3768_v0 = vrot.slane %v3767_v15, 2  ;;  %v3353_v33 = vrot.slane %v3352_v21, 4  ;;  %v3255_v45 = vmul.f32 1.442695, %v3207_v52  ;;  %v3257_v13 = vmul.f32 1.442695, %v3208_v5 }
 0x5e9   : > { %v3705_v36 = vmul.f32 %v3673_v8, %v3457_v6  ;;  %v3706_v30 = vmul.f32 %v3674_v54, %v3458_v58  ;;  %v3348_v18 = vrot.slane %v3347_v56, 1  ;;  %v3135_v40 = vrot.slane %v3134_v38, 1 }
 0x5ea   : > { %v3769_v16 = vadd.f32 %v3768_v0, %v3767_v15  ;;  %v3354_v35 = vadd.f32 %v3353_v33, %v3352_v21  ;;  %5078 = vpow2.f32 %v3255_v45  ;;  %v7341_v53 = vadd.f32 %v4696_v62, %v7080_v4  ;;  %v5032_v33 = vld [vmem:[#allocation26 + $0x10] sm:$0xff]  }
 0x5eb   : > { %v3772_v9 = vsel %vm2096_vm0, %v3705_v36, 0.0  ;;  %v3773_v60 = vsel %vm2096_vm0, %v3706_v30, 0.0  ;;  %v3349_v47 = vadd.f32 %v3348_v18, %v3347_v56  ;;  %5080 = vpow2.f32 %v3257_v13  ;;  %v4700_v22 = vpop.f32.mrb[60].mxu0  ;;  %4780 = vmatpush3.bf16.msra.mxu1 %v5032_v33 }
 0x5ec   : > { %v3770_v24 = vrot.slane %v3769_v16, 1  ;;  %v3774_v11 = vadd.f32 %v3773_v60, %v3772_v9  ;;  %v3355_v8 = vrot.slane %v3354_v35, 2  ;;  %v3136_v55 = vmax.f32 %v3134_v38, %v3135_v40  ;;  %v4701_v42 = vpop.f32.mrb[61].mxu0  ;;  %v5033_v40 = vld [vmem:[#allocation26 + $0x18] sm:$0xff]   ;;  %4781 = vmatprep.subr.bf16.mxu1 %v5760_v3 }
 0x5ed   : > { %5082 = vrcp.f32 %v3349_v47  ;;  %v3137_v17 = vsel %vm2096_vm0, %v7341_v53, -inf  ;;  %v4699_v23 = vadd.f32 %v4698_v20, %v4697_v7  ;;  %v4702_v59 = vadd.f32 %v4701_v42, %v4700_v22  ;;  %v4703_v54 = vpop.f32.mrb[62].mxu0 }
 0x5ee   : > { %v3771_v49 = vadd.f32 %v3770_v24, %v3769_v16  ;;  %v3775_v14 = vrot.slane %v3774_v11, 4  ;;  %v3356_v62 = vadd.f32 %v3355_v8, %v3354_v35  ;;  %v3209_v46 = vsub.f32 %v7279_v57, %v3136_v55  ;;  %v4704_v15 = vpop.f32.mrb[63].mxu0 }
 0x5ef   : > { %v3210_v21 = vsub.f32 %v7290_v50, %v3136_v55  ;;  %v7350_v52 = vadd.f32 %v4699_v23, %v7080_v4  ;;  %v7353_v5 = vadd.f32 %v4702_v59, %v7080_v4  ;;  %v4705_v6 = vadd.f32 %v4704_v15, %v4703_v54  ;;  %4782 = vmatpush3.bf16.msra.mxu1 %v5033_v40 }
 0x5f0   : > { %v3875_v58 = vpack.c.bf16 %v3771_v49, %v3771_v49  ;;  %v3776_v56 = vadd.f32 %v3775_v14, %v3774_v11  ;;  %v3357_v7 = vrot.slane %v3356_v62, 1  ;;  %v3259_v20 = vmul.f32 1.442695, %v3209_v46 }
 0x5f1   : > { %v3261_v38 = vmul.f32 1.442695, %v3210_v21  ;;  %v3138_v0 = vsel %vm2096_vm0, %v7350_v52, -inf  ;;  %v3146_v57 = vsel %vm2096_vm0, %v7353_v5, -inf  ;;  %v7360_v50 = vadd.f32 %v4705_v6, %v7080_v4 }
 0x5f2   : > { %v3922_v45 = vunpack.c.l.b16 %v3875_v58  ;;  %v3777_v13 = vrot.slane %v3776_v56, 2  ;;  %v3358_v36 = vadd.f32 %v3357_v7, %v3356_v62  ;;  %5084 = vpow2.f32 %v3259_v20 }
 0x5f3   : > { %5086 = vpow2.f32 %v3261_v38  ;;  %v3139_v30 = vmax.f32 %v3137_v17, %v3138_v0  ;;  %v3147_v18 = vsel %vm2096_vm0, %v7360_v50, -inf  ;;  %v3614_v47 = vrot.slane %v3533_v12, %v6480_v2 }
 0x5f4   : > { %v7364_v16 = vpop.eup %5078  ;;  %v3778_v35 = vadd.f32 %v3777_v13, %v3776_v56  ;;  %5088 = vrcp.f32 %v3358_v36  ;;  %v3148_v9 = vmax.f32 %v3146_v57, %v3147_v18  ;;  %v3941_v4 = vsel %vm3940_vm4, %v3922_v45, %v7326_v63 }
 0x5f5   : > { %v7370_v60 = vpop.eup %5080  ;;  %v3549_v22 = vcombine.high %v7323_v29, %v7323_v29  ;;  %v3359_v24 = vsel %vm2096_vm0, %v7364_v16, 0.0  ;;  %v3140_v11 = vrot.slane %v3139_v30, 4  ;;  %v3675_v42 = vadd.f32 %v7315_v1, %v6887_v48 }
 0x5f6   : > { %v3779_v8 = vrot.slane %v3778_v35, 1  ;;  %v3360_v3 = vsel %vm2096_vm0, %v7370_v60, 0.0  ;;  %v3149_v55 = vrot.slane %v3148_v9, 4  ;;  %v3677_v14 = vadd.f32 %v3614_v47, %v6884_v44 }
 0x5f7   : > { %v5083_v63 = vpop.eup %5082  ;;  %v3361_v12 = vadd.f32 %v3360_v3, %v3359_v24  ;;  %v3141_v17 = vmax.f32 %v3139_v30, %v3140_v11  ;;  %v7390_v62 = vrot.slane %v3549_v22, %v6794_v32  ;;  %v3678_v1 = vadd.f32 %v3614_v47, %v6890_v28 }
 0x5f8   : > { %v3780_v23 = vadd.f32 %v3779_v8, %v3778_v35  ;;  %v3459_v59 = vmul.f32 %v5083_v63, %v7285_v61  ;;  %v3460_v54 = vmul.f32 %v5083_v63, %v7298_v41  ;;  %v3150_v49 = vmax.f32 %v3148_v9, %v3149_v55 }
 0x5f9   : > { %v3362_v46 = vrot.slane %v3361_v12, 4  ;;  %v3142_v15 = vrot.slane %v3141_v17, 2  ;;  %v7410_v3 = vrot.slane %v7323_v29, %v6794_v32 }
 0x5fa   : > { %v3707_v48 = vmul.f32 %v3675_v42, %v3459_v59  ;;  %v3708_v21 = vmul.f32 %v3676_v37, %v3460_v54  ;;  %v3151_v6 = vrot.slane %v3150_v49, 2  ;;  %v3876_v51 = vpack.c.bf16 %v3780_v23, %v3780_v23 }
 0x5fb   : > { %v3363_v58 = vadd.f32 %v3362_v46, %v3361_v12  ;;  %v3143_v56 = vmax.f32 %v3141_v17, %v3142_v15  ;;  %v4706_v7 = vpop.f32.mrb[64].mxu0 }
 0x5fc   : > { %v7393_v61 = vpop.eup %5084  ;;  %v3781_v41 = vsel %vm2096_vm0, %v3707_v48, 0.0  ;;  %v3782_v44 = vsel %vm2096_vm0, %v3708_v21, 0.0  ;;  %v3152_v20 = vmax.f32 %v3150_v49, %v3151_v6  ;;  %v4707_v38 = vpop.f32.mrb[65].mxu0  ;;  %v3923_v0 = vunpack.c.l.b16 %v3876_v51 }
 0x5fd   : > { %v7397_v57 = vpop.eup %5086  ;;  %v3783_v33 = vadd.f32 %v3782_v44, %v3781_v41  ;;  %v3364_v45 = vrot.slane %v3363_v58, 2  ;;  %v3368_v28 = vsel %vm2096_vm0, %v7393_v61, 0.0  ;;  %v3144_v13 = vrot.slane %v3143_v56, 1  ;;  %v4709_v36 = vpop.f32.mrb[66].mxu0 }
 0x5fe   : > { %v5089_v30 = vpop.eup %5088  ;;  %v3369_v18 = vsel %vm2096_vm0, %v7397_v57, 0.0  ;;  %v3153_v40 = vrot.slane %v3152_v20, 1  ;;  %v4708_v35 = vadd.f32 %v4707_v38, %v4706_v7  ;;  %v4710_v9 = vpop.f32.mrb[67].mxu0  ;;  %v7404_v47 = vsel %vm3942_vm6, %v3923_v0, %v3941_v4  ;;  %v7418_v7 = vld [vmem:[#allocation25] ss:$0 sm:$0xff] }
 0x5ff   : > { %v3784_v22 = vrot.slane %v3783_v33, 4  ;;  %v3461_v24 = vmul.f32 %v5089_v30, %v7317_v19  ;;  %v3462_v11 = vmul.f32 %v5089_v30, %v7328_v39  ;;  %v3365_v8 = vadd.f32 %v3364_v45, %v3363_v58 }
 0x600   : > { %v3370_v55 = vadd.f32 %v3369_v18, %v3368_v28  ;;  %v3145_v63 = vmax.f32 %v3143_v56, %v3144_v13  ;;  %v3154_v42 = vmax.f32 %v3152_v20, %v3153_v40  ;;  %v7421_v41 = vadd.f32 %v7418_v7, %v4708_v35 }
 0x601   : > { %v3785_v37 = vadd.f32 %v3784_v22, %v3783_v33  ;;  %v3709_v12 = vmul.f32 %v3677_v14, %v3461_v24  ;;  %v3710_v17 = vmul.f32 %v3678_v1, %v3462_v11  ;;  %v3366_v23 = vrot.slane %v3365_v8, 1 }
 0x602   : > { %v3371_v59 = vrot.slane %v3370_v55, 4  ;;  %v3211_v4 = vsub.f32 %v7341_v53, %v3145_v63  ;;  %v3212_v54 = vsub.f32 %v7350_v52, %v3145_v63  ;;  %v3213_v19 = vsub.f32 %v7353_v5, %v3154_v42 }
 0x603   : > { %v3786_v39 = vrot.slane %v3785_v37, 2  ;;  %v3790_v49 = vsel %vm2096_vm0, %v3709_v12, 0.0  ;;  %v3791_v29 = vsel %vm2096_vm0, %v3710_v17, 0.0  ;;  %v3367_v46 = vadd.f32 %v3366_v23, %v3365_v8  ;;  %v4712_v15 = vpop.f32.mrb[68].mxu0 }
 0x604   : > { %v3792_v48 = vadd.f32 %v3791_v29, %v3790_v49  ;;  %v3372_v21 = vadd.f32 %v3371_v59, %v3370_v55  ;;  %v3263_v6 = vmul.f32 1.442695, %v3211_v4  ;;  %v3265_v14 = vmul.f32 1.442695, %v3212_v54  ;;  %v4713_v51 = vpop.f32.mrb[69].mxu0 }
 0x605   : > { %v3787_v1 = vadd.f32 %v3786_v39, %v3785_v37  ;;  %5090 = vrcp.f32 %v3367_v46  ;;  %v3214_v53 = vsub.f32 %v7360_v50, %v3154_v42  ;;  %v3267_v58 = vmul.f32 1.442695, %v3213_v19  ;;  %v4715_v52 = vpop.f32.mrb[70].mxu0 }
 0x606   : > { %v3793_v56 = vrot.slane %v3792_v48, 4  ;;  %v3373_v5 = vrot.slane %v3372_v21, 2  ;;  %5092 = vpow2.f32 %v3263_v6  ;;  %v4716_v44 = vpop.f32.mrb[71].mxu0  ;;  %v4711_v0 = vadd.f32 %v4710_v9, %v4709_v36 }
 0x607   : > { %v3788_v20 = vrot.slane %v3787_v1, 1  ;;  %5094 = vpow2.f32 %v3265_v14  ;;  %v3269_v38 = vmul.f32 1.442695, %v3214_v53  ;;  %v4714_v28 = vadd.f32 %v4713_v51, %v4712_v15 }
 0x608   : > { %v3794_v33 = vadd.f32 %v3793_v56, %v3792_v48  ;;  %v3374_v45 = vadd.f32 %v3373_v5, %v3372_v21  ;;  %5096 = vpow2.f32 %v3267_v58  ;;  %v7424_v50 = vadd.f32 %v7418_v7, %v4711_v0 }
 0x609   : > { %5098 = vpow2.f32 %v3269_v38  ;;  %v4717_v13 = vadd.f32 %v4716_v44, %v4715_v52  ;;  %v3789_v30 = vadd.f32 %v3788_v20, %v3787_v1  ;;  %v3618_v18 = vrot.slane %v7410_v3, %v6480_v2 }
 0x60a   : > { %v3795_v40 = vrot.slane %v3794_v33, 2  ;;  %v3375_v35 = vrot.slane %v3374_v45, 1  ;;  %v7429_v22 = vadd.f32 %v7418_v7, %v4714_v28  ;;  %v3155_v36 = vsel %vm2096_vm0, %v7421_v41, -inf }
 0x60b   : > { %v3156_v9 = vsel %vm2096_vm0, %v7424_v50, -inf  ;;  %v7436_v24 = vadd.f32 %v7418_v7, %v4717_v13  ;;  %v3877_v11 = vpack.c.bf16 %v3789_v30, %v3789_v30  ;;  %v3622_v54 = vrot.slane %v7390_v62, %v6480_v2 }
 0x60c   : > { %v3796_v8 = vadd.f32 %v3795_v40, %v3794_v33  ;;  %v3376_v55 = vadd.f32 %v3375_v35, %v3374_v45  ;;  %v3157_v63 = vmax.f32 %v3155_v36, %v3156_v9  ;;  %v3164_v42 = vsel %vm2096_vm0, %v7429_v22, -inf }
 0x60d   : > { %v3165_v37 = vsel %vm2096_vm0, %v7436_v24, -inf  ;;  %v3924_v12 = vunpack.c.l.b16 %v3877_v11  ;;  %v3679_v19 = vadd.f32 %v3618_v18, %v6918_v27  ;;  %v3680_v39 = vadd.f32 %v3618_v18, %v6924_v43 }
 0x60e   : > { %5100 = vrcp.f32 %v3376_v55  ;;  %v3158_v17 = vrot.slane %v3157_v63, 4  ;;  %v3166_v23 = vmax.f32 %v3164_v42, %v3165_v37  ;;  %v3797_v59 = vrot.slane %v3796_v8, 1 }
 0x60f   : > { %v5091_v4 = vpop.eup %5090  ;;  %v3945_v49 = vsel %vm3944_vm7, %v3924_v12, %v7404_v47  ;;  %v3581_v14 = vcombine.high %v7390_v62, %v7390_v62  ;;  %v3681_v35 = vadd.f32 %v3622_v54, %v6915_v25 }
 0x610   : > { %v7448_v29 = vpop.eup %5092  ;;  %v3463_v46 = vmul.f32 %v5091_v4, %v7364_v16  ;;  %v3464_v15 = vmul.f32 %v5091_v4, %v7370_v60  ;;  %v3159_v48 = vmax.f32 %v3157_v63, %v3158_v17  ;;  %v3167_v21 = vrot.slane %v3166_v23, 4 }
 0x611   : > { %v7452_v6 = vpop.eup %5094  ;;  %v3377_v27 = vsel %vm2096_vm0, %v7448_v29, 0.0  ;;  %v3798_v43 = vadd.f32 %v3797_v59, %v3796_v8  ;;  %v3682_v17 = vadd.f32 %v3622_v54, %v6921_v34 }
 0x612   : > { %v7458_v51 = vpop.eup %5096  ;;  %v3711_v47 = vmul.f32 %v3679_v19, %v3463_v46  ;;  %v3712_v1 = vmul.f32 %v3680_v39, %v3464_v15  ;;  %v3378_v16 = vsel %vm2096_vm0, %v7452_v6, 0.0  ;;  %v3160_v60 = vrot.slane %v3159_v48, 2 }
 0x613   : > { %v7462_v53 = vpop.eup %5098  ;;  %v3379_v58 = vadd.f32 %v3378_v16, %v3377_v27  ;;  %v3386_v52 = vsel %vm2096_vm0, %v7458_v51, 0.0  ;;  %v3168_v56 = vmax.f32 %v3166_v23, %v3167_v21  ;;  %v4718_v5 = vpop.f32.mrb[72].mxu0  ;;  %v3878_v44 = vpack.c.bf16 %v3798_v43, %v3798_v43 }
 0x614   : > { %v3799_v20 = vsel %vm2096_vm0, %v3711_v47, 0.0  ;;  %v3800_v38 = vsel %vm2096_vm0, %v3712_v1, 0.0  ;;  %v3387_v0 = vsel %vm2096_vm0, %v7462_v53, 0.0  ;;  %v3161_v33 = vmax.f32 %v3159_v48, %v3160_v60  ;;  %v4719_v45 = vpop.f32.mrb[73].mxu0 }
 0x615   : > { %v3801_v28 = vadd.f32 %v3800_v38, %v3799_v20  ;;  %v3380_v13 = vrot.slane %v3379_v58, 4  ;;  %v3388_v30 = vadd.f32 %v3387_v0, %v3386_v52  ;;  %v3169_v18 = vrot.slane %v3168_v56, 2  ;;  %v4721_v40 = vpop.f32.mrb[74].mxu0 }
 0x616   : > { %v3162_v36 = vrot.slane %v3161_v33, 1  ;;  %v4720_v9 = vadd.f32 %v4719_v45, %v4718_v5  ;;  %v4722_v11 = vpop.f32.mrb[75].mxu0  ;;  %v3925_v8 = vunpack.c.l.b16 %v3878_v44 }
 0x617   : > { %v3802_v55 = vrot.slane %v3801_v28, 4  ;;  %v3381_v63 = vadd.f32 %v3380_v13, %v3379_v58  ;;  %v3389_v42 = vrot.slane %v3388_v30, 4  ;;  %v3170_v37 = vmax.f32 %v3168_v56, %v3169_v18 }
 0x618   : > { %v5101_v12 = vpop.eup %5100  ;;  %v3163_v23 = vmax.f32 %v3161_v33, %v3162_v36  ;;  %v4723_v59 = vadd.f32 %v4722_v11, %v4721_v40  ;;  %v7473_v4 = vsel %vm3946_vm8, %v3925_v8, %v3945_v49  ;;  %v7484_v45 = vadd.f32 %v7418_v7, %v4720_v9 }
 0x619   : > { %v3803_v19 = vadd.f32 %v3802_v55, %v3801_v28  ;;  %v3465_v39 = vmul.f32 %v5101_v12, %v7393_v61  ;;  %v3466_v25 = vmul.f32 %v5101_v12, %v7397_v57  ;;  %v3382_v46 = vrot.slane %v3381_v63, 2 }
 0x61a   : > { %v3390_v15 = vadd.f32 %v3389_v42, %v3388_v30  ;;  %v3215_v48 = vsub.f32 %v7421_v41, %v3163_v23  ;;  %v3216_v21 = vsub.f32 %v7424_v50, %v3163_v23  ;;  %v3171_v27 = vrot.slane %v3170_v37, 1 }
 0x61b   : > { %v3804_v43 = vrot.slane %v3803_v19, 2  ;;  %v3713_v47 = vmul.f32 %v3681_v35, %v3465_v39  ;;  %v3714_v34 = vmul.f32 %v3682_v17, %v3466_v25  ;;  %v3383_v54 = vadd.f32 %v3382_v46, %v3381_v63  ;;  %v4724_v1 = vpop.f32.mrb[76].mxu0 }
 0x61c   : > { %v3391_v16 = vrot.slane %v3390_v15, 2  ;;  %v3271_v49 = vmul.f32 1.442695, %v3215_v48  ;;  %v3273_v60 = vmul.f32 1.442695, %v3216_v21  ;;  %v3172_v58 = vmax.f32 %v3170_v37, %v3171_v27  ;;  %v4725_v52 = vpop.f32.mrb[77].mxu0 }
 0x61d   : > { %v3805_v61 = vadd.f32 %v3804_v43, %v3803_v19  ;;  %v3808_v57 = vsel %vm2096_vm0, %v3713_v47, 0.0  ;;  %v3809_v56 = vsel %vm2096_vm0, %v3714_v34, 0.0  ;;  %v3384_v5 = vrot.slane %v3383_v54, 1  ;;  %v4727_v41 = vpop.f32.mrb[78].mxu0 }
 0x61e   : > { %v3810_v44 = vadd.f32 %v3809_v56, %v3808_v57  ;;  %v3392_v50 = vadd.f32 %v3391_v16, %v3390_v15  ;;  %5102 = vpow2.f32 %v3271_v49  ;;  %v3217_v20 = vsub.f32 %v7429_v22, %v3172_v58  ;;  %v4728_v38 = vpop.f32.mrb[79].mxu0 }
 0x61f   : > { %v3385_v0 = vadd.f32 %v3384_v5, %v3383_v54  ;;  %5104 = vpow2.f32 %v3273_v60  ;;  %v3218_v33 = vsub.f32 %v7436_v24, %v3172_v58  ;;  %v3579_v28 = vcombine.high %v7410_v3, %v7410_v3  ;;  %v7834_v60 = vld [vmem:[#allocation50_spill] sm:$0xff] }
 0x620   : > { %v3811_v13 = vrot.slane %v3810_v44, 4  ;;  %v3393_v30 = vrot.slane %v3392_v50, 1  ;;  %v3275_v18 = vmul.f32 1.442695, %v3217_v20  ;;  %v3806_v40 = vrot.slane %v3805_v61, 1 }
 0x621   : > { %5106 = vrcp.f32 %v3385_v0  ;;  %v3277_v35 = vmul.f32 1.442695, %v3218_v33  ;;  %v7489_v36 = vadd.f32 %v7418_v7, %v4723_v59  ;;  %v4726_v8 = vadd.f32 %v4725_v52, %v4724_v1  ;;  %v7835_v52 = vld [vmem:[#allocation51_spill] sm:$0xff] }
 0x622   : > { %v3812_v22 = vadd.f32 %v3811_v13, %v3810_v44  ;;  %v3394_v11 = vadd.f32 %v3393_v30, %v3392_v50  ;;  %5108 = vpow2.f32 %v3275_v18  ;;  %v3173_v24 = vsel %vm2096_vm0, %v7484_v45, -inf }
 0x623   : > { %5110 = vpow2.f32 %v3277_v35  ;;  %v3174_v3 = vsel %vm2096_vm0, %v7489_v36, -inf  ;;  %v4729_v9 = vadd.f32 %v4728_v38, %v4727_v41  ;;  %v7496_v42 = vadd.f32 %v7418_v7, %v4726_v8 }
 0x624   : > { %v3813_v55 = vrot.slane %v3812_v22, 2  ;;  %5112 = vrcp.f32 %v3394_v11  ;;  %v3175_v63 = vmax.f32 %v3173_v24, %v3174_v3  ;;  %v3630_v37 = vrot.slane %v3581_v14, %v6480_v2 }
 0x625   : > { %v3807_v12 = vadd.f32 %v3806_v40, %v3805_v61  ;;  %v7503_v17 = vadd.f32 %v7418_v7, %v4729_v9  ;;  %v3626_v19 = vrot.slane %v3579_v28, %v6480_v2  ;;  %v3182_v39 = vsel %vm2096_vm0, %v7496_v42, -inf }
 0x626   : > { %v3814_v23 = vadd.f32 %v3813_v55, %v3812_v22  ;;  %v3176_v59 = vrot.slane %v3175_v63, 4  ;;  %v3685_v7 = vadd.f32 %v3630_v37, %v6939_v10  ;;  %v3534_v21 = vcombine.high %v7306_v31, %v7306_v31 }
 0x627   : > { %v3183_v25 = vsel %vm2096_vm0, %v7503_v17, -inf  ;;  %v3879_v27 = vpack.c.bf16 %v3807_v12, %v3807_v12  ;;  %v3683_v49 = vadd.f32 %v3626_v19, %v6942_v26  ;;  %v3686_v58 = vadd.f32 %v3630_v37, %v7834_v60 }
 0x628   : > { %v7510_v46 = vpop.eup %5102  ;;  %v3815_v15 = vrot.slane %v3814_v23, 1  ;;  %v3177_v48 = vmax.f32 %v3175_v63, %v3176_v59  ;;  %v3184_v62 = vmax.f32 %v3182_v39, %v3183_v25  ;;  %v3684_v10 = vadd.f32 %v3626_v19, %v7835_v52 }
 0x629   : > { %v7512_v14 = vpop.eup %5104  ;;  %v3395_v43 = vsel %vm2096_vm0, %v7510_v46, 0.0  ;;  %v3926_v50 = vunpack.c.l.b16 %v3879_v27 }
 0x62a   : > { %v3816_v47 = vadd.f32 %v3815_v15, %v3814_v23  ;;  %v3396_v34 = vsel %vm2096_vm0, %v7512_v14, 0.0  ;;  %v3178_v54 = vrot.slane %v3177_v48, 2  ;;  %v3185_v1 = vrot.slane %v3184_v62, 4 }
 0x62b   : > { %v5107_v16 = vpop.eup %5106  ;;  %v3397_v61 = vadd.f32 %v3396_v34, %v3395_v43 }
 0x62c   : > { %v7524_v57 = vpop.eup %5108  ;;  %v3880_v31 = vpack.c.bf16 %v3816_v47, %v3816_v47  ;;  %v3467_v56 = vmul.f32 %v5107_v16, %v7448_v29  ;;  %v3468_v5 = vmul.f32 %v5107_v16, %v7452_v6  ;;  %v3179_v41 = vmax.f32 %v3177_v48, %v3178_v54 }
 0x62d   : > { %v7528_v44 = vpop.eup %5110  ;;  %v3398_v20 = vrot.slane %v3397_v61, 4  ;;  %v3404_v26 = vsel %vm2096_vm0, %v7524_v57, 0.0  ;;  %v3186_v38 = vmax.f32 %v3184_v62, %v3185_v1  ;;  %v3548_v62 = vrot.slane %v3534_v21, %v6794_v32 }
 0x62e   : > { %v5113_v0 = vpop.eup %5112  ;;  %v3927_v33 = vunpack.c.l.b16 %v3880_v31  ;;  %v3715_v28 = vmul.f32 %v3683_v49, %v3467_v56  ;;  %v3716_v13 = vmul.f32 %v3684_v10, %v3468_v5  ;;  %v3405_v30 = vsel %vm2096_vm0, %v7528_v44, 0.0 }
 0x62f   : > { %v3469_v29 = vmul.f32 %v5113_v0, %v7458_v51  ;;  %v3470_v6 = vmul.f32 %v5113_v0, %v7462_v53  ;;  %v3399_v18 = vadd.f32 %v3398_v20, %v3397_v61  ;;  %v3406_v40 = vadd.f32 %v3405_v30, %v3404_v26 }
 0x630   : > { %v3817_v35 = vsel %vm2096_vm0, %v3715_v28, 0.0  ;;  %v3818_v22 = vsel %vm2096_vm0, %v3716_v13, 0.0  ;;  %v3180_v11 = vrot.slane %v3179_v41, 1  ;;  %v3187_v8 = vrot.slane %v3186_v38, 2 }
 0x631   : > { %v3819_v24 = vadd.f32 %v3818_v22, %v3817_v35  ;;  %v3717_v3 = vmul.f32 %v3685_v7, %v3469_v29  ;;  %v3718_v9 = vmul.f32 %v3686_v58, %v3470_v6  ;;  %v3400_v55 = vrot.slane %v3399_v18, 2 }
 0x632   : > { %v3407_v63 = vrot.slane %v3406_v40, 4  ;;  %v3181_v37 = vmax.f32 %v3179_v41, %v3180_v11  ;;  %v3188_v12 = vmax.f32 %v3186_v38, %v3187_v8  ;;  %v3948_v23 = vsel %vm3934_vm1, %v3927_v33, %v3926_v50  ;;  %v7837_v8 = vld [vmem:[#allocation55_spill] sm:$0xff] }
 0x633   : > { %v3820_v51 = vrot.slane %v3819_v24, 4  ;;  %v3826_v53 = vsel %vm2096_vm0, %v3717_v3, 0.0  ;;  %v3827_v59 = vsel %vm2096_vm0, %v3718_v9, 0.0  ;;  %v3401_v19 = vadd.f32 %v3400_v55, %v3399_v18 }
 0x634   : > { %v3828_v39 = vadd.f32 %v3827_v59, %v3826_v53  ;;  %v3408_v25 = vadd.f32 %v3407_v63, %v3406_v40  ;;  %v3219_v15 = vsub.f32 %v7484_v45, %v3181_v37  ;;  %v3220_v48 = vsub.f32 %v7489_v36, %v3181_v37  ;;  %v7836_v40 = vld [vmem:[#allocation53_spill] sm:$0xff] }
 0x635   : > { %v3821_v7 = vadd.f32 %v3820_v51, %v3819_v24  ;;  %v3402_v27 = vrot.slane %v3401_v19, 1  ;;  %v3189_v43 = vrot.slane %v3188_v12, 1  ;;  %v3550_v21 = vcombine.high %v3548_v62, %v3548_v62 }
 0x636   : > { %v3829_v47 = vrot.slane %v3828_v39, 4  ;;  %v3409_v34 = vrot.slane %v3408_v25, 2  ;;  %v3279_v54 = vmul.f32 1.442695, %v3219_v15  ;;  %v3281_v1 = vmul.f32 1.442695, %v3220_v48 }
 0x637   : > { %v3822_v16 = vrot.slane %v3821_v7, 2  ;;  %v3403_v49 = vadd.f32 %v3402_v27, %v3401_v19  ;;  %v3190_v60 = vmax.f32 %v3188_v12, %v3189_v43  ;;  %v7547_v56 = vrot.slane %v3548_v62, %v6794_v32  ;;  %v7839_v62 = vld [vmem:[#allocation54_spill] sm:$0xff] }
 0x638   : > { %v3830_v58 = vadd.f32 %v3829_v47, %v3828_v39  ;;  %v3410_v52 = vadd.f32 %v3409_v34, %v3408_v25  ;;  %5114 = vpow2.f32 %v3279_v54 }
 0x639   : > { %v3823_v10 = vadd.f32 %v3822_v16, %v3821_v7  ;;  %5116 = vrcp.f32 %v3403_v49  ;;  %v3221_v45 = vsub.f32 %v7496_v42, %v3190_v60  ;;  %v3222_v36 = vsub.f32 %v7503_v17, %v3190_v60 }
 0x63a   : > { %v3831_v61 = vrot.slane %v3830_v58, 2  ;;  %v3411_v31 = vrot.slane %v3410_v52, 1  ;;  %5118 = vpow2.f32 %v3281_v1  ;;  %v7550_v42 = vrot.slane %v3550_v21, %v6794_v32 }
 0x63b   : > { %v3824_v5 = vrot.slane %v3823_v10, 1  ;;  %v3283_v41 = vmul.f32 1.442695, %v3221_v45  ;;  %v3285_v50 = vmul.f32 1.442695, %v3222_v36  ;;  %v3634_v17 = vrot.slane %v7547_v56, %v6480_v2 }
 0x63c   : > { %v3832_v20 = vadd.f32 %v3831_v61, %v3830_v58  ;;  %v3412_v26 = vadd.f32 %v3411_v31, %v3410_v52  ;;  %v3638_v18 = vrot.slane %v7550_v42, %v6480_v2 }
 0x63d   : > { %v3825_v38 = vadd.f32 %v3824_v5, %v3823_v10  ;;  %5120 = vpow2.f32 %v3283_v41  ;;  %v3687_v35 = vadd.f32 %v3634_v17, %v7836_v40  ;;  %v3688_v24 = vadd.f32 %v3634_v17, %v7837_v8 }
 0x63e   : > { %v3833_v0 = vrot.slane %v3832_v20, 1  ;;  %5122 = vrcp.f32 %v3412_v26  ;;  %v3690_v7 = vadd.f32 %v3638_v18, %v7839_v62  ;;  %v7843_v62 = vld [vmem:[#allocation58_spill] sm:$0xff] }
 0x63f   : > { %v3881_v33 = vpack.c.bf16 %v3825_v38, %v3825_v38  ;;  %5124 = vpow2.f32 %v3285_v50 }
 0x640   : > { %v3834_v28 = vadd.f32 %v3833_v0, %v3832_v20 }
 0x641   : > { %v3928_v13 = vunpack.c.l.b16 %v3881_v33 }
 0x642   : > { %v7554_v30 = vpop.eup %5114  ;;  %v3882_v29 = vpack.c.bf16 %v3834_v28, %v3834_v28 }
 0x643   : > { %v5117_v6 = vpop.eup %5116  ;;  %v3413_v32 = vsel %vm2096_vm0, %v7554_v30, 0.0  ;;  %v3949_v22 = vsel %vm3936_vm2, %v3928_v13, %v3948_v23  ;;  %v7838_v23 = vld [vmem:[#allocation52_spill] sm:$0xff] }
 0x644   : > { %v7562_v11 = vpop.eup %5118  ;;  %v3929_v3 = vunpack.c.l.b16 %v3882_v29  ;;  %v3471_v9 = vmul.f32 %v5117_v6, %v7510_v46  ;;  %v3472_v55 = vmul.f32 %v5117_v6, %v7512_v14  ;;  %v3689_v19 = vadd.f32 %v3638_v18, %v7838_v23 }
 0x645   : > { %v3414_v63 = vsel %vm2096_vm0, %v7562_v11, 0.0  ;;  %v3580_v29 = vcombine.high %v7547_v56, %v7547_v56 }
 0x646   : > { %v3719_v37 = vmul.f32 %v3687_v35, %v3471_v9  ;;  %v3720_v12 = vmul.f32 %v3688_v24, %v3472_v55  ;;  %v3415_v51 = vadd.f32 %v3414_v63, %v3413_v32  ;;  %v3950_v53 = vsel %vm3938_vm3, %v3929_v3, %v3949_v22 }
 0x647   : > { %v7570_v59 = vpop.eup %5120  ;;  %v3582_v32 = vcombine.high %v7550_v42, %v7550_v42  ;;  %v3642_v8 = vrot.slane %v3580_v29, %v6480_v2 }
 0x648   : > { %v5123_v39 = vpop.eup %5122  ;;  %v3835_v25 = vsel %vm2096_vm0, %v3719_v37, 0.0  ;;  %v3836_v15 = vsel %vm2096_vm0, %v3720_v12, 0.0  ;;  %v3416_v46 = vrot.slane %v3415_v51, 4  ;;  %v3422_v14 = vsel %vm2096_vm0, %v7570_v59, 0.0  ;;  %v7840_v37 = vld [vmem:[#allocation57_spill] sm:$0xff]  ;;  %v7841_v12 = vld [vmem:[#allocation59_spill] sm:$0xff] }
 0x649   : > { %v5125_v48 = vpop.eup %5124  ;;  %v3837_v27 = vadd.f32 %v3836_v15, %v3835_v25  ;;  %v3473_v43 = vmul.f32 %v5123_v39, %v7524_v57  ;;  %v3474_v47 = vmul.f32 %v5123_v39, %v7528_v44  ;;  %v3646_v55 = vrot.slane %v3582_v32, %v6480_v2 }
 0x64a   : > { %v3417_v34 = vadd.f32 %v3416_v46, %v3415_v51  ;;  %v3423_v54 = vsel %vm2096_vm0, %v5125_v48, 0.0  ;;  %v3691_v56 = vadd.f32 %v3642_v8, %v7840_v37  ;;  %v3692_v51 = vadd.f32 %v3642_v8, %v7841_v12  ;;  %v7842_v46 = vld [vmem:[#allocation56_spill] sm:$0xff] }
 0x64b   : > { %v3838_v1 = vrot.slane %v3837_v27, 4  ;;  %v3721_v16 = vmul.f32 %v3689_v19, %v3473_v43  ;;  %v3722_v49 = vmul.f32 %v3690_v7, %v3474_v47  ;;  %v3424_v60 = vadd.f32 %v3423_v54, %v3422_v14 }
 0x64c   : > { %v3418_v58 = vrot.slane %v3417_v34, 2  ;;  %v3694_v7 = vadd.f32 %v3646_v55, %v7843_v62 }
 0x64d   : > { %v3839_v52 = vadd.f32 %v3838_v1, %v3837_v27  ;;  %v3844_v10 = vsel %vm2096_vm0, %v3721_v16, 0.0  ;;  %v3845_v45 = vsel %vm2096_vm0, %v3722_v49, 0.0  ;;  %v3425_v36 = vrot.slane %v3424_v60, 4 }
 0x64e   : > { %v3846_v21 = vadd.f32 %v3845_v45, %v3844_v10  ;;  %v3419_v61 = vadd.f32 %v3418_v58, %v3417_v34 }
 0x64f   : > { %v3840_v31 = vrot.slane %v3839_v52, 2  ;;  %v3426_v57 = vadd.f32 %v3425_v36, %v3424_v60 }
 0x650   : > { %v3847_v5 = vrot.slane %v3846_v21, 4  ;;  %v3420_v44 = vrot.slane %v3419_v61, 1 }
 0x651   : > { %v3841_v41 = vadd.f32 %v3840_v31, %v3839_v52  ;;  %v3427_v50 = vrot.slane %v3426_v57, 2 }
 0x652   : > { %v3848_v20 = vadd.f32 %v3847_v5, %v3846_v21  ;;  %v3421_v26 = vadd.f32 %v3420_v44, %v3419_v61 }
 0x653   : > { %v3842_v38 = vrot.slane %v3841_v41, 1  ;;  %v3428_v0 = vadd.f32 %v3427_v50, %v3426_v57 }
 0x654   : > { %v3849_v17 = vrot.slane %v3848_v20, 2  ;;  %5126 = vrcp.f32 %v3421_v26  ;;  %v4492_v26 = vld [vmem:[#allocation28] ss:$0 sm:$0xff] }
 0x655   : > { %v3843_v33 = vadd.f32 %v3842_v38, %v3841_v41  ;;  %v3429_v28 = vrot.slane %v3428_v0, 1 }
 0x656   : > { %v3850_v13 = vadd.f32 %v3849_v17, %v3848_v20 }
 0x657   : > { %v3883_v6 = vpack.c.bf16 %v3843_v33, %v3843_v33  ;;  %v3430_v18 = vadd.f32 %v3429_v28, %v3428_v0  ;;  %v4024_v0 = vld [vmem:[%s853_s1] sm:$0xff] }
 0x658   : > { %v3851_v40 = vrot.slane %v3850_v13, 1 }
 0x659   : > { %v3930_v35 = vunpack.c.l.b16 %v3883_v6  ;;  %5128 = vrcp.f32 %v3430_v18 }
 0x65a   : > { %v3852_v22 = vadd.f32 %v3851_v40, %v3850_v13  ;;  %v4025_v13 = vld [vmem:[%s853_s1 + $0x8] sm:$0xff] }
 0x65b   : > { %v3951_v24 = vsel %vm3940_vm4, %v3930_v35, %v3950_v53  ;;  %v3693_v53 = vadd.f32 %v3646_v55, %v7842_v46 }
 0x65c   : > { %v3884_v3 = vpack.c.bf16 %v3852_v22, %v3852_v22 }
 0x65e   : > { %v5127_v9 = vpop.eup %5126  ;;  %v3931_v63 = vunpack.c.l.b16 %v3884_v3 }
 0x65f   : > { %v3475_v23 = vmul.f32 %v5127_v9, %v7554_v30  ;;  %v3476_v19 = vmul.f32 %v5127_v9, %v7562_v11 }
 0x660   : > { %v3952_v42 = vsel %vm3942_vm6, %v3931_v63, %v3951_v24 }
 0x661   : > { %v3723_v39 = vmul.f32 %v3691_v56, %v3475_v23  ;;  %v3724_v25 = vmul.f32 %v3692_v51, %v3476_v19 }
 0x663   : > { %v5129_v15 = vpop.eup %5128  ;;  %v3853_v14 = vsel %vm2096_vm0, %v3723_v39, 0.0  ;;  %v3854_v2 = vsel %vm2096_vm0, %v3724_v25, 0.0 }
 0x664   : > { %v3855_v27 = vadd.f32 %v3854_v2, %v3853_v14  ;;  %v3477_v43 = vmul.f32 %v5129_v15, %v7570_v59  ;;  %v3478_v47 = vmul.f32 %v5129_v15, %v5125_v48 }
 0x666   : > { %v3856_v30 = vrot.slane %v3855_v27, 4  ;;  %v3725_v34 = vmul.f32 %v3693_v53, %v3477_v43  ;;  %v3726_v11 = vmul.f32 %v3694_v7, %v3478_v47 }
 0x668   : > { %v3857_v54 = vadd.f32 %v3856_v30, %v3855_v27  ;;  %v3862_v1 = vsel %vm2096_vm0, %v3725_v34, 0.0  ;;  %v3863_v16 = vsel %vm2096_vm0, %v3726_v11, 0.0 }
 0x669   : > { %v3864_v49 = vadd.f32 %v3863_v16, %v3862_v1 }
 0x66a   : > { %v3858_v60 = vrot.slane %v3857_v54, 2 }
 0x66b   : > { %v3865_v58 = vrot.slane %v3864_v49, 4 }
 0x66c   : > { %v3859_v52 = vadd.f32 %v3858_v60, %v3857_v54 }
 0x66d   : > { %v3866_v10 = vadd.f32 %v3865_v58, %v3864_v49 }
 0x66e   : > { %v3860_v45 = vrot.slane %v3859_v52, 1 }
 0x66f   : > { %v3867_v36 = vrot.slane %v3866_v10, 2 }
 0x670   : > { %v3861_v21 = vadd.f32 %v3860_v45, %v3859_v52 }
 0x671   : > { %v3868_v59 = vadd.f32 %v3867_v36, %v3866_v10 }
 0x672   : > { %v3885_v48 = vpack.c.bf16 %v3861_v21, %v3861_v21 }
 0x673   : > { %v3869_v61 = vrot.slane %v3868_v59, 1 }
 0x674   : > { %v3932_v31 = vunpack.c.l.b16 %v3885_v48 }
 0x675   : > { %v3870_v57 = vadd.f32 %v3869_v61, %v3868_v59 }
 0x676   : > { %v3953_v5 = vsel %vm3944_vm7, %v3932_v31, %v3952_v42 }
 0x677   : > { %v3886_v44 = vpack.c.bf16 %v3870_v57, %v3870_v57 }
 0x679   : > { %v3933_v41 = vunpack.c.l.b16 %v3886_v44 }
 0x67b   : > { %v3954_v50 = vsel %vm3946_vm8, %v3933_v41, %v3953_v5 }
 0x67c   : > { %v3955_v20 = vpack.c.b16 %v3954_v50, %v7473_v4 }
 0x67e   : > { %4784 = vmatmul.mubr.msk.bf16.vlgmr.msra.gmra.mrb[80].mxu1 %vm2096_vm0, %v3955_v20 }
 0x751   : > { %v4017_v38 = vpop.f32.mrb[80].mxu1 }
 0x752   : > { %v4018_v17 = vadd.f32 %v4492_v26, %v4017_v38  ;;  %v4785_v33 = vpop.f32.mrb[81].mxu1 }
 0x753   : > { %v4020_v28 = vpop.f32.mrb[82].mxu1 }
 0x754   : > { %v4026_v29 = vadd.f32 %v4024_v0, %v4018_v17  ;;  %v4021_v4 = vadd.f32 %v4492_v26, %v4020_v28  ;;  %v4786_v6 = vpop.f32.mrb[83].mxu1 }
 0x756   : > { %4028 = vst [vmem:[%s973_s12] sm:$0xff] %v4026_v29  ;;  %v4027_v18 = vadd.f32 %v4025_v13, %v4021_v4 }
 0x758   : > { %4029 = vst [vmem:[%s973_s12 + $0x8] sm:$0xff] %v4027_v18 }
 0x759   : > { %5634 = shalt.err (!%p5631_p7)
}
 0x75a   : > { %s5635_s27 = scalar_lea.hbm %s7617_s3, 256  ;;  %s5639_s20 = scalar_lea.hbm %s7846_s11, 512 }
 0x75b   : > { %p5636_p8 = scmp.ne.s32.totalorder %s7617_s3, %s5635_s27  ;;  %p5640_p9 = scmp.lt.u32.totalorder %s7617_s3, %s7846_s11 }
 0x75c   : > { %p5641_p10 = scmp.lt.u32.totalorder %s5639_s20, %s5635_s27  ;;  %p5643_p13 = scmp.lt.u32.totalorder %s5635_s27, %s7617_s3 }
 0x75d   : > { %p5637_p11 = pnand %p5636_p8, %p7847_p1 }
 0x75e   : > { %p5642_p3 = por %p5641_p10, %p5640_p9 }
 0x75f   : > { %p5638_p5 = pneg %p5637_p11 }
 0x760   : > { %p5644_p0 = por %p5643_p13, %p5642_p3 }
 0x762   : > { %p5645_p4 = pnand %p5644_p0, %p5638_p5 }
 0x764   : > { %5648 = shalt.err (!%p5645_p4)
}
 0x765   : > { %s5763_s10 = smov 128   ;;  %s5764_s2 = smov 8  }
 0x766   : > { %4849 = dma.vmem_to_hbm [thread:$0]  (%p7847_p1), %s7612_s24, 256, %s7617_s3, %s4031_s23, %s5763_s10, %s5763_s10, %s5764_s2  }
 0x767 PF: > { %s7848_s1 = sld [smem:[#allocation40_spill]]  ;;  %s7849_s4 = sld [smem:[#allocation49_spill]] }
 0x768   : > { %s7850_s12 = sld [smem:[#allocation43_spill]] }
 0x76d   : > { %s4061_s9 = sand.u32 1, %s7848_s1   ;;  %p7851_p12 = scmp.ne.s32.totalorder %s7849_s4, 0 }
 0x76e   : > { %p7852_p6 = scmp.ge.s32.totalorder %s7850_s12, 2  ;;  %s4062_s16 = scalar_lea.sflag [#allocation4], %s4061_s9 }
 0x770   : > { %p4905_p2 = pnand %p7852_p6, %p7851_p12 }
 0x772   : > { %5710 = dma.done.wait (!%p4905_p2), %s4062_s16, 256  }
 0x773   : > { %5712 = vsyncadd (!%p4905_p2), %s4062_s16, 4294967040  ;;  %s47_s29 = sadd.s32 1, %s7850_s12   ;;  %s7853_s22 = sld [smem:[#allocation41_spill]] }
 0x774   : > { %p44_p7 = scmp.ge.s32.totalorder %s47_s29, 4   ;;  %s7854_s26 = sld [smem:[#allocation48_spill]] }
 0x775   : > { %s7855_s15 = sld [smem:[#allocation46_spill]]  ;;  %s7856_s24 = smov %s5719_s25 }
 0x776   : > { %s7858_s27 = smov %s5731_s28  ;;  %46 = sbr.rel (!%p44_p7) target bundleno = 36 (0x24), region = 245 }
 0x779   : > { %s7857_s25 = smov %s7853_s22 }
 0x77b   : > { %s7859_s28 = smov %s7855_s15 }
 0x77d   :  { %4067 = vsyncpa [#allocation3], 1 }
 0x77e   :  { %4069 = vsyncpa [#allocation3 + $0x1], 1 }
 0x77f   :  { %4070 = vsyncpa [#allocation6], 1 }
 0x780   :  { %4072 = vsyncpa [#allocation6 + $0x1], 1 }
 0x781   :  { %4073 = vsyncpa [#allocation9], 1 }
 0x782   :  { %4075 = vsyncpa [#allocation9 + $0x1], 1 }
 0x783   :  { %4076 = vsyncpa [#allocation12], 1 }
 0x784   :  { %4078 = vsyncpa [#allocation12 + $0x1], 1 }
 0x785   :  { %4079 = vsyncpa [#allocation15], 1 }
 0x786   :  { %4080 = vsyncpa [#allocation18], 1 }
 0x787   :  { %4081 = vsyncpa [#allocation21], 1 }
 0x788   :  { %4082 = vsyncpa [#allocation24], 1 }
 0x789   :  { %4083 = vsyncpa [#allocation27], 1 }
 0x78a   :  { %4084 = vsyncpa [#allocation4], 1 }
 0x78b   :  { %4086 = vsyncpa [#allocation4 + $0x1], 1 }

// kernel: model_forward.20
= control target key start
LH: loop header
LB: loop body
LE: loop exit
PB: predicated region body
PF: predicated region fallthrough
CT: control target
= control target key end

     0   :  { %s2357_s0 = inlined_call_operand.hbm [shape: f32[2,16,128], index: 0, kind: input, shape index: {}]   ;;  %s2358_s1 = inlined_call_operand.hbm [shape: f32[2,16,128], index: 1, kind: input, shape index: {}]   ;;  %s2359_s2 = inlined_call_operand.hbm [shape: f32[2,16,128], index: 2, kind: input, shape index: {}]   ;;  %s2360_s3 = inlined_call_operand.hbm [shape: bf16[128,256], index: 3, kind: input, shape index: {}]   ;;  %s2361_s4 = inlined_call_operand.hbm [shape: bf16[128,256], index: 4, kind: input, shape index: {}]   ;;  %s2362_s5 = inlined_call_operand.hbm [shape: bf16[128,256], index: 5, kind: input, shape index: {}]   ;;  %s2363_s6 = inlined_call_operand.vmem [shape: f32[1,256], index: 6, kind: input, shape index: {}]   ;;  %s2364_s7 = inlined_call_operand.hbm [shape: bf16[256,128], index: 7, kind: input, shape index: {}]   ;;  %s2365_s8 = inlined_call_operand.vmem [shape: f32[1,128], index: 8, kind: input, shape index: {}]   ;;  %s2366_s9 = inlined_call_operand.vmem [shape: f32[2,16,128], index: 9, kind: output, shape index: {}]  }
   0x1   :  { %2388 = sst [smem:[#allocation21_spill]] %s2358_s1 }
   0x2   :  { %2389 = sst [smem:[#allocation22_spill]] %s2360_s3 }
   0x3   :  { %2390 = sst [smem:[#allocation23_spill]] %s2362_s5 }
   0x4   :  { %2391 = sst [smem:[#allocation24_spill]] %s2363_s6 }
   0x5   :  { %2392 = sst [smem:[#allocation25_spill]] %s2365_s8 }
   0x6   :  { %2393 = sst [smem:[#allocation26_spill]] %s2366_s9 }
   0x7   :  { %14 = vsyncpa [#allocation3], 0 }
   0x8   :  { %16 = vsyncpa [#allocation3 + $0x1], 0 }
   0x9   :  { %17 = vsyncpa [#allocation5], 0 }
   0xa   :  { %19 = vsyncpa [#allocation5 + $0x1], 0 }
   0xb   :  { %20 = vsyncpa [#allocation8], 0 }
   0xc   :  { %21 = vsyncpa [#allocation11], 0  ;;  %s1994_s30 = smov 0   ;;  %s1996_s10 = smov 0  }
   0xd   :  { %s1998_s11 = smov 0   ;;  %s2000_s12 = smov 0  }
   0xe   :  { %s2002_s13 = smov 0   ;;  %s2004_s14 = smov 0  }
   0xf LB: > { %2394 = sst [smem:[#allocation17_spill]] %s1922_s12  ;;  %s2371_s15 = sadd.s32 4294967295, %s1930_s14   ;;  %s1930_s14 = sphi %s2004_s14, %s27_s14   ;;  %s1926_s13 = sphi %s2002_s13, %s2425_s13   ;;  %s1922_s12 = sphi %s2000_s12, %s2424_s12   ;;  %s1918_s11 = sphi %s1998_s11, %s2428_s11   ;;  %s1914_s10 = sphi %s1996_s10, %s2427_s10   ;;  %s1910_s30 = sphi %s1994_s30, %s2426_s30  }
  0x10   : > { %2395 = sst [smem:[#allocation18_spill]] %s1926_s13  ;;  %p61_p0 = scmp.ne.s32.totalorder %s1914_s10, %s1910_s30 }
  0x11   : > { %p2026_p1 = scmp.eq.s32.totalorder %s2371_s15, 0  ;;  %p1341_p2 = scmp.ge.s32.totalorder %s1930_s14, 1 }
  0x12   : > { %p282_p3 = scmp.lt.s32.totalorder %s1930_s14, 3  ;;  %s1932_s19 = smov [#allocation7]  }
  0x13   : > { %s2396_s16 = scalar_select %p2026_p1, 1, 0 }
  0x14   : > { %p2034_p4 = por %p2026_p1, %p61_p0  ;;  %p2038_p5 = pnand %p1341_p2, %p282_p3 }
  0x15   : > { %s294_s20 = sshll.u32 %s1932_s19, 4  ;;  %s1933_s22 = smov [#allocation10]   ;;  %s295_s20 = int_to_ptr.vmem [resolvable:$true] %s294_s20 }
  0x16   : > { %s2397_s17 = scalar_select %p2034_p4, 1, 0 }
  0x17   : > { %s2398_s18 = scalar_select %p2038_p5, 1, 0 }
  0x18   : > { %p1489_p6 = pneg %p2038_p5  ;;  %s320_s23 = sshll.u32 %s1933_s22, 4  ;;  %s2050_s23 = int_to_ptr.vmem [resolvable:$true] %s320_s23 }
  0x19   : > { %s2400_s3 = sld [smem:[#allocation22_spill]] }
  0x1a   : > { %p2046_p7 = pnand %p1489_p6, %p2026_p1 }
  0x1c   : > { %s2399_s21 = scalar_select %p2046_p7, 1, 0 }
  0x1d   : > { %p2060_p9 = pneg %p2046_p7 }
  0x1f   : > { %s1666_s26 = scalar_lea.hbm %s2400_s3, 2048 }
  0x20   : > { %p1667_p8 = scmp.ne.s32.totalorder %s2400_s3, %s1666_s26  ;;  %p1673_p12 = scmp.lt.u32.totalorder %s1666_s26, %s2400_s3 }
  0x21   : > { %s2401_s29 = scalar_select %p2060_p9, 1, 0 }
  0x22   : > { %p1669_p10 = pnand %p2060_p9, %p1667_p8 }
  0x24   : > { %p1670_p11 = pneg %p1669_p10 }
  0x26   : > { %p1675_p13 = pnand %p1673_p12, %p1670_p11 }
  0x28   : > { %1678 = shalt.err (!%p1675_p13)
}
  0x29   : > { %s1679_s22 = scalar_lea.vmem %s295_s20, 2048  ;;  %p1687_p6 = scmp.lt.s32.totalorder %s295_s20, %s295_s20 }
  0x2a   : > { %p1680_p0 = scmp.ne.s32.totalorder %s295_s20, %s1679_s22  ;;  %p1688_p1 = scmp.lt.s32.totalorder %s1679_s22, %s1679_s22 }
  0x2c   : > { %p1682_p2 = pnand %p1680_p0, %p2060_p9  ;;  %p1689_p4 = por %p1688_p1, %p1687_p6 }
  0x2e   : > { %p1683_p3 = pneg %p1682_p2 }
  0x30   : > { %p1690_p5 = pnand %p1689_p4, %p1683_p3 }
  0x32   : > { %1693 = shalt.err (!%p1690_p5)
}
  0x33   : > { %s2372_s24 = smov 128   ;;  %s2375_s25 = smov 8  }
  0x34   : > { %1492 = dma.hbm_to_vmem [thread:$0]  (!%p2046_p7), %s2400_s3, 2048, %s295_s20, [#allocation8], %s2372_s24, %s2372_s24, %s2375_s25  }
  0x35   : > { %s2402_s5 = sld [smem:[#allocation23_spill]] }
  0x3b   : > { %s1694_s19 = scalar_lea.hbm %s2402_s5, 2048 }
  0x3c   : > { %p1695_p1 = scmp.ne.s32.totalorder %s2402_s5, %s1694_s19  ;;  %p1701_p8 = scmp.lt.u32.totalorder %s1694_s19, %s2402_s5 }
  0x3e   : > { %p1697_p4 = pnand %p1695_p1, %p2060_p9 }
  0x40   : > { %p1698_p5 = pneg %p1697_p4 }
  0x42   : > { %p1703_p10 = pnand %p1701_p8, %p1698_p5 }
  0x44   : > { %1706 = shalt.err (!%p1703_p10)
}
  0x45   : > { %s1707_s20 = scalar_lea.vmem %s2050_s23, 2048  ;;  %p1715_p0 = scmp.lt.s32.totalorder %s2050_s23, %s2050_s23 }
  0x46   : > { %p1708_p11 = scmp.ne.s32.totalorder %s2050_s23, %s1707_s20  ;;  %p1716_p2 = scmp.lt.s32.totalorder %s1707_s20, %s1707_s20 }
  0x48   : > { %p1710_p12 = pnand %p1708_p11, %p2060_p9  ;;  %p1717_p3 = por %p1716_p2, %p1715_p0 }
  0x4a   : > { %p1711_p13 = pneg %p1710_p12 }
  0x4c   : > { %p1718_p6 = pnand %p1717_p3, %p1711_p13 }
  0x4e   : > { %1721 = shalt.err (!%p1718_p6)
}
  0x4f   : > { %1498 = dma.hbm_to_vmem [thread:$0]  (!%p2046_p7), %s2402_s5, 2048, %s2050_s23, [#allocation11], %s2372_s24, %s2372_s24, %s2375_s25  }
  0x50   : > { %s39_s15 = sadd.s32 1, %s1926_s13  ;;  %s48_s26 = sadd.s32 1, %s1918_s11 }
  0x51   : > { %p41_p1 = scmp.ge.s32.totalorder %s39_s15, 2  ;;  %p55_p4 = scmp.ne.s32.totalorder %s1918_s11, %s1914_s10 }
  0x52   : > { %p56_p5 = scmp.eq.s32.totalorder %s1930_s14, 0  ;;  %p1516_p8 = scmp.lt.s32.totalorder %s1930_s14, 2 }
  0x53   : > { %s2430_s15 = smov (%p41_p1, %s39_s15), 0  ;;  %s2374_s27 = sand.u32 1, %s1918_s11  }
  0x54   : > { %2403 = sst [smem:[#allocation19_spill]] %s2430_s15  ;;  %p57_p10 = por %p56_p5, %p55_p4 }
  0x55   : > { %s43_s28 = ssub.s32 %s1926_s13, %s2430_s15  ;;  %s2118_s30 = sshll.u32 %s2374_s27, 4 }
  0x56   : > { %p46_p11 = scmp.eq.s32.totalorder %s43_s28, 0  ;;  %s2121_s19 = sshll.u32 %s1926_s13, 8 }
  0x57   : > { %p2123_p12 = pnand %p1516_p8, %p57_p10  ;;  %s376_s22 = sand.u32 1, %s1930_s14  }
  0x58   : > { %s2129_s20 = scalar_select %p46_p11, %s1918_s11, %s48_s26  }
  0x59   : > { %s2404_s23 = scalar_select %p2123_p12, 1, 0 }
  0x5a   : > { %2405 = sst [smem:[#allocation20_spill]] %s2129_s20  ;;  %s380_s28 = scalar_lea.vmem [#allocation4], %s2118_s30 }
  0x5b   : > { %s2406_s1 = sld [smem:[#allocation21_spill]]  ;;  %s389_s27 = sshll.u32 %s380_s28, 4  ;;  %s2138_s27 = int_to_ptr.vmem [resolvable:$true] %s389_s27 }
  0x5c   : > { %s1936_s25 = smov [#allocation9]   ;;  %s2142_s5 = scalar_lea.sflag [#allocation5], %s376_s22 }
  0x5d   : > { %s2140_s3 = sshll.u32 %s1936_s25, 4  ;;  %p2148_p0 = pneg %p2123_p12  ;;  %s308_s3 = int_to_ptr.vmem [resolvable:$true] %s2140_s3 }
  0x5f   : > { %s2407_s8 = scalar_select %p2148_p0, 1, 0 }
  0x61   : > { %s2135_s24 = scalar_lea.hbm %s2406_s1, %s2121_s19  ;;  %s1727_s15 = scalar_lea.hbm %s2406_s1, 512 }
  0x62   : > { %s1722_s26 = scalar_lea.hbm %s2135_s24, 256  ;;  %p1728_p6 = scmp.lt.u32.totalorder %s2135_s24, %s2406_s1 }
  0x63   : > { %p1723_p13 = scmp.ne.s32.totalorder %s2135_s24, %s1722_s26  ;;  %p1729_p1 = scmp.lt.u32.totalorder %s1727_s15, %s1722_s26 }
  0x64   : > { %p1731_p5 = scmp.lt.u32.totalorder %s1722_s26, %s2135_s24 }
  0x65   : > { %p1725_p2 = pnand %p2148_p0, %p1723_p13  ;;  %p1730_p4 = por %p1729_p1, %p1728_p6 }
  0x67   : > { %p1726_p3 = pneg %p1725_p2  ;;  %p1732_p8 = por %p1731_p5, %p1730_p4 }
  0x69   : > { %p1733_p10 = pnand %p1732_p8, %p1726_p3 }
  0x6b   : > { %1736 = shalt.err (!%p1733_p10)
}
  0x6c   : > { %s1737_s22 = scalar_lea.vmem %s2138_s27, 256  ;;  %s1937_s9 = smov [#allocation4]  }
  0x6d   : > { %p1738_p11 = scmp.ne.s32.totalorder %s2138_s27, %s1737_s22  ;;  %s1742_s28 = sshll.u32 %s1937_s9, 4  ;;  %s1743_s28 = int_to_ptr.vmem [resolvable:$false] %s1742_s28 }
  0x6e   : > { %s1744_s13 = scalar_lea.vmem %s1743_s28, 512  ;;  %p1745_p7 = scmp.lt.s32.totalorder %s2138_s27, %s1743_s28 }
  0x6f   : > { %p1740_p13 = pnand %p1738_p11, %p2148_p0  ;;  %p1746_p9 = scmp.lt.s32.totalorder %s1744_s13, %s1737_s22 }
  0x71   : > { %p1741_p2 = pneg %p1740_p13  ;;  %p1747_p6 = por %p1746_p9, %p1745_p7 }
  0x73   : > { %p1748_p1 = pnand %p1747_p6, %p1741_p2 }
  0x75   : > { %1751 = shalt.err (!%p1748_p1)
}
  0x76   : > { %s2408_s15 = smov 8   ;;  %s2409_s26 = smov 128  }
  0x77   : > { %1508 = dma.hbm_to_vmem [thread:$0]  (!%p2123_p12), %s2135_s24, 256, %s2138_s27, %s2142_s5, %s2409_s26, %s2409_s26, %s2408_s15  }
  0x78   : > { %s1752_s28 = scalar_lea.hbm %s2361_s4, 2048  ;;  %p2410_p9 = scmp.ne.s32.totalorder %s2401_s29, 0 }
  0x79   : > { %p1753_p7 = scmp.ne.s32.totalorder %s2361_s4, %s1752_s28  ;;  %p1759_p5 = scmp.lt.u32.totalorder %s1752_s28, %s2361_s4 }
  0x7b   : > { %p1755_p3 = pnand %p1753_p7, %p2410_p9 }
  0x7d   : > { %p1756_p4 = pneg %p1755_p3 }
  0x7f   : > { %p1761_p8 = pnand %p1759_p5, %p1756_p4 }
  0x81   : > { %1764 = shalt.err (!%p1761_p8)
}
  0x82   : > { %s1765_s12 = scalar_lea.vmem %s308_s3, 2048  ;;  %p1773_p2 = scmp.lt.s32.totalorder %s308_s3, %s308_s3 }
  0x83   : > { %p1766_p10 = scmp.ne.s32.totalorder %s308_s3, %s1765_s12  ;;  %p1774_p6 = scmp.lt.s32.totalorder %s1765_s12, %s1765_s12 }
  0x85   : > { %p1768_p11 = pnand %p1766_p10, %p2410_p9  ;;  %p1775_p1 = por %p1774_p6, %p1773_p2 }
  0x87   : > { %p1769_p13 = pneg %p1768_p11 }
  0x89   : > { %p1776_p12 = pnand %p1775_p1, %p1769_p13 }
  0x8b   : > { %1779 = shalt.err (!%p1776_p12)
}
  0x8c   : > { %p2411_p7 = scmp.ne.s32.totalorder %s2399_s21, 0  ;;  %s1938_s27 = smov [#allocation12]  }
  0x8d   : > { %s336_s20 = sshll.u32 %s1938_s27, 4  ;;  %s1780_s12 = scalar_lea.hbm %s2364_s7, 2048  ;;  %s337_s20 = int_to_ptr.vmem [resolvable:$true] %s336_s20 }
  0x8e   : > { %1495 = dma.hbm_to_vmem [thread:$0]  (!%p2411_p7), %s2361_s4, 2048, %s308_s3, [#allocation8], %s2409_s26, %s2409_s26, %s2408_s15  }
  0x8f   : > { %p1781_p12 = scmp.ne.s32.totalorder %s2364_s7, %s1780_s12  ;;  %p1787_p5 = scmp.lt.u32.totalorder %s1780_s12, %s2364_s7 }
  0x91   : > { %p1783_p3 = pnand %p1781_p12, %p2410_p9 }
  0x93   : > { %p1784_p4 = pneg %p1783_p3 }
  0x95   : > { %p1789_p8 = pnand %p1787_p5, %p1784_p4 }
  0x97   : > { %1792 = shalt.err (!%p1789_p8)
}
  0x98   : > { %s1793_s3 = scalar_lea.vmem %s337_s20, 2048  ;;  %p1801_p2 = scmp.lt.s32.totalorder %s337_s20, %s337_s20 }
  0x99   : > { %p1794_p10 = scmp.ne.s32.totalorder %s337_s20, %s1793_s3  ;;  %p1802_p6 = scmp.lt.s32.totalorder %s1793_s3, %s1793_s3 }
  0x9b   : > { %p1796_p11 = pnand %p1794_p10, %p2410_p9  ;;  %p1803_p1 = por %p1802_p6, %p1801_p2 }
  0x9d   : > { %p1797_p13 = pneg %p1796_p11 }
  0x9f   : > { %p1804_p0 = pnand %p1803_p1, %p1797_p13 }
  0xa1   : > { %1807 = shalt.err (!%p1804_p0)
}
  0xa2   : > { %s1939_s1 = smov 64   ;;  %s1940_s6 = smov 4  }
  0xa3   : > { %1501 = dma.hbm_to_vmem [thread:$0]  (!%p2411_p7), %s2364_s7, 2048, %s337_s20, [#allocation11], %s1939_s1, %s1939_s1, %s1940_s6  }
  0xa4   : > { %s2219_s9 = scalar_lea.hbm %s2357_s0, %s2121_s19  ;;  %s357_s12 = scalar_lea.vmem [#allocation2], %s2118_s30 }
  0xa5   : > { %s366_s28 = sshll.u32 %s357_s12, 4  ;;  %s2412_s22 = sand.u32 1, %s1918_s11   ;;  %s2222_s28 = int_to_ptr.vmem [resolvable:$true] %s366_s28 }
  0xa6   : > { %s2226_s13 = scalar_lea.sflag [#allocation3], %s2412_s22  ;;  %s1808_s21 = scalar_lea.hbm %s2219_s9, 256 }
  0xa7   : > { %p1809_p0 = scmp.ne.s32.totalorder %s2219_s9, %s1808_s21  ;;  %p2413_p9 = scmp.ne.s32.totalorder %s2407_s8, 0 }
  0xa8   : > { %s1813_s1 = scalar_lea.hbm %s2357_s0, 512  ;;  %p1814_p3 = scmp.lt.u32.totalorder %s2219_s9, %s2357_s0 }
  0xa9   : > { %p1811_p7 = pnand %p1809_p0, %p2413_p9  ;;  %p1815_p4 = scmp.lt.u32.totalorder %s1813_s1, %s1808_s21 }
  0xaa   : > { %p1817_p8 = scmp.lt.u32.totalorder %s1808_s21, %s2219_s9 }
  0xab   : > { %p1812_p12 = pneg %p1811_p7  ;;  %p1816_p5 = por %p1815_p4, %p1814_p3 }
  0xad   : > { %p1818_p10 = por %p1817_p8, %p1816_p5 }
  0xaf   : > { %p1819_p11 = pnand %p1818_p10, %p1812_p12 }
  0xb1   : > { %1822 = shalt.err (!%p1819_p11)
}
  0xb2   : > { %s1823_s27 = scalar_lea.vmem %s2222_s28, 256  ;;  %s1941_s29 = smov [#allocation2]  }
  0xb3   : > { %p1824_p13 = scmp.ne.s32.totalorder %s2222_s28, %s1823_s27  ;;  %s1828_s25 = sshll.u32 %s1941_s29, 4  ;;  %s1829_s25 = int_to_ptr.vmem [resolvable:$false] %s1828_s25 }
  0xb4   : > { %s1830_s12 = scalar_lea.vmem %s1829_s25, 512  ;;  %p1831_p1 = scmp.lt.s32.totalorder %s2222_s28, %s1829_s25 }
  0xb5   : > { %p1826_p2 = pnand %p1824_p13, %p2413_p9  ;;  %p1832_p0 = scmp.lt.s32.totalorder %s1830_s12, %s1823_s27 }
  0xb7   : > { %p1827_p6 = pneg %p1826_p2  ;;  %p1833_p7 = por %p1832_p0, %p1831_p1 }
  0xb9   : > { %p1834_p3 = pnand %p1833_p7, %p1827_p6 }
  0xbb   : > { %1837 = shalt.err (!%p1834_p3)
}
  0xbc   : > { %p2414_p12 = scmp.ne.s32.totalorder %s2404_s23, 0  ;;  %s2257_s20 = scalar_lea.hbm %s2359_s2, %s2121_s19 }
  0xbd   : > { %s403_s3 = scalar_lea.vmem [#allocation6], %s2118_s30  ;;  %s1838_s6 = scalar_lea.hbm %s2257_s20, 256 }
  0xbe   : > { %1505 = dma.hbm_to_vmem [thread:$0]  (!%p2414_p12), %s2219_s9, 256, %s2222_s28, %s2226_s13, %s2409_s26, %s2409_s26, %s2408_s15  }
  0xbf   : > { %s412_s1 = sshll.u32 %s403_s3, 4  ;;  %p1839_p4 = scmp.ne.s32.totalorder %s2257_s20, %s1838_s6  ;;  %s2260_s1 = int_to_ptr.vmem [resolvable:$true] %s412_s1 }
  0xc0   : > { %s1843_s28 = scalar_lea.hbm %s2359_s2, 512  ;;  %p1844_p10 = scmp.lt.u32.totalorder %s2257_s20, %s2359_s2 }
  0xc1   : > { %p1841_p5 = pnand %p1839_p4, %p2413_p9  ;;  %p1845_p11 = scmp.lt.u32.totalorder %s1843_s28, %s1838_s6 }
  0xc2   : > { %p1847_p2 = scmp.lt.u32.totalorder %s1838_s6, %s2257_s20 }
  0xc3   : > { %p1842_p8 = pneg %p1841_p5  ;;  %p1846_p13 = por %p1845_p11, %p1844_p10 }
  0xc5   : > { %p1848_p6 = por %p1847_p2, %p1846_p13 }
  0xc7   : > { %p1849_p1 = pnand %p1848_p6, %p1842_p8 }
  0xc9   : > { %1852 = shalt.err (!%p1849_p1)
}
  0xca   : > { %s1853_s30 = scalar_lea.vmem %s2260_s1, 256  ;;  %s1942_s27 = smov [#allocation6]  }
  0xcb   : > { %p1854_p0 = scmp.ne.s32.totalorder %s2260_s1, %s1853_s30  ;;  %s1858_s29 = sshll.u32 %s1942_s27, 4  ;;  %s1859_s29 = int_to_ptr.vmem [resolvable:$false] %s1858_s29 }
  0xcc   : > { %s1860_s25 = scalar_lea.vmem %s1859_s29, 512  ;;  %p1861_p4 = scmp.lt.s32.totalorder %s2260_s1, %s1859_s29 }
  0xcd   : > { %p1856_p7 = pnand %p1854_p0, %p2413_p9  ;;  %p1862_p5 = scmp.lt.s32.totalorder %s1860_s25, %s1853_s30 }
  0xcf   : > { %p1857_p3 = pneg %p1856_p7  ;;  %p1863_p10 = por %p1862_p5, %p1861_p4 }
  0xd1   : > { %p1864_p11 = pnand %p1863_p10, %p1857_p3 }
  0xd3   : > { %1867 = shalt.err (!%p1864_p11)
}
  0xd4   : > { %1511 = dma.hbm_to_vmem [thread:$0]  (!%p2414_p12), %s2257_s20, 256, %s2260_s1, %s2142_s5, %s2409_s26, %s2409_s26, %s2408_s15  }
  0xd5   : > { %p2415_p9 = scmp.ne.s32.totalorder %s2398_s18, 0 }
  0xd6   : > { %s426_s8 = sand.u32 (!%p2415_p9), 1, %s1914_s10   ;;  %p2416_p8 = scmp.ne.s32.totalorder (!%p2415_p9), %s2397_s17, 0 }
  0xd7   : > { %424 = sbr.rel (%p2415_p9) target bundleno = 742 (0x2e6), region = 56  ;;  %s2290_s12 = sshll.u32 (!%p2415_p9), %s426_s8, 4 }
  0xd8   : > { %s427_s22 = scalar_lea.sflag (!%p2415_p9), [#allocation3], %s426_s8  ;;  %s430_s21 = scalar_lea.vmem (!%p2415_p9), [#allocation2], %s2290_s12 }
  0xde   : > { %1893 = dma.done.wait (%p2416_p8), %s427_s22, 256  }
  0xdf   : > { %1895 = vsyncadd (%p2416_p8), %s427_s22, 4294967040  ;;  %s2417_s23 = sadd.s32 4294967295, %s1930_s14   ;;  %s439_s15 = scalar_lea.vmem [#allocation4], %s2290_s12 }
  0xe0   : > { %s435_s5 = sand.u32 1, %s2417_s23  }
  0xe1   : > { %s436_s18 = scalar_lea.sflag [#allocation5], %s435_s5 }
  0xe2   : > { %1897 = dma.done.wait (%p2416_p8), %s436_s18, 512  }
  0xe3   : > { %1899 = vsyncadd (%p2416_p8), %s436_s18, 4294966784  ;;  %s448_s26 = scalar_lea.vmem [#allocation6], %s2290_s12  ;;  %p2418_p12 = scmp.ne.s32.totalorder %s2396_s16, 0 }
  0xe5   : > { %1901 = dma.done.wait (%p2418_p12), [#allocation8], 4096  }
  0xe6   : > { %1903 = vsyncadd (%p2418_p12), [#allocation8], 4294963200 }
  0xe7   : > { %1905 = dma.done.wait (%p2418_p12), [#allocation11], 4096  }
  0xe8   : > { %1907 = vsyncadd (%p2418_p12), [#allocation11], 4294963200  ;;  %v1943_v0 = vmov 0   ;;  %v1578_v1 = vld [vmem:[#allocation7 + $0x4] ss:$8 sps:$4 sm:$0xff]   ;;  %v1654_v53 = vld [vmem:[#allocation12 + $0x50] sm:$0xff]  }
  0xe9   : > { %800 = vmatprep.mubr.bf16.mxu0 %v1943_v0  ;;  %677 = vmatprep.mubr.bf16.mxu1 %v1943_v0  ;;  %v1580_v2 = vld [vmem:[#allocation7] ss:$8 sps:$4 sm:$0xff]   ;;  %v1581_v3 = vld [vmem:[#allocation7 + $0x14] ss:$8 sps:$4 sm:$0xff]   ;;  %v1583_v4 = vld [vmem:[#allocation7 + $0x10] ss:$8 sps:$4 sm:$0xff]  }
  0xea   : > { %768 = vmatprep.subr.bf16.mxu0 %v1578_v1  ;;  %v1584_v5 = vld [vmem:[#allocation7 + $0x24] ss:$8 sps:$4 sm:$0xff]   ;;  %v1586_v6 = vld [vmem:[#allocation7 + $0x20] ss:$8 sps:$4 sm:$0xff]   ;;  %v1587_v7 = vld [vmem:[#allocation7 + $0x34] ss:$8 sps:$4 sm:$0xff]  }
  0xeb   : > { %769 = vmatpush1.bf16.msra.mxu0 %v1580_v2  ;;  %v1589_v8 = vld [vmem:[#allocation7 + $0x30] ss:$8 sps:$4 sm:$0xff]   ;;  %v1601_v9 = vld [vmem:[#allocation9 + $0x4] ss:$8 sps:$4 sm:$0xff]   ;;  %v1604_v10 = vld [vmem:[#allocation9] ss:$8 sps:$4 sm:$0xff]  }
  0xec   : > { %770 = vmatprep.subr.bf16.mxu0 %v1581_v3  ;;  %v1590_v11 = vld [vmem:[#allocation7 + $0x44] ss:$8 sps:$4 sm:$0xff]   ;;  %645 = vmatprep.subr.bf16.mxu1 %v1601_v9  ;;  %v1592_v12 = vld [vmem:[#allocation7 + $0x40] ss:$8 sps:$4 sm:$0xff]   ;;  %v1608_v13 = vld [vmem:[#allocation9 + $0x14] ss:$8 sps:$4 sm:$0xff]  }
  0xed   : > { %646 = vmatpush1.bf16.msra.mxu1 %v1604_v10  ;;  %v1610_v14 = vld [vmem:[#allocation9 + $0x10] ss:$8 sps:$4 sm:$0xff]   ;;  %v1593_v15 = vld [vmem:[#allocation7 + $0x54] ss:$8 sps:$4 sm:$0xff]   ;;  %v1614_v16 = vld [vmem:[#allocation9 + $0x24] ss:$8 sps:$4 sm:$0xff]  }
  0xee   : > { %647 = vmatprep.subr.bf16.mxu1 %v1608_v13  ;;  %v1616_v17 = vld [vmem:[#allocation9 + $0x20] ss:$8 sps:$4 sm:$0xff]   ;;  %v1595_v18 = vld [vmem:[#allocation7 + $0x50] ss:$8 sps:$4 sm:$0xff]   ;;  %v1596_v19 = vld [vmem:[#allocation7 + $0x64] ss:$8 sps:$4 sm:$0xff]  }
  0xef   : > { %771 = vmatpush1.bf16.msra.mxu0 %v1583_v4  ;;  %v1620_v20 = vld [vmem:[#allocation9 + $0x34] ss:$8 sps:$4 sm:$0xff]   ;;  %v1598_v21 = vld [vmem:[#allocation7 + $0x60] ss:$8 sps:$4 sm:$0xff]   ;;  %v1622_v22 = vld [vmem:[#allocation9 + $0x30] ss:$8 sps:$4 sm:$0xff]  }
  0xf0   : > { %772 = vmatprep.subr.bf16.mxu0 %v1584_v5  ;;  %v1626_v23 = vld [vmem:[#allocation9 + $0x44] ss:$8 sps:$4 sm:$0xff]   ;;  %v1599_v24 = vld [vmem:[#allocation7 + $0x74] ss:$8 sps:$4 sm:$0xff]   ;;  %v1603_v25 = vld [vmem:[#allocation7 + $0x70] ss:$8 sps:$4 sm:$0xff]  }
  0xf1   : > { %648 = vmatpush1.bf16.msra.mxu1 %v1610_v14  ;;  %v527_v26 = vld [vmem:[%s430_s21] sm:$0xff]  ;;  %v528_v27 = vld [vmem:[%s430_s21 + $0x8] sm:$0xff]  ;;  %v959_v14 = vlaneseq  ;;  %s2419_s20 = sld [smem:[#allocation24_spill]]  ;;  %s2420_s3 = sld [smem:[#allocation17_spill]] }
  0xf2   : > { %649 = vmatprep.subr.bf16.mxu1 %v1614_v16  ;;  %v1628_v28 = vld [vmem:[#allocation9 + $0x40] ss:$8 sps:$4 sm:$0xff]   ;;  %v1632_v29 = vld [vmem:[#allocation9 + $0x54] ss:$8 sps:$4 sm:$0xff]   ;;  %v1607_v30 = vld [vmem:[#allocation10 + $0x4] ss:$8 sps:$4 sm:$0xff]   ;;  %v545_v32 = vpack.c.bf16 %v528_v27, %v527_v26 }
  0xf3   : > { %773 = vmatpush1.bf16.msra.mxu0 %v1586_v6  ;;  %v1605_v31 = vld [vmem:[#allocation10] ss:$8 sps:$4 sm:$0xff]   ;;  %v1634_v33 = vld [vmem:[#allocation9 + $0x50] ss:$8 sps:$4 sm:$0xff]   ;;  %v1638_v34 = vld [vmem:[#allocation9 + $0x64] ss:$8 sps:$4 sm:$0xff]  }
  0xf4   : > { %774 = vmatprep.subr.bf16.mxu0 %v1587_v7  ;;  %v1613_v35 = vld [vmem:[#allocation10 + $0x14] ss:$8 sps:$4 sm:$0xff]   ;;  %v1611_v36 = vld [vmem:[#allocation10 + $0x10] ss:$8 sps:$4 sm:$0xff]   ;;  %v1619_v37 = vld [vmem:[#allocation10 + $0x24] ss:$8 sps:$4 sm:$0xff]  }
  0xf5   : > { %650 = vmatpush1.bf16.msra.mxu1 %v1616_v17  ;;  %v1640_v38 = vld [vmem:[#allocation9 + $0x60] ss:$8 sps:$4 sm:$0xff]   ;;  %v1644_v39 = vld [vmem:[#allocation9 + $0x74] ss:$8 sps:$4 sm:$0xff]   ;;  %v1646_v40 = vld [vmem:[#allocation9 + $0x70] ss:$8 sps:$4 sm:$0xff]  }
  0xf6   : > { %651 = vmatprep.subr.bf16.mxu1 %v1620_v20  ;;  %v1617_v41 = vld [vmem:[#allocation10 + $0x20] ss:$8 sps:$4 sm:$0xff]   ;;  %v1625_v43 = vld [vmem:[#allocation10 + $0x34] ss:$8 sps:$4 sm:$0xff]   ;;  %v1623_v47 = vld [vmem:[#allocation10 + $0x30] ss:$8 sps:$4 sm:$0xff]  }
  0xf7   : > { %775 = vmatpush1.bf16.msra.mxu0 %v1589_v8  ;;  %v546_v42 = vld [vmem:[%s439_s15] sm:$0xff]  ;;  %v547_v44 = vld [vmem:[%s439_s15 + $0x8] sm:$0xff]  ;;  %p517_p13 = scmp.lt.s32.totalorder %s2420_s3, 1  ;;  %s2421_s9 = sld [smem:[#allocation25_spill]] }
  0xf8   : > { %776 = vmatprep.subr.bf16.mxu0 %v1590_v11  ;;  %v1650_v45 = vld [vmem:[#allocation12 + $0x40] sm:$0xff]   ;;  %v564_v48 = vpack.c.bf16 %v547_v44, %v546_v42  ;;  %v1652_v49 = vld [vmem:[#allocation12 + $0x48] sm:$0xff]   ;;  %v1637_v54 = vld [vmem:[#allocation10 + $0x54] ss:$8 sps:$4 sm:$0xff]   ;;  %s2422_s19 = sld [smem:[#allocation26_spill]] }
  0xf9   : > { %652 = vmatpush1.bf16.msra.mxu1 %v1622_v22  ;;  %v1651_v46 = vld [vmem:[#allocation12] sm:$0xff]   ;;  %v1653_v51 = vld [vmem:[#allocation12 + $0x8] sm:$0xff]   ;;  %v1655_v55 = vld [vmem:[#allocation12 + $0x10] sm:$0xff]   ;;  %s2432_s3 = smov (!%p517_p13, %s2420_s3), 1 }
  0xfa   : > { %653 = vmatprep.subr.bf16.mxu1 %v1626_v23  ;;  %v1631_v50 = vld [vmem:[#allocation10 + $0x44] ss:$8 sps:$4 sm:$0xff]   ;;  %v1629_v52 = vld [vmem:[#allocation10 + $0x40] ss:$8 sps:$4 sm:$0xff]   ;;  %v1635_v56 = vld [vmem:[#allocation10 + $0x50] ss:$8 sps:$4 sm:$0xff]  }
  0xfb   : > { %777 = vmatpush1.bf16.msra.mxu0 %v1592_v12  ;;  %v1656_v57 = vld [vmem:[#allocation12 + $0x58] sm:$0xff]   ;;  %v1643_v58 = vld [vmem:[#allocation10 + $0x64] ss:$8 sps:$4 sm:$0xff]   ;;  %v1641_v60 = vld [vmem:[#allocation10 + $0x60] ss:$8 sps:$4 sm:$0xff]   ;;  %s1436_s1 = sshll.u32 %s2432_s3, 4 }
  0xfc   : > { %778 = vmatprep.subr.bf16.mxu0 %v1593_v15  ;;  %v1657_v59 = vld [vmem:[#allocation12 + $0x18] sm:$0xff]   ;;  %v811_v63 = vld [vmem:[%s448_s26] sm:$0xff]  ;;  %v1660_v4 = vld [vmem:[#allocation12 + $0x68] sm:$0xff]   ;;  %v960_v15 = vshrl.u32 %v959_v14, 7 }
  0xfd   : > { %654 = vmatpush1.bf16.msra.mxu1 %v1628_v28  ;;  %v1649_v61 = vld [vmem:[#allocation10 + $0x74] ss:$8 sps:$4 sm:$0xff]   ;;  %v1647_v62 = vld [vmem:[#allocation10 + $0x70] ss:$8 sps:$4 sm:$0xff]   ;;  %v1658_v2 = vld [vmem:[#allocation12 + $0x60] sm:$0xff]  }
  0xfe   : > { %655 = vmatprep.subr.bf16.mxu1 %v1632_v29  ;;  %v1659_v3 = vld [vmem:[#allocation12 + $0x20] sm:$0xff]   ;;  %v1661_v5 = vld [vmem:[#allocation12 + $0x28] sm:$0xff]   ;;  %v1662_v6 = vld [vmem:[#allocation12 + $0x70] sm:$0xff]   ;;  %v961_v16 = vsub.s32 0, %v960_v15  ;;  %s524_s30 = scalar_lea.vmem %s2422_s19, %s1436_s1 }
  0xff   : > { %779 = vmatpush1.bf16.msra.mxu0 %v1595_v18  ;;  %v1663_v7 = vld [vmem:[#allocation12 + $0x30] sm:$0xff]   ;;  %v1664_v8 = vld [vmem:[#allocation12 + $0x78] sm:$0xff]   ;;  %v957_v17 = vld [vmem:[%s2419_s20] sm:$0x3]  ;;  %v965_v18 = vsub.s32 1, %v960_v15 }
 0x100   : > { %780 = vmatprep.subr.bf16.mxu0 %v1596_v19  ;;  %v1665_v9 = vld [vmem:[#allocation12 + $0x38] sm:$0xff]   ;;  %v962_v19 = vrot.slane %v957_v17, %v961_v16 }
 0x101   : > { %656 = vmatpush1.bf16.msra.mxu1 %v1634_v33 }
 0x102   : > { %657 = vmatprep.subr.bf16.mxu1 %v1638_v34 }
 0x103   : > { %781 = vmatpush1.bf16.msra.mxu0 %v1598_v21  ;;  %v966_v21 = vrot.slane %v957_v17, %v965_v18 }
 0x104   : > { %782 = vmatprep.subr.bf16.mxu0 %v1599_v24 }
 0x105   : > { %658 = vmatpush1.bf16.msra.mxu1 %v1640_v38 }
 0x106   : > { %659 = vmatprep.subr.bf16.mxu1 %v1644_v39 }
 0x107   : > { %783 = vmatpush1.bf16.msra.mxu0 %v1603_v25 }
 0x108   : > { %910 = vmatprep.subr.bf16.mxu0 %v1607_v30 }
 0x109   : > { %660 = vmatpush1.bf16.msra.mxu1 %v1646_v40  ;;  %v1414_v40 = vld [vmem:[%s2421_s9] ss:$0 sm:$0xff] }
 0x10a   : > { %801 = vmatmul.mubr.bf16.vlgmr.msra.gmra.mrb[0].mxu0 %v545_v32  ;;  %1437 = vmatprep.subr.bf16.mxu1 %v1650_v45 }
 0x10b   : > { %911 = vmatpush1.bf16.msra.mxu0 %v1605_v31  ;;  %942 = vmatprep.mubr.bf16.mxu0 %v1943_v0  ;;  %v812_v0 = vld [vmem:[%s448_s26 + $0x8] sm:$0xff] }
 0x10c   : > { %912 = vmatprep.subr.bf16.mxu0 %v1613_v35  ;;  %678 = vmatmul.mubr.bf16.vlgmr.msra.gmra.mrb[0].mxu1 %v564_v48  ;;  %v829_v1 = vpack.c.bf16 %v812_v0, %v811_v63 }
 0x10d   : > { %1438 = vmatpush3.bf16.msra.mxu1 %v1651_v46 }
 0x10e   : > { %1439 = vmatprep.subr.bf16.mxu1 %v1652_v49 }
 0x10f   : > { %913 = vmatpush1.bf16.msra.mxu0 %v1611_v36 }
 0x110   : > { %914 = vmatprep.subr.bf16.mxu0 %v1619_v37 }
 0x111   : > { %1440 = vmatpush3.bf16.msra.mxu1 %v1653_v51 }
 0x112   : > { %1441 = vmatprep.subr.bf16.mxu1 %v1654_v53 }
 0x113   : > { %915 = vmatpush1.bf16.msra.mxu0 %v1617_v41 }
 0x114   : > { %916 = vmatprep.subr.bf16.mxu0 %v1625_v43 }
 0x115   : > { %1442 = vmatpush3.bf16.msra.mxu1 %v1655_v55 }
 0x116   : > { %1443 = vmatprep.subr.bf16.mxu1 %v1656_v57 }
 0x117   : > { %917 = vmatpush1.bf16.msra.mxu0 %v1623_v47 }
 0x118   : > { %918 = vmatprep.subr.bf16.mxu0 %v1631_v50 }
 0x119   : > { %1444 = vmatpush3.bf16.msra.mxu1 %v1657_v59 }
 0x11a   : > { %1445 = vmatprep.subr.bf16.mxu1 %v1658_v2 }
 0x11b   : > { %919 = vmatpush1.bf16.msra.mxu0 %v1629_v52 }
 0x11c   : > { %920 = vmatprep.subr.bf16.mxu0 %v1637_v54 }
 0x11d   : > { %1446 = vmatpush3.bf16.msra.mxu1 %v1659_v3 }
 0x11e   : > { %1447 = vmatprep.subr.bf16.mxu1 %v1660_v4 }
 0x11f   : > { %921 = vmatpush1.bf16.msra.mxu0 %v1635_v56 }
 0x120   : > { %922 = vmatprep.subr.bf16.mxu0 %v1643_v58 }
 0x121   : > { %1448 = vmatpush3.bf16.msra.mxu1 %v1661_v5 }
 0x122   : > { %1449 = vmatprep.subr.bf16.mxu1 %v1662_v6 }
 0x123   : > { %923 = vmatpush1.bf16.msra.mxu0 %v1641_v60 }
 0x124   : > { %924 = vmatprep.subr.bf16.mxu0 %v1649_v61 }
 0x125   : > { %1450 = vmatpush3.bf16.msra.mxu1 %v1663_v7 }
 0x126   : > { %1451 = vmatprep.subr.bf16.mxu1 %v1664_v8 }
 0x127   : > { %925 = vmatpush1.bf16.msra.mxu0 %v1647_v62 }
 0x129   : > { %1452 = vmatpush3.bf16.msra.mxu1 %v1665_v9 }
 0x12a   : > { %943 = vmatmul.mubr.bf16.vlgmr.msra.gmra.mrb[0].mxu0 %v829_v1 }
 0x1df   : > { %v679_v10 = vpop.f32.mrb[0].mxu1 }
 0x1e0   : > { %v681_v11 = vpop.f32.mrb[1].mxu1 }
 0x1e1   : > { %v683_v12 = vpop.f32.mrb[2].mxu1 }
 0x1e2   : > { %v685_v13 = vpop.f32.mrb[3].mxu1 }
 0x1fd   : > { %v944_v20 = vpop.f32.mrb[0].mxu0 }
 0x1fe   : > { %v1459_v22 = vadd.f32 %v944_v20, %v679_v10  ;;  %v946_v23 = vpop.f32.mrb[1].mxu0 }
 0x1ff   : > { %v1460_v24 = vadd.f32 %v946_v23, %v681_v11  ;;  %v948_v25 = vpop.f32.mrb[2].mxu0 }
 0x200   : > { %v969_v26 = vadd.f32 %v1459_v22, %v962_v19  ;;  %v1461_v27 = vadd.f32 %v948_v25, %v683_v12  ;;  %v950_v28 = vpop.f32.mrb[3].mxu0 }
 0x201   : > { %v970_v29 = vadd.f32 %v1460_v24, %v966_v21  ;;  %v1462_v30 = vadd.f32 %v950_v28, %v685_v13 }
 0x202   : > { %v971_v31 = vadd.f32 %v1461_v27, %v962_v19  ;;  %v973_v33 = vmax.f32 %v969_v26, 0.0 }
 0x203   : > { %v972_v32 = vadd.f32 %v1462_v30, %v966_v21  ;;  %v974_v35 = vmax.f32 %v970_v29, 0.0 }
 0x204   : > { %v975_v34 = vmax.f32 %v971_v31, 0.0 }
 0x205   : > { %v976_v36 = vmax.f32 %v972_v32, 0.0 }
 0x206   : > { %v1010_v37 = vpack.c.bf16 %v975_v34, %v973_v33 }
 0x207   : > { %v1011_v38 = vpack.c.bf16 %v976_v36, %v974_v35 }
 0x209   : > { %1146 = vmatprep.mubr.bf16.mxu1 %v1011_v38 }
 0x20a   : > { %1147 = vmatmul.mubr.bf16.vlgmr.msra.gmra.mrb[4].mxu1 %v1010_v37 }
 0x2dd   : > { %v1453_v39 = vpop.f32.mrb[4].mxu1 }
 0x2de   : > { %v1454_v41 = vpop.f32.mrb[5].mxu1 }
 0x2df   : > { %v1455_v42 = vadd.f32 %v1454_v41, %v1453_v39  ;;  %v1456_v43 = vpop.f32.mrb[6].mxu1 }
 0x2e0   : > { %v1457_v44 = vpop.f32.mrb[7].mxu1 }
 0x2e1   : > { %v1149_v45 = vadd.f32 %v1455_v42, %v1414_v40  ;;  %v1458_v46 = vadd.f32 %v1457_v44, %v1456_v43 }
 0x2e3   : > { %1155 = vst [vmem:[%s524_s30] sm:$0xff] %v1149_v45  ;;  %v1152_v47 = vadd.f32 %v1458_v46, %v1414_v40 }
 0x2e5   : > { %1156 = vst [vmem:[%s524_s30 + $0x8] sm:$0xff] %v1152_v47 }
 0x2e6 PF: > { %s27_s14 = sadd.s32 1, %s1930_s14   ;;  %s2423_s27 = sld [smem:[#allocation20_spill]] }
 0x2e7   : > { %p24_p2 = scmp.ge.s32.totalorder %s27_s14, 4   ;;  %s2424_s12 = sld [smem:[#allocation18_spill]] }
 0x2e8   : > { %s2425_s13 = sld [smem:[#allocation19_spill]]  ;;  %s2426_s30 = smov %s1914_s10 }
 0x2e9   : > { %s2427_s10 = smov %s1918_s11  ;;  %26 = sbr.rel (!%p24_p2) target bundleno = 15 (0xf), region = 136 }
 0x2ec   : > { %s2428_s11 = smov %s2423_s27 }
 0x2f0   :  { %1187 = vsyncpa [#allocation3], 1 }
 0x2f1   :  { %1189 = vsyncpa [#allocation3 + $0x1], 1 }
 0x2f2   :  { %1190 = vsyncpa [#allocation5], 1 }
 0x2f3   :  { %1192 = vsyncpa [#allocation5 + $0x1], 1 }
 0x2f4   :  { %1193 = vsyncpa [#allocation8], 1 }
 0x2f5   :  { %1194 = vsyncpa [#allocation11], 1 }

// kernel: model_forward.23
= control target key start
LH: loop header
LB: loop body
LE: loop exit
PB: predicated region body
PF: predicated region fallthrough
CT: control target
= control target key end

     0   :  { %s4353_s0 = inlined_call_operand.hbm [shape: f32[2,16,128], index: 0, kind: input, shape index: {}]   ;;  %s4354_s1 = inlined_call_operand.hbm [shape: f32[2,16,128], index: 1, kind: input, shape index: {}]   ;;  %s4355_s2 = inlined_call_operand.hbm [shape: f32[2,16,128], index: 2, kind: input, shape index: {}]   ;;  %s4356_s3 = inlined_call_operand.hbm [shape: f32[2,16,128], index: 3, kind: input, shape index: {}]   ;;  %s4357_s4 = inlined_call_operand.hbm [shape: bf16[128,384], index: 4, kind: input, shape index: {}]   ;;  %s4358_s5 = inlined_call_operand.hbm [shape: bf16[128,384], index: 5, kind: input, shape index: {}]   ;;  %s4359_s6 = inlined_call_operand.hbm [shape: bf16[128,384], index: 6, kind: input, shape index: {}]   ;;  %s4360_s7 = inlined_call_operand.hbm [shape: bf16[128,384], index: 7, kind: input, shape index: {}]   ;;  %s4361_s8 = inlined_call_operand.vmem [shape: f32[1,384], index: 8, kind: input, shape index: {}]   ;;  %s4362_s9 = inlined_call_operand.hbm [shape: bf16[384,256], index: 9, kind: input, shape index: {}]   ;;  %s4363_s10 = inlined_call_operand.vmem [shape: f32[1,256], index: 10, kind: input, shape index: {}]   ;;  %s4364_s11 = inlined_call_operand.hbm [shape: bf16[256,128], index: 11, kind: input, shape index: {}]   ;;  %s4365_s12 = inlined_call_operand.vmem [shape: f32[1,128], index: 12, kind: input, shape index: {}]   ;;  %s4366_s13 = inlined_call_operand.hbm [shape: f32[2,16,128], index: 13, kind: output, shape index: {}]  }
   0x1   :  { %4394 = sst [smem:[#allocation37_spill]] %s4354_s1 }
   0x2   :  { %4395 = sst [smem:[#allocation38_spill]] %s4356_s3 }
   0x3   :  { %4396 = sst [smem:[#allocation39_spill]] %s4357_s4 }
   0x4   :  { %4397 = sst [smem:[#allocation40_spill]] %s4358_s5 }
   0x5   :  { %4398 = sst [smem:[#allocation41_spill]] %s4360_s7 }
   0x6   :  { %4399 = sst [smem:[#allocation42_spill]] %s4361_s8 }
   0x7   :  { %4400 = sst [smem:[#allocation43_spill]] %s4363_s10 }
   0x8   :  { %4401 = sst [smem:[#allocation44_spill]] %s4365_s12 }
   0x9   :  { %4402 = sst [smem:[#allocation45_spill]] %s4366_s13 }
   0xa   :  { %18 = vsyncpa [#allocation3], 0 }
   0xb   :  { %20 = vsyncpa [#allocation3 + $0x1], 0 }
   0xc   :  { %21 = vsyncpa [#allocation6], 0 }
   0xd   :  { %23 = vsyncpa [#allocation6 + $0x1], 0 }
   0xe   :  { %24 = vsyncpa [#allocation9], 0 }
   0xf   :  { %26 = vsyncpa [#allocation9 + $0x1], 0 }
  0x10   :  { %27 = vsyncpa [#allocation12], 0 }
  0x11   :  { %28 = vsyncpa [#allocation15], 0 }
  0x12   :  { %29 = vsyncpa [#allocation18], 0 }
  0x13   :  { %30 = vsyncpa [#allocation4], 0 }
  0x14   :  { %32 = vsyncpa [#allocation4 + $0x1], 0  ;;  %s3752_s25 = smov 0   ;;  %s3754_s26 = smov 0  }
  0x15   :  { %s3756_s27 = smov 0   ;;  %s3758_s28 = smov 0  }
  0x16   :  { %s3760_s29 = smov 0   ;;  %s3762_s30 = smov 0  }
  0x17 LB: > { %4403 = sst [smem:[#allocation28_spill]] %s3638_s25  ;;  %s3783_s14 = sadd.s32 4294967295, %s3658_s30   ;;  %s3658_s30 = sphi %s3762_s30, %s38_s30   ;;  %s3654_s29 = sphi %s3760_s29, %s4464_s29   ;;  %s3650_s28 = sphi %s3758_s28, %s4459_s28   ;;  %s3646_s27 = sphi %s3756_s27, %s4463_s27   ;;  %s3642_s26 = sphi %s3754_s26, %s4462_s26   ;;  %s3638_s25 = sphi %s3752_s25, %s4461_s25  }
  0x18   : > { %4404 = sst [smem:[#allocation29_spill]] %s3650_s28  ;;  %p2538_p0 = scmp.ge.s32.totalorder %s3658_s30, 1 }
  0x19   : > { %4405 = sst [smem:[#allocation30_spill]] %s3654_s29  ;;  %p4370_p1 = scmp.eq.s32.totalorder %s3783_s14, 0 }
  0x1a   : > { %4406 = sst [smem:[#allocation31_spill]] %s3783_s14  ;;  %p384_p2 = scmp.lt.s32.totalorder %s3658_s30, 3 }
  0x1b   : > { %s3660_s16 = smov [#allocation10]   ;;  %s3661_s19 = smov [#allocation11]  }
  0x1c   : > { %p3788_p3 = pnand %p2538_p0, %p384_p2  ;;  %s396_s17 = sshll.u32 %s3660_s16, 4  ;;  %s3792_s17 = int_to_ptr.vmem [resolvable:$true] %s396_s17 }
  0x1d   : > { %s409_s20 = sshll.u32 %s3661_s19, 4  ;;  %s3662_s21 = smov [#allocation14]   ;;  %s3803_s20 = int_to_ptr.vmem [resolvable:$true] %s409_s20 }
  0x1e   : > { %s4407_s15 = scalar_select %p3788_p3, 1, 0 }
  0x1f   : > { %p2933_p4 = pneg %p3788_p3  ;;  %s3805_s22 = sshll.u32 %s3662_s21, 4  ;;  %s436_s22 = int_to_ptr.vmem [resolvable:$true] %s3805_s22 }
  0x20   : > { %4408 = sst [smem:[#allocation32_spill]] %s4407_s15  ;;  %s4410_s4 = sld [smem:[#allocation39_spill]] }
  0x21   : > { %p3799_p6 = pnand %p2933_p4, %p4370_p1 }
  0x23   : > { %s4409_s18 = scalar_select %p3799_p6, 1, 0 }
  0x24   : > { %p3815_p8 = pneg %p3799_p6 }
  0x26   : > { %s3264_s16 = scalar_lea.hbm %s4410_s4, 3072 }
  0x27   : > { %p3265_p7 = scmp.ne.s32.totalorder %s4410_s4, %s3264_s16  ;;  %p3271_p11 = scmp.lt.u32.totalorder %s3264_s16, %s4410_s4 }
  0x28   : > { %s4411_s28 = scalar_select %p3815_p8, 1, 0 }
  0x29   : > { %p3267_p9 = pnand %p3815_p8, %p3265_p7 }
  0x2b   : > { %p3268_p10 = pneg %p3267_p9 }
  0x2d   : > { %p3273_p12 = pnand %p3271_p11, %p3268_p10 }
  0x2f   : > { %3276 = shalt.err (!%p3273_p12)
}
  0x30   : > { %s3277_s12 = scalar_lea.vmem %s3792_s17, 3072  ;;  %p3285_p4 = scmp.lt.s32.totalorder %s3792_s17, %s3792_s17 }
  0x31   : > { %p3278_p13 = scmp.ne.s32.totalorder %s3792_s17, %s3277_s12  ;;  %p3286_p5 = scmp.lt.s32.totalorder %s3277_s12, %s3277_s12 }
  0x33   : > { %p3280_p0 = pnand %p3278_p13, %p3815_p8  ;;  %p3287_p7 = por %p3286_p5, %p3285_p4 }
  0x35   : > { %p3281_p2 = pneg %p3280_p0 }
  0x37   : > { %p3288_p9 = pnand %p3287_p7, %p3281_p2 }
  0x39   : > { %3291 = shalt.err (!%p3288_p9)
}
  0x3a   : > { %s4372_s13 = smov 192   ;;  %s4373_s23 = smov 12  }
  0x3b   : > { %2936 = dma.hbm_to_vmem [thread:$0]  (!%p3799_p6), %s4410_s4, 3072, %s3792_s17, [#allocation9], %s4372_s13, %s4372_s13, %s4373_s23  }
  0x3c   : > { %s4412_s5 = sld [smem:[#allocation40_spill]] }
  0x42   : > { %s3292_s12 = scalar_lea.hbm %s4412_s5, 3072 }
  0x43   : > { %p3293_p5 = scmp.ne.s32.totalorder %s4412_s5, %s3292_s12  ;;  %p3299_p12 = scmp.lt.u32.totalorder %s3292_s12, %s4412_s5 }
  0x45   : > { %p3295_p10 = pnand %p3293_p5, %p3815_p8 }
  0x47   : > { %p3296_p11 = pneg %p3295_p10 }
  0x49   : > { %p3301_p13 = pnand %p3299_p12, %p3296_p11 }
  0x4b   : > { %3304 = shalt.err (!%p3301_p13)
}
  0x4c   : > { %s3305_s17 = scalar_lea.vmem %s3803_s20, 3072  ;;  %p3313_p7 = scmp.lt.s32.totalorder %s3803_s20, %s3803_s20 }
  0x4d   : > { %p3306_p0 = scmp.ne.s32.totalorder %s3803_s20, %s3305_s17  ;;  %p3314_p9 = scmp.lt.s32.totalorder %s3305_s17, %s3305_s17 }
  0x4f   : > { %p3308_p2 = pnand %p3306_p0, %p3815_p8  ;;  %p3315_p5 = por %p3314_p9, %p3313_p7 }
  0x51   : > { %p3309_p4 = pneg %p3308_p2 }
  0x53   : > { %p3316_p10 = pnand %p3315_p5, %p3309_p4 }
  0x55   : > { %3319 = shalt.err (!%p3316_p10)
}
  0x56   : > { %2939 = dma.hbm_to_vmem [thread:$0]  (!%p3799_p6), %s4412_s5, 3072, %s3803_s20, [#allocation12], %s4372_s13, %s4372_s13, %s4373_s23  }
  0x57   : > { %s4413_s7 = sld [smem:[#allocation41_spill]] }
  0x5d   : > { %s3320_s24 = scalar_lea.hbm %s4413_s7, 3072 }
  0x5e   : > { %p3321_p11 = scmp.ne.s32.totalorder %s4413_s7, %s3320_s24  ;;  %p3327_p0 = scmp.lt.u32.totalorder %s3320_s24, %s4413_s7 }
  0x60   : > { %p3323_p12 = pnand %p3321_p11, %p3815_p8 }
  0x62   : > { %p3324_p13 = pneg %p3323_p12 }
  0x64   : > { %p3329_p2 = pnand %p3327_p0, %p3324_p13 }
  0x66   : > { %3332 = shalt.err (!%p3329_p2)
}
  0x67   : > { %s3333_s17 = scalar_lea.vmem %s436_s22, 3072  ;;  %p3341_p5 = scmp.lt.s32.totalorder %s436_s22, %s436_s22 }
  0x68   : > { %p3334_p4 = scmp.ne.s32.totalorder %s436_s22, %s3333_s17  ;;  %p3342_p10 = scmp.lt.s32.totalorder %s3333_s17, %s3333_s17 }
  0x6a   : > { %p3336_p7 = pnand %p3334_p4, %p3815_p8  ;;  %p3343_p1 = por %p3342_p10, %p3341_p5 }
  0x6c   : > { %p3337_p9 = pneg %p3336_p7 }
  0x6e   : > { %p3344_p3 = pnand %p3343_p1, %p3337_p9 }
  0x70   : > { %3347 = shalt.err (!%p3344_p3)
}
  0x71   : > { %2945 = dma.hbm_to_vmem [thread:$0]  (!%p3799_p6), %s4413_s7, 3072, %s436_s22, [#allocation15], %s4372_s13, %s4372_s13, %s4373_s23  }
  0x72   : > { %s2537_s8 = sadd.s32 4294967294, %s3658_s30   ;;  %s50_s10 = sadd.s32 1, %s3654_s29 }
  0x73   : > { %s59_s15 = sadd.s32 1, %s3646_s27  ;;  %p52_p1 = scmp.ge.s32.totalorder %s50_s10, 2 }
  0x74   : > { %p66_p3 = scmp.ne.s32.totalorder %s3646_s27, %s3642_s26  ;;  %p67_p11 = scmp.eq.s32.totalorder %s3658_s30, 0 }
  0x75   : > { %p72_p12 = scmp.ne.s32.totalorder %s3642_s26, %s3638_s25  ;;  %s4466_s10 = smov (%p52_p1, %s50_s10), 0 }
  0x76   : > { %4414 = sst [smem:[#allocation33_spill]] %s4466_s10  ;;  %p3897_p13 = por %p67_p11, %p66_p3 }
  0x77   : > { %p4416_p0 = scmp.eq.s32.totalorder %s3783_s14, 0  ;;  %s54_s16 = ssub.s32 %s3654_s29, %s4466_s10 }
  0x78   : > { %p371_p4 = scmp.eq.s32.totalorder %s3783_s14, 1  ;;  %p57_p7 = scmp.eq.s32.totalorder %s54_s16, 0 }
  0x79   : > { %p3903_p2 = por %p4416_p0, %p72_p12  ;;  %p377_p9 = scmp.eq.s32.totalorder %s2537_s8, 1 }
  0x7a   : > { %p3910_p5 = por %p371_p4, %p66_p3  ;;  %p2975_p1 = scmp.lt.s32.totalorder %s3658_s30, 2 }
  0x7b   : > { %s4417_s22 = scalar_select %p3903_p2, 1, 0 }
  0x7c   : > { %s4418_s19 = scalar_select %p3910_p5, 1, 0 }
  0x7d   : > { %s3915_s21 = scalar_select %p57_p7, %s3646_s27, %s59_s15  }
  0x7e   : > { %4419 = sst [smem:[#allocation34_spill]] %s4418_s19  ;;  %p3917_p10 = por %p377_p9, %p72_p12 }
  0x7f   : > { %4420 = sst [smem:[#allocation35_spill]] %s3915_s21  ;;  %s4374_s17 = sand.u32 1, %s3646_s27  }
  0x80   : > { %s4421_s12 = scalar_select %p3917_p10, 1, 0 }
  0x81   : > { %s3925_s20 = sshll.u32 %s4374_s17, 4  ;;  %s3928_s3 = sshll.u32 %s3654_s29, 8 }
  0x82   : > { %4422 = sst [smem:[#allocation36_spill]] %s4421_s12  ;;  %p3932_p3 = pnand %p2975_p1, %p3897_p13 }
  0x83   : > { %s4378_s15 = sand.u32 1, %s3658_s30   ;;  %s4424_s1 = sld [smem:[#allocation37_spill]] }
  0x84   : > { %s4423_s8 = scalar_select %p3932_p3, 1, 0 }
  0x85   : > { %s511_s17 = scalar_lea.vmem [#allocation5], %s3925_s20  ;;  %s3948_s24 = scalar_lea.sflag [#allocation6], %s4378_s15 }
  0x86   : > { %s520_s4 = sshll.u32 %s511_s17, 4  ;;  %p3954_p12 = pneg %p3932_p3  ;;  %s3944_s4 = int_to_ptr.vmem [resolvable:$true] %s520_s4 }
  0x88   : > { %s4425_s7 = scalar_select %p3954_p12, 1, 0 }
  0x89   : > { %s3941_s23 = scalar_lea.hbm %s4424_s1, %s3928_s3  ;;  %s3353_s17 = scalar_lea.hbm %s4424_s1, 512 }
  0x8a   : > { %s3348_s5 = scalar_lea.hbm %s3941_s23, 256  ;;  %p3354_p4 = scmp.lt.u32.totalorder %s3941_s23, %s4424_s1 }
  0x8b   : > { %p3349_p11 = scmp.ne.s32.totalorder %s3941_s23, %s3348_s5  ;;  %p3355_p7 = scmp.lt.u32.totalorder %s3353_s17, %s3348_s5 }
  0x8c   : > { %p3357_p1 = scmp.lt.u32.totalorder %s3348_s5, %s3941_s23 }
  0x8d   : > { %p3351_p13 = pnand %p3954_p12, %p3349_p11  ;;  %p3356_p9 = por %p3355_p7, %p3354_p4 }
  0x8f   : > { %p3352_p0 = pneg %p3351_p13  ;;  %p3358_p10 = por %p3357_p1, %p3356_p9 }
  0x91   : > { %p3359_p5 = pnand %p3358_p10, %p3352_p0 }
  0x93   : > { %3362 = shalt.err (!%p3359_p5)
}
  0x94   : > { %s3363_s15 = scalar_lea.vmem %s3944_s4, 256  ;;  %s3665_s13 = smov [#allocation5]  }
  0x95   : > { %p3364_p11 = scmp.ne.s32.totalorder %s3944_s4, %s3363_s15  ;;  %s3368_s16 = sshll.u32 %s3665_s13, 4  ;;  %s3369_s16 = int_to_ptr.vmem [resolvable:$false] %s3368_s16 }
  0x96   : > { %s3370_s29 = scalar_lea.vmem %s3369_s16, 512  ;;  %p3371_p6 = scmp.lt.s32.totalorder %s3944_s4, %s3369_s16 }
  0x97   : > { %p3366_p13 = pnand %p3364_p11, %p3954_p12  ;;  %p3372_p8 = scmp.lt.s32.totalorder %s3370_s29, %s3363_s15 }
  0x99   : > { %p3367_p2 = pneg %p3366_p13  ;;  %p3373_p4 = por %p3372_p8, %p3371_p6 }
  0x9b   : > { %p3374_p7 = pnand %p3373_p4, %p3367_p2 }
  0x9d   : > { %3377 = shalt.err (!%p3374_p7)
}
  0x9e   : > { %s3666_s5 = smov 128   ;;  %s3667_s10 = smov 8  }
  0x9f   : > { %2958 = dma.hbm_to_vmem [thread:$0]  (!%p3932_p3), %s3941_s23, 256, %s3944_s4, %s3948_s24, %s3666_s5, %s3666_s5, %s3667_s10  }
  0xa0   : > { %s3668_s17 = smov [#allocation13]   ;;  %s3669_s16 = smov [#allocation16]  }
  0xa1   : > { %s422_s13 = sshll.u32 %s3668_s17, 4  ;;  %s451_s15 = sshll.u32 %s3669_s16, 4  ;;  %s423_s13 = int_to_ptr.vmem [resolvable:$true] %s422_s13  ;;  %s452_s15 = int_to_ptr.vmem [resolvable:$true] %s451_s15 }
  0xa2   : > { %s3378_s21 = scalar_lea.hbm %s4359_s6, 3072  ;;  %p4426_p8 = scmp.ne.s32.totalorder %s4411_s28, 0 }
  0xa3   : > { %p3379_p6 = scmp.ne.s32.totalorder %s4359_s6, %s3378_s21  ;;  %p3385_p10 = scmp.lt.u32.totalorder %s3378_s21, %s4359_s6 }
  0xa5   : > { %p3381_p2 = pnand %p3379_p6, %p4426_p8 }
  0xa7   : > { %p3382_p5 = pneg %p3381_p2 }
  0xa9   : > { %p3387_p0 = pnand %p3385_p10, %p3382_p5 }
  0xab   : > { %3390 = shalt.err (!%p3387_p0)
}
  0xac   : > { %s3391_s4 = scalar_lea.vmem %s423_s13, 3072  ;;  %p3399_p13 = scmp.lt.s32.totalorder %s423_s13, %s423_s13 }
  0xad   : > { %p3392_p9 = scmp.ne.s32.totalorder %s423_s13, %s3391_s4  ;;  %p3400_p4 = scmp.lt.s32.totalorder %s3391_s4, %s3391_s4 }
  0xaf   : > { %p3394_p1 = pnand %p3392_p9, %p4426_p8  ;;  %p3401_p7 = por %p3400_p4, %p3399_p13 }
  0xb1   : > { %p3395_p11 = pneg %p3394_p1 }
  0xb3   : > { %p3402_p3 = pnand %p3401_p7, %p3395_p11 }
  0xb5   : > { %3405 = shalt.err (!%p3402_p3)
}
  0xb6   : > { %p4427_p6 = scmp.ne.s32.totalorder %s4409_s18, 0  ;;  %s4428_s1 = smov 12  }
  0xb7   : > { %s4429_s25 = smov 192   ;;  %s3406_s12 = scalar_lea.hbm %s4362_s9, 6144 }
  0xb8   : > { %2942 = dma.hbm_to_vmem [thread:$0]  (!%p4427_p6), %s4359_s6, 3072, %s423_s13, [#allocation12], %s4429_s25, %s4429_s25, %s4428_s1  }
  0xb9   : > { %p3407_p2 = scmp.ne.s32.totalorder %s4362_s9, %s3406_s12  ;;  %p3413_p10 = scmp.lt.u32.totalorder %s3406_s12, %s4362_s9 }
  0xbb   : > { %p3409_p3 = pnand %p3407_p2, %p4426_p8 }
  0xbd   : > { %p3410_p5 = pneg %p3409_p3 }
  0xbf   : > { %p3415_p0 = pnand %p3413_p10, %p3410_p5 }
  0xc1   : > { %3418 = shalt.err (!%p3415_p0)
}
  0xc2   : > { %s3419_s14 = scalar_lea.vmem %s452_s15, 6144  ;;  %p3427_p13 = scmp.lt.s32.totalorder %s452_s15, %s452_s15 }
  0xc3   : > { %p3420_p9 = scmp.ne.s32.totalorder %s452_s15, %s3419_s14  ;;  %p3428_p4 = scmp.lt.s32.totalorder %s3419_s14, %s3419_s14 }
  0xc5   : > { %p3422_p1 = pnand %p3420_p9, %p4426_p8  ;;  %p3429_p7 = por %p3428_p4, %p3427_p13 }
  0xc7   : > { %p3423_p11 = pneg %p3422_p1 }
  0xc9   : > { %p3430_p12 = pnand %p3429_p7, %p3423_p11 }
  0xcb   : > { %3433 = shalt.err (!%p3430_p12)
}
  0xcc   : > { %2948 = dma.hbm_to_vmem [thread:$0]  (!%p4427_p6), %s4362_s9, 6144, %s452_s15, [#allocation15], %s3666_s5, %s3666_s5, %s3667_s10  }
  0xcd   : > { %s3670_s25 = smov [#allocation17]   ;;  %s3434_s12 = scalar_lea.hbm %s4364_s11, 2048 }
  0xce   : > { %s467_s23 = sshll.u32 %s3670_s25, 4  ;;  %p3435_p12 = scmp.ne.s32.totalorder %s4364_s11, %s3434_s12  ;;  %s468_s23 = int_to_ptr.vmem [resolvable:$true] %s467_s23 }
  0xcf   : > { %p3441_p5 = scmp.lt.u32.totalorder %s3434_s12, %s4364_s11 }
  0xd0   : > { %p3437_p2 = pnand %p3435_p12, %p4426_p8 }
  0xd2   : > { %p3438_p3 = pneg %p3437_p2 }
  0xd4   : > { %p3443_p10 = pnand %p3441_p5, %p3438_p3 }
  0xd6   : > { %3446 = shalt.err (!%p3443_p10)
}
  0xd7   : > { %s3447_s15 = scalar_lea.vmem %s468_s23, 2048  ;;  %p3455_p11 = scmp.lt.s32.totalorder %s468_s23, %s468_s23 }
  0xd8   : > { %p3448_p0 = scmp.ne.s32.totalorder %s468_s23, %s3447_s15  ;;  %p3456_p13 = scmp.lt.s32.totalorder %s3447_s15, %s3447_s15 }
  0xda   : > { %p3450_p9 = pnand %p3448_p0, %p4426_p8  ;;  %p3457_p4 = por %p3456_p13, %p3455_p11 }
  0xdc   : > { %p3451_p1 = pneg %p3450_p9 }
  0xde   : > { %p3458_p7 = pnand %p3457_p4, %p3451_p1 }
  0xe0   : > { %3461 = shalt.err (!%p3458_p7)
}
  0xe1   : > { %s3671_s14 = smov 64   ;;  %s3672_s13 = smov 4  }
  0xe2   : > { %2951 = dma.hbm_to_vmem [thread:$0]  (!%p4427_p6), %s4364_s11, 2048, %s468_s23, [#allocation18], %s3671_s14, %s3671_s14, %s3672_s13  }
  0xe3   : > { %s4045_s21 = scalar_lea.hbm %s4353_s0, %s3928_s3  ;;  %s488_s12 = scalar_lea.vmem [#allocation2], %s3925_s20 }
  0xe4   : > { %s497_s17 = sshll.u32 %s488_s12, 4  ;;  %s4430_s16 = sand.u32 1, %s3646_s27   ;;  %s4048_s17 = int_to_ptr.vmem [resolvable:$true] %s497_s17 }
  0xe5   : > { %s4052_s29 = scalar_lea.sflag [#allocation3], %s4430_s16  ;;  %s3462_s18 = scalar_lea.hbm %s4045_s21, 256 }
  0xe6   : > { %p3463_p8 = scmp.ne.s32.totalorder %s4045_s21, %s3462_s18  ;;  %p4431_p12 = scmp.ne.s32.totalorder %s4425_s7, 0 }
  0xe7   : > { %s3467_s15 = scalar_lea.hbm %s4353_s0, 512  ;;  %p3468_p3 = scmp.lt.u32.totalorder %s4045_s21, %s4353_s0 }
  0xe8   : > { %p3465_p6 = pnand %p3463_p8, %p4431_p12  ;;  %p3469_p5 = scmp.lt.u32.totalorder %s3467_s15, %s3462_s18 }
  0xe9   : > { %p3471_p0 = scmp.lt.u32.totalorder %s3462_s18, %s4045_s21 }
  0xea   : > { %p3466_p2 = pneg %p3465_p6  ;;  %p3470_p10 = por %p3469_p5, %p3468_p3 }
  0xec   : > { %p3472_p9 = por %p3471_p0, %p3470_p10 }
  0xee   : > { %p3473_p1 = pnand %p3472_p9, %p3466_p2 }
  0xf0   : > { %3476 = shalt.err (!%p3473_p1)
}
  0xf1   : > { %s3477_s1 = scalar_lea.vmem %s4048_s17, 256  ;;  %s3673_s25 = smov [#allocation2]  }
  0xf2   : > { %p3478_p11 = scmp.ne.s32.totalorder %s4048_s17, %s3477_s1  ;;  %s3482_s28 = sshll.u32 %s3673_s25, 4  ;;  %s3483_s28 = int_to_ptr.vmem [resolvable:$false] %s3482_s28 }
  0xf3   : > { %s3484_s19 = scalar_lea.vmem %s3483_s28, 512  ;;  %p3485_p7 = scmp.lt.s32.totalorder %s4048_s17, %s3483_s28 }
  0xf4   : > { %p3480_p13 = pnand %p3478_p11, %p4431_p12  ;;  %p3486_p8 = scmp.lt.s32.totalorder %s3484_s19, %s3477_s1 }
  0xf6   : > { %p3481_p4 = pneg %p3480_p13  ;;  %p3487_p6 = por %p3486_p8, %p3485_p7 }
  0xf8   : > { %p3488_p3 = pnand %p3487_p6, %p3481_p4 }
  0xfa   : > { %3491 = shalt.err (!%p3488_p3)
}
  0xfb   : > { %p4432_p2 = scmp.ne.s32.totalorder %s4423_s8, 0  ;;  %s4083_s18 = scalar_lea.hbm %s4355_s2, %s3928_s3 }
  0xfc   : > { %s534_s23 = scalar_lea.vmem [#allocation7], %s3925_s20  ;;  %s3492_s15 = scalar_lea.hbm %s4083_s18, 256 }
  0xfd   : > { %2955 = dma.hbm_to_vmem [thread:$0]  (!%p4432_p2), %s4045_s21, 256, %s4048_s17, %s4052_s29, %s3666_s5, %s3666_s5, %s3667_s10  }
  0xfe   : > { %s543_s4 = sshll.u32 %s534_s23, 4  ;;  %p3493_p5 = scmp.ne.s32.totalorder %s4083_s18, %s3492_s15  ;;  %s4086_s4 = int_to_ptr.vmem [resolvable:$true] %s543_s4 }
  0xff   : > { %s3497_s17 = scalar_lea.hbm %s4355_s2, 512  ;;  %p3498_p9 = scmp.lt.u32.totalorder %s4083_s18, %s4355_s2 }
 0x100   : > { %p3495_p10 = pnand %p3493_p5, %p4431_p12  ;;  %p3499_p1 = scmp.lt.u32.totalorder %s3497_s17, %s3492_s15 }
 0x101   : > { %p3501_p13 = scmp.lt.u32.totalorder %s3492_s15, %s4083_s18 }
 0x102   : > { %p3496_p0 = pneg %p3495_p10  ;;  %p3500_p11 = por %p3499_p1, %p3498_p9 }
 0x104   : > { %p3502_p4 = por %p3501_p13, %p3500_p11 }
 0x106   : > { %p3503_p7 = pnand %p3502_p4, %p3496_p0 }
 0x108   : > { %3506 = shalt.err (!%p3503_p7)
}
 0x109   : > { %s3507_s1 = scalar_lea.vmem %s4086_s4, 256  ;;  %s3674_s25 = smov [#allocation7]  }
 0x10a   : > { %p3508_p8 = scmp.ne.s32.totalorder %s4086_s4, %s3507_s1  ;;  %s3512_s28 = sshll.u32 %s3674_s25, 4  ;;  %s3513_s28 = int_to_ptr.vmem [resolvable:$false] %s3512_s28 }
 0x10b   : > { %s3514_s19 = scalar_lea.vmem %s3513_s28, 512  ;;  %p3515_p5 = scmp.lt.s32.totalorder %s4086_s4, %s3513_s28 }
 0x10c   : > { %p3510_p6 = pnand %p3508_p8, %p4431_p12  ;;  %p3516_p10 = scmp.lt.s32.totalorder %s3514_s19, %s3507_s1 }
 0x10e   : > { %p3511_p3 = pneg %p3510_p6  ;;  %p3517_p9 = por %p3516_p10, %p3515_p5 }
 0x110   : > { %p3518_p1 = pnand %p3517_p9, %p3511_p3 }
 0x112   : > { %3521 = shalt.err (!%p3518_p1)
}
 0x113   : > { %2961 = dma.hbm_to_vmem [thread:$0]  (!%p4432_p2), %s4083_s18, 256, %s4086_s4, %s3948_s24, %s3666_s5, %s3666_s5, %s3667_s10  }
 0x114   : > { %s4433_s23 = sld [smem:[#allocation38_spill]]  ;;  %s557_s14 = scalar_lea.vmem [#allocation8], %s3925_s20 }
 0x115   : > { %s566_s21 = sshll.u32 %s557_s14, 4  ;;  %s4434_s17 = sand.u32 1, %s3658_s30   ;;  %s4120_s21 = int_to_ptr.vmem [resolvable:$true] %s566_s21 }
 0x116   : > { %s4124_s29 = scalar_lea.sflag [#allocation9], %s4434_s17 }
 0x11a   : > { %s4117_s15 = scalar_lea.hbm %s4433_s23, %s3928_s3  ;;  %s3527_s3 = scalar_lea.hbm %s4433_s23, 512 }
 0x11b   : > { %s3522_s13 = scalar_lea.hbm %s4117_s15, 256  ;;  %p3528_p4 = scmp.lt.u32.totalorder %s4117_s15, %s4433_s23 }
 0x11c   : > { %p3523_p0 = scmp.ne.s32.totalorder %s4117_s15, %s3522_s13  ;;  %p3529_p7 = scmp.lt.u32.totalorder %s3527_s3, %s3522_s13 }
 0x11d   : > { %p3531_p6 = scmp.lt.u32.totalorder %s3522_s13, %s4117_s15 }
 0x11e   : > { %p3525_p11 = pnand %p3523_p0, %p4431_p12  ;;  %p3530_p8 = por %p3529_p7, %p3528_p4 }
 0x120   : > { %p3526_p13 = pneg %p3525_p11  ;;  %p3532_p3 = por %p3531_p6, %p3530_p8 }
 0x122   : > { %p3533_p5 = pnand %p3532_p3, %p3526_p13 }
 0x124   : > { %3536 = shalt.err (!%p3533_p5)
}
 0x125   : > { %s3537_s20 = scalar_lea.vmem %s4120_s21, 256  ;;  %s3675_s25 = smov [#allocation8]  }
 0x126   : > { %p3538_p10 = scmp.ne.s32.totalorder %s4120_s21, %s3537_s20  ;;  %s3542_s28 = sshll.u32 %s3675_s25, 4  ;;  %s3543_s28 = int_to_ptr.vmem [resolvable:$false] %s3542_s28 }
 0x127   : > { %s3544_s19 = scalar_lea.vmem %s3543_s28, 512  ;;  %p3545_p0 = scmp.lt.s32.totalorder %s4120_s21, %s3543_s28 }
 0x128   : > { %p3540_p9 = pnand %p3538_p10, %p4431_p12  ;;  %p3546_p11 = scmp.lt.s32.totalorder %s3544_s19, %s3537_s20 }
 0x12a   : > { %p3541_p1 = pneg %p3540_p9  ;;  %p3547_p4 = por %p3546_p11, %p3545_p0 }
 0x12c   : > { %p3548_p7 = pnand %p3547_p4, %p3541_p1 }
 0x12e   : > { %3551 = shalt.err (!%p3548_p7)
}
 0x12f   : > { %2964 = dma.hbm_to_vmem [thread:$0]  (!%p4432_p2), %s4117_s15, 256, %s4120_s21, %s4124_s29, %s3666_s5, %s3666_s5, %s3667_s10  }
 0x130   : > { %s4435_s7 = sld [smem:[#allocation32_spill]] }
 0x136   : > { %p4436_p12 = scmp.ne.s32.totalorder %s4435_s7, 0 }
 0x137   : > { %s4154_s12 = sand.u32 (!%p4436_p12), 1, %s3642_s26   ;;  %p4437_p13 = scmp.ne.s32.totalorder (!%p4436_p12), %s4417_s22, 0 }
 0x138   : > { %578 = sbr.rel (%p4436_p12) target bundleno = 1184 (0x4a0), region = 72  ;;  %s4157_s16 = sshll.u32 (!%p4436_p12), %s4154_s12, 4 }
 0x139   : > { %s581_s8 = scalar_lea.sflag (!%p4436_p12), [#allocation3], %s4154_s12  ;;  %s584_s14 = scalar_lea.vmem (!%p4436_p12), [#allocation2], %s4157_s16 }
 0x13f   : > { %3605 = dma.done.wait (%p4437_p13), %s581_s8, 256  }
 0x140   : > { %3607 = vsyncadd (%p4437_p13), %s581_s8, 4294967040  ;;  %s4438_s5 = sld [smem:[#allocation31_spill]]  ;;  %s593_s21 = scalar_lea.vmem [#allocation5], %s4157_s16 }
 0x146   : > { %s589_s10 = sand.u32 1, %s4438_s5  }
 0x147   : > { %s590_s15 = scalar_lea.sflag [#allocation6], %s589_s10 }
 0x148   : > { %3609 = dma.done.wait (%p4437_p13), %s590_s15, 512  }
 0x149   : > { %3611 = vsyncadd (%p4437_p13), %s590_s15, 4294966784  ;;  %s602_s17 = scalar_lea.vmem [#allocation7], %s4157_s16  ;;  %s608_s29 = scalar_lea.sflag [#allocation9], %s589_s10 }
 0x14a   : > { %s611_s13 = scalar_lea.vmem [#allocation8], %s4157_s16 }
 0x14b   : > { %3613 = dma.done.wait (%p4437_p13), %s608_s29, 256  }
 0x14c   : > { %3615 = vsyncadd (%p4437_p13), %s608_s29, 4294967040  ;;  %p4439_p2 = scmp.eq.s32.totalorder %s4438_s5, 0 }
 0x14e   : > { %3617 = dma.done.wait (%p4439_p2), [#allocation9], 3072   ;;  %p4440_p8 = pmov %p4439_p2 }
 0x14f   : > { %p4441_p6 = pmov %p4439_p2 }
 0x150   : > { %3619 = vsyncadd (%p4440_p8), [#allocation9], 4294964224 }
 0x151   : > { %3621 = dma.done.wait (%p4441_p6), [#allocation12], 6144   ;;  %p4442_p3 = pmov %p4439_p2 }
 0x152   : > { %p4443_p5 = pmov %p4439_p2 }
 0x153   : > { %3623 = vsyncadd (%p4442_p3), [#allocation12], 4294961152 }
 0x154   : > { %3625 = dma.done.wait (%p4443_p5), [#allocation15], 9216   ;;  %p4444_p10 = pmov %p4439_p2 }
 0x155   : > { %p4445_p9 = pmov %p4439_p2 }
 0x156   : > { %3627 = vsyncadd (%p4444_p10), [#allocation15], 4294958080 }
 0x157   : > { %3629 = dma.done.wait (%p4445_p9), [#allocation18], 2048   ;;  %p4446_p1 = pmov %p4439_p2 }
 0x158   : > { %v3676_v0 = vmov 0   ;;  %v3048_v1 = vld [vmem:[#allocation11 + $0x4] ss:$12 sps:$4 sm:$0xff]   ;;  %v3052_v3 = vld [vmem:[#allocation11] ss:$12 sps:$4 sm:$0xff]   ;;  %v3677_v42 = vmov 0.0  }
 0x159   : > { %3631 = vsyncadd (%p4446_p1), [#allocation18], 4294965248  ;;  %929 = vmatprep.mubr.bf16.mxu1 %v3676_v0  ;;  %1141 = vmatprep.mubr.bf16.mxu0 %v3676_v0  ;;  %v3050_v2 = vld [vmem:[#allocation10 + $0x4] ss:$12 sps:$4 sm:$0xff]   ;;  %v3053_v4 = vld [vmem:[#allocation10] ss:$12 sps:$4 sm:$0xff]  }
 0x15a   : > { %897 = vmatprep.subr.bf16.mxu1 %v3048_v1  ;;  %1109 = vmatprep.subr.bf16.mxu0 %v3050_v2  ;;  %v3054_v5 = vld [vmem:[#allocation11 + $0x1c] ss:$12 sps:$4 sm:$0xff]   ;;  %v3058_v7 = vld [vmem:[#allocation11 + $0x18] ss:$12 sps:$4 sm:$0xff]   ;;  %v3060_v9 = vld [vmem:[#allocation11 + $0x34] ss:$12 sps:$4 sm:$0xff]  }
 0x15b   : > { %898 = vmatpush1.bf16.msra.mxu1 %v3052_v3  ;;  %1110 = vmatpush1.bf16.msra.mxu0 %v3053_v4  ;;  %v3056_v6 = vld [vmem:[#allocation10 + $0x1c] ss:$12 sps:$4 sm:$0xff]   ;;  %v3059_v8 = vld [vmem:[#allocation10 + $0x18] ss:$12 sps:$4 sm:$0xff]   ;;  %v3062_v10 = vld [vmem:[#allocation10 + $0x34] ss:$12 sps:$4 sm:$0xff]  }
 0x15c   : > { %899 = vmatprep.subr.bf16.mxu1 %v3054_v5  ;;  %1111 = vmatprep.subr.bf16.mxu0 %v3056_v6  ;;  %v3064_v11 = vld [vmem:[#allocation11 + $0x30] ss:$12 sps:$4 sm:$0xff]   ;;  %v3066_v13 = vld [vmem:[#allocation11 + $0x4c] ss:$12 sps:$4 sm:$0xff]   ;;  %v3070_v15 = vld [vmem:[#allocation11 + $0x48] ss:$12 sps:$4 sm:$0xff]  }
 0x15d   : > { %v3065_v12 = vld [vmem:[#allocation10 + $0x30] ss:$12 sps:$4 sm:$0xff]   ;;  %v3068_v14 = vld [vmem:[#allocation10 + $0x4c] ss:$12 sps:$4 sm:$0xff]   ;;  %v3071_v16 = vld [vmem:[#allocation10 + $0x48] ss:$12 sps:$4 sm:$0xff]  }
 0x15e   : > { %v3072_v17 = vld [vmem:[#allocation11 + $0x64] ss:$12 sps:$4 sm:$0xff]   ;;  %v3076_v19 = vld [vmem:[#allocation11 + $0x60] ss:$12 sps:$4 sm:$0xff]   ;;  %v3078_v21 = vld [vmem:[#allocation11 + $0x7c] ss:$12 sps:$4 sm:$0xff]  }
 0x15f   : > { %900 = vmatpush1.bf16.msra.mxu1 %v3058_v7  ;;  %1112 = vmatpush1.bf16.msra.mxu0 %v3059_v8  ;;  %v3074_v18 = vld [vmem:[#allocation10 + $0x64] ss:$12 sps:$4 sm:$0xff]   ;;  %v3077_v20 = vld [vmem:[#allocation10 + $0x60] ss:$12 sps:$4 sm:$0xff]   ;;  %v3080_v22 = vld [vmem:[#allocation10 + $0x7c] ss:$12 sps:$4 sm:$0xff]  }
 0x160   : > { %901 = vmatprep.subr.bf16.mxu1 %v3060_v9  ;;  %1113 = vmatprep.subr.bf16.mxu0 %v3062_v10  ;;  %v3082_v23 = vld [vmem:[#allocation11 + $0x78] ss:$12 sps:$4 sm:$0xff]   ;;  %v3084_v25 = vld [vmem:[#allocation11 + $0x94] ss:$12 sps:$4 sm:$0xff]   ;;  %v3088_v27 = vld [vmem:[#allocation11 + $0x90] ss:$12 sps:$4 sm:$0xff]  }
 0x161   : > { %v3083_v24 = vld [vmem:[#allocation10 + $0x78] ss:$12 sps:$4 sm:$0xff]   ;;  %v3086_v26 = vld [vmem:[#allocation10 + $0x94] ss:$12 sps:$4 sm:$0xff]   ;;  %v3089_v28 = vld [vmem:[#allocation10 + $0x90] ss:$12 sps:$4 sm:$0xff]  }
 0x162   : > { %v3090_v29 = vld [vmem:[#allocation11 + $0xac] ss:$12 sps:$4 sm:$0xff]   ;;  %v3094_v31 = vld [vmem:[#allocation11 + $0xa8] ss:$12 sps:$4 sm:$0xff]   ;;  %v3098_v37 = vld [vmem:[#allocation13 + $0x4] ss:$12 sps:$4 sm:$0xff]  }
 0x163   : > { %902 = vmatpush1.bf16.msra.mxu1 %v3064_v11  ;;  %1114 = vmatpush1.bf16.msra.mxu0 %v3065_v12  ;;  %v3092_v30 = vld [vmem:[#allocation10 + $0xac] ss:$12 sps:$4 sm:$0xff]   ;;  %v3095_v32 = vld [vmem:[#allocation10 + $0xa8] ss:$12 sps:$4 sm:$0xff]   ;;  %vm3678_vm0 = vmmov 0   ;;  %s4447_s18 = sld [smem:[#allocation42_spill]] }
 0x164   : > { %903 = vmatprep.subr.bf16.mxu1 %v3066_v13  ;;  %1115 = vmatprep.subr.bf16.mxu0 %v3068_v14  ;;  %v734_v33 = vld [vmem:[%s593_s21] sm:$0xff]  ;;  %v735_v34 = vld [vmem:[%s593_s21 + $0x8] sm:$0xff]  ;;  %s4448_s1 = sld [smem:[#allocation43_spill]]  ;;  %s4449_s20 = sld [smem:[#allocation29_spill]] }
 0x165   : > { %v699_v35 = vld [vmem:[%s584_s14] sm:$0xff]  ;;  %v700_v36 = vld [vmem:[%s584_s14 + $0x8] sm:$0xff]  ;;  %v4203_v38 = vpack.c.bf16 %v735_v34, %v734_v33  ;;  %s4450_s19 = sld [smem:[#allocation44_spill]]  ;;  %s692_s7 = scalar_lea.vmem [#allocation19], %s4157_s16 }
 0x166   : > { %v3096_v39 = vld [vmem:[#allocation13] ss:$12 sps:$4 sm:$0xff]   ;;  %v4205_v40 = vpack.c.bf16 %v700_v36, %v699_v35  ;;  %v3099_v41 = vld [vmem:[#allocation11 + $0x8] ss:$12 sps:$4 sm:$0xff]   ;;  %v3100_v44 = vld [vmem:[#allocation13 + $0x18] ss:$12 sps:$4 sm:$0xff]  }
 0x167   : > { %904 = vmatpush1.bf16.msra.mxu1 %v3070_v15  ;;  %1116 = vmatpush1.bf16.msra.mxu0 %v3071_v16  ;;  %v3102_v43 = vld [vmem:[#allocation13 + $0x1c] ss:$12 sps:$4 sm:$0xff]   ;;  %v3103_v45 = vld [vmem:[#allocation11 + $0x20] ss:$12 sps:$4 sm:$0xff]   ;;  %v3107_v48 = vld [vmem:[#allocation11 + $0x38] ss:$12 sps:$4 sm:$0xff]  }
 0x168   : > { %905 = vmatprep.subr.bf16.mxu1 %v3072_v17  ;;  %1117 = vmatprep.subr.bf16.mxu0 %v3074_v18  ;;  %v3106_v46 = vld [vmem:[#allocation13 + $0x34] ss:$12 sps:$4 sm:$0xff]   ;;  %v3104_v47 = vld [vmem:[#allocation13 + $0x30] ss:$12 sps:$4 sm:$0xff]   ;;  %v3110_v49 = vld [vmem:[#allocation13 + $0x4c] ss:$12 sps:$4 sm:$0xff]  }
 0x169   : > { %v3108_v50 = vld [vmem:[#allocation13 + $0x48] ss:$12 sps:$4 sm:$0xff]   ;;  %v3111_v51 = vld [vmem:[#allocation11 + $0x50] ss:$12 sps:$4 sm:$0xff]   ;;  %v3112_v53 = vld [vmem:[#allocation13 + $0x60] ss:$12 sps:$4 sm:$0xff]  }
 0x16a   : > { %v3114_v52 = vld [vmem:[#allocation13 + $0x64] ss:$12 sps:$4 sm:$0xff]   ;;  %v3115_v54 = vld [vmem:[#allocation11 + $0x68] ss:$12 sps:$4 sm:$0xff]   ;;  %v3119_v57 = vld [vmem:[#allocation11 + $0x80] ss:$12 sps:$4 sm:$0xff]  }
 0x16b   : > { %906 = vmatpush1.bf16.msra.mxu1 %v3076_v19  ;;  %1118 = vmatpush1.bf16.msra.mxu0 %v3077_v20  ;;  %v3118_v55 = vld [vmem:[#allocation13 + $0x7c] ss:$12 sps:$4 sm:$0xff]   ;;  %v3116_v56 = vld [vmem:[#allocation13 + $0x78] ss:$12 sps:$4 sm:$0xff]   ;;  %v3122_v58 = vld [vmem:[#allocation13 + $0x94] ss:$12 sps:$4 sm:$0xff]  }
 0x16c   : > { %907 = vmatprep.subr.bf16.mxu1 %v3078_v21  ;;  %1119 = vmatprep.subr.bf16.mxu0 %v3080_v22  ;;  %v3120_v59 = vld [vmem:[#allocation13 + $0x90] ss:$12 sps:$4 sm:$0xff]   ;;  %v3123_v60 = vld [vmem:[#allocation11 + $0x98] ss:$12 sps:$4 sm:$0xff]   ;;  %v3124_v62 = vld [vmem:[#allocation13 + $0xa8] ss:$12 sps:$4 sm:$0xff]  }
 0x16d   : > { %v3126_v61 = vld [vmem:[#allocation13 + $0xac] ss:$12 sps:$4 sm:$0xff]   ;;  %v3127_v63 = vld [vmem:[#allocation11 + $0xb0] ss:$12 sps:$4 sm:$0xff]   ;;  %v3131_v6 = vld [vmem:[#allocation10 + $0x8] ss:$12 sps:$4 sm:$0xff]  }
 0x16e   : > { %v1193_v1 = vld [vmem:[%s602_s17] sm:$0xff]  ;;  %v1194_v2 = vld [vmem:[%s602_s17 + $0x8] sm:$0xff]  ;;  %s4451_s8 = sld [smem:[#allocation34_spill]]  ;;  %s2317_s14 = sshll.u32 %s692_s7, 4  ;;  %s4299_s14 = int_to_ptr.vmem [resolvable:$true] %s2317_s14 }
 0x16f   : > { %908 = vmatpush1.bf16.msra.mxu1 %v3082_v23  ;;  %1120 = vmatpush1.bf16.msra.mxu0 %v3083_v24  ;;  %v3130_v3 = vld [vmem:[#allocation14 + $0x4] ss:$12 sps:$4 sm:$0xff]   ;;  %v3128_v4 = vld [vmem:[#allocation14] ss:$12 sps:$4 sm:$0xff]   ;;  %v4224_v5 = vpack.c.bf16 %v1194_v2, %v1193_v1  ;;  %v3134_v7 = vld [vmem:[#allocation14 + $0x1c] ss:$12 sps:$4 sm:$0xff]  }
 0x170   : > { %909 = vmatprep.subr.bf16.mxu1 %v3084_v25  ;;  %1121 = vmatprep.subr.bf16.mxu0 %v3086_v26  ;;  %v3132_v8 = vld [vmem:[#allocation14 + $0x18] ss:$12 sps:$4 sm:$0xff]   ;;  %v3135_v9 = vld [vmem:[#allocation10 + $0x20] ss:$12 sps:$4 sm:$0xff]   ;;  %v3136_v11 = vld [vmem:[#allocation14 + $0x30] ss:$12 sps:$4 sm:$0xff]  }
 0x171   : > { %v3138_v10 = vld [vmem:[#allocation14 + $0x34] ss:$12 sps:$4 sm:$0xff]   ;;  %v3139_v12 = vld [vmem:[#allocation10 + $0x38] ss:$12 sps:$4 sm:$0xff]   ;;  %v3143_v15 = vld [vmem:[#allocation10 + $0x50] ss:$12 sps:$4 sm:$0xff]  }
 0x172   : > { %v3142_v13 = vld [vmem:[#allocation14 + $0x4c] ss:$12 sps:$4 sm:$0xff]   ;;  %v3140_v14 = vld [vmem:[#allocation14 + $0x48] ss:$12 sps:$4 sm:$0xff]   ;;  %v3146_v16 = vld [vmem:[#allocation14 + $0x64] ss:$12 sps:$4 sm:$0xff]  }
 0x173   : > { %910 = vmatpush1.bf16.msra.mxu1 %v3088_v27  ;;  %1122 = vmatpush1.bf16.msra.mxu0 %v3089_v28  ;;  %v3144_v17 = vld [vmem:[#allocation14 + $0x60] ss:$12 sps:$4 sm:$0xff]   ;;  %v3147_v18 = vld [vmem:[#allocation10 + $0x68] ss:$12 sps:$4 sm:$0xff]   ;;  %v3148_v20 = vld [vmem:[#allocation14 + $0x78] ss:$12 sps:$4 sm:$0xff]  }
 0x174   : > { %911 = vmatprep.subr.bf16.mxu1 %v3090_v29  ;;  %1123 = vmatprep.subr.bf16.mxu0 %v3092_v30  ;;  %v3150_v19 = vld [vmem:[#allocation14 + $0x7c] ss:$12 sps:$4 sm:$0xff]   ;;  %v3151_v21 = vld [vmem:[#allocation10 + $0x80] ss:$12 sps:$4 sm:$0xff]   ;;  %v3155_v24 = vld [vmem:[#allocation10 + $0x98] ss:$12 sps:$4 sm:$0xff]  }
 0x175   : > { %v3154_v22 = vld [vmem:[#allocation14 + $0x94] ss:$12 sps:$4 sm:$0xff]   ;;  %v3152_v23 = vld [vmem:[#allocation14 + $0x90] ss:$12 sps:$4 sm:$0xff]   ;;  %v3158_v25 = vld [vmem:[#allocation14 + $0xac] ss:$12 sps:$4 sm:$0xff]  }
 0x176   : > { %v3156_v26 = vld [vmem:[#allocation14 + $0xa8] ss:$12 sps:$4 sm:$0xff]   ;;  %v3159_v27 = vld [vmem:[#allocation10 + $0xb0] ss:$12 sps:$4 sm:$0xff]   ;;  %v3162_v33 = vld [vmem:[#allocation13 + $0x38] ss:$12 sps:$4 sm:$0xff]  }
 0x177   : > { %912 = vmatpush1.bf16.msra.mxu1 %v3094_v31  ;;  %1124 = vmatpush1.bf16.msra.mxu0 %v3095_v32  ;;  %v1446_v28 = vld [vmem:[%s611_s13] sm:$0xff]  ;;  %v1447_v29 = vld [vmem:[%s611_s13 + $0x8] sm:$0xff]  ;;  %s2740_s5 = sshll.u32 %s4449_s20, 8  ;;  %s4452_s21 = sld [smem:[#allocation45_spill]] }
 0x178   : > { %2799 = vmatprep.subr.bf16.mxu1 %v3677_v42  ;;  %1356 = vmatprep.subr.bf16.mxu0 %v3098_v37  ;;  %v3160_v30 = vld [vmem:[#allocation13 + $0x8] ss:$12 sps:$4 sm:$0xff]   ;;  %v4243_v31 = vpack.c.bf16 %v1447_v29, %v1446_v28  ;;  %v3161_v32 = vld [vmem:[#allocation13 + $0x20] ss:$12 sps:$4 sm:$0xff]   ;;  %v3163_v34 = vld [vmem:[#allocation13 + $0x50] ss:$12 sps:$4 sm:$0xff]  }
 0x179   : > { %v3164_v35 = vld [vmem:[#allocation13 + $0x68] ss:$12 sps:$4 sm:$0xff]   ;;  %v3165_v36 = vld [vmem:[#allocation13 + $0x80] ss:$12 sps:$4 sm:$0xff]   ;;  %v3166_v37 = vld [vmem:[#allocation13 + $0x98] ss:$12 sps:$4 sm:$0xff]  }
 0x17a   : > { %930 = vmatmul.mubr.bf16.vlgmr.msra.gmra.mrb[0].mxu1 %v4203_v38  ;;  %1142 = vmatmul.mubr.bf16.vlgmr.msra.gmra.mrb[0].mxu0 %v4205_v40  ;;  %v3202_v1 = vld [vmem:[#allocation16 + $0x84] ss:$8 sps:$4 sm:$0xff]   ;;  %v3200_v2 = vld [vmem:[#allocation16 + $0x80] ss:$8 sps:$4 sm:$0xff]   ;;  %v3255_v28 = vld [vmem:[#allocation17 + $0x18] sm:$0xff]   ;;  %s2302_s16 = scalar_lea.sflag [#allocation4], %s4154_s12 }
 0x17b   : > { %2800 = vmatpush3.bf16.msra.mxu1 %v3099_v41  ;;  %1357 = vmatpush1.bf16.msra.mxu0 %v3096_v39  ;;  %v3178_v39 = vld [vmem:[#allocation16 + $0x4] ss:$8 sps:$4 sm:$0xff]   ;;  %v3167_v41 = vld [vmem:[#allocation13 + $0xb0] ss:$12 sps:$4 sm:$0xff]   ;;  %s3552_s29 = scalar_lea.vmem %s4299_s14, 256  ;;  %p4453_p11 = scmp.ne.s32.totalorder %s4451_s8, 0 }
 0x17c   : > { %2801 = vmatprep.subr.bf16.mxu1 %v3677_v42  ;;  %1358 = vmatprep.subr.bf16.mxu0 %v3102_v43  ;;  %v3179_v43 = vld [vmem:[#allocation16 + $0x10] ss:$8 sps:$4 sm:$0xff]   ;;  %v3256_v29 = vld [vmem:[#allocation17 + $0x60] sm:$0xff]   ;;  %p3553_p0 = scmp.ne.s32.totalorder %s4299_s14, %s3552_s29  ;;  %s3679_s13 = smov [#allocation19]  }
 0x17d   : > { %2815 = vmatprep.mubr.msk.bf16.mxu1 %vm3678_vm0, %v3677_v42  ;;  %1388 = vmatprep.mubr.bf16.mxu0 %v3676_v0  ;;  %s4304_s17 = scalar_lea.hbm %s4452_s21, %s2740_s5  ;;  %s3556_s22 = sshll.u32 %s3679_s13, 4  ;;  %s3557_s22 = int_to_ptr.vmem [resolvable:$false] %s3556_s22 }
 0x17e   : > { %p3554_p4 = pnand %p3553_p0, %p4453_p11  ;;  %s3558_s24 = scalar_lea.vmem %s3557_s22, 512 }
 0x17f   : > { %2802 = vmatpush3.bf16.msra.mxu1 %v3103_v45  ;;  %1359 = vmatpush1.bf16.msra.mxu0 %v3100_v44  ;;  %v3184_v44 = vld [vmem:[#allocation16 + $0x24] ss:$8 sps:$4 sm:$0xff]   ;;  %v3168_v45 = vld [vmem:[#allocation14 + $0x8] ss:$12 sps:$4 sm:$0xff]   ;;  %p3559_p12 = scmp.lt.s32.totalorder %s4299_s14, %s3557_s22  ;;  %p3560_p13 = scmp.lt.s32.totalorder %s3558_s24, %s3552_s29 }
 0x180   : > { %2803 = vmatprep.subr.bf16.mxu1 %v3677_v42  ;;  %1360 = vmatprep.subr.bf16.mxu0 %v3106_v46  ;;  %v3182_v46 = vld [vmem:[#allocation16 + $0x20] ss:$8 sps:$4 sm:$0xff]   ;;  %p3555_p7 = pneg %p3554_p4 }
 0x181   : > { %p3561_p2 = por %p3560_p13, %p3559_p12 }
 0x183   : > { %2804 = vmatpush3.bf16.msra.mxu1 %v3107_v48  ;;  %1361 = vmatpush1.bf16.msra.mxu0 %v3104_v47  ;;  %v3187_v47 = vld [vmem:[#allocation16 + $0x34] ss:$8 sps:$4 sm:$0xff]   ;;  %v3169_v48 = vld [vmem:[#allocation14 + $0x20] ss:$12 sps:$4 sm:$0xff]   ;;  %p3562_p8 = pnand %p3561_p2, %p3555_p7 }
 0x184   : > { %2805 = vmatprep.subr.bf16.mxu1 %v3677_v42  ;;  %1362 = vmatprep.subr.bf16.mxu0 %v3110_v49  ;;  %v3185_v49 = vld [vmem:[#allocation16 + $0x30] ss:$8 sps:$4 sm:$0xff]  }
 0x187   : > { %2806 = vmatpush3.bf16.msra.mxu1 %v3111_v51  ;;  %1363 = vmatpush1.bf16.msra.mxu0 %v3108_v50  ;;  %v3190_v50 = vld [vmem:[#allocation16 + $0x44] ss:$8 sps:$4 sm:$0xff]  }
 0x188   : > { %2807 = vmatprep.subr.bf16.mxu1 %v3677_v42  ;;  %1364 = vmatprep.subr.bf16.mxu0 %v3114_v52  ;;  %v3170_v51 = vld [vmem:[#allocation14 + $0x38] ss:$12 sps:$4 sm:$0xff]   ;;  %v3188_v52 = vld [vmem:[#allocation16 + $0x40] ss:$8 sps:$4 sm:$0xff]  }
 0x18b   : > { %2808 = vmatpush3.bf16.msra.mxu1 %v3115_v54  ;;  %1365 = vmatpush1.bf16.msra.mxu0 %v3112_v53  ;;  %v3171_v53 = vld [vmem:[#allocation14 + $0x50] ss:$12 sps:$4 sm:$0xff]   ;;  %v3172_v54 = vld [vmem:[#allocation14 + $0x68] ss:$12 sps:$4 sm:$0xff]  }
 0x18c   : > { %2809 = vmatprep.subr.bf16.mxu1 %v3677_v42  ;;  %1366 = vmatprep.subr.bf16.mxu0 %v3118_v55  ;;  %v3173_v55 = vld [vmem:[#allocation14 + $0x80] ss:$12 sps:$4 sm:$0xff]  }
 0x18f   : > { %2810 = vmatpush3.bf16.msra.mxu1 %v3119_v57  ;;  %1367 = vmatpush1.bf16.msra.mxu0 %v3116_v56  ;;  %v3193_v56 = vld [vmem:[#allocation16 + $0x54] ss:$8 sps:$4 sm:$0xff]   ;;  %v3191_v57 = vld [vmem:[#allocation16 + $0x50] ss:$8 sps:$4 sm:$0xff]  }
 0x190   : > { %2811 = vmatprep.subr.bf16.mxu1 %v3677_v42  ;;  %1368 = vmatprep.subr.bf16.mxu0 %v3122_v58  ;;  %v3174_v58 = vld [vmem:[#allocation14 + $0x98] ss:$12 sps:$4 sm:$0xff]  }
 0x193   : > { %2812 = vmatpush3.bf16.msra.mxu1 %v3123_v60  ;;  %1369 = vmatpush1.bf16.msra.mxu0 %v3120_v59  ;;  %v3194_v59 = vld [vmem:[#allocation16 + $0x60] ss:$8 sps:$4 sm:$0xff]   ;;  %v3196_v60 = vld [vmem:[#allocation16 + $0x64] ss:$8 sps:$4 sm:$0xff]  }
 0x194   : > { %2813 = vmatprep.subr.bf16.mxu1 %v3677_v42  ;;  %1370 = vmatprep.subr.bf16.mxu0 %v3126_v61  ;;  %v3199_v61 = vld [vmem:[#allocation16 + $0x74] ss:$8 sps:$4 sm:$0xff]  }
 0x197   : > { %2814 = vmatpush3.bf16.msra.mxu1 %v3127_v63  ;;  %1371 = vmatpush1.bf16.msra.mxu0 %v3124_v62  ;;  %v3175_v62 = vld [vmem:[#allocation14 + $0xb0] ss:$12 sps:$4 sm:$0xff]  }
 0x198   : > { %2819 = vmatprep.subr.bf16.mxu1 %v3677_v42  ;;  %1609 = vmatprep.subr.bf16.mxu0 %v3130_v3  ;;  %v3197_v63 = vld [vmem:[#allocation16 + $0x70] ss:$8 sps:$4 sm:$0xff]   ;;  %v3205_v3 = vld [vmem:[#allocation16 + $0x94] ss:$8 sps:$4 sm:$0xff]  }
 0x19a   : > { %2816 = vmatmul.mubr.bf16.vlgmr.msra.gmra.mrb[4].mxu1 %v4203_v38  ;;  %1389 = vmatmul.mubr.bf16.vlgmr.msra.gmra.mrb[0].mxu0 %v4224_v5  ;;  %v3176_v38 = vld [vmem:[#allocation16] ss:$8 sps:$4 sm:$0xff]  }
 0x19b   : > { %2820 = vmatpush3.bf16.msra.mxu1 %v3131_v6  ;;  %1610 = vmatpush1.bf16.msra.mxu0 %v3128_v4  ;;  %v3203_v4 = vld [vmem:[#allocation16 + $0x90] ss:$8 sps:$4 sm:$0xff]   ;;  %v3206_v6 = vld [vmem:[#allocation16 + $0xa0] ss:$8 sps:$4 sm:$0xff]  }
 0x19c   : > { %2821 = vmatprep.subr.bf16.mxu1 %v3677_v42  ;;  %1611 = vmatprep.subr.bf16.mxu0 %v3134_v7  ;;  %v3211_v7 = vld [vmem:[#allocation16 + $0xb4] ss:$8 sps:$4 sm:$0xff]  }
 0x19d   : > { %2835 = vmatprep.mubr.msk.bf16.mxu1 %vm3678_vm0, %v3677_v42  ;;  %1641 = vmatprep.mubr.bf16.mxu0 %v3676_v0 }
 0x19f   : > { %2822 = vmatpush3.bf16.msra.mxu1 %v3135_v9  ;;  %1612 = vmatpush1.bf16.msra.mxu0 %v3132_v8  ;;  %v3209_v8 = vld [vmem:[#allocation16 + $0xb0] ss:$8 sps:$4 sm:$0xff]   ;;  %v3212_v9 = vld [vmem:[#allocation16 + $0xc0] ss:$8 sps:$4 sm:$0xff]  }
 0x1a0   : > { %2823 = vmatprep.subr.bf16.mxu1 %v3677_v42  ;;  %1613 = vmatprep.subr.bf16.mxu0 %v3138_v10  ;;  %v3217_v10 = vld [vmem:[#allocation16 + $0xd4] ss:$8 sps:$4 sm:$0xff]  }
 0x1a3   : > { %2824 = vmatpush3.bf16.msra.mxu1 %v3139_v12  ;;  %1614 = vmatpush1.bf16.msra.mxu0 %v3136_v11  ;;  %v3215_v11 = vld [vmem:[#allocation16 + $0xd0] ss:$8 sps:$4 sm:$0xff]   ;;  %v3220_v12 = vld [vmem:[#allocation16 + $0xe4] ss:$8 sps:$4 sm:$0xff]  }
 0x1a4   : > { %2825 = vmatprep.subr.bf16.mxu1 %v3677_v42  ;;  %1615 = vmatprep.subr.bf16.mxu0 %v3142_v13  ;;  %v3218_v13 = vld [vmem:[#allocation16 + $0xe0] ss:$8 sps:$4 sm:$0xff]  }
 0x1a7   : > { %2826 = vmatpush3.bf16.msra.mxu1 %v3143_v15  ;;  %1616 = vmatpush1.bf16.msra.mxu0 %v3140_v14  ;;  %v3223_v14 = vld [vmem:[#allocation16 + $0xf4] ss:$8 sps:$4 sm:$0xff]   ;;  %v3221_v15 = vld [vmem:[#allocation16 + $0xf0] ss:$8 sps:$4 sm:$0xff]  }
 0x1a8   : > { %2827 = vmatprep.subr.bf16.mxu1 %v3677_v42  ;;  %1617 = vmatprep.subr.bf16.mxu0 %v3146_v16  ;;  %v3226_v16 = vld [vmem:[#allocation16 + $0x104] ss:$8 sps:$4 sm:$0xff]  }
 0x1ab   : > { %2828 = vmatpush3.bf16.msra.mxu1 %v3147_v18  ;;  %1618 = vmatpush1.bf16.msra.mxu0 %v3144_v17 }
 0x1ac   : > { %2829 = vmatprep.subr.bf16.mxu1 %v3677_v42  ;;  %1619 = vmatprep.subr.bf16.mxu0 %v3150_v19 }
 0x1af   : > { %2830 = vmatpush3.bf16.msra.mxu1 %v3151_v21  ;;  %1620 = vmatpush1.bf16.msra.mxu0 %v3148_v20  ;;  %v3248_v21 = vld [vmem:[#allocation17 + $0x40] sm:$0xff]  }
 0x1b0   : > { %2831 = vmatprep.subr.bf16.mxu1 %v3677_v42  ;;  %1621 = vmatprep.subr.bf16.mxu0 %v3154_v22  ;;  %v3249_v22 = vld [vmem:[#allocation17] sm:$0xff]  }
 0x1b3   : > { %2832 = vmatpush3.bf16.msra.mxu1 %v3155_v24  ;;  %1622 = vmatpush1.bf16.msra.mxu0 %v3152_v23  ;;  %v3250_v23 = vld [vmem:[#allocation17 + $0x48] sm:$0xff]  }
 0x1b4   : > { %2833 = vmatprep.subr.bf16.mxu1 %v3677_v42  ;;  %1623 = vmatprep.subr.bf16.mxu0 %v3158_v25  ;;  %v3251_v24 = vld [vmem:[#allocation17 + $0x8] sm:$0xff]   ;;  %v3252_v25 = vld [vmem:[#allocation17 + $0x50] sm:$0xff]  }
 0x1b7   : > { %2834 = vmatpush3.bf16.msra.mxu1 %v3159_v27  ;;  %1624 = vmatpush1.bf16.msra.mxu0 %v3156_v26  ;;  %v3253_v26 = vld [vmem:[#allocation17 + $0x10] sm:$0xff]   ;;  %v3254_v27 = vld [vmem:[#allocation17 + $0x58] sm:$0xff]  }
 0x1b8   : > { %2839 = vmatprep.subr.bf16.mxu1 %v3677_v42  ;;  %2031 = vmatprep.subr.bf16.mxu0 %v3178_v39  ;;  %v4275_v39 = vld [vmem:[%s4447_s18] sm:$0x7] }
 0x1ba   : > { %2836 = vmatmul.mubr.bf16.vlgmr.msra.gmra.mrb[8].mxu1 %v4205_v40  ;;  %1642 = vmatmul.mubr.bf16.vlgmr.msra.gmra.mrb[0].mxu0 %v4243_v31  ;;  %v3181_v40 = vld [vmem:[#allocation16 + $0x14] ss:$8 sps:$4 sm:$0xff]  }
 0x1bb   : > { %2840 = vmatpush3.bf16.msra.mxu1 %v3160_v30  ;;  %2855 = vmatprep.mubr.msk.bf16.mxu1 %vm3678_vm0, %v3677_v42  ;;  %v3257_v30 = vld [vmem:[#allocation17 + $0x20] sm:$0xff]  }
 0x1bc   : > { %2841 = vmatprep.subr.bf16.mxu1 %v3677_v42  ;;  %2032 = vmatpush1.bf16.msra.mxu0 %v3176_v38 }
 0x1bd   : > { %2033 = vmatprep.subr.bf16.mxu0 %v3181_v40 }
 0x1bf   : > { %2842 = vmatpush3.bf16.msra.mxu1 %v3161_v32 }
 0x1c0   : > { %2843 = vmatprep.subr.bf16.mxu1 %v3677_v42  ;;  %2034 = vmatpush1.bf16.msra.mxu0 %v3179_v43 }
 0x1c1   : > { %2035 = vmatprep.subr.bf16.mxu0 %v3184_v44 }
 0x1c3   : > { %2844 = vmatpush3.bf16.msra.mxu1 %v3162_v33 }
 0x1c4   : > { %2845 = vmatprep.subr.bf16.mxu1 %v3677_v42  ;;  %2036 = vmatpush1.bf16.msra.mxu0 %v3182_v46 }
 0x1c5   : > { %2037 = vmatprep.subr.bf16.mxu0 %v3187_v47 }
 0x1c7   : > { %2846 = vmatpush3.bf16.msra.mxu1 %v3163_v34 }
 0x1c8   : > { %2847 = vmatprep.subr.bf16.mxu1 %v3677_v42  ;;  %2038 = vmatpush1.bf16.msra.mxu0 %v3185_v49 }
 0x1c9   : > { %2039 = vmatprep.subr.bf16.mxu0 %v3190_v50 }
 0x1cb   : > { %2848 = vmatpush3.bf16.msra.mxu1 %v3164_v35 }
 0x1cc   : > { %2849 = vmatprep.subr.bf16.mxu1 %v3677_v42  ;;  %2040 = vmatpush1.bf16.msra.mxu0 %v3188_v52 }
 0x1cd   : > { %2041 = vmatprep.subr.bf16.mxu0 %v3193_v56 }
 0x1cf   : > { %2850 = vmatpush3.bf16.msra.mxu1 %v3165_v36  ;;  %v1701_v36 = vlaneseq }
 0x1d0   : > { %2851 = vmatprep.subr.bf16.mxu1 %v3677_v42  ;;  %2042 = vmatpush1.bf16.msra.mxu0 %v3191_v57 }
 0x1d1   : > { %2043 = vmatprep.subr.bf16.mxu0 %v3196_v60 }
 0x1d3   : > { %2852 = vmatpush3.bf16.msra.mxu1 %v3166_v37  ;;  %v4269_v37 = vshrl.u32 %v1701_v36, 7 }
 0x1d4   : > { %2853 = vmatprep.subr.bf16.mxu1 %v3677_v42  ;;  %2044 = vmatpush1.bf16.msra.mxu0 %v3194_v59 }
 0x1d5   : > { %2045 = vmatprep.subr.bf16.mxu0 %v3199_v61  ;;  %v1703_v38 = vsub.s32 0, %v4269_v37  ;;  %v1707_v40 = vsub.s32 1, %v4269_v37 }
 0x1d7   : > { %2854 = vmatpush3.bf16.msra.mxu1 %v3167_v41  ;;  %v1704_v41 = vrot.slane %v4275_v39, %v1703_v38 }
 0x1d8   : > { %2859 = vmatprep.subr.bf16.mxu1 %v3677_v42  ;;  %2046 = vmatpush1.bf16.msra.mxu0 %v3197_v63 }
 0x1d9   : > { %2047 = vmatprep.subr.bf16.mxu0 %v3202_v1 }
 0x1da   : > { %2856 = vmatmul.mubr.bf16.vlgmr.msra.gmra.mrb[12].mxu1 %v4224_v5  ;;  %v3208_v5 = vld [vmem:[#allocation16 + $0xa4] ss:$8 sps:$4 sm:$0xff]  }
 0x1db   : > { %2860 = vmatpush3.bf16.msra.mxu1 %v3168_v45  ;;  %2875 = vmatprep.mubr.msk.bf16.mxu1 %vm3678_vm0, %v3677_v42  ;;  %v1708_v45 = vrot.slane %v4275_v39, %v1707_v40 }
 0x1dc   : > { %2861 = vmatprep.subr.bf16.mxu1 %v3677_v42  ;;  %2048 = vmatpush1.bf16.msra.mxu0 %v3200_v2 }
 0x1dd   : > { %2049 = vmatprep.subr.bf16.mxu0 %v3205_v3 }
 0x1df   : > { %2862 = vmatpush3.bf16.msra.mxu1 %v3169_v48 }
 0x1e0   : > { %2863 = vmatprep.subr.bf16.mxu1 %v3677_v42  ;;  %2050 = vmatpush1.bf16.msra.mxu0 %v3203_v4 }
 0x1e1   : > { %2051 = vmatprep.subr.bf16.mxu0 %v3208_v5  ;;  %v3224_v5 = vld [vmem:[#allocation16 + $0x100] ss:$8 sps:$4 sm:$0xff]  }
 0x1e3   : > { %2864 = vmatpush3.bf16.msra.mxu1 %v3170_v51 }
 0x1e4   : > { %2865 = vmatprep.subr.bf16.mxu1 %v3677_v42  ;;  %2052 = vmatpush1.bf16.msra.mxu0 %v3206_v6  ;;  %v3229_v6 = vld [vmem:[#allocation16 + $0x114] ss:$8 sps:$4 sm:$0xff]  }
 0x1e5   : > { %2053 = vmatprep.subr.bf16.mxu0 %v3211_v7  ;;  %v3227_v7 = vld [vmem:[#allocation16 + $0x110] ss:$8 sps:$4 sm:$0xff]  }
 0x1e7   : > { %2866 = vmatpush3.bf16.msra.mxu1 %v3171_v53 }
 0x1e8   : > { %2867 = vmatprep.subr.bf16.mxu1 %v3677_v42  ;;  %2054 = vmatpush1.bf16.msra.mxu0 %v3209_v8  ;;  %v3232_v8 = vld [vmem:[#allocation16 + $0x124] ss:$8 sps:$4 sm:$0xff]  }
 0x1eb   : > { %2868 = vmatpush3.bf16.msra.mxu1 %v3172_v54 }
 0x1ec   : > { %2869 = vmatprep.subr.bf16.mxu1 %v3677_v42 }
 0x1ef   : > { %2870 = vmatpush3.bf16.msra.mxu1 %v3173_v55 }
 0x1f0   : > { %2871 = vmatprep.subr.bf16.mxu1 %v3677_v42 }
 0x1f3   : > { %2872 = vmatpush3.bf16.msra.mxu1 %v3174_v58 }
 0x1f4   : > { %2873 = vmatprep.subr.bf16.mxu1 %v3677_v42  ;;  %v3214_v42 = vld [vmem:[#allocation16 + $0xc4] ss:$8 sps:$4 sm:$0xff]  }
 0x1f5   : > { %2055 = vmatprep.subr.bf16.mxu0 %v3214_v42  ;;  %v3230_v42 = vld [vmem:[#allocation16 + $0x120] ss:$8 sps:$4 sm:$0xff]  }
 0x1f6   : > { %2056 = vmatpush1.bf16.msra.mxu0 %v3212_v9  ;;  %v3235_v9 = vld [vmem:[#allocation16 + $0x134] ss:$8 sps:$4 sm:$0xff]  }
 0x1f7   : > { %2874 = vmatpush3.bf16.msra.mxu1 %v3175_v62  ;;  %2057 = vmatprep.subr.bf16.mxu0 %v3217_v10  ;;  %v3233_v10 = vld [vmem:[#allocation16 + $0x130] ss:$8 sps:$4 sm:$0xff]  }
 0x1f8   : > { %2777 = vmatprep.subr.bf16.mxu1 %v3248_v21 }
 0x1fa   : > { %2876 = vmatmul.mubr.bf16.vlgmr.msra.gmra.mrb[16].mxu1 %v4243_v31  ;;  %2058 = vmatpush1.bf16.msra.mxu0 %v3215_v11  ;;  %v3258_v31 = vld [vmem:[#allocation17 + $0x68] sm:$0xff]  }
 0x1fb   : > { %2059 = vmatprep.subr.bf16.mxu0 %v3220_v12  ;;  %2778 = vmatpush3.bf16.msra.mxu1 %v3249_v22  ;;  %v3238_v11 = vld [vmem:[#allocation16 + $0x144] ss:$8 sps:$4 sm:$0xff]   ;;  %v3236_v12 = vld [vmem:[#allocation16 + $0x140] ss:$8 sps:$4 sm:$0xff]   ;;  %v3247_v22 = vld [vmem:[#allocation16 + $0x174] ss:$8 sps:$4 sm:$0xff]  }
 0x1fc   : > { %2779 = vmatprep.subr.bf16.mxu1 %v3250_v23  ;;  %v3245_v23 = vld [vmem:[#allocation16 + $0x170] ss:$8 sps:$4 sm:$0xff]  }
 0x1fe   : > { %2060 = vmatpush1.bf16.msra.mxu0 %v3218_v13  ;;  %v3241_v13 = vld [vmem:[#allocation16 + $0x154] ss:$8 sps:$4 sm:$0xff]  }
 0x1ff   : > { %2061 = vmatprep.subr.bf16.mxu0 %v3223_v14  ;;  %2780 = vmatpush3.bf16.msra.mxu1 %v3251_v24  ;;  %v3239_v14 = vld [vmem:[#allocation16 + $0x150] ss:$8 sps:$4 sm:$0xff]   ;;  %v1711_v24 = vsub.s32 2, %v4269_v37 }
 0x200   : > { %2781 = vmatprep.subr.bf16.mxu1 %v3252_v25 }
 0x201   : > { %v1712_v25 = vrot.slane %v4275_v39, %v1711_v24  ;;  %v3263_v39 = vld [vmem:[#allocation17 + $0x38] sm:$0xff]  }
 0x202   : > { %2062 = vmatpush1.bf16.msra.mxu0 %v3221_v15  ;;  %v3244_v15 = vld [vmem:[#allocation16 + $0x164] ss:$8 sps:$4 sm:$0xff]  }
 0x203   : > { %2074 = vmatprep.subr.bf16.mxu0 %v3226_v16  ;;  %2782 = vmatpush3.bf16.msra.mxu1 %v3253_v26 }
 0x204   : > { %2783 = vmatprep.subr.bf16.mxu1 %v3254_v27 }
 0x207   : > { %2784 = vmatpush3.bf16.msra.mxu1 %v3255_v28 }
 0x208   : > { %2785 = vmatprep.subr.bf16.mxu1 %v3256_v29 }
 0x20b   : > { %2786 = vmatpush3.bf16.msra.mxu1 %v3257_v30 }
 0x20c   : > { %2787 = vmatprep.subr.bf16.mxu1 %v3258_v31 }
 0x24d   : > { %v931_v17 = vpop.f32.mrb[0].mxu1 }
 0x24e   : > { %v933_v18 = vpop.f32.mrb[1].mxu1 }
 0x24f   : > { %v935_v19 = vpop.f32.mrb[2].mxu1 }
 0x250   : > { %v937_v20 = vpop.f32.mrb[3].mxu1 }
 0x26d   : > { %v974_v32 = vpop.f32.mrb[4].mxu1 }
 0x26e   : > { %v2817_v33 = vpop.f32.mrb[5].mxu1 }
 0x26f   : > { %v977_v34 = vpop.f32.mrb[6].mxu1 }
 0x270   : > { %v2818_v35 = vpop.f32.mrb[7].mxu1 }
 0x28d   : > { %v1186_v43 = vpop.f32.mrb[8].mxu1  ;;  %v1643_v44 = vpop.f32.mrb[0].mxu0 }
 0x28e   : > { %v1187_v46 = vadd.f32 %v1186_v43, %v974_v32  ;;  %v2879_v47 = vadd.f32 %v1643_v44, %v931_v17  ;;  %v2837_v48 = vpop.f32.mrb[9].mxu1  ;;  %v1645_v49 = vpop.f32.mrb[1].mxu0  ;;  %v3260_v43 = vld [vmem:[#allocation17 + $0x70] sm:$0xff]  }
 0x28f   : > { %v2880_v50 = vadd.f32 %v1645_v49, %v933_v18  ;;  %v1189_v51 = vpop.f32.mrb[10].mxu1  ;;  %v1647_v52 = vpop.f32.mrb[2].mxu0  ;;  %v3261_v44 = vld [vmem:[#allocation17 + $0x30] sm:$0xff]  }
 0x290   : > { %v1716_v53 = vadd.f32 %v2879_v47, %v1704_v41  ;;  %v1190_v54 = vadd.f32 %v1189_v51, %v977_v34  ;;  %v2881_v55 = vadd.f32 %v1647_v52, %v935_v19  ;;  %v2838_v56 = vpop.f32.mrb[11].mxu1  ;;  %v1649_v57 = vpop.f32.mrb[3].mxu0  ;;  %v3242_v19 = vld [vmem:[#allocation16 + $0x160] ss:$8 sps:$4 sm:$0xff]  }
 0x291   : > { %v1717_v58 = vadd.f32 %v2880_v50, %v1708_v45  ;;  %v2882_v59 = vadd.f32 %v1649_v57, %v937_v20 }
 0x292   : > { %v1719_v60 = vadd.f32 %v2881_v55, %v1704_v41  ;;  %v1722_v62 = vmax.f32 %v1716_v53, 0.0  ;;  %v3259_v41 = vld [vmem:[#allocation17 + $0x28] sm:$0xff]  }
 0x293   : > { %v1720_v61 = vadd.f32 %v2882_v59, %v1708_v45  ;;  %v1723_v1 = vmax.f32 %v1717_v58, 0.0  ;;  %2788 = vmatpush3.bf16.msra.mxu1 %v3259_v41  ;;  %v3262_v45 = vld [vmem:[#allocation17 + $0x78] sm:$0xff]  }
 0x294   : > { %v1725_v63 = vmax.f32 %v1719_v60, 0.0  ;;  %2789 = vmatprep.subr.bf16.mxu1 %v3260_v43 }
 0x295   : > { %v1726_v2 = vmax.f32 %v1720_v61, 0.0 }
 0x296   : > { %v1777_v3 = vpack.c.bf16 %v1725_v63, %v1722_v62 }
 0x297   : > { %v1778_v4 = vpack.c.bf16 %v1726_v2, %v1723_v1  ;;  %2790 = vmatpush3.bf16.msra.mxu1 %v3261_v44 }
 0x298   : > { %2791 = vmatprep.subr.bf16.mxu1 %v3262_v45 }
 0x299   : > { %2063 = vmatprep.mubr.bf16.mxu0 %v1778_v4 }
 0x29a   : > { %2064 = vmatmul.mubr.bf16.vlgmr.msra.gmra.mrb[4].mxu0 %v1777_v3 }
 0x29b   : > { %2075 = vmatpush1.bf16.msra.mxu0 %v3224_v5  ;;  %2106 = vmatprep.mubr.bf16.mxu0 %v3676_v0 }
 0x29c   : > { %2076 = vmatprep.subr.bf16.mxu0 %v3229_v6  ;;  %2792 = vmatpush3.bf16.msra.mxu1 %v3263_v39 }
 0x29f   : > { %2077 = vmatpush1.bf16.msra.mxu0 %v3227_v7 }
 0x2a0   : > { %2078 = vmatprep.subr.bf16.mxu0 %v3232_v8 }
 0x2a3   : > { %2079 = vmatpush1.bf16.msra.mxu0 %v3230_v42 }
 0x2a4   : > { %2080 = vmatprep.subr.bf16.mxu0 %v3235_v9 }
 0x2a7   : > { %2081 = vmatpush1.bf16.msra.mxu0 %v3233_v10 }
 0x2a8   : > { %2082 = vmatprep.subr.bf16.mxu0 %v3238_v11 }
 0x2ab   : > { %2083 = vmatpush1.bf16.msra.mxu0 %v3236_v12 }
 0x2ac   : > { %2084 = vmatprep.subr.bf16.mxu0 %v3241_v13 }
 0x2ad   : > { %v1433_v16 = vpop.f32.mrb[12].mxu1 }
 0x2ae   : > { %v1442_v0 = vadd.f32 %v1433_v16, %v1187_v46  ;;  %v2857_v17 = vpop.f32.mrb[13].mxu1  ;;  %v1776_v46 = vld [vmem:[%s4448_s1] sm:$0x3] }
 0x2af   : > { %v1436_v18 = vpop.f32.mrb[14].mxu1  ;;  %2085 = vmatpush1.bf16.msra.mxu0 %v3239_v14  ;;  %v1784_v47 = vrot.slane %v1776_v46, %v1703_v38  ;;  %v1788_v48 = vrot.slane %v1776_v46, %v1707_v40  ;;  %v2714_v38 = vld [vmem:[%s4450_s19] ss:$0 sm:$0xff] }
 0x2b0   : > { %v1445_v20 = vadd.f32 %v1436_v18, %v1190_v54  ;;  %v2858_v21 = vpop.f32.mrb[15].mxu1  ;;  %2086 = vmatprep.subr.bf16.mxu0 %v3244_v15 }
 0x2b3   : > { %2087 = vmatpush1.bf16.msra.mxu0 %v3242_v19 }
 0x2b4   : > { %2088 = vmatprep.subr.bf16.mxu0 %v3247_v22 }
 0x2b7   : > { %2089 = vmatpush1.bf16.msra.mxu0 %v3245_v23 }
 0x2cd   : > { %v1686_v26 = vpop.f32.mrb[16].mxu1 }
 0x2ce   : > { %v1695_v27 = vadd.f32 %v1686_v26, %v1442_v0  ;;  %v2877_v28 = vpop.f32.mrb[17].mxu1 }
 0x2cf   : > { %v1689_v29 = vpop.f32.mrb[18].mxu1 }
 0x2d0   : > { %v1718_v30 = vadd.f32 %v1712_v25, %v1695_v27  ;;  %v1698_v31 = vadd.f32 %v1689_v29, %v1445_v20  ;;  %v2878_v32 = vpop.f32.mrb[19].mxu1 }
 0x2d2   : > { %v1721_v33 = vadd.f32 %v1712_v25, %v1698_v31  ;;  %v1724_v34 = vmax.f32 %v1718_v30, 0.0 }
 0x2d4   : > { %v1727_v35 = vmax.f32 %v1721_v33, 0.0 }
 0x2d6   : > { %v1779_v36 = vpack.c.bf16 %v1727_v35, %v1724_v34 }
 0x2d8   : > { %2107 = vmatmul.mubr.bf16.vlgmr.msra.gmra.mrb[4].mxu0 %v1779_v36 }
 0x3ab   : > { %v2108_v49 = vpop.f32.mrb[4].mxu0 }
 0x3ac   : > { %v2883_v50 = vadd.f32 %v2108_v49, %v1784_v47  ;;  %v2110_v51 = vpop.f32.mrb[5].mxu0 }
 0x3ad   : > { %v2884_v52 = vadd.f32 %v2110_v51, %v1788_v48  ;;  %v2112_v53 = vpop.f32.mrb[6].mxu0 }
 0x3ae   : > { %v2885_v54 = vadd.f32 %v2112_v53, %v1784_v47  ;;  %v2114_v55 = vpop.f32.mrb[7].mxu0  ;;  %v2117_v57 = vmax.f32 %v2883_v50, 0.0 }
 0x3af   : > { %v2886_v56 = vadd.f32 %v2114_v55, %v1788_v48  ;;  %v2118_v59 = vmax.f32 %v2884_v52, 0.0 }
 0x3b0   : > { %v2119_v58 = vmax.f32 %v2885_v54, 0.0 }
 0x3b1   : > { %v2120_v60 = vmax.f32 %v2886_v56, 0.0 }
 0x3b2   : > { %v2154_v61 = vpack.c.bf16 %v2119_v58, %v2117_v57 }
 0x3b3   : > { %v2155_v62 = vpack.c.bf16 %v2120_v60, %v2118_v59 }
 0x3b5   : > { %2290 = vmatprep.mubr.bf16.mxu1 %v2155_v62 }
 0x3b6   : > { %2291 = vmatmul.mubr.bf16.vlgmr.msra.gmra.mrb[20].mxu1 %v2154_v61 }
 0x489   : > { %v2793_v37 = vpop.f32.mrb[20].mxu1 }
 0x48a   : > { %v2794_v40 = vpop.f32.mrb[21].mxu1 }
 0x48b   : > { %v2795_v63 = vadd.f32 %v2794_v40, %v2793_v37  ;;  %v2796_v1 = vpop.f32.mrb[22].mxu1 }
 0x48c   : > { %v2797_v2 = vpop.f32.mrb[23].mxu1 }
 0x48d   : > { %v2293_v3 = vadd.f32 %v2795_v63, %v2714_v38  ;;  %v2798_v4 = vadd.f32 %v2797_v2, %v2796_v1 }
 0x48f   : > { %2299 = vst [vmem:[%s692_s7] sm:$0xff] %v2293_v3  ;;  %v2296_v5 = vadd.f32 %v2798_v4, %v2714_v38 }
 0x491   : > { %2300 = vst [vmem:[%s692_s7 + $0x8] sm:$0xff] %v2296_v5 }
 0x492   : > { %3565 = shalt.err (!%p3562_p8)
}
 0x493   : > { %s3566_s18 = scalar_lea.hbm %s4304_s17, 256  ;;  %s3570_s1 = scalar_lea.hbm %s4452_s21, 512 }
 0x494   : > { %p3567_p6 = scmp.ne.s32.totalorder %s4304_s17, %s3566_s18  ;;  %p3571_p10 = scmp.lt.u32.totalorder %s4304_s17, %s4452_s21 }
 0x495   : > { %p3572_p9 = scmp.lt.u32.totalorder %s3570_s1, %s3566_s18  ;;  %p3574_p0 = scmp.lt.u32.totalorder %s3566_s18, %s4304_s17 }
 0x496   : > { %p3568_p3 = pnand %p3567_p6, %p4453_p11 }
 0x497   : > { %p3573_p1 = por %p3572_p9, %p3571_p10 }
 0x498   : > { %p3569_p5 = pneg %p3568_p3 }
 0x499   : > { %p3575_p4 = por %p3574_p0, %p3573_p1 }
 0x49b   : > { %p3576_p7 = pnand %p3575_p4, %p3569_p5 }
 0x49d   : > { %3579 = shalt.err (!%p3576_p7)
}
 0x49e   : > { %s3680_s28 = smov 128   ;;  %s3681_s19 = smov 8  }
 0x49f   : > { %2931 = dma.vmem_to_hbm [thread:$0]  (%p4453_p11), %s4299_s14, 256, %s4304_s17, %s2302_s16, %s3680_s28, %s3680_s28, %s3681_s19  }
 0x4a0 PF: > { %s4454_s7 = sld [smem:[#allocation28_spill]]  ;;  %s4455_s5 = sld [smem:[#allocation36_spill]] }
 0x4a1   : > { %p4457_p13 = scmp.ge.s32.totalorder %s3658_s30, 2 }
 0x4a6   : > { %s2332_s10 = sand.u32 1, %s4454_s7   ;;  %p4456_p12 = scmp.ne.s32.totalorder %s4455_s5, 0 }
 0x4a7   : > { %s2333_s15 = scalar_lea.sflag [#allocation4], %s2332_s10 }
 0x4a8   : > { %p2966_p2 = pnand %p4457_p13, %p4456_p12 }
 0x4aa   : > { %3633 = dma.done.wait (!%p2966_p2), %s2333_s15, 256  }
 0x4ab   : > { %3635 = vsyncadd (!%p2966_p2), %s2333_s15, 4294967040  ;;  %s38_s30 = sadd.s32 1, %s3658_s30   ;;  %s4458_s29 = sld [smem:[#allocation35_spill]] }
 0x4ac   : > { %p35_p8 = scmp.ge.s32.totalorder %s38_s30, 4   ;;  %s4459_s28 = sld [smem:[#allocation30_spill]] }
 0x4ad   : > { %s4460_s12 = sld [smem:[#allocation33_spill]]  ;;  %s4461_s25 = smov %s3642_s26 }
 0x4ae   : > { %s4462_s26 = smov %s3646_s27  ;;  %37 = sbr.rel (!%p35_p8) target bundleno = 23 (0x17), region = 178 }
 0x4b1   : > { %s4463_s27 = smov %s4458_s29 }
 0x4b3   : > { %s4464_s29 = smov %s4460_s12 }
 0x4b5   :  { %2338 = vsyncpa [#allocation3], 1 }
 0x4b6   :  { %2340 = vsyncpa [#allocation3 + $0x1], 1 }
 0x4b7   :  { %2341 = vsyncpa [#allocation6], 1 }
 0x4b8   :  { %2343 = vsyncpa [#allocation6 + $0x1], 1 }
 0x4b9   :  { %2344 = vsyncpa [#allocation9], 1 }
 0x4ba   :  { %2346 = vsyncpa [#allocation9 + $0x1], 1 }
 0x4bb   :  { %2347 = vsyncpa [#allocation12], 1 }
 0x4bc   :  { %2348 = vsyncpa [#allocation15], 1 }
 0x4bd   :  { %2349 = vsyncpa [#allocation18], 1 }
 0x4be   :  { %2350 = vsyncpa [#allocation4], 1 }
 0x4bf   :  { %2352 = vsyncpa [#allocation4 + $0x1], 1 }

</bundles_post_ra>
